<compile_context>
chip_gen: v5e
topology: v5e:2x2
jax: 0.10.0
libtpu: 0.0.40
codegen_flags: <defaults>
</compile_context>

<pallas_src>
import jax
import jax.numpy as jnp
from jax.experimental import pallas as pl
from jax.experimental.pallas import tpu as pltpu

# Problem sizes fixed by the module definition.
C_SE = 50      # squeeze channels
C_MID = 1200   # expanded channels
C_OUT = 200    # projected channels
H = W = 14
N = 1
S = N * H * W          # true flattened spatial size (= 196)
S_PAD = 256            # lane-dense padded spatial size (multiple of 128)
BN_EPS = 1e-3


def _se_conv_bn_kernel(xse_ref, x_ref, w1t_ref, b1_ref, w2_ref,
                       gamma_ref, beta_ref, o_ref):
    # --- SE gate: 1x1 conv (50 -> 1200) + bias + sigmoid, lane-dense row -----
    # xse: [1, C_SE] f32, w1t: [C_SE, C_MID] f32  ->  gate: [1, C_MID] f32
    logits = jnp.dot(xse_ref[...], w1t_ref[...],
                     preferred_element_type=jnp.float32) + b1_ref[...]
    gate = jax.nn.sigmoid(logits)

    # --- fold the per-channel gate into w2's columns -------------------------
    # y = w2 @ (diag(gate) @ x) == (w2 * gate_row) @ x
    # w2: [C_OUT, C_MID] bf16; gate broadcast over sublanes (rows) is free.
    w2_gated = (w2_ref[...].astype(jnp.float32) * gate).astype(jnp.bfloat16)

    # --- 1x1 conv (1200 -> 200), no bias: bf16 x bf16 -> f32 accumulation ----
    # x: [C_MID, S_PAD] bf16 (columns S..S_PAD-1 are zero) -> y: [C_OUT, S_PAD]
    y = jnp.dot(w2_gated, x_ref[...], preferred_element_type=jnp.float32)

    # --- BatchNorm2d (training mode), single pass over y ---------------------
    # Zero-padded columns contribute nothing to the sums; divide by true S.
    s = jnp.sum(y, axis=1, keepdims=True)           # [C_OUT, 1]
    ss = jnp.sum(y * y, axis=1, keepdims=True)      # [C_OUT, 1]
    mean = s * (1.0 / S)
    var = ss * (1.0 / S) - mean * mean              # biased batch variance
    scale = gamma_ref[...] * jax.lax.rsqrt(var + BN_EPS)
    shift = beta_ref[...] - mean * scale
    o_ref[...] = (y * scale + shift).astype(o_ref.dtype)


def se_conv_bn(x393, x390, w1, b1, w2, gamma, beta):
    """x393: [1, C_SE, 1, 1], x390: [1, C_MID, H, W] -> [1, C_OUT, H, W] (f32)."""
    assert x393.shape == (N, C_SE, 1, 1)
    assert x390.shape == (N, C_MID, H, W)

    # Channel-major 2D views; big matmul operands down-cast to bf16.
    xse_row = x393.reshape(1, C_SE).astype(jnp.float32)
    x2d = x390.reshape(C_MID, S).astype(jnp.bfloat16)
    x2d = jnp.pad(x2d, ((0, 0), (0, S_PAD - S)))                 # lane-dense pad
    w1t = w1.reshape(C_MID, C_SE).T.astype(jnp.float32)           # [C_SE, C_MID]
    b1r = b1.reshape(1, C_MID).astype(jnp.float32)
    w2m = w2.reshape(C_OUT, C_MID).astype(jnp.bfloat16)
    gm = gamma.reshape(C_OUT, 1).astype(jnp.float32)
    bm = beta.reshape(C_OUT, 1).astype(jnp.float32)

    bytes_accessed = (xse_row.size * 4 + x2d.size * 2 + w1t.size * 4
                      + b1r.size * 4 + w2m.size * 2 + gm.size * 4 + bm.size * 4
                      + C_OUT * S_PAD * 4)
    cost = pl.CostEstimate(
        flops=2 * (C_MID * C_SE + C_OUT * C_MID * S),
        transcendentals=C_MID + C_OUT,           # sigmoid + rsqrt
        bytes_accessed=bytes_accessed)

    # ~1.5 MiB total resident data: single-block kernel, no grid / tiling
    # needed on any of v5e / v6e / v7x.
    vmem = pl.BlockSpec(memory_space=pltpu.MemorySpace.VMEM)
    out2d = pl.pallas_call(
        _se_conv_bn_kernel,
        out_shape=jax.ShapeDtypeStruct((C_OUT, S_PAD), jnp.float32),
        in_specs=[vmem] * 7,
        out_specs=vmem,
        cost_estimate=cost,
    )(xse_row, x2d, w1t, b1r, w2m, gm, bm)

    return out2d[:, :S].reshape(N, C_OUT, H, W)


def _reference_f32(x393, x390, w1, b1, w2, gamma, beta):
    """Pure-f32 JAX reference mirroring the PyTorch forward (semantic check)."""
    xse = x393.reshape(C_SE)
    gate = jax.nn.sigmoid(w1.reshape(C_MID, C_SE) @ xse + b1.reshape(C_MID))
    x_gated = gate[None, :, None, None] * x390
    y = jnp.einsum('oc,nchw->nohw', w2.reshape(C_OUT, C_MID), x_gated)
    mean = jnp.mean(y, axis=(0, 2, 3), keepdims=True)
    var = jnp.mean((y - mean) ** 2, axis=(0, 2, 3), keepdims=True)
    return ((y - mean) / jnp.sqrt(var + BN_EPS)
            ) * gamma[None, :, None, None] + beta[None, :, None, None]


def _reference_kernel_numerics(x393, x390, w1, b1, w2, gamma, beta):
    """Reference mirroring the kernel's bf16 matmul numerics (tight check)."""
    xse = x393.reshape(1, C_SE).astype(jnp.float32)
    w1t = w1.reshape(C_MID, C_SE).T.astype(jnp.float32)
    logits = jax.lax.dot(xse, w1t, precision=jax.lax.Precision.HIGHEST) \
        + b1.reshape(1, C_MID)
    gate = jax.nn.sigmoid(logits)                                  # [1, C_MID]
    w2g = (w2.reshape(C_OUT, C_MID).astype(jnp.bfloat16).astype(jnp.float32)
           * gate).astype(jnp.bfloat16)
    xb = x390.reshape(C_MID, S).astype(jnp.bfloat16)
    y = jnp.dot(w2g, xb, preferred_element_type=jnp.float32)       # [C_OUT, S]
    mean = jnp.sum(y, axis=1, keepdims=True) / S
    var = jnp.sum(y * y, axis=1, keepdims=True) / S - mean * mean
    scale = gamma.reshape(C_OUT, 1) * jax.lax.rsqrt(var + BN_EPS)
    shift = beta.reshape(C_OUT, 1) - mean * scale
    return (y * scale + shift).reshape(N, C_OUT, H, W)


if __name__ == "__main__":
    key = jax.random.PRNGKey(0)
    k_x393, k_x390, k_w1, k_b1, k_w2, k_g, k_b = jax.random.split(key, 7)

    # Deterministic inputs at the shapes the module's forward implies.
    x393 = jax.random.normal(k_x393, (N, C_SE, 1, 1), dtype=jnp.float32)
    x390 = jax.random.normal(k_x390, (N, C_MID, H, W), dtype=jnp.float32)

    # Deterministic parameter init (synthetic; shapes from __init__).
    w1 = 0.05 * jax.random.normal(k_w1, (C_MID, C_SE, 1, 1), dtype=jnp.float32)
    b1 = 0.05 * jax.random.normal(k_b1, (C_MID,), dtype=jnp.float32)
    w2 = 0.05 * jax.random.normal(k_w2, (C_OUT, C_MID, 1, 1), dtype=jnp.float32)
    gamma = 1.0 + 0.1 * jax.random.normal(k_g, (C_OUT,), dtype=jnp.float32)
    beta = 0.1 * jax.random.normal(k_b, (C_OUT,), dtype=jnp.float32)

    out = se_conv_bn(x393, x390, w1, b1, w2, gamma, beta)
    out = jax.block_until_ready(out)
    assert out.shape == (N, C_OUT, H, W)

    # Tight check against a reference with the same bf16 matmul numerics.
    ref_bf = _reference_kernel_numerics(x393, x390, w1, b1, w2, gamma, beta)
    assert jnp.allclose(out, ref_bf, atol=5e-3, rtol=5e-3), \
        "mismatch vs bf16-numerics reference"

    # Looser semantic check against the pure-f32 PyTorch-style reference
    # (tolerance sized for bf16 matmul operands).
    ref_f32 = _reference_f32(x393, x390, w1, b1, w2, gamma, beta)
    assert jnp.allclose(out, ref_f32, atol=5e-2, rtol=5e-2), \
        "mismatch vs f32 reference"

    print("KERNEL_OK")
</pallas_src>

<mosaic_0001>
module attributes {stable_mosaic.version = 11 : i64} {
  func.func @_se_conv_bn_kernel(%arg0: memref<1x50xf32, #tpu.memory_space<vmem>>, %arg1: memref<1200x256xbf16, #tpu.memory_space<vmem>>, %arg2: memref<50x1200xf32, #tpu.memory_space<vmem>>, %arg3: memref<1x1200xf32, #tpu.memory_space<vmem>>, %arg4: memref<200x1200xbf16, #tpu.memory_space<vmem>>, %arg5: memref<200x1xf32, #tpu.memory_space<vmem>>, %arg6: memref<200x1xf32, #tpu.memory_space<vmem>>, %arg7: memref<200x256xf32, #tpu.memory_space<vmem>>) attributes {dimension_semantics = [], scalar_prefetch = 0 : i64, scratch_operands = 0 : i64, tpu.core_type = #tpu.core_type<tc>} {
    %c0 = arith.constant 0 : index
    %c0_0 = arith.constant 0 : index
    %0 = vector.load %arg0[%c0, %c0_0] : memref<1x50xf32, #tpu.memory_space<vmem>>, vector<1x50xf32>
    %c0_1 = arith.constant 0 : index
    %c0_2 = arith.constant 0 : index
    %1 = vector.load %arg2[%c0_1, %c0_2] : memref<50x1200xf32, #tpu.memory_space<vmem>>, vector<50x1200xf32>
    %cst = arith.constant dense<0.000000e+00> : vector<1x1200xf32>
    %2 = tpu.matmul %0, %1, %cst {dimension_numbers = #tpu.dot_dimension_numbers<[1], [0], [0], [1], [0, 0, 1, 1], [], []>} : vector<1x50xf32>, vector<50x1200xf32>, vector<1x1200xf32> -> vector<1x1200xf32>
    %c0_3 = arith.constant 0 : index
    %c0_4 = arith.constant 0 : index
    %3 = vector.load %arg3[%c0_3, %c0_4] : memref<1x1200xf32, #tpu.memory_space<vmem>>, vector<1x1200xf32>
    %4 = arith.addf %2, %3 : vector<1x1200xf32>
    %5 = arith.negf %4 : vector<1x1200xf32>
    %6 = math.exp %5 : vector<1x1200xf32>
    %cst_5 = arith.constant 1.000000e+00 : f32
    %7 = vector.broadcast %cst_5 : f32 to vector<1x1200xf32>
    %8 = arith.addf %7, %6 : vector<1x1200xf32>
    %9 = arith.divf %7, %8 : vector<1x1200xf32>
    %c0_6 = arith.constant 0 : index
    %c0_7 = arith.constant 0 : index
    %10 = vector.load %arg4[%c0_6, %c0_7] : memref<200x1200xbf16, #tpu.memory_space<vmem>>, vector<200x1200xbf16>
    %11 = arith.extf %10 : vector<200x1200xbf16> to vector<200x1200xf32>
    %12 = vector.broadcast %9 : vector<1x1200xf32> to vector<200x1200xf32>
    %13 = arith.mulf %11, %12 : vector<200x1200xf32>
    %14 = arith.truncf %13 : vector<200x1200xf32> to vector<200x1200xbf16>
    %c0_8 = arith.constant 0 : index
    %c0_9 = arith.constant 0 : index
    %15 = vector.load %arg1[%c0_8, %c0_9] : memref<1200x256xbf16, #tpu.memory_space<vmem>>, vector<1200x256xbf16>
    %cst_10 = arith.constant dense<0.000000e+00> : vector<200x256xf32>
    %16 = tpu.matmul %14, %15, %cst_10 {dimension_numbers = #tpu.dot_dimension_numbers<[1], [0], [0], [1], [0, 0, 1, 1], [], []>} : vector<200x1200xbf16>, vector<1200x256xbf16>, vector<200x256xf32> -> vector<200x256xf32>
    %cst_11 = arith.constant dense<0.000000e+00> : vector<200xf32>
    %17 = vector.multi_reduction <add>, %16, %cst_11 [1] : vector<200x256xf32> to vector<200xf32>
    %18 = vector.shape_cast %17 : vector<200xf32> to vector<200x1xf32>
    %19 = arith.mulf %16, %16 : vector<200x256xf32>
    %cst_12 = arith.constant dense<0.000000e+00> : vector<200xf32>
    %20 = vector.multi_reduction <add>, %19, %cst_12 [1] : vector<200x256xf32> to vector<200xf32>
    %21 = vector.shape_cast %20 : vector<200xf32> to vector<200x1xf32>
    %cst_13 = arith.constant 0.00510204071 : f32
    %22 = vector.broadcast %cst_13 : f32 to vector<200x1xf32>
    %23 = arith.mulf %18, %22 : vector<200x1xf32>
    %cst_14 = arith.constant 0.00510204071 : f32
    %24 = vector.broadcast %cst_14 : f32 to vector<200x1xf32>
    %25 = arith.mulf %21, %24 : vector<200x1xf32>
    %26 = arith.mulf %23, %23 : vector<200x1xf32>
    %27 = arith.subf %25, %26 : vector<200x1xf32>
    %c0_15 = arith.constant 0 : index
    %c0_16 = arith.constant 0 : index
    %28 = vector.load %arg5[%c0_15, %c0_16] : memref<200x1xf32, #tpu.memory_space<vmem>>, vector<200x1xf32>
    %cst_17 = arith.constant 1.000000e-03 : f32
    %29 = vector.broadcast %cst_17 : f32 to vector<200x1xf32>
    %30 = arith.addf %27, %29 : vector<200x1xf32>
    %31 = math.rsqrt %30 : vector<200x1xf32>
    %32 = arith.mulf %28, %31 : vector<200x1xf32>
    %c0_18 = arith.constant 0 : index
    %c0_19 = arith.constant 0 : index
    %33 = vector.load %arg6[%c0_18, %c0_19] : memref<200x1xf32, #tpu.memory_space<vmem>>, vector<200x1xf32>
    %34 = arith.mulf %23, %32 : vector<200x1xf32>
    %35 = arith.subf %33, %34 : vector<200x1xf32>
    %36 = vector.broadcast %32 : vector<200x1xf32> to vector<200x256xf32>
    %37 = arith.mulf %16, %36 : vector<200x256xf32>
    %38 = vector.broadcast %35 : vector<200x1xf32> to vector<200x256xf32>
    %39 = arith.addf %37, %38 : vector<200x256xf32>
    %c0_20 = arith.constant 0 : index
    %c0_21 = arith.constant 0 : index
    %40 = vector.load %arg7[%c0_20, %c0_21] : memref<200x256xf32, #tpu.memory_space<vmem>>, vector<200x256xf32>
    tpu.vector_store %arg7[%c0_20, %c0_21], %39 {strides = array<i32>} : memref<200x256xf32, #tpu.memory_space<vmem>>, vector<200x256xf32>,
    return
  }
}

</mosaic_0001>

<bundles_post_ra>
// kernel: tpu_custom_call.1
= control target key start
LH: loop header
LB: loop body
LE: loop exit
PB: predicated region body
PF: predicated region fallthrough
CT: control target
= control target key end

     0   :  { %12 = vsyncpa [#allocation3], 0  ;;  %s8397_s0 = inlined_call_operand.vmem [shape: f32[1,50], index: 0, kind: input, shape index: {}]   ;;  %s8398_s1 = inlined_call_operand.hbm [shape: bf16[1200,256], index: 1, kind: input, shape index: {}]   ;;  %s8399_s2 = inlined_call_operand.hbm [shape: f32[50,1200], index: 2, kind: input, shape index: {}]   ;;  %s8400_s3 = inlined_call_operand.vmem [shape: f32[1,1200], index: 3, kind: input, shape index: {}]   ;;  %s8401_s4 = inlined_call_operand.hbm [shape: bf16[200,1200], index: 4, kind: input, shape index: {}]   ;;  %s8402_s5 = inlined_call_operand.vmem [shape: f32[200,1], index: 5, kind: input, shape index: {}]   ;;  %s8403_s6 = inlined_call_operand.vmem [shape: f32[200,1], index: 6, kind: input, shape index: {}]   ;;  %s8404_s7 = inlined_call_operand.hbm [shape: f32[200,256], index: 7, kind: output, shape index: {}]  }
   0x1   :  { %13 = vsyncpa [#allocation6], 0  ;;  %s34_s26 = sshll.u32 %s8399_s2, 4  ;;  %s35_s26 = int_to_ptr.hbm [resolvable:$true] %s34_s26 }
   0x2   :  { %14 = vsyncpa [#allocation4], 0  ;;  %s5895_s27 = smov [#allocation5]   ;;  %s21_s8 = sshll.u32 %s8398_s1, 4  ;;  %s22_s8 = int_to_ptr.hbm [resolvable:$true] %s21_s8 }
   0x3   :  { %s36_s28 = sshll.u32 %s5895_s27, 4  ;;  %s5896_s9 = smov 1280   ;;  %s37_s28 = int_to_ptr.vmem [resolvable:$true] %s36_s28 }
   0x4   :  { %s5897_s10 = smov 80   ;;  %s5898_s11 = smov [#allocation2]  }
   0x5   :  { %42 = dma.hbm_to_vmem [thread:$0]  %s35_s26, 8960, %s37_s28, [#allocation6], %s5896_s9, %s5896_s9, %s5897_s10  }
   0x6   :  { %s23_s12 = sshll.u32 %s5898_s11, 4  ;;  %s5899_s13 = smov 128   ;;  %s24_s12 = int_to_ptr.vmem [resolvable:$true] %s23_s12 }
   0x7   :  { %s5900_s14 = smov 8   ;;  %s49_s16 = sshll.u32 %s8401_s4, 4  ;;  %s50_s16 = int_to_ptr.hbm [resolvable:$true] %s49_s16 }
   0x8   :  { %29 = dma.hbm_to_vmem [thread:$0]  %s22_s8, 19200, %s24_s12, [#allocation3], %s5899_s13, %s5899_s13, %s5900_s14  }
   0x9   :  { %s5901_s17 = smov [#allocation7]   ;;  %s5902_s19 = smov 640  }
   0xa   :  { %s51_s18 = sshll.u32 %s5901_s17, 4  ;;  %s5903_s1 = smov 40   ;;  %s52_s18 = int_to_ptr.vmem [resolvable:$true] %s51_s18 }
   0xb   :  { %57 = dma.hbm_to_vmem [thread:$0]  %s50_s16, 16000, %s52_s18, [#allocation6], %s5902_s19, %s5902_s19, %s5903_s1  }
   0xc   :  { %5889 = dma.done.wait [#allocation3], 19200  }
   0xd   :  { %5890 = vsyncadd [#allocation3], 4294948096 }
   0xe   :  { %5891 = dma.done.wait [#allocation6], 24960  }
   0xf   :  { %5892 = vsyncadd [#allocation6], 4294942336  ;;  %vm174_vm0 = vcmask 1041408   ;;  %v136_v0 = vld [vmem:[#allocation5 + $0x1e0] sm:$0x3]  ;;  %v126_v4 = vld [vmem:[#allocation5 + $0x190] sm:$0xff] }
  0x10   :  { %v137_v1 = vld [vmem:[#allocation5 + $0x1e8] sm:$0x3]  ;;  %v138_v2 = vld [vmem:[#allocation5 + $0x1f0] sm:$0x3]  ;;  %4880 = vmatpush.msk.msra.mxu0 %vm174_vm0, %v136_v0  ;;  %v139_v3 = vld [vmem:[#allocation5 + $0x1f8] sm:$0x3] }
  0x11   :  { %4882 = vmatpush.msk.msra.mxu1 %vm174_vm0, %v137_v1  ;;  %v127_v5 = vld [vmem:[#allocation5 + $0x198] sm:$0xff]  ;;  %4884 = vmatpush.msk.msra.mxu2 %vm174_vm0, %v138_v2  ;;  %v128_v6 = vld [vmem:[#allocation5 + $0x1a0] sm:$0xff]  ;;  %v129_v7 = vld [vmem:[#allocation5 + $0x1a8] sm:$0xff]  ;;  %vm170_vm1 = vcmask 408576   ;;  %s4866_s19 = sshll.u32 %s8404_s7, 4  ;;  %s5906_s1 = smov 256   ;;  %s4867_s19 = int_to_ptr.hbm [resolvable:$true] %s4866_s19 }
  0x12   :  { %4886 = vmatpush.msk.msra.mxu3 %vm174_vm0, %v139_v3  ;;  %v116_v8 = vld [vmem:[#allocation5 + $0x140] sm:$0xff]  ;;  %215 = vmatpush.msra.mxu0 %v126_v4  ;;  %v117_v9 = vld [vmem:[#allocation5 + $0x148] sm:$0xff]  ;;  %v118_v10 = vld [vmem:[#allocation5 + $0x150] sm:$0xff]  ;;  %s5907_s4 = smov 16  }
  0x13   :  { %235 = vmatpush.msra.mxu1 %v127_v5  ;;  %v119_v11 = vld [vmem:[#allocation5 + $0x158] sm:$0xff]  ;;  %255 = vmatpush.msra.mxu2 %v128_v6  ;;  %v106_v12 = vld [vmem:[#allocation5 + $0xf0] sm:$0xff]  ;;  %v108_v14 = vld [vmem:[#allocation5 + $0x100] sm:$0xff] }
  0x14   :  { %275 = vmatpush.msra.mxu3 %v129_v7  ;;  %v107_v13 = vld [vmem:[#allocation5 + $0xf8] sm:$0xff]  ;;  %216 = vmatpush.msra.mxu0 %v116_v8  ;;  %v109_v15 = vld [vmem:[#allocation5 + $0x108] sm:$0xff]  ;;  %v96_v16 = vld [vmem:[#allocation5 + $0xa0] sm:$0xff] }
  0x15   :  { %236 = vmatpush.msra.mxu1 %v117_v9  ;;  %256 = vmatpush.msra.mxu2 %v118_v10  ;;  %v97_v17 = vld [vmem:[#allocation5 + $0xa8] sm:$0xff]  ;;  %v98_v18 = vld [vmem:[#allocation5 + $0xb0] sm:$0xff]  ;;  %v99_v19 = vld [vmem:[#allocation5 + $0xb8] sm:$0xff] }
  0x16   :  { %276 = vmatpush.msra.mxu3 %v119_v11  ;;  %217 = vmatpush.msra.mxu0 %v106_v12  ;;  %v86_v20 = vld [vmem:[#allocation5 + $0x50] sm:$0xff]  ;;  %v87_v21 = vld [vmem:[#allocation5 + $0x58] sm:$0xff]  ;;  %v88_v22 = vld [vmem:[#allocation5 + $0x60] sm:$0xff] }
  0x17   :  { %237 = vmatpush.msra.mxu1 %v107_v13  ;;  %257 = vmatpush.msra.mxu2 %v108_v14  ;;  %v89_v23 = vld [vmem:[#allocation5 + $0x68] sm:$0xff]  ;;  %v76_v24 = vld [vmem:[#allocation5] sm:$0xff]  ;;  %v78_v26 = vld [vmem:[#allocation5 + $0x10] sm:$0xff] }
  0x18   :  { %277 = vmatpush.msra.mxu3 %v109_v15  ;;  %218 = vmatpush.msra.mxu0 %v96_v16  ;;  %v77_v25 = vld [vmem:[#allocation5 + $0x8] sm:$0xff]  ;;  %v79_v27 = vld [vmem:[#allocation5 + $0x18] sm:$0xff]  ;;  %v5964_v28 = vld [vmem:[%s8397_s0] sm:$0x1] }
  0x19   :  { %238 = vmatpush.msra.mxu1 %v97_v17  ;;  %258 = vmatpush.msra.mxu2 %v98_v18  ;;  %v140_v29 = vld [vmem:[#allocation5 + $0x200] sm:$0x3]  ;;  %v141_v30 = vld [vmem:[#allocation5 + $0x208] sm:$0x3]  ;;  %v142_v31 = vld [vmem:[#allocation5 + $0x210] sm:$0x3] }
  0x1a   :  { %278 = vmatpush.msra.mxu3 %v99_v19  ;;  %219 = vmatpush.msra.mxu0 %v86_v20  ;;  %v143_v32 = vld [vmem:[#allocation5 + $0x218] sm:$0x3]  ;;  %v130_v33 = vld [vmem:[#allocation5 + $0x1b0] sm:$0xff]  ;;  %v132_v35 = vld [vmem:[#allocation5 + $0x1c0] sm:$0xff] }
  0x1b   :  { %239 = vmatpush.msra.mxu1 %v87_v21  ;;  %259 = vmatpush.msra.mxu2 %v88_v22  ;;  %v131_v34 = vld [vmem:[#allocation5 + $0x1b8] sm:$0xff]  ;;  %v133_v36 = vld [vmem:[#allocation5 + $0x1c8] sm:$0xff]  ;;  %v120_v37 = vld [vmem:[#allocation5 + $0x160] sm:$0xff] }
  0x1c   :  { %279 = vmatpush.msra.mxu3 %v89_v23  ;;  %220 = vmatpush.msra.mxu0 %v76_v24  ;;  %v121_v38 = vld [vmem:[#allocation5 + $0x168] sm:$0xff]  ;;  %v122_v39 = vld [vmem:[#allocation5 + $0x170] sm:$0xff]  ;;  %v123_v40 = vld [vmem:[#allocation5 + $0x178] sm:$0xff] }
  0x1d   :  { %240 = vmatpush.msra.mxu1 %v77_v25  ;;  %260 = vmatpush.msra.mxu2 %v78_v26  ;;  %v110_v41 = vld [vmem:[#allocation5 + $0x110] sm:$0xff]  ;;  %v111_v42 = vld [vmem:[#allocation5 + $0x118] sm:$0xff]  ;;  %v112_v43 = vld [vmem:[#allocation5 + $0x120] sm:$0xff] }
  0x1e   :  { %280 = vmatpush.msra.mxu3 %v79_v27  ;;  %4881 = vmatmul.msk.f32.vlgmr.msra.gmra.mxu0 %vm170_vm1, %v5964_v28  ;;  %v113_v44 = vld [vmem:[#allocation5 + $0x128] sm:$0xff]  ;;  %v100_v45 = vld [vmem:[#allocation5 + $0xc0] sm:$0xff]  ;;  %v90_v47 = vld [vmem:[#allocation5 + $0x70] sm:$0xff] }
  0x1f   :  { %4883 = vmatmul.msk.f32.vlgmr.msra.gmra.mxu1 %vm170_vm1, %v5964_v28  ;;  %4885 = vmatmul.msk.f32.vlgmr.msra.gmra.mxu2 %vm170_vm1, %v5964_v28  ;;  %v101_v46 = vld [vmem:[#allocation5 + $0xc8] sm:$0xff]  ;;  %v91_v48 = vld [vmem:[#allocation5 + $0x78] sm:$0xff]  ;;  %v80_v49 = vld [vmem:[#allocation5 + $0x20] sm:$0xff] }
  0x20   :  { %4887 = vmatmul.msk.f32.vlgmr.msra.gmra.mxu3 %vm170_vm1, %v5964_v28  ;;  %4888 = vmatpush.msk.msrb.mxu0 %vm174_vm0, %v140_v29  ;;  %v81_v50 = vld [vmem:[#allocation5 + $0x28] sm:$0xff]  ;;  %v144_v51 = vld [vmem:[#allocation5 + $0x220] sm:$0x3]  ;;  %v102_v53 = vld [vmem:[#allocation5 + $0xd0] sm:$0xff] }
  0x21   :  { %4890 = vmatpush.msk.msrb.mxu1 %vm174_vm0, %v141_v30  ;;  %4892 = vmatpush.msk.msrb.mxu2 %vm174_vm0, %v142_v31  ;;  %v145_v52 = vld [vmem:[#allocation5 + $0x228] sm:$0x3]  ;;  %v103_v54 = vld [vmem:[#allocation5 + $0xd8] sm:$0xff]  ;;  %v134_v55 = vld [vmem:[#allocation5 + $0x1d0] sm:$0xff] }
  0x22   :  { %4894 = vmatpush.msk.msrb.mxu3 %vm174_vm0, %v143_v32  ;;  %295 = vmatpush.msrb.mxu0 %v130_v33  ;;  %v135_v56 = vld [vmem:[#allocation5 + $0x1d8] sm:$0xff]  ;;  %v92_v57 = vld [vmem:[#allocation5 + $0x80] sm:$0xff]  ;;  %v93_v58 = vld [vmem:[#allocation5 + $0x88] sm:$0xff] }
  0x23   :  { %315 = vmatpush.msrb.mxu1 %v131_v34  ;;  %335 = vmatpush.msrb.mxu2 %v132_v35  ;;  %v124_v59 = vld [vmem:[#allocation5 + $0x180] sm:$0xff]  ;;  %v125_v60 = vld [vmem:[#allocation5 + $0x188] sm:$0xff]  ;;  %v82_v61 = vld [vmem:[#allocation5 + $0x30] sm:$0xff] }
  0x24   :  { %355 = vmatpush.msrb.mxu3 %v133_v36  ;;  %296 = vmatpush.msrb.mxu0 %v120_v37  ;;  %v83_v62 = vld [vmem:[#allocation5 + $0x38] sm:$0xff]  ;;  %v114_v63 = vld [vmem:[#allocation5 + $0x130] sm:$0xff]  ;;  %v4968_v1 = vld [vmem:[#allocation2 + $0x70] sm:$0xf] }
  0x25   :  { %316 = vmatpush.msrb.mxu1 %v121_v38  ;;  %336 = vmatpush.msrb.mxu2 %v122_v39  ;;  %v115_v0 = vld [vmem:[#allocation5 + $0x138] sm:$0xff]  ;;  %v5551_v2 = vld [vmem:[#allocation2 + $0x74] sm:$0xf0]  ;;  %v5032_v3 = vld [vmem:[#allocation2 + $0xf0] sm:$0xf] }
  0x26   :  { %356 = vmatpush.msrb.mxu3 %v123_v40  ;;  %297 = vmatpush.msrb.mxu0 %v110_v41  ;;  %v4969_v4 = vor.u32 %v5551_v2, %v4968_v1  ;;  %v5567_v5 = vld [vmem:[#allocation2 + $0xf4] sm:$0xf0]  ;;  %v104_v7 = vld [vmem:[#allocation5 + $0xe0] sm:$0xff]  ;;  %v4960_v9 = vld [vmem:[#allocation2 + $0x60] sm:$0xf] }
  0x27   :  { %317 = vmatpush.msrb.mxu1 %v111_v42  ;;  %337 = vmatpush.msrb.mxu2 %v112_v43  ;;  %v5033_v6 = vor.u32 %v5567_v5, %v5032_v3  ;;  %v105_v8 = vld [vmem:[#allocation5 + $0xe8] sm:$0xff]  ;;  %v5549_v10 = vld [vmem:[#allocation2 + $0x64] sm:$0xf0]  ;;  %v5024_v11 = vld [vmem:[#allocation2 + $0xe0] sm:$0xf] }
  0x28   :  { %357 = vmatpush.msrb.mxu3 %v113_v44  ;;  %298 = vmatpush.msrb.mxu0 %v100_v45  ;;  %v94_v12 = vld [vmem:[#allocation5 + $0x90] sm:$0xff]  ;;  %v95_v13 = vld [vmem:[#allocation5 + $0x98] sm:$0xff]  ;;  %v4961_v14 = vor.u32 %v5549_v10, %v4960_v9  ;;  %v5096_v17 = vld [vmem:[#allocation2 + $0x170] sm:$0xf] }
  0x29   :  { %318 = vmatpush.msrb.mxu1 %v101_v46  ;;  %338 = vmatpush.msrb.mxu2 %v102_v53  ;;  %v5565_v15 = vld [vmem:[#allocation2 + $0xe4] sm:$0xf0]  ;;  %v5583_v18 = vld [vmem:[#allocation2 + $0x174] sm:$0xf0]  ;;  %v5160_v19 = vld [vmem:[#allocation2 + $0x1f0] sm:$0xf] }
  0x2a   :  { %299 = vmatpush.msrb.mxu0 %v90_v47  ;;  %358 = vmatpush.msrb.mxu3 %v103_v54  ;;  %v5025_v16 = vor.u32 %v5565_v15, %v5024_v11  ;;  %v84_v20 = vld [vmem:[#allocation5 + $0x40] sm:$0xff]  ;;  %v85_v21 = vld [vmem:[#allocation5 + $0x48] sm:$0xff]  ;;  %v5097_v22 = vor.u32 %v5583_v18, %v5096_v17  ;;  %v5088_v32 = vld [vmem:[#allocation2 + $0x160] sm:$0xf] }
  0x2b   :  { %319 = vmatpush.msrb.mxu1 %v91_v48  ;;  %339 = vmatpush.msrb.mxu2 %v92_v57  ;;  %v5599_v23 = vld [vmem:[#allocation2 + $0x1f4] sm:$0xf0]  ;;  %v4952_v25 = vld [vmem:[#allocation2 + $0x50] sm:$0xf]  ;;  %v5581_v33 = vld [vmem:[#allocation2 + $0x164] sm:$0xf0] }
  0x2c   :  { %300 = vmatpush.msrb.mxu0 %v80_v49  ;;  %359 = vmatpush.msrb.mxu3 %v93_v58  ;;  %v5161_v24 = vor.u32 %v5599_v23, %v5160_v19  ;;  %v5547_v26 = vld [vmem:[#allocation2 + $0x54] sm:$0xf0]  ;;  %v5016_v27 = vld [vmem:[#allocation2 + $0xd0] sm:$0xf]  ;;  %v5152_v34 = vld [vmem:[#allocation2 + $0x1e0] sm:$0xf]  ;;  %v5089_v35 = vor.u32 %v5581_v33, %v5088_v32 }
  0x2d   :  { %320 = vmatpush.msrb.mxu1 %v81_v50  ;;  %4889 = vmatmul.msk.f32.vlgmr.msrb.gmra.mxu0 %vm170_vm1, %v5964_v28  ;;  %v4953_v29 = vor.u32 %v5547_v26, %v4952_v25  ;;  %v5563_v30 = vld [vmem:[#allocation2 + $0xd4] sm:$0xf0]  ;;  %v5597_v36 = vld [vmem:[#allocation2 + $0x1e4] sm:$0xf0]  ;;  %v4944_v38 = vld [vmem:[#allocation2 + $0x40] sm:$0xf] }
  0x2e   :  { %4896 = vmatpush.msk.msra.mxu0 %vm174_vm0, %v144_v51  ;;  %4891 = vmatmul.msk.f32.vlgmr.msrb.gmra.mxu1 %vm170_vm1, %v5964_v28  ;;  %v5017_v31 = vor.u32 %v5563_v30, %v5016_v27  ;;  %v5153_v37 = vor.u32 %v5597_v36, %v5152_v34  ;;  %v5545_v39 = vld [vmem:[#allocation2 + $0x44] sm:$0xf0]  ;;  %v5008_v40 = vld [vmem:[#allocation2 + $0xc0] sm:$0xf]  ;;  %v5080_v44 = vld [vmem:[#allocation2 + $0x150] sm:$0xf] }
  0x2f   :  { %4898 = vmatpush.msk.msra.mxu1 %vm174_vm0, %v145_v52  ;;  %340 = vmatpush.msrb.mxu2 %v82_v61  ;;  %v4945_v41 = vor.u32 %v5545_v39, %v4944_v38  ;;  %v5561_v42 = vld [vmem:[#allocation2 + $0xc4] sm:$0xf0]  ;;  %v5579_v45 = vld [vmem:[#allocation2 + $0x154] sm:$0xf0]  ;;  %v5144_v46 = vld [vmem:[#allocation2 + $0x1d0] sm:$0xf] }
  0x30   :  { %375 = vmatpush.msra.mxu0 %v134_v55  ;;  %360 = vmatpush.msrb.mxu3 %v83_v62  ;;  %v5009_v43 = vor.u32 %v5561_v42, %v5008_v40  ;;  %v5081_v47 = vor.u32 %v5579_v45, %v5080_v44  ;;  %v5595_v48 = vld [vmem:[#allocation2 + $0x1d4] sm:$0xf0]  ;;  %v4936_v50 = vld [vmem:[#allocation2 + $0x30] sm:$0xf]  ;;  %v5995_v52 = vld [vmem:[%s8400_s3] sm:$0xff] }
  0x31   :  { %395 = vmatpush.msra.mxu1 %v135_v56  ;;  %4893 = vmatmul.msk.f32.vlgmr.msrb.gmra.mxu2 %vm170_vm1, %v5964_v28  ;;  %v5145_v49 = vor.u32 %v5595_v48, %v5144_v46  ;;  %v5000_v51 = vld [vmem:[#allocation2 + $0xb0] sm:$0xf]  ;;  %v5559_v54 = vld [vmem:[#allocation2 + $0xb4] sm:$0xf0]  ;;  %v5072_v56 = vld [vmem:[#allocation2 + $0x140] sm:$0xf] }
  0x32   :  { %376 = vmatpush.msra.mxu0 %v124_v59  ;;  %4895 = vmatmul.msk.f32.vlgmr.msrb.gmra.mxu3 %vm170_vm1, %v5964_v28  ;;  %v5001_v55 = vor.u32 %v5559_v54, %v5000_v51  ;;  %v5577_v57 = vld [vmem:[#allocation2 + $0x144] sm:$0xf0]  ;;  %v5136_v58 = vld [vmem:[#allocation2 + $0x1c0] sm:$0xf]  ;;  %v150_v1 = vperm.slane %v5995_v52, 0  ;;  %v151_v2 = vperm.slane %v5995_v52, 1 }
  0x33   :  { %396 = vmatpush.msra.mxu1 %v125_v60  ;;  %2300 = vmatpush.bf16.msra.mxu2 %v4969_v4  ;;  %v5073_v59 = vor.u32 %v5577_v57, %v5072_v56  ;;  %v5593_v60 = vld [vmem:[#allocation2 + $0x1c4] sm:$0xf0]  ;;  %v4928_v62 = vld [vmem:[#allocation2 + $0x20] sm:$0xf]  ;;  %v5591_v10 = vld [vmem:[#allocation2 + $0x1b4] sm:$0xf0] }
  0x34   :  { %377 = vmatpush.msra.mxu0 %v114_v63  ;;  %2373 = vmatpush.bf16.msra.mxu3 %v5033_v6  ;;  %v5137_v61 = vor.u32 %v5593_v60, %v5136_v58  ;;  %v5541_v63 = vld [vmem:[#allocation2 + $0x24] sm:$0xf0]  ;;  %v5064_v6 = vld [vmem:[#allocation2 + $0x130] sm:$0xf]  ;;  %v5555_v18 = vld [vmem:[#allocation2 + $0x94] sm:$0xf0] }
  0x35   :  { %397 = vmatpush.msra.mxu1 %v115_v0  ;;  %v4992_v0 = vld [vmem:[#allocation2 + $0xa0] sm:$0xf]  ;;  %v4929_v3 = vor.u32 %v5541_v63, %v4928_v62  ;;  %v5557_v4 = vld [vmem:[#allocation2 + $0xa4] sm:$0xf0]  ;;  %v152_v25 = vperm.slane %v5995_v52, 2  ;;  %v153_v26 = vperm.slane %v5995_v52, 3 }
  0x36   :  { %378 = vmatpush.msra.mxu0 %v104_v7  ;;  %v4993_v5 = vor.u32 %v5557_v4, %v4992_v0  ;;  %v5575_v7 = vld [vmem:[#allocation2 + $0x134] sm:$0xf0]  ;;  %v5573_v23 = vld [vmem:[#allocation2 + $0x124] sm:$0xf0]  ;;  %v4912_v33 = vld [vmem:[#allocation2] sm:$0xf] }
  0x37   :  { %398 = vmatpush.msra.mxu1 %v105_v8  ;;  %2301 = vmatpush.bf16.msra.mxu2 %v4961_v14  ;;  %v5128_v8 = vld [vmem:[#allocation2 + $0x1b0] sm:$0xf]  ;;  %v5065_v9 = vor.u32 %v5575_v7, %v5064_v6  ;;  %v5537_v34 = vld [vmem:[#allocation2 + $0x4] sm:$0xf0]  ;;  %v5571_v40 = vld [vmem:[#allocation2 + $0x114] sm:$0xf0] }
  0x38   :  { %379 = vmatpush.msra.mxu0 %v94_v12  ;;  %2374 = vmatpush.bf16.msra.mxu3 %v5025_v16  ;;  %v5129_v11 = vor.u32 %v5591_v10, %v5128_v8  ;;  %v4920_v12 = vld [vmem:[#allocation2 + $0x10] sm:$0xf]  ;;  %v5553_v36 = vld [vmem:[#allocation2 + $0x84] sm:$0xf0]  ;;  %v5631_v52 = vld [vmem:[#allocation2 + $0x2f4] sm:$0xf0] }
  0x39   :  { %399 = vmatpush.msra.mxu1 %v95_v13  ;;  %v5539_v13 = vld [vmem:[#allocation2 + $0x14] sm:$0xf0]  ;;  %v4984_v14 = vld [vmem:[#allocation2 + $0x90] sm:$0xf]  ;;  %v5569_v54 = vld [vmem:[#allocation2 + $0x104] sm:$0xf0] }
  0x3a   :  { %380 = vmatpush.msra.mxu0 %v84_v20  ;;  %v4921_v17 = vor.u32 %v5539_v13, %v4920_v12  ;;  %v5048_v39 = vld [vmem:[#allocation2 + $0x110] sm:$0xf]  ;;  %v5663_v6 = vld [vmem:[#allocation2 + $0x3f4] sm:$0xf0] }
  0x3b   :  { %400 = vmatpush.msra.mxu1 %v85_v21  ;;  %4897 = vmatmul.msk.f32.vlgmr.msra.gmra.mxu0 %vm170_vm1, %v5964_v28  ;;  %v4985_v21 = vor.u32 %v5555_v18, %v4984_v14  ;;  %v5049_v42 = vor.u32 %v5571_v40, %v5048_v39 }
  0x3c   :  { %2446 = vmatpush.bf16.msrb.mxu0 %v5097_v22  ;;  %2302 = vmatpush.bf16.msra.mxu2 %v4953_v29  ;;  %v5056_v22 = vld [vmem:[#allocation2 + $0x120] sm:$0xf]  ;;  %v5589_v29 = vld [vmem:[#allocation2 + $0x1a4] sm:$0xf0] }
  0x3d   :  { %2519 = vmatpush.bf16.msrb.mxu1 %v5161_v24  ;;  %2375 = vmatpush.bf16.msra.mxu3 %v5017_v31  ;;  %v5120_v24 = vld [vmem:[#allocation2 + $0x1a0] sm:$0xf]  ;;  %v5057_v27 = vor.u32 %v5573_v23, %v5056_v22 }
  0x3e   :  { %4899 = vmatmul.msk.f32.vlgmr.msra.gmra.mxu1 %vm170_vm1, %v5964_v28  ;;  %v5543_v28 = vld [vmem:[#allocation2 + $0x34] sm:$0xf0]  ;;  %v5121_v32 = vor.u32 %v5589_v29, %v5120_v24 }
  0x3f   :  { %v4937_v53 = vor.u32 %v5543_v28, %v4936_v50  ;;  %v5615_v50 = vld [vmem:[#allocation2 + $0x274] sm:$0xf0]  ;;  %v5288_v28 = vld [vmem:[#allocation2 + $0x2f0] sm:$0xf] }
  0x40   :  { %2447 = vmatpush.bf16.msrb.mxu0 %v5089_v35  ;;  %2303 = vmatpush.bf16.msra.mxu2 %v4945_v41  ;;  %v4976_v35 = vld [vmem:[#allocation2 + $0x80] sm:$0xf]  ;;  %v5112_v41 = vld [vmem:[#allocation2 + $0x190] sm:$0xf]  ;;  %v5289_v57 = vor.u32 %v5631_v52, %v5288_v28 }
  0x41   :  { %2520 = vmatpush.bf16.msrb.mxu1 %v5153_v37  ;;  %2376 = vmatpush.bf16.msra.mxu3 %v5009_v43  ;;  %v4913_v37 = vor.u32 %v5537_v34, %v4912_v33  ;;  %v4977_v38 = vor.u32 %v5553_v36, %v4976_v35  ;;  %v5587_v43 = vld [vmem:[#allocation2 + $0x194] sm:$0xf0]  ;;  %v5280_v52 = vld [vmem:[#allocation2 + $0x2e0] sm:$0xf]  ;;  %v5661_v35 = vld [vmem:[#allocation2 + $0x3e4] sm:$0xf0] }
  0x42   :  { %v5113_v46 = vor.u32 %v5587_v43, %v5112_v41 }
  0x44   :  { %2448 = vmatpush.bf16.msrb.mxu0 %v5081_v47  ;;  %2304 = vmatpush.bf16.msra.mxu2 %v4937_v53  ;;  %v5040_v53 = vld [vmem:[#allocation2 + $0x100] sm:$0xf] }
  0x45   :  { %2521 = vmatpush.bf16.msrb.mxu1 %v5145_v49  ;;  %2377 = vmatpush.bf16.msra.mxu3 %v5001_v55  ;;  %v5224_v49 = vld [vmem:[#allocation2 + $0x270] sm:$0xf]  ;;  %v5041_v58 = vor.u32 %v5569_v54, %v5040_v53  ;;  %v5629_v53 = vld [vmem:[#allocation2 + $0x2e4] sm:$0xf0] }
  0x46   :  { %v5225_v51 = vor.u32 %v5615_v50, %v5224_v49  ;;  %v5613_v49 = vld [vmem:[#allocation2 + $0x264] sm:$0xf0] }
  0x48   :  { %2449 = vmatpush.bf16.msrb.mxu0 %v5073_v59  ;;  %2305 = vmatpush.bf16.msra.mxu2 %v4929_v3  ;;  %v5104_v59 = vld [vmem:[#allocation2 + $0x180] sm:$0xf]  ;;  %v5647_v3 = vld [vmem:[#allocation2 + $0x374] sm:$0xf0] }
  0x49   :  { %2522 = vmatpush.bf16.msrb.mxu1 %v5137_v61  ;;  %2378 = vmatpush.bf16.msra.mxu3 %v4993_v5  ;;  %v5585_v61 = vld [vmem:[#allocation2 + $0x184] sm:$0xf0]  ;;  %v5416_v5 = vld [vmem:[#allocation2 + $0x3f0] sm:$0xf] }
  0x4a   :  { %v5105_v0 = vor.u32 %v5585_v61, %v5104_v59  ;;  %v5417_v7 = vor.u32 %v5663_v6, %v5416_v5  ;;  %v5281_v59 = vor.u32 %v5629_v53, %v5280_v52  ;;  %v5611_v52 = vld [vmem:[#allocation2 + $0x254] sm:$0xf0] }
  0x4c   :  { %2450 = vmatpush.bf16.msrb.mxu0 %v5065_v9  ;;  %2306 = vmatpush.bf16.msra.mxu2 %v4921_v17 }
  0x4d   :  { %2523 = vmatpush.bf16.msrb.mxu1 %v5129_v11  ;;  %2379 = vmatpush.bf16.msra.mxu3 %v4985_v21 }
  0x50   :  { %2451 = vmatpush.bf16.msrb.mxu0 %v5057_v27  ;;  %2307 = vmatpush.bf16.msra.mxu2 %v4913_v37 }
  0x51   :  { %2524 = vmatpush.bf16.msrb.mxu1 %v5121_v32  ;;  %2380 = vmatpush.bf16.msra.mxu3 %v4977_v38 }
  0x54   :  { %2452 = vmatpush.bf16.msrb.mxu0 %v5049_v42  ;;  %2592 = vmatpush.bf16.msrb.mxu2 %v5225_v51 }
  0x55   :  { %2525 = vmatpush.bf16.msrb.mxu1 %v5113_v46  ;;  %2665 = vmatpush.bf16.msrb.mxu3 %v5289_v57  ;;  %v596_v57 = vld [vmem:[#allocation7 + $0x8] sm:$0xff] }
  0x56   :  { %v722_v5 = vunpack.c.l.bf16 %v596_v57 }
  0x58   :  { %2453 = vmatpush.bf16.msrb.mxu0 %v5041_v58  ;;  %v601_v58 = vld [vmem:[#allocation7 + $0x30] sm:$0xff] }
  0x59   :  { %2526 = vmatpush.bf16.msrb.mxu1 %v5105_v0  ;;  %2666 = vmatpush.bf16.msrb.mxu3 %v5281_v59  ;;  %v732_v6 = vunpack.c.l.bf16 %v601_v58 }
  0x5d   :  { %2811 = vmatpush.bf16.msra.mxu1 %v5417_v7 }
  0x9b   :  { %v222_v15 = vpop.f32.mrf.mxu0 }
  0x9c   :  { %v242_v16 = vpop.f32.mrf.mxu1  ;;  %v223_v19 = vadd.f32 %v222_v15, %v150_v1  ;;  %v6006_v15 = vld [vmem:[#allocation7] sm:$0xff] }
  0x9d   :  { %v243_v20 = vadd.f32 %v242_v16, %v151_v2  ;;  %v5352_v2 = vld [vmem:[#allocation2 + $0x370] sm:$0xf]  ;;  %v6008_v16 = vld [vmem:[#allocation7 + $0x28] sm:$0xff]  ;;  %v720_v24 = vunpack.c.l.bf16 %v6006_v15 }
  0x9e   :  { %v4900_v30 = vmul.f32 -1.442695, %v223_v19  ;;  %v5353_v4 = vor.u32 %v5647_v3, %v5352_v2  ;;  %v731_v29 = vunpack.c.h.bf16 %v6008_v16 }
  0x9f   :  { %v4901_v31 = vmul.f32 -1.442695, %v243_v20 }
  0xa0   :  { %5702 = vpow2.f32 %v4900_v30  ;;  %2738 = vmatpush.bf16.msra.mxu0 %v5353_v4 }
  0xa1   :  { %5704 = vpow2.f32 %v4901_v31 }
  0xa2   :  { %v262_v44 = vpop.f32.mrf.mxu2 }
  0xa3   :  { %v282_v45 = vpop.f32.mrf.mxu3  ;;  %v263_v47 = vadd.f32 %v262_v44, %v152_v25  ;;  %v730_v25 = vunpack.c.l.bf16 %v6008_v16  ;;  %v733_v16 = vunpack.c.h.bf16 %v601_v58  ;;  %v620_v58 = vld [vmem:[#allocation7 + $0xc8] sm:$0xff] }
  0xa4   :  { %v283_v48 = vadd.f32 %v282_v45, %v153_v26  ;;  %v721_v26 = vunpack.c.h.bf16 %v6006_v15 }
  0xa5   :  { %v4902_v55 = vmul.f32 -1.442695, %v263_v47 }
  0xa6   :  { %v4903_v56 = vmul.f32 -1.442695, %v283_v48  ;;  %v5703_v60 = vpop.eup %5702  ;;  %v5216_v48 = vld [vmem:[#allocation2 + $0x260] sm:$0xf] }
  0xa7   :  { %v5705_v62 = vpop.eup %5704  ;;  %v435_v63 = vadd.f32 1.0, %v5703_v60  ;;  %5706 = vpow2.f32 %v4902_v55  ;;  %v5217_v51 = vor.u32 %v5613_v49, %v5216_v48 }
  0xa8   :  { %v436_v1 = vadd.f32 1.0, %v5705_v62  ;;  %5708 = vpow2.f32 %v4903_v56 }
  0xa9   :  { %5710 = vrcp.f32 %v435_v63  ;;  %v454_v17 = vand.u32 2147483647, %v435_v63  ;;  %v456_v18 = vand.u32 2147483648, %v435_v63  ;;  %vm450_vm2 = vweird.f32 %v435_v63  ;;  %2593 = vmatpush.bf16.msrb.mxu2 %v5217_v51  ;;  %v5208_v51 = vld [vmem:[#allocation2 + $0x250] sm:$0xf] }
  0xaa   :  { %5712 = vrcp.f32 %v436_v1  ;;  %v469_v21 = vand.u32 2147483647, %v436_v1  ;;  %v471_v22 = vand.u32 2147483648, %v436_v1  ;;  %vm465_vm5 = vweird.f32 %v436_v1 }
  0xab   :  { %vm6015_vm4 = vcmp.eq.f32.partialorder %v454_v17, 8.507059e+37  ;;  %v457_v34 = vor.u32 1.1754944e-38, %v456_v18  ;;  %v5344_v17 = vld [vmem:[#allocation2 + $0x360] sm:$0xf]  ;;  %v5645_v18 = vld [vmem:[#allocation2 + $0x364] sm:$0xf0]  ;;  %v5209_v53 = vor.u32 %v5611_v52, %v5208_v51 }
  0xac   :  { %vm6019_vm7 = vcmp.eq.f32.partialorder %v469_v21, 8.507059e+37  ;;  %v472_v36 = vor.u32 1.1754944e-38, %v471_v22 }
  0xad   :  { %v5707_v8 = vpop.eup %5706  ;;  %2594 = vmatpush.bf16.msrb.mxu2 %v5209_v53 }
  0xae   :  { %v5709_v9 = vpop.eup %5708  ;;  %v6001_v10 = vadd.f32 1.0, %v5707_v8 }
  0xaf   :  { %v5711_v11 = vpop.eup %5710  ;;  %v6003_v12 = vadd.f32 1.0, %v5709_v9 }
  0xb0   :  { %v5713_v13 = vpop.eup %5712  ;;  %v446_v14 = vmul.f32 %v5711_v11, %v435_v63  ;;  %5714 = vrcp.f32 %v6001_v10  ;;  %vm451_vm3 = vweird.f32 %v5711_v11  ;;  %vm480_vm9 = vweird.f32 %v6001_v10 }
  0xb1   :  { %v461_v19 = vmul.f32 %v5713_v13, %v436_v1  ;;  %5716 = vrcp.f32 %v6003_v12  ;;  %vm466_vm6 = vweird.f32 %v5713_v13  ;;  %vm452_vm8 = vmor %vm450_vm2, %vm451_vm3  ;;  %v484_v39 = vand.u32 2147483647, %v6001_v10 }
  0xb2   :  { %v447_v20 = vsub.f32 1.0, %v446_v14  ;;  %vm467_vm10 = vmor %vm465_vm5, %vm466_vm6  ;;  %v486_v42 = vand.u32 2147483648, %v6001_v10  ;;  %vm495_vm11 = vweird.f32 %v6003_v12  ;;  %v499_v43 = vand.u32 2147483647, %v6003_v12 }
  0xb3   :  { %v462_v23 = vsub.f32 1.0, %v461_v19  ;;  %v501_v60 = vand.u32 2147483648, %v6003_v12  ;;  %vm485_vm15 = vcmp.eq.f32.partialorder %v484_v39, 8.507059e+37  ;;  %v611_v39 = vld [vmem:[#allocation7 + $0x80] sm:$0xff] }
  0xb4   :  { %v448_v27 = vmul.f32 %v5711_v11, %v447_v20  ;;  %v487_v3 = vor.u32 1.1754944e-38, %v486_v42  ;;  %vm500_vm1 = vcmp.eq.f32.partialorder %v499_v43, 8.507059e+37  ;;  %v5345_v20 = vor.u32 %v5645_v18, %v5344_v17 }
  0xb5   :  { %v463_v31 = vmul.f32 %v5713_v13, %v462_v23  ;;  %v605_v23 = vld [vmem:[#allocation7 + $0x50] sm:$0xff]  ;;  %v753_v48 = vunpack.c.h.bf16 %v611_v39 }
  0xb6   :  { %v5715_v32 = vpop.eup %5714  ;;  %v449_v33 = vadd.f32 %v5711_v11, %v448_v27  ;;  %2739 = vmatpush.bf16.msra.mxu0 %v5345_v20 }
  0xb7   :  { %v464_v37 = vadd.f32 %v5713_v13, %v463_v31  ;;  %v476_v38 = vmul.f32 %v5715_v32, %v6001_v10  ;;  %v5717_v40 = vpop.eup %5716  ;;  %vm481_vm12 = vweird.f32 %v5715_v32  ;;  %v723_v10 = vunpack.c.h.bf16 %v596_v57  ;;  %v615_v57 = vld [vmem:[#allocation7 + $0xa0] sm:$0xff] }
  0xb8   :  { %v453_v41 = vsel %vm452_vm8, %v5711_v11, %v449_v33  ;;  %v491_v47 = vmul.f32 %v5717_v40, %v6003_v12  ;;  %vm496_vm13 = vweird.f32 %v5717_v40  ;;  %vm482_vm14 = vmor %vm480_vm9, %vm481_vm12 }
  0xb9   :  { %v458_v44 = vsel %vm6015_vm4, %v457_v34, %v453_v41  ;;  %v468_v45 = vsel %vm467_vm10, %v5713_v13, %v464_v37  ;;  %v477_v46 = vsub.f32 1.0, %v476_v38  ;;  %vm497_vm0 = vmor %vm495_vm11, %vm496_vm13  ;;  %v502_v13 = vor.u32 1.1754944e-38, %v501_v60  ;;  %v5408_v34 = vld [vmem:[#allocation2 + $0x3e0] sm:$0xf]  ;;  %v606_v38 = vld [vmem:[#allocation7 + $0x58] sm:$0xff] }
  0xba   :  { %v6032_v50 = vperm.slane %v458_v44, 0  ;;  %v473_v28 = vsel %vm6019_vm7, %v472_v36, %v468_v45  ;;  %v492_v56 = vsub.f32 1.0, %v491_v47  ;;  %v742_v43 = vunpack.c.l.bf16 %v606_v38 }
  0xbb   :  { %v6036_v54 = vperm.slane %v473_v28, 0  ;;  %v478_v55 = vmul.f32 %v5715_v32, %v477_v46  ;;  %v752_v44 = vunpack.c.l.bf16 %v611_v39  ;;  %v743_v47 = vunpack.c.h.bf16 %v606_v38 }
  0xbc   :  { %v980_v61 = vmul.f32 %v6032_v50, %v720_v24  ;;  %v990_v62 = vmul.f32 %v6032_v50, %v730_v25  ;;  %v493_v0 = vmul.f32 %v5717_v40, %v492_v56  ;;  %v610_v24 = vld [vmem:[#allocation7 + $0x78] sm:$0xff]  ;;  %v760_v60 = vunpack.c.l.bf16 %v615_v57 }
  0xbd   :  { %v479_v63 = vadd.f32 %v5715_v32, %v478_v55  ;;  %v981_v1 = vmul.f32 %v6036_v54, %v721_v26  ;;  %v991_v2 = vmul.f32 %v6036_v54, %v731_v29  ;;  %v740_v29 = vunpack.c.l.bf16 %v605_v23 }
  0xbe   :  { %v6046_v4 = vpack.c.bf16 %v990_v62, %v980_v61  ;;  %v494_v8 = vadd.f32 %v5717_v40, %v493_v0  ;;  %v750_v30 = vunpack.c.l.bf16 %v610_v24  ;;  %v751_v33 = vunpack.c.h.bf16 %v610_v24 }
  0xbf   :  { %v483_v7 = vsel %vm482_vm14, %v5715_v32, %v479_v63  ;;  %v6048_v9 = vpack.c.bf16 %v991_v2, %v981_v1  ;;  %v741_v32 = vunpack.c.h.bf16 %v605_v23  ;;  %v1000_v36 = vmul.f32 %v6032_v50, %v740_v29  ;;  %v5272_v1 = vld [vmem:[#allocation2 + $0x2d0] sm:$0xf]  ;;  %v5627_v2 = vld [vmem:[#allocation2 + $0x2d4] sm:$0xf0] }
  0xc0   :  { %v488_v11 = vsel %vm485_vm15, %v487_v3, %v483_v7  ;;  %2308 = vmatmul.bf16.vlgmr.msra.gmra.mxu2 %v6046_v4  ;;  %v498_v15 = vsel %vm497_vm0, %v5717_v40, %v494_v8  ;;  %v1010_v37 = vmul.f32 %v6032_v50, %v750_v30  ;;  %v5409_v40 = vor.u32 %v5661_v35, %v5408_v34  ;;  %v5336_v3 = vld [vmem:[#allocation2 + $0x350] sm:$0xf]  ;;  %v616_v7 = vld [vmem:[#allocation7 + $0xa8] sm:$0xff]  ;;  %v630_v34 = vld [vmem:[#allocation7 + $0x118] sm:$0xff] }
  0xc1   :  { %v6054_v14 = vperm.slane %v488_v11, 0  ;;  %2381 = vmatmul.bf16.vlgmr.msra.gmra.mxu3 %v6048_v9  ;;  %v503_v19 = vsel %vm500_vm1, %v502_v13, %v498_v15  ;;  %v1001_v41 = vmul.f32 %v6036_v54, %v741_v32  ;;  %v1011_v42 = vmul.f32 %v6036_v54, %v751_v33  ;;  %v621_v8 = vld [vmem:[#allocation7 + $0xd0] sm:$0xff]  ;;  %v5643_v13 = vld [vmem:[#allocation2 + $0x354] sm:$0xf0] }
  0xc2   :  { %v6057_v21 = vperm.slane %v503_v19, 0  ;;  %2812 = vmatpush.bf16.msra.mxu1 %v5409_v40  ;;  %v6073_v45 = vpack.c.bf16 %v1010_v37, %v1000_v36  ;;  %v770_v61 = vunpack.c.l.bf16 %v620_v58  ;;  %v761_v63 = vunpack.c.h.bf16 %v615_v57  ;;  %v625_v33 = vld [vmem:[#allocation7 + $0xf0] sm:$0xff] }
  0xc3   :  { %v982_v12 = vmul.f32 %v6054_v14, %v722_v5  ;;  %v992_v22 = vmul.f32 %v6054_v14, %v732_v6  ;;  %v6075_v46 = vpack.c.bf16 %v1011_v42, %v1001_v41  ;;  %v1002_v49 = vmul.f32 %v6054_v14, %v742_v43  ;;  %v5200_v41 = vld [vmem:[#allocation2 + $0x240] sm:$0xf]  ;;  %v5609_v42 = vld [vmem:[#allocation2 + $0x244] sm:$0xf0] }
  0xc4   :  { %v983_v26 = vmul.f32 %v6057_v21, %v723_v10  ;;  %v993_v27 = vmul.f32 %v6057_v21, %v733_v16  ;;  %v1012_v28 = vmul.f32 %v6054_v14, %v752_v44  ;;  %v1003_v55 = vmul.f32 %v6057_v21, %v743_v47  ;;  %v626_v47 = vld [vmem:[#allocation7 + $0xf8] sm:$0xff] }
  0xc5   :  { %v6061_v25 = vpack.c.bf16 %v992_v22, %v982_v12  ;;  %v1013_v56 = vmul.f32 %v6057_v21, %v753_v48  ;;  %v771_v0 = vunpack.c.h.bf16 %v620_v58  ;;  %v1020_v5 = vmul.f32 %v6032_v50, %v760_v60  ;;  %v631_v48 = vld [vmem:[#allocation7 + $0x120] sm:$0xff] }
  0xc6   :  { %v6066_v31 = vpack.c.bf16 %v993_v27, %v983_v26  ;;  %v6083_v59 = vpack.c.bf16 %v1012_v28, %v1002_v49  ;;  %v1030_v6 = vmul.f32 %v6032_v50, %v770_v61  ;;  %v5273_v11 = vor.u32 %v5627_v2, %v5272_v1  ;;  %v5400_v26 = vld [vmem:[#allocation2 + $0x3d0] sm:$0xf]  ;;  %v5659_v27 = vld [vmem:[#allocation2 + $0x3d4] sm:$0xf0] }
  0xc7   :  { %8571 = vst [vmem:[#allocation12_spill] sm:$0xff] %v6061_v25  ;;  %2454 = vmatmul.bf16.vlgmr.msrb.gmra.mxu0 %v6061_v25  ;;  %v6086_v62 = vpack.c.bf16 %v1013_v56, %v1003_v55  ;;  %v1021_v10 = vmul.f32 %v6036_v54, %v761_v63  ;;  %v1031_v15 = vmul.f32 %v6036_v54, %v771_v0  ;;  %v762_v17 = vunpack.c.l.bf16 %v616_v7  ;;  %v5264_v63 = vld [vmem:[#allocation2 + $0x2c0] sm:$0xf]  ;;  %v5625_v0 = vld [vmem:[#allocation2 + $0x2c4] sm:$0xf0] }
  0xc8   :  { %8572 = vst [vmem:[#allocation13_spill] sm:$0xff] %v6066_v31  ;;  %2527 = vmatmul.bf16.vlgmr.msrb.gmra.mxu1 %v6066_v31  ;;  %v5337_v16 = vor.u32 %v5643_v13, %v5336_v3  ;;  %2667 = vmatpush.bf16.msrb.mxu3 %v5273_v11  ;;  %v772_v18 = vunpack.c.l.bf16 %v621_v8  ;;  %v6093_v19 = vpack.c.bf16 %v1030_v6, %v1020_v5  ;;  %v763_v12 = vunpack.c.h.bf16 %v616_v7  ;;  %v635_v5 = vld [vmem:[#allocation7 + $0x140] sm:$0xff]  ;;  %v640_v6 = vld [vmem:[#allocation7 + $0x168] sm:$0xff] }
  0xc9   :  { %8573 = vst [vmem:[#allocation14_spill] sm:$0xff] %v6083_v59  ;;  %v6095_v20 = vpack.c.bf16 %v1031_v15, %v1021_v10  ;;  %v773_v22 = vunpack.c.h.bf16 %v621_v8  ;;  %v1022_v23 = vmul.f32 %v6054_v14, %v762_v17  ;;  %v5401_v29 = vor.u32 %v5659_v27, %v5400_v26  ;;  %v5641_v17 = vld [vmem:[#allocation2 + $0x344] sm:$0xf0] }
  0xca   :  { %8574 = vst [vmem:[#allocation15_spill] sm:$0xff] %v6086_v62  ;;  %2740 = vmatpush.bf16.msra.mxu0 %v5337_v16  ;;  %v1032_v24 = vmul.f32 %v6054_v14, %v772_v18  ;;  %v1023_v30 = vmul.f32 %v6057_v21, %v763_v12  ;;  %v780_v36 = vunpack.c.l.bf16 %v625_v33  ;;  %v790_v37 = vunpack.c.l.bf16 %v630_v34  ;;  %v5328_v16 = vld [vmem:[#allocation2 + $0x340] sm:$0xf]  ;;  %v5657_v27 = vld [vmem:[#allocation2 + $0x3c4] sm:$0xf0] }
  0xcb   :  { %v1033_v32 = vmul.f32 %v6057_v21, %v773_v22  ;;  %2813 = vmatpush.bf16.msra.mxu1 %v5401_v29  ;;  %v781_v39 = vunpack.c.h.bf16 %v625_v33  ;;  %v791_v40 = vunpack.c.h.bf16 %v630_v34  ;;  %v5201_v49 = vor.u32 %v5609_v42, %v5200_v41  ;;  %v5392_v18 = vld [vmem:[#allocation2 + $0x3c0] sm:$0xf] }
  0xcc   :  { %v6103_v35 = vpack.c.bf16 %v1032_v24, %v1022_v23  ;;  %v1040_v43 = vmul.f32 %v6032_v50, %v780_v36  ;;  %v1050_v44 = vmul.f32 %v6032_v50, %v790_v37  ;;  %v782_v52 = vunpack.c.l.bf16 %v626_v47  ;;  %v636_v23 = vld [vmem:[#allocation7 + $0x148] sm:$0xff]  ;;  %v641_v24 = vld [vmem:[#allocation7 + $0x170] sm:$0xff] }
  0xcd   :  { %v6106_v38 = vpack.c.bf16 %v1033_v32, %v1023_v30  ;;  %v1041_v28 = vmul.f32 %v6036_v54, %v781_v39  ;;  %v1051_v51 = vmul.f32 %v6036_v54, %v791_v40  ;;  %2595 = vmatpush.bf16.msrb.mxu2 %v5201_v49  ;;  %v792_v53 = vunpack.c.l.bf16 %v631_v48 }
  0xce   :  { %8575 = vst [vmem:[#allocation16_spill] sm:$0xff] %v6103_v35  ;;  %v6113_v55 = vpack.c.bf16 %v1050_v44, %v1040_v43  ;;  %v783_v57 = vunpack.c.h.bf16 %v626_v47  ;;  %v793_v58 = vunpack.c.h.bf16 %v631_v48  ;;  %v1042_v60 = vmul.f32 %v6054_v14, %v782_v52  ;;  %v645_v47 = vld [vmem:[#allocation7 + $0x190] sm:$0xff]  ;;  %v650_v48 = vld [vmem:[#allocation7 + $0x1b8] sm:$0xff] }
  0xcf   :  { %8576 = vst [vmem:[#allocation17_spill] sm:$0xff] %v6106_v38  ;;  %v6115_v56 = vpack.c.bf16 %v1051_v51, %v1041_v28  ;;  %v1052_v61 = vmul.f32 %v6054_v14, %v792_v53  ;;  %v5265_v1 = vor.u32 %v5625_v0, %v5264_v63  ;;  %v800_v8 = vunpack.c.l.bf16 %v635_v5  ;;  %v646_v63 = vld [vmem:[#allocation7 + $0x198] sm:$0xff]  ;;  %v651_v0 = vld [vmem:[#allocation7 + $0x1c0] sm:$0xff] }
  0xd0   :  { %2313 = vmatmul.bf16.gmra.mxu2 %v6073_v45  ;;  %v1043_v2 = vmul.f32 %v6057_v21, %v783_v57  ;;  %v1053_v3 = vmul.f32 %v6057_v21, %v793_v58  ;;  %v810_v11 = vunpack.c.l.bf16 %v640_v6  ;;  %v801_v10 = vunpack.c.h.bf16 %v635_v5  ;;  %v5192_v58 = vld [vmem:[#allocation2 + $0x230] sm:$0xf] }
  0xd1   :  { %2386 = vmatmul.bf16.gmra.mxu3 %v6075_v46  ;;  %v6123_v7 = vpack.c.bf16 %v1052_v61, %v1042_v60  ;;  %v811_v15 = vunpack.c.h.bf16 %v640_v6  ;;  %v1060_v12 = vmul.f32 %v6032_v50, %v800_v8  ;;  %v5329_v26 = vor.u32 %v5641_v17, %v5328_v16  ;;  %v5256_v6 = vld [vmem:[#allocation2 + $0x2b0] sm:$0xf]  ;;  %v5623_v8 = vld [vmem:[#allocation2 + $0x2b4] sm:$0xf0] }
  0xd2   :  { %2668 = vmatpush.bf16.msrb.mxu3 %v5265_v1  ;;  %v6126_v13 = vpack.c.bf16 %v1053_v3, %v1043_v2  ;;  %v1070_v22 = vmul.f32 %v6032_v50, %v810_v11  ;;  %v1061_v29 = vmul.f32 %v6036_v54, %v801_v10  ;;  %v5393_v32 = vor.u32 %v5657_v27, %v5392_v18  ;;  %v5607_v1 = vld [vmem:[#allocation2 + $0x234] sm:$0xf0] }
  0xd3   :  { %8577 = vst [vmem:[#allocation18_spill] sm:$0xff] %v6123_v7  ;;  %v1071_v30 = vmul.f32 %v6036_v54, %v811_v15  ;;  %2741 = vmatpush.bf16.msra.mxu0 %v5329_v26  ;;  %v802_v33 = vunpack.c.l.bf16 %v636_v23  ;;  %v812_v34 = vunpack.c.l.bf16 %v641_v24  ;;  %v803_v39 = vunpack.c.h.bf16 %v636_v23  ;;  %v5320_v26 = vld [vmem:[#allocation2 + $0x330] sm:$0xf]  ;;  %v5639_v27 = vld [vmem:[#allocation2 + $0x334] sm:$0xf0] }
  0xd4   :  { %8578 = vst [vmem:[#allocation19_spill] sm:$0xff] %v6126_v13  ;;  %2814 = vmatpush.bf16.msra.mxu1 %v5393_v32  ;;  %v6133_v36 = vpack.c.bf16 %v1070_v22, %v1060_v12  ;;  %v813_v40 = vunpack.c.h.bf16 %v641_v24  ;;  %v820_v28 = vunpack.c.l.bf16 %v645_v47  ;;  %v830_v51 = vunpack.c.l.bf16 %v650_v48  ;;  %v655_v24 = vld [vmem:[#allocation7 + $0x1e0] sm:$0xff]  ;;  %v660_v32 = vld [vmem:[#allocation7 + $0x208] sm:$0xff] }
  0xd5   :  { %v6135_v37 = vpack.c.bf16 %v1071_v30, %v1061_v29  ;;  %v1062_v41 = vmul.f32 %v6054_v14, %v802_v33  ;;  %v1072_v42 = vmul.f32 %v6054_v14, %v812_v34  ;;  %v1063_v43 = vmul.f32 %v6057_v21, %v803_v39  ;;  %v5384_v34 = vld [vmem:[#allocation2 + $0x3b0] sm:$0xf]  ;;  %v5655_v39 = vld [vmem:[#allocation2 + $0x3b4] sm:$0xf0] }
  0xd6   :  { %v1073_v44 = vmul.f32 %v6057_v21, %v813_v40  ;;  %v821_v53 = vunpack.c.h.bf16 %v645_v47  ;;  %v831_v57 = vunpack.c.h.bf16 %v650_v48  ;;  %v1080_v60 = vmul.f32 %v6032_v50, %v820_v28 }
  0xd7   :  { %2459 = vmatmul.bf16.gmra.mxu0 %v6083_v59  ;;  %v6143_v49 = vpack.c.bf16 %v1072_v42, %v1062_v41  ;;  %v1090_v61 = vmul.f32 %v6032_v50, %v830_v51  ;;  %v5193_v5 = vor.u32 %v5607_v1, %v5192_v58  ;;  %v5257_v11 = vor.u32 %v5623_v8, %v5256_v6  ;;  %v5184_v8 = vld [vmem:[#allocation2 + $0x220] sm:$0xf] }
  0xd8   :  { %2532 = vmatmul.bf16.gmra.mxu1 %v6086_v62  ;;  %v6146_v52 = vpack.c.bf16 %v1073_v44, %v1063_v43  ;;  %v1081_v2 = vmul.f32 %v6036_v54, %v821_v53  ;;  %v1091_v3 = vmul.f32 %v6036_v54, %v831_v57  ;;  %v822_v10 = vunpack.c.l.bf16 %v646_v63  ;;  %v656_v53 = vld [vmem:[#allocation7 + $0x1e8] sm:$0xff]  ;;  %v661_v57 = vld [vmem:[#allocation7 + $0x210] sm:$0xff]  ;;  %v715_v59 = vld [vmem:[#allocation7 + $0x3c0] sm:$0xff] }
  0xd9   :  { %8579 = vst [vmem:[#allocation20_spill] sm:$0xff] %v6143_v49  ;;  %v832_v15 = vunpack.c.l.bf16 %v651_v0  ;;  %2596 = vmatpush.bf16.msrb.mxu2 %v5193_v5  ;;  %v6153_v16 = vpack.c.bf16 %v1090_v61, %v1080_v60  ;;  %2669 = vmatpush.bf16.msrb.mxu3 %v5257_v11  ;;  %v823_v18 = vunpack.c.h.bf16 %v646_v63  ;;  %v833_v12 = vunpack.c.h.bf16 %v651_v0  ;;  %v5605_v11 = vld [vmem:[#allocation2 + $0x224] sm:$0xf0] }
  0xda   :  { %8580 = vst [vmem:[#allocation21_spill] sm:$0xff] %v6146_v52  ;;  %v6155_v17 = vpack.c.bf16 %v1091_v3, %v1081_v2  ;;  %v1082_v22 = vmul.f32 %v6054_v14, %v822_v10  ;;  %v5321_v33 = vor.u32 %v5639_v27, %v5320_v26  ;;  %v5385_v40 = vor.u32 %v5655_v39, %v5384_v34 }
  0xdb   :  { %v1092_v23 = vmul.f32 %v6054_v14, %v832_v15  ;;  %v1083_v29 = vmul.f32 %v6057_v21, %v823_v18  ;;  %v1093_v30 = vmul.f32 %v6057_v21, %v833_v12  ;;  %v840_v42 = vunpack.c.l.bf16 %v655_v24  ;;  %v665_v18 = vld [vmem:[#allocation7 + $0x230] sm:$0xff]  ;;  %v670_v12 = vld [vmem:[#allocation7 + $0x258] sm:$0xff] }
  0xdc   :  { %8581 = vst [vmem:[#allocation22_spill] sm:$0xff] %v6155_v17  ;;  %2742 = vmatpush.bf16.msra.mxu0 %v5321_v33  ;;  %v850_v43 = vunpack.c.l.bf16 %v660_v32  ;;  %2815 = vmatpush.bf16.msra.mxu1 %v5385_v40  ;;  %v841_v47 = vunpack.c.h.bf16 %v655_v24  ;;  %v851_v48 = vunpack.c.h.bf16 %v660_v32  ;;  %v842_v61 = vunpack.c.l.bf16 %v656_v53  ;;  %v5248_v32 = vld [vmem:[#allocation2 + $0x2a0] sm:$0xf]  ;;  %v5621_v33 = vld [vmem:[#allocation2 + $0x2a4] sm:$0xf0]  ;;  %v666_v40 = vld [vmem:[#allocation7 + $0x238] sm:$0xff] }
  0xdd   :  { %v6163_v41 = vpack.c.bf16 %v1092_v23, %v1082_v22  ;;  %v6166_v44 = vpack.c.bf16 %v1093_v30, %v1083_v29  ;;  %v1100_v28 = vmul.f32 %v6032_v50, %v840_v42  ;;  %v852_v63 = vunpack.c.l.bf16 %v661_v57  ;;  %v671_v42 = vld [vmem:[#allocation7 + $0x260] sm:$0xff] }
  0xde   :  { %v1110_v51 = vmul.f32 %v6032_v50, %v850_v43  ;;  %v1101_v58 = vmul.f32 %v6036_v54, %v841_v47  ;;  %v1111_v60 = vmul.f32 %v6036_v54, %v851_v48  ;;  %v843_v2 = vunpack.c.h.bf16 %v656_v53 }
  0xdf   :  { %8582 = vst [vmem:[#allocation23_spill] sm:$0xff] %v6163_v41  ;;  %v853_v3 = vunpack.c.h.bf16 %v661_v57  ;;  %v1102_v5 = vmul.f32 %v6054_v14, %v842_v61  ;;  %v1112_v6 = vmul.f32 %v6054_v14, %v852_v63  ;;  %v5185_v22 = vor.u32 %v5605_v11, %v5184_v8  ;;  %v5653_v8 = vld [vmem:[#allocation2 + $0x3a4] sm:$0xf0] }
  0xe0   :  { %2318 = vmatmul.bf16.gmra.mxu2 %v6093_v19  ;;  %8583 = vst [vmem:[#allocation24_spill] sm:$0xff] %v6166_v44  ;;  %v6173_v0 = vpack.c.bf16 %v1110_v51, %v1100_v28  ;;  %v6175_v1 = vpack.c.bf16 %v1111_v60, %v1101_v58  ;;  %v1103_v10 = vmul.f32 %v6057_v21, %v843_v2  ;;  %v860_v24 = vunpack.c.l.bf16 %v665_v18  ;;  %v5312_v2 = vld [vmem:[#allocation2 + $0x320] sm:$0xf] }
  0xe1   :  { %2391 = vmatmul.bf16.gmra.mxu3 %v6095_v20  ;;  %v1113_v15 = vmul.f32 %v6057_v21, %v853_v3  ;;  %v6183_v23 = vpack.c.bf16 %v1112_v6, %v1102_v5  ;;  %v870_v26 = vunpack.c.l.bf16 %v670_v12  ;;  %2597 = vmatpush.bf16.msrb.mxu2 %v5185_v22  ;;  %v861_v29 = vunpack.c.h.bf16 %v665_v18  ;;  %v5637_v3 = vld [vmem:[#allocation2 + $0x324] sm:$0xf0]  ;;  %v5376_v5 = vld [vmem:[#allocation2 + $0x3a0] sm:$0xf]  ;;  %v6203_v22 = vpop.f32.mrf.mxu0 }
  0xe2   :  { %8584 = vst [vmem:[#allocation25_spill] sm:$0xff] %v6173_v0  ;;  %v871_v30 = vunpack.c.h.bf16 %v670_v12  ;;  %v1120_v34 = vmul.f32 %v6032_v50, %v860_v24  ;;  %v5249_v43 = vor.u32 %v5621_v33, %v5248_v32  ;;  %v862_v28 = vunpack.c.l.bf16 %v666_v40  ;;  %v680_v18 = vld [vmem:[#allocation7 + $0x2a8] sm:$0xff] }
  0xe3   :  { %8585 = vst [vmem:[#allocation26_spill] sm:$0xff] %v6175_v1  ;;  %v6186_v27 = vpack.c.bf16 %v1113_v15, %v1103_v10  ;;  %v1130_v39 = vmul.f32 %v6032_v50, %v870_v26  ;;  %v1121_v47 = vmul.f32 %v6036_v54, %v861_v29  ;;  %v872_v51 = vunpack.c.l.bf16 %v671_v42  ;;  %v675_v15 = vld [vmem:[#allocation7 + $0x280] sm:$0xff]  ;;  %v6207_v26 = vpop.f32.mrf.mxu1 }
  0xe4   :  { %8586 = vst [vmem:[#allocation27_spill] sm:$0xff] %v6183_v23  ;;  %v1131_v48 = vmul.f32 %v6036_v54, %v871_v30  ;;  %2670 = vmatpush.bf16.msrb.mxu3 %v5249_v43  ;;  %v863_v58 = vunpack.c.h.bf16 %v666_v40  ;;  %v873_v60 = vunpack.c.h.bf16 %v671_v42  ;;  %v1122_v61 = vmul.f32 %v6054_v14, %v862_v28  ;;  %v676_v42 = vld [vmem:[#allocation7 + $0x288] sm:$0xff]  ;;  %v681_v43 = vld [vmem:[#allocation7 + $0x2b0] sm:$0xff] }
  0xe5   :  { %8587 = vst [vmem:[#allocation28_spill] sm:$0xff] %v6186_v27  ;;  %v6193_v53 = vpack.c.bf16 %v1130_v39, %v1120_v34  ;;  %v1132_v63 = vmul.f32 %v6054_v14, %v872_v51  ;;  %v5313_v6 = vor.u32 %v5637_v3, %v5312_v2  ;;  %v5377_v12 = vor.u32 %v5653_v8, %v5376_v5  ;;  %v6219_v51 = vpop.f32.mrf.mxu3 }
  0xe6   :  { %v6195_v57 = vpack.c.bf16 %v1131_v48, %v1121_v47  ;;  %v1123_v11 = vmul.f32 %v6057_v21, %v863_v58  ;;  %v1133_v10 = vmul.f32 %v6057_v21, %v873_v60  ;;  %v880_v29 = vunpack.c.l.bf16 %v675_v15  ;;  %v6215_v47 = vpop.f32.mrf.mxu2 }
  0xe7   :  { %2464 = vmatmul.bf16.gmra.mxu0 %v6103_v35  ;;  %8588 = vst [vmem:[#allocation29_spill] sm:$0xff] %v6193_v53  ;;  %v6205_v24 = vpack.c.bf16 %v1132_v63, %v1122_v61  ;;  %2816 = vmatpush.bf16.msra.mxu1 %v5377_v12  ;;  %v890_v30 = vunpack.c.l.bf16 %v680_v18  ;;  %v881_v33 = vunpack.c.h.bf16 %v675_v15  ;;  %v891_v34 = vunpack.c.h.bf16 %v680_v18  ;;  %v5603_v15 = vld [vmem:[#allocation2 + $0x214] sm:$0xf0]  ;;  %v5240_v18 = vld [vmem:[#allocation2 + $0x290] sm:$0xf] }
  0xe8   :  { %2537 = vmatmul.bf16.gmra.mxu1 %v6106_v38  ;;  %8589 = vst [vmem:[#allocation30_spill] sm:$0xff] %v6195_v57  ;;  %2743 = vmatpush.bf16.msra.mxu0 %v5313_v6  ;;  %v6210_v32 = vpack.c.bf16 %v1133_v10, %v1123_v11  ;;  %v1140_v39 = vmul.f32 %v6032_v50, %v880_v29  ;;  %v882_v60 = vunpack.c.l.bf16 %v676_v42  ;;  %v892_v61 = vunpack.c.l.bf16 %v681_v43  ;;  %v5176_v10 = vld [vmem:[#allocation2 + $0x210] sm:$0xf]  ;;  %v5619_v29 = vld [vmem:[#allocation2 + $0x294] sm:$0xf0] }
  0xe9   :  { %8590 = vst [vmem:[#allocation31_spill] sm:$0xff] %v6205_v24  ;;  %v1150_v40 = vmul.f32 %v6032_v50, %v890_v30  ;;  %v1141_v48 = vmul.f32 %v6036_v54, %v881_v33  ;;  %v1151_v28 = vmul.f32 %v6036_v54, %v891_v34  ;;  %v6221_v58 = vpop.f32.mrf.mxu0  ;;  %v883_v5 = vunpack.c.h.bf16 %v676_v42 }
  0xea   :  { %8591 = vst [vmem:[#allocation32_spill] sm:$0xff] %v6210_v32  ;;  %v893_v6 = vunpack.c.h.bf16 %v681_v43  ;;  %v1142_v8 = vmul.f32 %v6054_v14, %v882_v60  ;;  %v1152_v11 = vmul.f32 %v6054_v14, %v892_v61  ;;  %v5177_v12 = vor.u32 %v5603_v15, %v5176_v10 }
  0xeb   :  { %v6223_v63 = vpop.f32.mrf.mxu1  ;;  %v6225_v2 = vpack.c.bf16 %v1150_v40, %v1140_v39  ;;  %v6227_v3 = vpack.c.bf16 %v1151_v28, %v1141_v48  ;;  %v1143_v33 = vmul.f32 %v6057_v21, %v883_v5  ;;  %v685_v39 = vld [vmem:[#allocation7 + $0x2d0] sm:$0xff]  ;;  %v690_v40 = vld [vmem:[#allocation7 + $0x2f8] sm:$0xff]  ;;  %v5241_v42 = vor.u32 %v5619_v29, %v5240_v18  ;;  %v6240_v5 = vld [vmem:[%s8400_s3] sm:$0xff] }
  0xec   :  { %v1153_v34 = vmul.f32 %v6057_v21, %v893_v6  ;;  %2598 = vmatpush.bf16.msrb.mxu2 %v5177_v12  ;;  %v6235_v60 = vpack.c.bf16 %v1152_v11, %v1142_v8  ;;  %v901_v10 = vunpack.c.h.bf16 %v685_v39  ;;  %v154_v6 = vperm.slane %v6240_v5, 4  ;;  %v5304_v11 = vld [vmem:[#allocation2 + $0x310] sm:$0xf]  ;;  %v5635_v29 = vld [vmem:[#allocation2 + $0x314] sm:$0xf0] }
  0xed   :  { %8592 = vst [vmem:[#allocation33_spill] sm:$0xff] %v6225_v2  ;;  %2671 = vmatpush.bf16.msrb.mxu3 %v5241_v42  ;;  %v911_v12 = vunpack.c.h.bf16 %v690_v40  ;;  %v960_v25 = vunpack.c.l.bf16 %v715_v59 }
  0xee   :  { %8593 = vst [vmem:[#allocation34_spill] sm:$0xff] %v6227_v3  ;;  %v6244_v18 = vpack.c.bf16 %v1153_v34, %v1143_v33  ;;  %v303_v33 = vadd.f32 %v6203_v22, %v154_v6 }
  0xef   :  { %8594 = vst [vmem:[#allocation35_spill] sm:$0xff] %v6235_v60 }
  0xf0   :  { %2323 = vmatmul.bf16.gmra.mxu2 %v6113_v55  ;;  %8595 = vst [vmem:[#allocation36_spill] sm:$0xff] %v6244_v18  ;;  %v4904_v22 = vmul.f32 -1.442695, %v303_v33 }
  0xf1   :  { %2396 = vmatmul.bf16.gmra.mxu3 %v6115_v56 }
  0xf2   :  { %5718 = vpow2.f32 %v4904_v22 }
  0xf7   :  { %2469 = vmatmul.bf16.gmra.mxu0 %v6123_v7 }
  0xf8   :  { %2542 = vmatmul.bf16.gmra.mxu1 %v6126_v13 }
 0x100   :  { %2328 = vmatmul.bf16.gmra.mxu2 %v6133_v36 }
 0x101   :  { %2401 = vmatmul.bf16.gmra.mxu3 %v6135_v37 }
 0x107   :  { %2474 = vmatmul.bf16.gmra.mxu0 %v6143_v49 }
 0x108   :  { %2547 = vmatmul.bf16.gmra.mxu1 %v6146_v52 }
 0x110   :  { %2333 = vmatmul.bf16.gmra.mxu2 %v6153_v16 }
 0x111   :  { %2406 = vmatmul.bf16.gmra.mxu3 %v6155_v17 }
 0x117   :  { %2479 = vmatmul.bf16.gmra.mxu0 %v6163_v41 }
 0x118   :  { %2552 = vmatmul.bf16.gmra.mxu1 %v6166_v44 }
 0x120   :  { %2338 = vmatmul.bf16.gmra.mxu2 %v6173_v0 }
 0x121   :  { %2411 = vmatmul.bf16.gmra.mxu3 %v6175_v1  ;;  %v5540_v1 = vld [vmem:[#allocation2 + $0x24] sm:$0xf] }
 0x127   :  { %2484 = vmatmul.bf16.gmra.mxu0 %v6183_v23 }
 0x128   :  { %2557 = vmatmul.bf16.gmra.mxu1 %v6186_v27  ;;  %v686_v27 = vld [vmem:[#allocation7 + $0x2d8] sm:$0xff] }
 0x129   :  { %v902_v41 = vunpack.c.l.bf16 %v686_v27 }
 0x130   :  { %2343 = vmatmul.bf16.gmra.mxu2 %v6193_v53 }
 0x131   :  { %2416 = vmatmul.bf16.gmra.mxu3 %v6195_v57 }
 0x137   :  { %2489 = vmatmul.bf16.gmra.mxu0 %v6205_v24  ;;  %v910_v24 = vunpack.c.l.bf16 %v690_v40  ;;  %v1161_v40 = vmul.f32 %v6036_v54, %v901_v10 }
 0x138   :  { %2562 = vmatmul.bf16.gmra.mxu1 %v6210_v32  ;;  %v900_v32 = vunpack.c.l.bf16 %v685_v39  ;;  %v155_v39 = vperm.slane %v6240_v5, 5 }
 0x13a   :  { %v1160_v42 = vmul.f32 %v6032_v50, %v900_v32 }
 0x140   :  { %2348 = vmatmul.bf16.gmra.mxu2 %v6225_v2 }
 0x141   :  { %2421 = vmatmul.bf16.gmra.mxu3 %v6227_v3 }
 0x143   :  { %v2309_v30 = vpop.f32.mrf.mxu2 }
 0x144   :  { %v2382_v43 = vpop.f32.mrf.mxu3  ;;  %v2455_v48 = vpop.f32.mrf.mxu0 }
 0x145   :  { %v2383_v28 = vadd.f32 %v2382_v43, %v2309_v30  ;;  %v2528_v61 = vpop.f32.mrf.mxu1  ;;  %v5368_v30 = vld [vmem:[#allocation2 + $0x390] sm:$0xf]  ;;  %v1170_v43 = vmul.f32 %v6032_v50, %v910_v24  ;;  %v323_v24 = vadd.f32 %v6207_v26, %v155_v39  ;;  %v700_v39 = vld [vmem:[#allocation7 + $0x348] sm:$0xff] }
 0x147   :  { %v2456_v15 = vadd.f32 %v2455_v48, %v2383_v28  ;;  %2494 = vmatmul.bf16.gmra.mxu0 %v6235_v60  ;;  %v691_v48 = vld [vmem:[#allocation7 + $0x300] sm:$0xff]  ;;  %v5305_v28 = vor.u32 %v5635_v29, %v5304_v11  ;;  %v5651_v60 = vld [vmem:[#allocation2 + $0x394] sm:$0xf0]  ;;  %v6256_v11 = vpack.c.bf16 %v1170_v43, %v1160_v42  ;;  %v903_v29 = vunpack.c.h.bf16 %v686_v27 }
 0x148   :  { %2567 = vmatmul.bf16.gmra.mxu1 %v6244_v18  ;;  %v912_v32 = vunpack.c.l.bf16 %v691_v48  ;;  %v913_v10 = vunpack.c.h.bf16 %v691_v48  ;;  %v4905_v26 = vmul.f32 -1.442695, %v323_v24  ;;  %v931_v24 = vunpack.c.h.bf16 %v700_v39 }
 0x149   :  { %v6246_v8 = vadd.f32 %v2528_v61, %v2456_v15  ;;  %v1171_v61 = vmul.f32 %v6036_v54, %v911_v12  ;;  %v5369_v15 = vor.u32 %v5651_v60, %v5368_v30  ;;  %2744 = vmatpush.bf16.msra.mxu0 %v5305_v28  ;;  %8596 = vst [vmem:[#allocation37_spill] sm:$0xff] %v6256_v11 }
 0x14a   :  { %v1172_v12 = vmul.f32 %v6054_v14, %v912_v32  ;;  %v1163_v27 = vmul.f32 %v6057_v21, %v903_v29  ;;  %5720 = vpow2.f32 %v4905_v26  ;;  %v5719_v29 = vpop.eup %5718 }
 0x14b   :  { %v2311_v34 = vpop.f32.mrf.mxu2  ;;  %2817 = vmatpush.bf16.msra.mxu1 %v5369_v15  ;;  %v6258_v49 = vpack.c.bf16 %v1171_v61, %v1161_v40  ;;  %v930_v40 = vunpack.c.l.bf16 %v700_v39  ;;  %v5617_v39 = vld [vmem:[#allocation2 + $0x284] sm:$0xf0] }
 0x14c   :  { %v2384_v18 = vpop.f32.mrf.mxu3  ;;  %v2457_v23 = vpop.f32.mrf.mxu0 }
 0x14d   :  { %v2385_v44 = vadd.f32 %v2384_v18, %v2311_v34  ;;  %v2530_v52 = vpop.f32.mrf.mxu1  ;;  %8597 = vst [vmem:[#allocation38_spill] sm:$0xff] %v6258_v49  ;;  %v1162_v18 = vmul.f32 %v6054_v14, %v902_v41  ;;  %v157_v41 = vperm.slane %v6240_v5, 7 }
 0x14f   :  { %v2458_v6 = vadd.f32 %v2457_v23, %v2385_v44  ;;  %v1173_v44 = vmul.f32 %v6057_v21, %v913_v10  ;;  %v695_v23 = vld [vmem:[#allocation7 + $0x320] sm:$0xff]  ;;  %v6269_v28 = vpack.c.bf16 %v1172_v12, %v1162_v18  ;;  %v5601_v18 = vld [vmem:[#allocation2 + $0x204] sm:$0xf0]  ;;  %v363_v12 = vadd.f32 %v6219_v51, %v157_v41 }
 0x150   :  { %2353 = vmatmul.bf16.gmra.mxu2 %v6256_v11  ;;  %v920_v34 = vunpack.c.l.bf16 %v695_v23  ;;  %v921_v32 = vunpack.c.h.bf16 %v695_v23  ;;  %v5168_v10 = vld [vmem:[#allocation2 + $0x200] sm:$0xf] }
 0x151   :  { %v6261_v60 = vadd.f32 %v2530_v52, %v2458_v6  ;;  %2426 = vmatmul.bf16.gmra.mxu3 %v6258_v49  ;;  %v156_v52 = vperm.slane %v6240_v5, 6  ;;  %8598 = vst [vmem:[#allocation39_spill] sm:$0xff] %v6269_v28  ;;  %v6273_v15 = vpack.c.bf16 %v1173_v44, %v1163_v27  ;;  %v5232_v5 = vld [vmem:[#allocation2 + $0x280] sm:$0xf]  ;;  %v696_v27 = vld [vmem:[#allocation7 + $0x328] sm:$0xff]  ;;  %v701_v44 = vld [vmem:[#allocation7 + $0x350] sm:$0xff]  ;;  %v5169_v23 = vor.u32 %v5601_v18, %v5168_v10 }
 0x152   :  { %v1180_v26 = vmul.f32 %v6032_v50, %v920_v34  ;;  %v922_v34 = vunpack.c.l.bf16 %v696_v27  ;;  %v923_v13 = vunpack.c.h.bf16 %v696_v27  ;;  %v5633_v27 = vld [vmem:[#allocation2 + $0x304] sm:$0xf0] }
 0x153   :  { %v2314_v30 = vpop.f32.mrf.mxu2  ;;  %8599 = vst [vmem:[#allocation40_spill] sm:$0xff] %v6273_v15  ;;  %v343_v22 = vadd.f32 %v6215_v47, %v156_v52  ;;  %v1181_v47 = vmul.f32 %v6036_v54, %v921_v32  ;;  %v5233_v52 = vor.u32 %v5617_v39, %v5232_v5  ;;  %2599 = vmatpush.bf16.msrb.mxu2 %v5169_v23  ;;  %v5360_v23 = vld [vmem:[#allocation2 + $0x380] sm:$0xf]  ;;  %v5649_v39 = vld [vmem:[#allocation2 + $0x384] sm:$0xf0] }
 0x154   :  { %v2387_v42 = vpop.f32.mrf.mxu3  ;;  %v2460_v43 = vpop.f32.mrf.mxu0 }
 0x155   :  { %v2388_v48 = vadd.f32 %v2387_v42, %v2314_v30  ;;  %v2533_v33 = vpop.f32.mrf.mxu1  ;;  %v1190_v30 = vmul.f32 %v6032_v50, %v930_v40  ;;  %v4906_v51 = vmul.f32 -1.442695, %v343_v22  ;;  %v932_v40 = vunpack.c.l.bf16 %v701_v44  ;;  %2672 = vmatpush.bf16.msrb.mxu3 %v5233_v52  ;;  %v710_v52 = vld [vmem:[#allocation7 + $0x398] sm:$0xff] }
 0x157   :  { %v2461_v61 = vadd.f32 %v2460_v43, %v2388_v48  ;;  %2499 = vmatmul.bf16.gmra.mxu0 %v6269_v28  ;;  %v1191_v43 = vmul.f32 %v6036_v54, %v931_v24  ;;  %v5721_v48 = vpop.eup %5720  ;;  %v4907_v28 = vmul.f32 -1.442695, %v363_v12  ;;  %v6286_v18 = vpack.c.bf16 %v1190_v30, %v1180_v26  ;;  %v5296_v30 = vld [vmem:[#allocation2 + $0x300] sm:$0xf] }
 0x158   :  { %2572 = vmatmul.bf16.gmra.mxu1 %v6273_v15  ;;  %v6288_v32 = vadd.f32 1.0, %v5721_v48  ;;  %v1182_v12 = vmul.f32 %v6054_v14, %v922_v34  ;;  %v1192_v26 = vmul.f32 %v6054_v14, %v932_v40  ;;  %v5361_v48 = vor.u32 %v5649_v39, %v5360_v23 }
 0x159   :  { %v6276_v6 = vadd.f32 %v2533_v33, %v2461_v61  ;;  %v6284_v33 = vadd.f32 1.0, %v5719_v29  ;;  %8600 = vst [vmem:[#allocation41_spill] sm:$0xff] %v6286_v18  ;;  %v6290_v5 = vpack.c.bf16 %v1191_v43, %v1181_v47  ;;  %v933_v29 = vunpack.c.h.bf16 %v701_v44  ;;  %v705_v43 = vld [vmem:[#allocation7 + $0x370] sm:$0xff] }
 0x15a   :  { %v6302_v34 = vpack.c.bf16 %v1192_v26, %v1182_v12  ;;  %2818 = vmatpush.bf16.msra.mxu1 %v5361_v48  ;;  %v951_v23 = vunpack.c.h.bf16 %v710_v52  ;;  %v706_v48 = vld [vmem:[#allocation7 + $0x378] sm:$0xff]  ;;  %vm525_vm4 = vweird.f32 %v6288_v32 }
 0x15b   :  { %v2316_v42 = vpop.f32.mrf.mxu2  ;;  %8601 = vst [vmem:[#allocation42_spill] sm:$0xff] %v6290_v5  ;;  %5722 = vrcp.f32 %v6284_v33  ;;  %v1193_v47 = vmul.f32 %v6057_v21, %v933_v29  ;;  %v941_v29 = vunpack.c.h.bf16 %v705_v43  ;;  %vm510_vm2 = vweird.f32 %v6284_v33 }
 0x15c   :  { %v2389_v61 = vpop.f32.mrf.mxu3  ;;  %v2462_v15 = vpop.f32.mrf.mxu0  ;;  %5724 = vpow2.f32 %v4906_v51  ;;  %8602 = vst [vmem:[#allocation43_spill] sm:$0xff] %v6302_v34 }
 0x15d   :  { %v2390_v41 = vadd.f32 %v2389_v61, %v2316_v42  ;;  %v2535_v10 = vpop.f32.mrf.mxu1  ;;  %5726 = vpow2.f32 %v4907_v28  ;;  %v1183_v42 = vmul.f32 %v6057_v21, %v923_v13 }
 0x15e   :  { %5728 = vrcp.f32 %v6288_v32 }
 0x15f   :  { %v2463_v24 = vadd.f32 %v2462_v15, %v2390_v41  ;;  %v5297_v15 = vor.u32 %v5633_v27, %v5296_v30  ;;  %v6307_v13 = vpack.c.bf16 %v1193_v47, %v1183_v42  ;;  %v1201_v47 = vmul.f32 %v6036_v54, %v941_v29 }
 0x160   :  { %2358 = vmatmul.bf16.gmra.mxu2 %v6286_v18 }
 0x161   :  { %v6294_v22 = vadd.f32 %v2535_v10, %v2463_v24  ;;  %2431 = vmatmul.bf16.gmra.mxu3 %v6290_v5  ;;  %2745 = vmatpush.bf16.msra.mxu0 %v5297_v15  ;;  %v6304_v28 = vpop.eup %5722  ;;  %v940_v10 = vunpack.c.l.bf16 %v705_v43  ;;  %v950_v24 = vunpack.c.l.bf16 %v710_v52  ;;  %8603 = vst [vmem:[#allocation44_spill] sm:$0xff] %v6307_v13  ;;  %v1211_v43 = vmul.f32 %v6036_v54, %v951_v23 }
 0x162   :  { %v5725_v30 = vpop.eup %5724  ;;  %v506_v52 = vmul.f32 %v6304_v28, %v6284_v33  ;;  %vm511_vm3 = vweird.f32 %v6304_v28 }
 0x163   :  { %v2319_v44 = vpop.f32.mrf.mxu2  ;;  %v5727_v39 = vpop.eup %5726  ;;  %v6314_v12 = vadd.f32 1.0, %v5725_v30  ;;  %v1200_v26 = vmul.f32 %v6032_v50, %v940_v10  ;;  %v6330_v38 = vpack.c.bf16 %v1211_v43, %v1201_v47  ;;  %vm6367_vm6 = vmor %vm510_vm2, %vm511_vm3 }
 0x164   :  { %v2392_v61 = vpop.f32.mrf.mxu3  ;;  %v2465_v51 = vpop.f32.mrf.mxu0  ;;  %v507_v35 = vsub.f32 1.0, %v506_v52  ;;  %v5685_v52 = vld [vmem:[#allocation2 + $0x4a4] sm:$0xf0] }
 0x165   :  { %v2393_v41 = vadd.f32 %v2392_v61, %v2319_v44  ;;  %v2538_v40 = vpop.f32.mrf.mxu1  ;;  %v6309_v7 = vpop.eup %5728  ;;  %v1210_v44 = vmul.f32 %v6032_v50, %v950_v24  ;;  %v711_v61 = vld [vmem:[#allocation7 + $0x3a0] sm:$0xff]  ;;  %5730 = vrcp.f32 %v6314_v12  ;;  %8605 = vst [vmem:[#allocation46_spill] sm:$0xff] %v6330_v38  ;;  %vm540_vm10 = vweird.f32 %v6314_v12 }
 0x166   :  { %v952_v24 = vunpack.c.l.bf16 %v711_v61  ;;  %v953_v29 = vunpack.c.h.bf16 %v711_v61  ;;  %v5504_v61 = vld [vmem:[#allocation2 + $0x4a0] sm:$0xf]  ;;  %vm526_vm5 = vweird.f32 %v6309_v7 }
 0x167   :  { %v2466_v27 = vadd.f32 %v2465_v51, %v2393_v41  ;;  %2504 = vmatmul.bf16.gmra.mxu0 %v6302_v34  ;;  %v6318_v51 = vadd.f32 1.0, %v5727_v39  ;;  %v521_v41 = vmul.f32 %v6309_v7, %v6288_v32  ;;  %v943_v34 = vunpack.c.h.bf16 %v706_v48  ;;  %vm6380_vm7 = vmor %vm525_vm4, %vm526_vm5 }
 0x168   :  { %2577 = vmatmul.bf16.gmra.mxu1 %v6307_v13  ;;  %v6327_v13 = vpack.c.bf16 %v1210_v44, %v1200_v26  ;;  %v1212_v26 = vmul.f32 %v6054_v14, %v952_v24  ;;  %v5480_v44 = vld [vmem:[#allocation2 + $0x470] sm:$0xf]  ;;  %v1213_v47 = vmul.f32 %v6057_v21, %v953_v29  ;;  %v508_v24 = vmul.f32 %v6304_v28, %v507_v35 }
 0x169   :  { %v6311_v15 = vadd.f32 %v2538_v40, %v2466_v27  ;;  %v942_v27 = vunpack.c.l.bf16 %v706_v48  ;;  %5732 = vrcp.f32 %v6318_v51  ;;  %v522_v62 = vsub.f32 1.0, %v521_v41  ;;  %v5679_v48 = vld [vmem:[#allocation2 + $0x474] sm:$0xf0] }
 0x16a   :  { %8604 = vst [vmem:[#allocation45_spill] sm:$0xff] %v6327_v13  ;;  %v5481_v43 = vor.u32 %v5679_v48, %v5480_v44  ;;  %v961_v48 = vunpack.c.h.bf16 %v715_v59  ;;  %vm555_vm12 = vweird.f32 %v6318_v51 }
 0x16b   :  { %v2321_v42 = vpop.f32.mrf.mxu2  ;;  %v6340_v31 = vpop.eup %5730 }
 0x16c   :  { %v2394_v40 = vpop.f32.mrf.mxu3  ;;  %v2467_v30 = vpop.f32.mrf.mxu0  ;;  %2884 = vmatpush.bf16.msra.mxu2 %v5481_v43  ;;  %v536_v35 = vmul.f32 %v6340_v31, %v6314_v12  ;;  %v531_v43 = vand.u32 2147483648, %v6288_v32  ;;  %vm541_vm11 = vweird.f32 %v6340_v31 }
 0x16d   :  { %v2395_v10 = vadd.f32 %v2394_v40, %v2321_v42  ;;  %v2540_v39 = vpop.f32.mrf.mxu1  ;;  %v1202_v40 = vmul.f32 %v6054_v14, %v942_v27  ;;  %vm6420_vm14 = vmor %vm540_vm10, %vm541_vm11  ;;  %vm2260_vm10 = vcmask 392192  }
 0x16e   :  { %v532_v49 = vor.u32 1.1754944e-38, %v531_v43 }
 0x16f   :  { %v2468_v23 = vadd.f32 %v2467_v30, %v2395_v10  ;;  %v1203_v30 = vmul.f32 %v6057_v21, %v943_v34  ;;  %v5505_v10 = vor.u32 %v5685_v52, %v5504_v61  ;;  %v6342_v27 = vpop.eup %5732  ;;  %v6346_v34 = vpack.c.bf16 %v1212_v26, %v1202_v40  ;;  %v716_v40 = vld [vmem:[#allocation7 + $0x3c8] sm:$0xff] }
 0x170   :  { %2363 = vmatmul.bf16.gmra.mxu2 %v6327_v13  ;;  %v514_v26 = vand.u32 2147483647, %v6284_v33  ;;  %v516_v61 = vand.u32 2147483648, %v6284_v33  ;;  %v551_v59 = vmul.f32 %v6342_v27, %v6318_v51  ;;  %v529_v52 = vand.u32 2147483647, %v6288_v32 }
 0x171   :  { %v6333_v42 = vadd.f32 %v2540_v39, %v2468_v23  ;;  %2436 = vmatmul.bf16.gmra.mxu3 %v6330_v38  ;;  %v523_v38 = vmul.f32 %v6309_v7, %v522_v62  ;;  %8606 = vst [vmem:[#allocation47_spill] sm:$0xff] %v6346_v34  ;;  %v6350_v44 = vpack.c.bf16 %v1213_v47, %v1203_v30  ;;  %vm556_vm13 = vweird.f32 %v6342_v27 }
 0x172   :  { %2962 = vmatpush.bf16.msra.mxu3 %v5505_v10  ;;  %v509_v30 = vadd.f32 %v6304_v28, %v508_v24  ;;  %v5550_v10 = vld [vmem:[#allocation2 + $0x74] sm:$0xf]  ;;  %v962_v24 = vunpack.c.l.bf16 %v716_v40  ;;  %vm6386_vm8 = vcmp.eq.f32.partialorder %v514_v26, 8.507059e+37  ;;  %v517_v18 = vor.u32 1.1754944e-38, %v516_v61  ;;  %vm6442_vm0 = vmor %vm555_vm12, %vm556_vm13 }
 0x173   :  { %v2324_v41 = vpop.f32.mrf.mxu2  ;;  %8607 = vst [vmem:[#allocation48_spill] sm:$0xff] %v6350_v44  ;;  %v524_v47 = vadd.f32 %v6309_v7, %v523_v38  ;;  %v552_v32 = vsub.f32 1.0, %v551_v59  ;;  %vm530_vm9 = vcmp.eq.f32.partialorder %v529_v52, 8.507059e+37 }
 0x174   :  { %v2397_v39 = vpop.f32.mrf.mxu3  ;;  %v2470_v23 = vpop.f32.mrf.mxu0 }
 0x175   :  { %v2398_v13 = vadd.f32 %v2397_v39, %v2324_v41  ;;  %v2543_v29 = vpop.f32.mrf.mxu1  ;;  %v4970_v39 = vld [vmem:[#allocation2 + $0x78] sm:$0xf0] }
 0x176   :  { %v4973_v38 = vor.u32 %v5550_v10, %v4970_v39  ;;  %v559_v39 = vand.u32 2147483647, %v6318_v51 }
 0x177   :  { %v2471_v62 = vadd.f32 %v2470_v23, %v2398_v13  ;;  %2509 = vmatmul.bf16.gmra.mxu0 %v6346_v34  ;;  %v1220_v23 = vmul.f32 %v6032_v50, %v960_v25  ;;  %v537_v34 = vsub.f32 1.0, %v536_v35  ;;  %v513_v50 = vsel %vm6367_vm6, %v6304_v28, %v509_v30  ;;  %v597_v13 = vld [vmem:[#allocation7 + $0x10] sm:$0xff] }
 0x178   :  { %2582 = vmatmul.bf16.gmra.mxu1 %v6350_v44  ;;  %3030 = vmatpush.bf16.msrb.mxu0 %v4973_v38  ;;  %v528_v25 = vsel %vm6380_vm7, %v6309_v7, %v524_v47  ;;  %v518_v28 = vsel %vm6386_vm8, %v517_v18, %v513_v50  ;;  %v544_v7 = vand.u32 2147483647, %v6314_v12  ;;  %v602_v47 = vld [vmem:[#allocation7 + $0x38] sm:$0xff]  ;;  %vm560_vm1 = vcmp.eq.f32.partialorder %v559_v39, 8.507059e+37 }
 0x179   :  { %v6373_v41 = vadd.f32 %v2543_v29, %v2471_v62  ;;  %v1221_v29 = vmul.f32 %v6036_v54, %v961_v48  ;;  %v963_v62 = vunpack.c.h.bf16 %v716_v40  ;;  %v6396_v35 = vpack.c.bf16 %v1220_v23, %v1220_v23 }
 0x17a   :  { %v1222_v40 = vmul.f32 %v6054_v14, %v962_v24  ;;  %v538_v26 = vmul.f32 %v6340_v31, %v537_v34  ;;  %v533_v30 = vsel %vm530_vm9, %v532_v49, %v528_v25  ;;  %v546_v14 = vand.u32 2147483648, %v6314_v12 }
 0x17b   :  { %v2326_v5 = vpop.f32.mrf.mxu2  ;;  %8614 = vst [vmem:[#allocation49_spill] sm:$0xff] %v6396_v35  ;;  %v6400_v43 = vpack.c.bf16 %v1221_v29, %v1221_v29  ;;  %v1223_v59 = vmul.f32 %v6057_v21, %v963_v62  ;;  %v5566_v21 = vld [vmem:[#allocation2 + $0xf4] sm:$0xf]  ;;  %v561_v49 = vand.u32 2147483648, %v6318_v51  ;;  %v6430_v29 = vperm.slane %v518_v28, 0 }
 0x17c   :  { %v2399_v11 = vpop.f32.mrf.mxu3  ;;  %v2472_v3 = vpop.f32.mrf.mxu0  ;;  %v539_v34 = vadd.f32 %v6340_v31, %v538_v26  ;;  %v6426_v24 = vpack.c.bf16 %v1222_v40, %v1222_v40  ;;  %v6432_v62 = vperm.slane %v533_v30, 0  ;;  %vm6434_vm15 = vcmp.eq.f32.partialorder %v544_v7, 8.507059e+37 }
 0x17d   :  { %v2400_v54 = vadd.f32 %v2399_v11, %v2326_v5  ;;  %v2545_v48 = vpop.f32.mrf.mxu1  ;;  %8615 = vst [vmem:[#allocation50_spill] sm:$0xff] %v6400_v43  ;;  %v553_v11 = vmul.f32 %v6342_v27, %v552_v32  ;;  %v5034_v5 = vld [vmem:[#allocation2 + $0xf8] sm:$0xf0]  ;;  %v6428_v38 = vpack.c.bf16 %v1223_v59, %v1223_v59  ;;  %v547_v25 = vor.u32 1.1754944e-38, %v546_v14  ;;  %v5677_v14 = vld [vmem:[#allocation2 + $0x464] sm:$0xf0] }
 0x17e   :  { %v5037_v18 = vor.u32 %v5566_v21, %v5034_v5  ;;  %8618 = vst [vmem:[#allocation51_spill] sm:$0xff] %v6426_v24  ;;  %v724_v40 = vunpack.c.l.bf16 %v597_v13  ;;  %v734_v26 = vunpack.c.l.bf16 %v602_v47  ;;  %v725_v28 = vunpack.c.h.bf16 %v597_v13 }
 0x17f   :  { %v2473_v61 = vadd.f32 %v2472_v3, %v2400_v54  ;;  %v554_v10 = vadd.f32 %v6342_v27, %v553_v11  ;;  %8619 = vst [vmem:[#allocation52_spill] sm:$0xff] %v6428_v38  ;;  %v562_v54 = vor.u32 1.1754944e-38, %v561_v49  ;;  %v735_v30 = vunpack.c.h.bf16 %v602_v47  ;;  %v5472_v11 = vld [vmem:[#allocation2 + $0x460] sm:$0xf]  ;;  %v598_v49 = vld [vmem:[#allocation7 + $0x18] sm:$0xff] }
 0x180   :  { %2368 = vmatmul.bf16.gmra.mxu2 %v6396_v35  ;;  %3103 = vmatpush.bf16.msrb.mxu1 %v5037_v18  ;;  %v994_v5 = vmul.f32 %v6430_v29, %v734_v26  ;;  %v603_v18 = vld [vmem:[#allocation7 + $0x40] sm:$0xff] }
 0x181   :  { %v6411_v3 = vadd.f32 %v2545_v48, %v2473_v61  ;;  %2441 = vmatmul.bf16.gmra.mxu3 %v6400_v43  ;;  %v543_v61 = vsel %vm6420_vm14, %v6340_v31, %v539_v34  ;;  %v558_v51 = vsel %vm6442_vm0, %v6342_v27, %v554_v10  ;;  %v984_v31 = vmul.f32 %v6430_v29, %v724_v40 }
 0x182   :  { %v548_v21 = vsel %vm6434_vm15, %v547_v25, %v543_v61  ;;  %v5473_v34 = vor.u32 %v5677_v14, %v5472_v11  ;;  %v985_v27 = vmul.f32 %v6432_v62, %v725_v28  ;;  %v995_v47 = vmul.f32 %v6432_v62, %v735_v30  ;;  %v607_v14 = vld [vmem:[#allocation7 + $0x60] sm:$0xff] }
 0x183   :  { %v2329_v44 = vpop.f32.mrf.mxu2  ;;  %v6462_v39 = vperm.slane %v548_v21, 0  ;;  %v736_v12 = vunpack.c.l.bf16 %v603_v18  ;;  %v6466_v25 = vpack.c.bf16 %v994_v5, %v984_v31  ;;  %v727_v40 = vunpack.c.h.bf16 %v598_v49  ;;  %v612_v21 = vld [vmem:[#allocation7 + $0x88] sm:$0xff] }
 0x184   :  { %v2402_v33 = vpop.f32.mrf.mxu3  ;;  %v2475_v23 = vpop.f32.mrf.mxu0  ;;  %2885 = vmatpush.bf16.msra.mxu2 %v5473_v34  ;;  %v737_v26 = vunpack.c.h.bf16 %v603_v18 }
 0x185   :  { %v2403_v50 = vadd.f32 %v2402_v33, %v2329_v44  ;;  %v2548_v48 = vpop.f32.mrf.mxu1  ;;  %v563_v44 = vsel %vm560_vm1, %v562_v54, %v558_v51  ;;  %8624 = vst [vmem:[#allocation53_spill] sm:$0xff] %v6466_v25  ;;  %v6468_v54 = vpack.c.bf16 %v995_v47, %v985_v27  ;;  %v996_v28 = vmul.f32 %v6462_v39, %v736_v12  ;;  %v4962_v12 = vld [vmem:[#allocation2 + $0x68] sm:$0xf0] }
 0x186   :  { %v6464_v32 = vperm.slane %v563_v44, 0  ;;  %v744_v44 = vunpack.c.l.bf16 %v607_v14 }
 0x187   :  { %v2476_v59 = vadd.f32 %v2475_v23, %v2403_v50  ;;  %2514 = vmatmul.bf16.gmra.mxu0 %v6426_v24  ;;  %v726_v23 = vunpack.c.l.bf16 %v598_v49  ;;  %8625 = vst [vmem:[#allocation54_spill] sm:$0xff] %v6468_v54 }
 0x188   :  { %2587 = vmatmul.bf16.gmra.mxu1 %v6428_v38  ;;  %v987_v51 = vmul.f32 %v6464_v32, %v727_v40  ;;  %v997_v11 = vmul.f32 %v6464_v32, %v737_v26  ;;  %v608_v26 = vld [vmem:[#allocation7 + $0x68] sm:$0xff] }
 0x189   :  { %v6453_v7 = vadd.f32 %v2548_v48, %v2476_v59  ;;  %v986_v59 = vmul.f32 %v6462_v39, %v726_v23  ;;  %v5548_v23 = vld [vmem:[#allocation2 + $0x64] sm:$0xf] }
 0x18a   :  { %v6481_v47 = vpack.c.bf16 %v997_v11, %v987_v51 }
 0x18b   :  { %v2331_v13 = vpop.f32.mrf.mxu2  ;;  %v6478_v18 = vpack.c.bf16 %v996_v28, %v986_v59  ;;  %v613_v59 = vld [vmem:[#allocation7 + $0x90] sm:$0xff]  ;;  %v4965_v28 = vor.u32 %v5548_v23, %v4962_v12  ;;  %v747_v23 = vunpack.c.h.bf16 %v608_v26 }
 0x18c   :  { %v2404_v52 = vpop.f32.mrf.mxu3  ;;  %v2477_v10 = vpop.f32.mrf.mxu0  ;;  %8627 = vst [vmem:[#allocation56_spill] sm:$0xff] %v6481_v47  ;;  %v757_v12 = vunpack.c.h.bf16 %v613_v59 }
 0x18d   :  { %v2405_v33 = vadd.f32 %v2404_v52, %v2331_v13  ;;  %v2550_v50 = vpop.f32.mrf.mxu1  ;;  %8626 = vst [vmem:[#allocation55_spill] sm:$0xff] %v6478_v18  ;;  %v754_v13 = vunpack.c.l.bf16 %v612_v21  ;;  %v745_v52 = vunpack.c.h.bf16 %v607_v14  ;;  %3031 = vmatpush.bf16.msrb.mxu0 %v4965_v28 }
 0x18f   :  { %v2478_v48 = vadd.f32 %v2477_v10, %v2405_v33  ;;  %v755_v10 = vunpack.c.h.bf16 %v612_v21  ;;  %v1014_v40 = vmul.f32 %v6430_v29, %v754_v13  ;;  %v1005_v51 = vmul.f32 %v6432_v62, %v745_v52 }
 0x190   :  { %2600 = vmatmul.bf16.vlgmr.msrb.gmra.mxu2 %v6466_v25 }
 0x191   :  { %v6471_v61 = vadd.f32 %v2550_v50, %v2478_v48  ;;  %2673 = vmatmul.bf16.vlgmr.msrb.gmra.mxu3 %v6468_v54  ;;  %v5564_v50 = vld [vmem:[#allocation2 + $0xe4] sm:$0xf]  ;;  %v1004_v48 = vmul.f32 %v6430_v29, %v744_v44  ;;  %v1015_v11 = vmul.f32 %v6432_v62, %v755_v10 }
 0x193   :  { %v2334_v30 = vpop.f32.mrf.mxu2 }
 0x194   :  { %v2407_v31 = vpop.f32.mrf.mxu3  ;;  %v2480_v5 = vpop.f32.mrf.mxu0 }
 0x195   :  { %v2408_v49 = vadd.f32 %v2407_v31, %v2334_v30  ;;  %v2553_v34 = vpop.f32.mrf.mxu1  ;;  %v5026_v30 = vld [vmem:[#allocation2 + $0xe8] sm:$0xf0] }
 0x196   :  { %v5029_v14 = vor.u32 %v5564_v50, %v5026_v30  ;;  %v1007_v30 = vmul.f32 %v6464_v32, %v747_v23  ;;  %v5464_v23 = vld [vmem:[#allocation2 + $0x450] sm:$0xf] }
 0x197   :  { %v2481_v27 = vadd.f32 %v2480_v5, %v2408_v49  ;;  %2746 = vmatmul.bf16.vlgmr.msra.gmra.mxu0 %v6478_v18  ;;  %v6492_v18 = vpack.c.bf16 %v1015_v11, %v1005_v51 }
 0x198   :  { %2819 = vmatmul.bf16.vlgmr.msra.gmra.mxu1 %v6481_v47  ;;  %v6490_v47 = vpack.c.bf16 %v1014_v40, %v1004_v48  ;;  %v1017_v48 = vmul.f32 %v6464_v32, %v757_v12  ;;  %v617_v40 = vld [vmem:[#allocation7 + $0xb0] sm:$0xff]  ;;  %v5675_v12 = vld [vmem:[#allocation2 + $0x454] sm:$0xf0] }
 0x199   :  { %v6483_v33 = vadd.f32 %v2553_v34, %v2481_v27  ;;  %v746_v34 = vunpack.c.l.bf16 %v608_v26  ;;  %v756_v27 = vunpack.c.l.bf16 %v613_v59  ;;  %3104 = vmatpush.bf16.msrb.mxu1 %v5029_v14  ;;  %8629 = vst [vmem:[#allocation58_spill] sm:$0xff] %v6492_v18  ;;  %v5465_v38 = vor.u32 %v5675_v12, %v5464_v23  ;;  %v4954_v12 = vld [vmem:[#allocation2 + $0x58] sm:$0xf0] }
 0x19a   :  { %8628 = vst [vmem:[#allocation57_spill] sm:$0xff] %v6490_v47 }
 0x19b   :  { %v2336_v31 = vpop.f32.mrf.mxu2  ;;  %v1006_v10 = vmul.f32 %v6462_v39, %v746_v34  ;;  %v1016_v50 = vmul.f32 %v6462_v39, %v756_v27  ;;  %v6505_v34 = vpack.c.bf16 %v1017_v48, %v1007_v30  ;;  %v765_v27 = vunpack.c.h.bf16 %v617_v40  ;;  %2886 = vmatpush.bf16.msra.mxu2 %v5465_v38 }
 0x19c   :  { %v2409_v21 = vpop.f32.mrf.mxu3  ;;  %v2482_v5 = vpop.f32.mrf.mxu0 }
 0x19d   :  { %v2410_v49 = vadd.f32 %v2409_v21, %v2336_v31  ;;  %v2555_v44 = vpop.f32.mrf.mxu1  ;;  %v622_v31 = vld [vmem:[#allocation7 + $0xd8] sm:$0xff]  ;;  %v6502_v11 = vpack.c.bf16 %v1016_v50, %v1006_v10  ;;  %v764_v21 = vunpack.c.l.bf16 %v617_v40  ;;  %8631 = vst [vmem:[#allocation60_spill] sm:$0xff] %v6505_v34 }
 0x19e   :  { %v618_v50 = vld [vmem:[#allocation7 + $0xb8] sm:$0xff] }
 0x19f   :  { %v2483_v13 = vadd.f32 %v2482_v5, %v2410_v49  ;;  %8630 = vst [vmem:[#allocation59_spill] sm:$0xff] %v6502_v11  ;;  %v774_v5 = vunpack.c.l.bf16 %v622_v31 }
 0x1a0   :  { %2605 = vmatmul.bf16.gmra.mxu2 %v6490_v47 }
 0x1a1   :  { %v6495_v52 = vadd.f32 %v2555_v44, %v2483_v13  ;;  %2678 = vmatmul.bf16.gmra.mxu3 %v6492_v18  ;;  %v775_v44 = vunpack.c.h.bf16 %v622_v31  ;;  %v1034_v10 = vmul.f32 %v6430_v29, %v774_v5  ;;  %v767_v5 = vunpack.c.h.bf16 %v618_v50 }
 0x1a3   :  { %v2339_v28 = vpop.f32.mrf.mxu2  ;;  %v1035_v30 = vmul.f32 %v6432_v62, %v775_v44  ;;  %v5546_v44 = vld [vmem:[#allocation2 + $0x54] sm:$0xf] }
 0x1a4   :  { %v2412_v51 = vpop.f32.mrf.mxu3  ;;  %v2485_v26 = vpop.f32.mrf.mxu0 }
 0x1a5   :  { %v2413_v59 = vadd.f32 %v2412_v51, %v2339_v28  ;;  %v2558_v14 = vpop.f32.mrf.mxu1  ;;  %v1024_v28 = vmul.f32 %v6430_v29, %v764_v21  ;;  %v623_v51 = vld [vmem:[#allocation7 + $0xe0] sm:$0xff] }
 0x1a6   :  { %v777_v18 = vunpack.c.h.bf16 %v623_v51 }
 0x1a7   :  { %v2486_v49 = vadd.f32 %v2485_v26, %v2413_v59  ;;  %2751 = vmatmul.bf16.gmra.mxu0 %v6502_v11  ;;  %v1025_v59 = vmul.f32 %v6432_v62, %v765_v27  ;;  %v6514_v11 = vpack.c.bf16 %v1034_v10, %v1024_v28  ;;  %v4957_v28 = vor.u32 %v5546_v44, %v4954_v12  ;;  %v5018_v10 = vld [vmem:[#allocation2 + $0xd8] sm:$0xf0] }
 0x1a8   :  { %2824 = vmatmul.bf16.gmra.mxu1 %v6505_v34 }
 0x1a9   :  { %v6507_v13 = vadd.f32 %v2558_v14, %v2486_v49  ;;  %v766_v14 = vunpack.c.l.bf16 %v618_v50  ;;  %v776_v49 = vunpack.c.l.bf16 %v623_v51  ;;  %8632 = vst [vmem:[#allocation61_spill] sm:$0xff] %v6514_v11  ;;  %v6516_v24 = vpack.c.bf16 %v1035_v30, %v1025_v59  ;;  %v627_v51 = vld [vmem:[#allocation7 + $0x100] sm:$0xff]  ;;  %v632_v30 = vld [vmem:[#allocation7 + $0x128] sm:$0xff]  ;;  %3032 = vmatpush.bf16.msrb.mxu0 %v4957_v28  ;;  %v5683_v28 = vld [vmem:[#allocation2 + $0x494] sm:$0xf0] }
 0x1aa   :  { %v1027_v59 = vmul.f32 %v6464_v32, %v767_v5  ;;  %v1037_v50 = vmul.f32 %v6464_v32, %v777_v18  ;;  %v785_v5 = vunpack.c.h.bf16 %v627_v51  ;;  %v795_v18 = vunpack.c.h.bf16 %v632_v30 }
 0x1ab   :  { %v2341_v26 = vpop.f32.mrf.mxu2  ;;  %8633 = vst [vmem:[#allocation62_spill] sm:$0xff] %v6516_v24  ;;  %v1026_v27 = vmul.f32 %v6462_v39, %v766_v14  ;;  %v1036_v38 = vmul.f32 %v6462_v39, %v776_v49 }
 0x1ac   :  { %v2414_v48 = vpop.f32.mrf.mxu3  ;;  %v2487_v40 = vpop.f32.mrf.mxu0  ;;  %v6529_v12 = vpack.c.bf16 %v1037_v50, %v1027_v59  ;;  %v1055_v59 = vmul.f32 %v6432_v62, %v795_v18 }
 0x1ad   :  { %v2415_v31 = vadd.f32 %v2414_v48, %v2341_v26  ;;  %v2560_v34 = vpop.f32.mrf.mxu1  ;;  %v5562_v26 = vld [vmem:[#allocation2 + $0xd4] sm:$0xf]  ;;  %v6526_v14 = vpack.c.bf16 %v1036_v38, %v1026_v27 }
 0x1ae   :  { %8635 = vst [vmem:[#allocation64_spill] sm:$0xff] %v6529_v12 }
 0x1af   :  { %v2488_v21 = vadd.f32 %v2487_v40, %v2415_v31  ;;  %8634 = vst [vmem:[#allocation63_spill] sm:$0xff] %v6526_v14 }
 0x1b0   :  { %2610 = vmatmul.bf16.gmra.mxu2 %v6514_v11  ;;  %v794_v11 = vunpack.c.l.bf16 %v632_v30 }
 0x1b1   :  { %v6519_v23 = vadd.f32 %v2560_v34, %v2488_v21  ;;  %2683 = vmatmul.bf16.gmra.mxu3 %v6516_v24  ;;  %v5021_v34 = vor.u32 %v5562_v26, %v5018_v10  ;;  %v784_v24 = vunpack.c.l.bf16 %v627_v51  ;;  %v5496_v26 = vld [vmem:[#allocation2 + $0x490] sm:$0xf]  ;;  %v628_v10 = vld [vmem:[#allocation7 + $0x108] sm:$0xff] }
 0x1b2   :  { %v1054_v38 = vmul.f32 %v6430_v29, %v794_v11  ;;  %v787_v11 = vunpack.c.h.bf16 %v628_v10 }
 0x1b3   :  { %v2344_v48 = vpop.f32.mrf.mxu2  ;;  %3105 = vmatpush.bf16.msrb.mxu1 %v5021_v34  ;;  %v1044_v27 = vmul.f32 %v6430_v29, %v784_v24  ;;  %v5497_v34 = vor.u32 %v5683_v28, %v5496_v26  ;;  %v5456_v28 = vld [vmem:[#allocation2 + $0x440] sm:$0xf] }
 0x1b4   :  { %v2417_v40 = vpop.f32.mrf.mxu3  ;;  %v2490_v31 = vpop.f32.mrf.mxu0 }
 0x1b5   :  { %v2418_v21 = vadd.f32 %v2417_v40, %v2344_v48  ;;  %v2563_v49 = vpop.f32.mrf.mxu1  ;;  %v633_v48 = vld [vmem:[#allocation7 + $0x130] sm:$0xff]  ;;  %2963 = vmatpush.bf16.msra.mxu3 %v5497_v34  ;;  %v5673_v34 = vld [vmem:[#allocation2 + $0x444] sm:$0xf0] }
 0x1b6   :  { %v797_v54 = vunpack.c.h.bf16 %v633_v48 }
 0x1b7   :  { %v2491_v44 = vadd.f32 %v2490_v31, %v2418_v21  ;;  %2756 = vmatmul.bf16.gmra.mxu0 %v6526_v14  ;;  %v1045_v31 = vmul.f32 %v6432_v62, %v785_v5  ;;  %v786_v21 = vunpack.c.l.bf16 %v628_v10  ;;  %v637_v10 = vld [vmem:[#allocation7 + $0x150] sm:$0xff] }
 0x1b8   :  { %2829 = vmatmul.bf16.gmra.mxu1 %v6529_v12  ;;  %v6538_v12 = vpack.c.bf16 %v1054_v38, %v1044_v27  ;;  %v1047_v38 = vmul.f32 %v6464_v32, %v787_v11 }
 0x1b9   :  { %v6531_v47 = vadd.f32 %v2563_v49, %v2491_v44  ;;  %v796_v49 = vunpack.c.l.bf16 %v633_v48  ;;  %v6540_v14 = vpack.c.bf16 %v1055_v59, %v1045_v31  ;;  %v1046_v5 = vmul.f32 %v6462_v39, %v786_v21  ;;  %v642_v48 = vld [vmem:[#allocation7 + $0x178] sm:$0xff] }
 0x1ba   :  { %8636 = vst [vmem:[#allocation65_spill] sm:$0xff] %v6538_v12  ;;  %v1057_v31 = vmul.f32 %v6464_v32, %v797_v54  ;;  %v804_v21 = vunpack.c.l.bf16 %v637_v10  ;;  %v815_v11 = vunpack.c.h.bf16 %v642_v48  ;;  %v5544_v54 = vld [vmem:[#allocation2 + $0x44] sm:$0xf] }
 0x1bb   :  { %v2346_v40 = vpop.f32.mrf.mxu2  ;;  %8637 = vst [vmem:[#allocation66_spill] sm:$0xff] %v6540_v14  ;;  %v1056_v18 = vmul.f32 %v6462_v39, %v796_v49 }
 0x1bc   :  { %v2419_v50 = vpop.f32.mrf.mxu3  ;;  %v2492_v51 = vpop.f32.mrf.mxu0 }
 0x1bd   :  { %v2420_v30 = vadd.f32 %v2419_v50, %v2346_v40  ;;  %v2565_v44 = vpop.f32.mrf.mxu1  ;;  %v5457_v40 = vor.u32 %v5673_v34, %v5456_v28  ;;  %v6553_v28 = vpack.c.bf16 %v1057_v31, %v1047_v38  ;;  %v805_v34 = vunpack.c.h.bf16 %v637_v10 }
 0x1be   :  { %v1075_v31 = vmul.f32 %v6432_v62, %v815_v11 }
 0x1bf   :  { %v2493_v24 = vadd.f32 %v2492_v51, %v2420_v30  ;;  %2887 = vmatpush.bf16.msra.mxu2 %v5457_v40  ;;  %v6550_v30 = vpack.c.bf16 %v1056_v18, %v1046_v5  ;;  %8639 = vst [vmem:[#allocation68_spill] sm:$0xff] %v6553_v28  ;;  %v5560_v40 = vld [vmem:[#allocation2 + $0xc4] sm:$0xf]  ;;  %v1064_v5 = vmul.f32 %v6430_v29, %v804_v21 }
 0x1c0   :  { %2615 = vmatmul.bf16.gmra.mxu2 %v6538_v12  ;;  %v4946_v12 = vld [vmem:[#allocation2 + $0x48] sm:$0xf0]  ;;  %v1065_v38 = vmul.f32 %v6432_v62, %v805_v34 }
 0x1c1   :  { %v6543_v26 = vadd.f32 %v2565_v44, %v2493_v24  ;;  %2688 = vmatmul.bf16.gmra.mxu3 %v6540_v14  ;;  %8638 = vst [vmem:[#allocation67_spill] sm:$0xff] %v6550_v30  ;;  %v814_v24 = vunpack.c.l.bf16 %v642_v48 }
 0x1c2   :  { %v6564_v35 = vpack.c.bf16 %v1075_v31, %v1065_v38 }
 0x1c3   :  { %v2349_v27 = vpop.f32.mrf.mxu2  ;;  %v1074_v18 = vmul.f32 %v6430_v29, %v814_v24 }
 0x1c4   :  { %v2422_v59 = vpop.f32.mrf.mxu3  ;;  %v2495_v50 = vpop.f32.mrf.mxu0  ;;  %8641 = vst [vmem:[#allocation70_spill] sm:$0xff] %v6564_v35 }
 0x1c5   :  { %v2423_v51 = vadd.f32 %v2422_v59, %v2349_v27  ;;  %v2568_v44 = vpop.f32.mrf.mxu1  ;;  %v638_v27 = vld [vmem:[#allocation7 + $0x158] sm:$0xff]  ;;  %v643_v59 = vld [vmem:[#allocation7 + $0x180] sm:$0xff]  ;;  %v6562_v43 = vpack.c.bf16 %v1074_v18, %v1064_v5 }
 0x1c6   :  { %v816_v25 = vunpack.c.l.bf16 %v643_v59  ;;  %v647_v18 = vld [vmem:[#allocation7 + $0x1a0] sm:$0xff] }
 0x1c7   :  { %v2496_v49 = vadd.f32 %v2495_v50, %v2423_v51  ;;  %2761 = vmatmul.bf16.gmra.mxu0 %v6550_v30  ;;  %v4949_v50 = vor.u32 %v5544_v54, %v4946_v12  ;;  %v5010_v51 = vld [vmem:[#allocation2 + $0xc8] sm:$0xf0]  ;;  %8640 = vst [vmem:[#allocation69_spill] sm:$0xff] %v6562_v43  ;;  %v807_v12 = vunpack.c.h.bf16 %v638_v27  ;;  %v817_v54 = vunpack.c.h.bf16 %v643_v59 }
 0x1c8   :  { %2834 = vmatmul.bf16.gmra.mxu1 %v6553_v28  ;;  %v5013_v10 = vor.u32 %v5560_v40, %v5010_v51  ;;  %v806_v28 = vunpack.c.l.bf16 %v638_v27  ;;  %v652_v51 = vld [vmem:[#allocation7 + $0x1c8] sm:$0xff] }
 0x1c9   :  { %v6555_v14 = vadd.f32 %v2568_v44, %v2496_v49  ;;  %3033 = vmatpush.bf16.msrb.mxu0 %v4949_v50  ;;  %v1067_v50 = vmul.f32 %v6464_v32, %v807_v12  ;;  %v1077_v5 = vmul.f32 %v6464_v32, %v817_v54  ;;  %v5448_v12 = vld [vmem:[#allocation2 + $0x430] sm:$0xf]  ;;  %v5671_v54 = vld [vmem:[#allocation2 + $0x434] sm:$0xf0] }
 0x1ca   :  { %3106 = vmatpush.bf16.msrb.mxu1 %v5013_v10  ;;  %v1066_v11 = vmul.f32 %v6462_v39, %v806_v28 }
 0x1cb   :  { %v2351_v30 = vpop.f32.mrf.mxu2  ;;  %v6577_v28 = vpack.c.bf16 %v1077_v5, %v1067_v50 }
 0x1cc   :  { %v2424_v48 = vpop.f32.mrf.mxu3  ;;  %v2497_v44 = vpop.f32.mrf.mxu0 }
 0x1cd   :  { %v2425_v49 = vadd.f32 %v2424_v48, %v2351_v30  ;;  %v2570_v21 = vpop.f32.mrf.mxu1  ;;  %v1076_v30 = vmul.f32 %v6462_v39, %v816_v25  ;;  %v824_v48 = vunpack.c.l.bf16 %v647_v18  ;;  %8643 = vst [vmem:[#allocation72_spill] sm:$0xff] %v6577_v28  ;;  %v825_v25 = vunpack.c.h.bf16 %v647_v18 }
 0x1cf   :  { %v2498_v24 = vadd.f32 %v2497_v44, %v2425_v49  ;;  %v6574_v31 = vpack.c.bf16 %v1076_v30, %v1066_v11  ;;  %v834_v44 = vunpack.c.l.bf16 %v652_v51  ;;  %v648_v30 = vld [vmem:[#allocation7 + $0x1a8] sm:$0xff] }
 0x1d0   :  { %2620 = vmatmul.bf16.gmra.mxu2 %v6562_v43 }
 0x1d1   :  { %v6567_v34 = vadd.f32 %v2570_v21, %v2498_v24  ;;  %2693 = vmatmul.bf16.gmra.mxu3 %v6564_v35  ;;  %8642 = vst [vmem:[#allocation71_spill] sm:$0xff] %v6574_v31  ;;  %v835_v21 = vunpack.c.h.bf16 %v652_v51  ;;  %v1094_v11 = vmul.f32 %v6430_v29, %v834_v44  ;;  %v5449_v35 = vor.u32 %v5671_v54, %v5448_v12  ;;  %v4938_v54 = vld [vmem:[#allocation2 + $0x38] sm:$0xf0] }
 0x1d2   :  { %v827_v44 = vunpack.c.h.bf16 %v648_v30 }
 0x1d3   :  { %v2354_v40 = vpop.f32.mrf.mxu2  ;;  %v1095_v50 = vmul.f32 %v6432_v62, %v835_v21  ;;  %2888 = vmatpush.bf16.msra.mxu2 %v5449_v35  ;;  %v5542_v21 = vld [vmem:[#allocation2 + $0x34] sm:$0xf] }
 0x1d4   :  { %v2427_v38 = vpop.f32.mrf.mxu3  ;;  %v2500_v27 = vpop.f32.mrf.mxu0 }
 0x1d5   :  { %v2428_v59 = vadd.f32 %v2427_v38, %v2354_v40  ;;  %v2573_v10 = vpop.f32.mrf.mxu1  ;;  %v1084_v40 = vmul.f32 %v6430_v29, %v824_v48  ;;  %v653_v38 = vld [vmem:[#allocation7 + $0x1d0] sm:$0xff] }
 0x1d6   :  { %v837_v2 = vunpack.c.h.bf16 %v653_v38 }
 0x1d7   :  { %v2501_v49 = vadd.f32 %v2500_v27, %v2428_v59  ;;  %2766 = vmatmul.bf16.gmra.mxu0 %v6574_v31  ;;  %v1085_v59 = vmul.f32 %v6432_v62, %v825_v25  ;;  %v6586_v31 = vpack.c.bf16 %v1094_v11, %v1084_v40  ;;  %v1087_v11 = vmul.f32 %v6464_v32, %v827_v44 }
 0x1d8   :  { %2839 = vmatmul.bf16.gmra.mxu1 %v6577_v28 }
 0x1d9   :  { %v6579_v24 = vadd.f32 %v2573_v10, %v2501_v49  ;;  %v826_v10 = vunpack.c.l.bf16 %v648_v30  ;;  %v836_v49 = vunpack.c.l.bf16 %v653_v38  ;;  %8644 = vst [vmem:[#allocation73_spill] sm:$0xff] %v6586_v31  ;;  %v6588_v43 = vpack.c.bf16 %v1095_v50, %v1085_v59  ;;  %v657_v30 = vld [vmem:[#allocation7 + $0x1f0] sm:$0xff]  ;;  %v662_v38 = vld [vmem:[#allocation7 + $0x218] sm:$0xff] }
 0x1da   :  { %v1097_v59 = vmul.f32 %v6464_v32, %v837_v2  ;;  %v855_v44 = vunpack.c.h.bf16 %v662_v38  ;;  %v5558_v2 = vld [vmem:[#allocation2 + $0xb4] sm:$0xf] }
 0x1db   :  { %v2356_v27 = vpop.f32.mrf.mxu2  ;;  %8645 = vst [vmem:[#allocation74_spill] sm:$0xff] %v6588_v43  ;;  %v1086_v25 = vmul.f32 %v6462_v39, %v826_v10  ;;  %v1096_v35 = vmul.f32 %v6462_v39, %v836_v49  ;;  %v844_v10 = vunpack.c.l.bf16 %v657_v30 }
 0x1dc   :  { %v2429_v5 = vpop.f32.mrf.mxu3  ;;  %v2502_v18 = vpop.f32.mrf.mxu0 }
 0x1dd   :  { %v2430_v51 = vadd.f32 %v2429_v5, %v2356_v27  ;;  %v2575_v28 = vpop.f32.mrf.mxu1  ;;  %v4941_v27 = vor.u32 %v5542_v21, %v4938_v54  ;;  %v6601_v21 = vpack.c.bf16 %v1097_v59, %v1087_v11  ;;  %v845_v54 = vunpack.c.h.bf16 %v657_v30 }
 0x1de   :  { %v1115_v11 = vmul.f32 %v6432_v62, %v855_v44 }
 0x1df   :  { %v2503_v48 = vadd.f32 %v2502_v18, %v2430_v51  ;;  %3034 = vmatpush.bf16.msrb.mxu0 %v4941_v27  ;;  %v6598_v18 = vpack.c.bf16 %v1096_v35, %v1086_v25  ;;  %8647 = vst [vmem:[#allocation76_spill] sm:$0xff] %v6601_v21  ;;  %v1104_v27 = vmul.f32 %v6430_v29, %v844_v10  ;;  %v658_v35 = vld [vmem:[#allocation7 + $0x1f8] sm:$0xff] }
 0x1e0   :  { %2625 = vmatmul.bf16.gmra.mxu2 %v6586_v31  ;;  %v5002_v31 = vld [vmem:[#allocation2 + $0xb8] sm:$0xf0] }
 0x1e1   :  { %v6591_v12 = vadd.f32 %v2575_v28, %v2503_v48  ;;  %2698 = vmatmul.bf16.gmra.mxu3 %v6588_v43  ;;  %8646 = vst [vmem:[#allocation75_spill] sm:$0xff] %v6598_v18  ;;  %v854_v48 = vunpack.c.l.bf16 %v662_v38 }
 0x1e3   :  { %v2359_v40 = vpop.f32.mrf.mxu2  ;;  %v1114_v25 = vmul.f32 %v6430_v29, %v854_v48  ;;  %v847_v48 = vunpack.c.h.bf16 %v658_v35 }
 0x1e4   :  { %v2432_v50 = vpop.f32.mrf.mxu3  ;;  %v2505_v5 = vpop.f32.mrf.mxu0 }
 0x1e5   :  { %v2433_v28 = vadd.f32 %v2432_v50, %v2359_v40  ;;  %v2578_v51 = vpop.f32.mrf.mxu1  ;;  %v663_v40 = vld [vmem:[#allocation7 + $0x220] sm:$0xff]  ;;  %v5005_v50 = vor.u32 %v5558_v2, %v5002_v31 }
 0x1e6   :  { %v857_v53 = vunpack.c.h.bf16 %v663_v40  ;;  %v5440_v2 = vld [vmem:[#allocation2 + $0x420] sm:$0xf] }
 0x1e7   :  { %v2506_v49 = vadd.f32 %v2505_v5, %v2433_v28  ;;  %2771 = vmatmul.bf16.gmra.mxu0 %v6598_v18  ;;  %v1105_v28 = vmul.f32 %v6432_v62, %v845_v54  ;;  %3107 = vmatpush.bf16.msrb.mxu1 %v5005_v50  ;;  %v6610_v18 = vpack.c.bf16 %v1114_v25, %v1104_v27  ;;  %v5669_v50 = vld [vmem:[#allocation2 + $0x424] sm:$0xf0] }
 0x1e8   :  { %2844 = vmatmul.bf16.gmra.mxu1 %v6601_v21  ;;  %v1107_v25 = vmul.f32 %v6464_v32, %v847_v48 }
 0x1e9   :  { %v6603_v43 = vadd.f32 %v2578_v51, %v2506_v49  ;;  %v846_v51 = vunpack.c.l.bf16 %v658_v35  ;;  %v856_v49 = vunpack.c.l.bf16 %v663_v40  ;;  %8648 = vst [vmem:[#allocation77_spill] sm:$0xff] %v6610_v18  ;;  %v6612_v57 = vpack.c.bf16 %v1115_v11, %v1105_v28  ;;  %v667_v35 = vld [vmem:[#allocation7 + $0x240] sm:$0xff]  ;;  %v672_v40 = vld [vmem:[#allocation7 + $0x268] sm:$0xff] }
 0x1ea   :  { %v1117_v28 = vmul.f32 %v6464_v32, %v857_v53  ;;  %v875_v48 = vunpack.c.h.bf16 %v672_v40 }
 0x1eb   :  { %v2361_v5 = vpop.f32.mrf.mxu2  ;;  %8649 = vst [vmem:[#allocation78_spill] sm:$0xff] %v6612_v57  ;;  %v1106_v54 = vmul.f32 %v6462_v39, %v846_v51  ;;  %v1116_v44 = vmul.f32 %v6462_v39, %v856_v49  ;;  %v864_v51 = vunpack.c.l.bf16 %v667_v35 }
 0x1ec   :  { %v2434_v59 = vpop.f32.mrf.mxu3  ;;  %v2507_v30 = vpop.f32.mrf.mxu0 }
 0x1ed   :  { %v2435_v38 = vadd.f32 %v2434_v59, %v2361_v5  ;;  %v2580_v21 = vpop.f32.mrf.mxu1  ;;  %v5441_v5 = vor.u32 %v5669_v50, %v5440_v2  ;;  %v6625_v2 = vpack.c.bf16 %v1117_v28, %v1107_v25  ;;  %v865_v50 = vunpack.c.h.bf16 %v667_v35 }
 0x1ee   :  { %v1124_v53 = vmul.f32 %v6430_v29, %v864_v51 }
 0x1ef   :  { %v2508_v10 = vadd.f32 %v2507_v30, %v2435_v38  ;;  %2889 = vmatpush.bf16.msra.mxu2 %v5441_v5  ;;  %v6622_v30 = vpack.c.bf16 %v1116_v44, %v1106_v54  ;;  %8652 = vst [vmem:[#allocation81_spill] sm:$0xff] %v6625_v2  ;;  %v668_v54 = vld [vmem:[#allocation7 + $0x248] sm:$0xff]  ;;  %v673_v44 = vld [vmem:[#allocation7 + $0x270] sm:$0xff] }
 0x1f0   :  { %2630 = vmatmul.bf16.gmra.mxu2 %v6610_v18  ;;  %v866_v35 = vunpack.c.l.bf16 %v668_v54  ;;  %v867_v51 = vunpack.c.h.bf16 %v668_v54 }
 0x1f1   :  { %v6615_v31 = vadd.f32 %v2580_v21, %v2508_v10  ;;  %2703 = vmatmul.bf16.gmra.mxu3 %v6612_v57  ;;  %8651 = vst [vmem:[#allocation80_spill] sm:$0xff] %v6622_v30  ;;  %v874_v10 = vunpack.c.l.bf16 %v672_v40  ;;  %v876_v40 = vunpack.c.l.bf16 %v673_v44 }
 0x1f3   :  { %8650 = vst [vmem:[#allocation79_spill] sm:$0xff] %v6615_v31  ;;  %v2364_v27 = vpop.f32.mrf.mxu2  ;;  %v1134_v5 = vmul.f32 %v6430_v29, %v874_v10  ;;  %v877_v10 = vunpack.c.h.bf16 %v673_v44 }
 0x1f4   :  { %v2437_v11 = vpop.f32.mrf.mxu3  ;;  %v2510_v59 = vpop.f32.mrf.mxu0 }
 0x1f5   :  { %v2438_v21 = vadd.f32 %v2437_v11, %v2364_v27  ;;  %v2583_v38 = vpop.f32.mrf.mxu1  ;;  %v1125_v11 = vmul.f32 %v6432_v62, %v865_v50  ;;  %v1126_v50 = vmul.f32 %v6462_v39, %v866_v35  ;;  %v1137_v54 = vmul.f32 %v6464_v32, %v877_v10 }
 0x1f7   :  { %v2511_v49 = vadd.f32 %v2510_v59, %v2438_v21  ;;  %2776 = vmatmul.bf16.gmra.mxu0 %v6622_v30  ;;  %v1135_v59 = vmul.f32 %v6432_v62, %v875_v48  ;;  %v1136_v48 = vmul.f32 %v6462_v39, %v876_v40 }
 0x1f8   :  { %2849 = vmatmul.bf16.gmra.mxu1 %v6625_v2 }
 0x1f9   :  { %v6627_v57 = vadd.f32 %v2583_v38, %v2511_v49  ;;  %v6634_v49 = vpack.c.bf16 %v1134_v5, %v1124_v53  ;;  %v6636_v30 = vpack.c.bf16 %v1135_v59, %v1125_v11  ;;  %v4930_v53 = vld [vmem:[#allocation2 + $0x28] sm:$0xf0]  ;;  %v5488_v5 = vld [vmem:[#allocation2 + $0x480] sm:$0xf]  ;;  %v1127_v11 = vmul.f32 %v6464_v32, %v867_v51  ;;  %v5681_v59 = vld [vmem:[#allocation2 + $0x484] sm:$0xf0] }
 0x1fa   :  { %v4933_v44 = vor.u32 %v5540_v1, %v4930_v53  ;;  %v6646_v40 = vpack.c.bf16 %v1136_v48, %v1126_v50 }
 0x1fb   :  { %8653 = vst [vmem:[#allocation82_spill] sm:$0xff] %v6627_v57  ;;  %v2366_v27 = vpop.f32.mrf.mxu2  ;;  %v6649_v1 = vpack.c.bf16 %v1137_v54, %v1127_v11 }
 0x1fc   :  { %v2439_v21 = vpop.f32.mrf.mxu3  ;;  %v2512_v25 = vpop.f32.mrf.mxu0  ;;  %8654 = vst [vmem:[#allocation83_spill] sm:$0xff] %v6634_v49  ;;  %3035 = vmatpush.bf16.msrb.mxu0 %v4933_v44 }
 0x1fd   :  { %v2440_v28 = vadd.f32 %v2439_v21, %v2366_v27  ;;  %v2585_v38 = vpop.f32.mrf.mxu1  ;;  %8655 = vst [vmem:[#allocation84_spill] sm:$0xff] %v6636_v30  ;;  %v677_v27 = vld [vmem:[#allocation7 + $0x290] sm:$0xff]  ;;  %v682_v21 = vld [vmem:[#allocation7 + $0x2b8] sm:$0xff] }
 0x1fe   :  { %8657 = vst [vmem:[#allocation86_spill] sm:$0xff] %v6646_v40  ;;  %v884_v57 = vunpack.c.l.bf16 %v677_v27  ;;  %v894_v31 = vunpack.c.l.bf16 %v682_v21  ;;  %v885_v10 = vunpack.c.h.bf16 %v677_v27  ;;  %v895_v53 = vunpack.c.h.bf16 %v682_v21 }
 0x1ff   :  { %v2513_v2 = vadd.f32 %v2512_v25, %v2440_v28  ;;  %v4994_v28 = vld [vmem:[#allocation2 + $0xa8] sm:$0xf0]  ;;  %8658 = vst [vmem:[#allocation87_spill] sm:$0xff] %v6649_v1 }
 0x200   :  { %2635 = vmatmul.bf16.gmra.mxu2 %v6634_v49  ;;  %v5489_v49 = vor.u32 %v5681_v59, %v5488_v5  ;;  %v1144_v50 = vmul.f32 %v6430_v29, %v884_v57  ;;  %v1154_v48 = vmul.f32 %v6430_v29, %v894_v31  ;;  %v678_v5 = vld [vmem:[#allocation7 + $0x298] sm:$0xff] }
 0x201   :  { %v6639_v18 = vadd.f32 %v2585_v38, %v2513_v2  ;;  %2708 = vmatmul.bf16.gmra.mxu3 %v6636_v30  ;;  %v5556_v2 = vld [vmem:[#allocation2 + $0xa4] sm:$0xf]  ;;  %v886_v54 = vunpack.c.l.bf16 %v678_v5 }
 0x202   :  { %v4997_v35 = vor.u32 %v5556_v2, %v4994_v28  ;;  %2964 = vmatpush.bf16.msra.mxu3 %v5489_v49  ;;  %v1145_v49 = vmul.f32 %v6432_v62, %v885_v10  ;;  %v887_v2 = vunpack.c.h.bf16 %v678_v5 }
 0x203   :  { %8656 = vst [vmem:[#allocation85_spill] sm:$0xff] %v6639_v18  ;;  %v2369_v25 = vpop.f32.mrf.mxu2  ;;  %v1146_v31 = vmul.f32 %v6462_v39, %v886_v54 }
 0x204   :  { %v2442_v38 = vpop.f32.mrf.mxu3  ;;  %v2515_v30 = vpop.f32.mrf.mxu0  ;;  %3108 = vmatpush.bf16.msrb.mxu1 %v4997_v35  ;;  %v5667_v35 = vld [vmem:[#allocation2 + $0x414] sm:$0xf0]  ;;  %v1147_v10 = vmul.f32 %v6464_v32, %v887_v2 }
 0x205   :  { %v2443_v18 = vadd.f32 %v2442_v38, %v2369_v25  ;;  %v2588_v0 = vpop.f32.mrf.mxu1  ;;  %v683_v25 = vld [vmem:[#allocation7 + $0x2c0] sm:$0xff]  ;;  %v5432_v38 = vld [vmem:[#allocation2 + $0x410] sm:$0xf] }
 0x206   :  { %v896_v27 = vunpack.c.l.bf16 %v683_v25  ;;  %v897_v57 = vunpack.c.h.bf16 %v683_v25 }
 0x207   :  { %v2516_v51 = vadd.f32 %v2515_v30, %v2443_v18  ;;  %2781 = vmatmul.bf16.gmra.mxu0 %v6646_v40  ;;  %v1155_v18 = vmul.f32 %v6432_v62, %v895_v53 }
 0x208   :  { %2854 = vmatmul.bf16.gmra.mxu1 %v6649_v1  ;;  %v1156_v28 = vmul.f32 %v6462_v39, %v896_v27  ;;  %v1157_v53 = vmul.f32 %v6464_v32, %v897_v57 }
 0x209   :  { %v6651_v17 = vadd.f32 %v2588_v0, %v2516_v51  ;;  %v6658_v0 = vpack.c.bf16 %v1154_v48, %v1144_v50  ;;  %v6660_v59 = vpack.c.bf16 %v1155_v18, %v1145_v49  ;;  %v687_v50 = vld [vmem:[#allocation7 + $0x2e0] sm:$0xff]  ;;  %v692_v48 = vld [vmem:[#allocation7 + $0x308] sm:$0xff] }
 0x20a   :  { %v6669_v18 = vpack.c.bf16 %v1156_v28, %v1146_v31  ;;  %v904_v54 = vunpack.c.l.bf16 %v687_v50  ;;  %v914_v27 = vunpack.c.l.bf16 %v692_v48  ;;  %v905_v2 = vunpack.c.h.bf16 %v687_v50 }
 0x20b   :  { %v2371_v44 = vpop.f32.mrf.mxu2  ;;  %8659 = vst [vmem:[#allocation88_spill] sm:$0xff] %v6658_v0  ;;  %v915_v57 = vunpack.c.h.bf16 %v692_v48 }
 0x20c   :  { %v2444_v30 = vpop.f32.mrf.mxu3  ;;  %v2517_v11 = vpop.f32.mrf.mxu0  ;;  %8660 = vst [vmem:[#allocation89_spill] sm:$0xff] %v6660_v59  ;;  %v5433_v44 = vor.u32 %v5667_v35, %v5432_v38  ;;  %v688_v38 = vld [vmem:[#allocation7 + $0x2e8] sm:$0xff]  ;;  %v1164_v31 = vmul.f32 %v6430_v29, %v904_v54  ;;  %v1174_v28 = vmul.f32 %v6430_v29, %v914_v27  ;;  %v1165_v50 = vmul.f32 %v6432_v62, %v905_v2 }
 0x20d   :  { %v2590_v21 = vpop.f32.mrf.mxu1  ;;  %8661 = vst [vmem:[#allocation90_spill] sm:$0xff] %v6669_v18  ;;  %v1175_v48 = vmul.f32 %v6432_v62, %v915_v57  ;;  %v906_v27 = vunpack.c.l.bf16 %v688_v38  ;;  %v907_v57 = vunpack.c.h.bf16 %v688_v38 }
 0x20e   :  { %2890 = vmatpush.bf16.msra.mxu2 %v5433_v44  ;;  %v6672_v21 = vpack.c.bf16 %v1157_v53, %v1147_v10  ;;  %v4922_v44 = vld [vmem:[#allocation2 + $0x18] sm:$0xf0]  ;;  %v147_v10 = vld [vmem:[%s8400_s3 + $0x8] sm:$0x3] }
 0x20f   :  { %v6687_v2 = vpack.c.bf16 %v1175_v48, %v1165_v50 }
 0x210   :  { %2640 = vmatmul.bf16.gmra.mxu2 %v6658_v0  ;;  %8662 = vst [vmem:[#allocation91_spill] sm:$0xff] %v6672_v21  ;;  %v6685_v0 = vpack.c.bf16 %v1174_v28, %v1164_v31 }
 0x211   :  { %2713 = vmatmul.bf16.gmra.mxu3 %v6660_v59  ;;  %8665 = vst [vmem:[#allocation94_spill] sm:$0xff] %v6687_v2 }
 0x212   :  { %8664 = vst [vmem:[#allocation93_spill] sm:$0xff] %v6685_v0 }
 0x213   :  { %v2601_v51 = vpop.f32.mrf.mxu2 }
 0x214   :  { %v2602_v5 = vadd.f32 %v2601_v51, %v6246_v8  ;;  %v2674_v25 = vpop.f32.mrf.mxu3  ;;  %v2747_v49 = vpop.f32.mrf.mxu0  ;;  %v693_v8 = vld [vmem:[#allocation7 + $0x310] sm:$0xff] }
 0x215   :  { %v2820_v11 = vpop.f32.mrf.mxu1  ;;  %v5538_v51 = vld [vmem:[#allocation2 + $0x14] sm:$0xf] }
 0x216   :  { %v2675_v30 = vadd.f32 %v2674_v25, %v2602_v5  ;;  %v5554_v5 = vld [vmem:[#allocation2 + $0x94] sm:$0xf]  ;;  %v4925_v25 = vor.u32 %v5538_v51, %v4922_v44  ;;  %v917_v51 = vunpack.c.h.bf16 %v693_v8 }
 0x217   :  { %2786 = vmatmul.bf16.gmra.mxu0 %v6669_v18  ;;  %v158_v18 = vperm.slane %v147_v10, 0 }
 0x218   :  { %v2748_v1 = vadd.f32 %v2747_v49, %v2675_v30  ;;  %2859 = vmatmul.bf16.gmra.mxu1 %v6672_v21  ;;  %v4986_v49 = vld [vmem:[#allocation2 + $0x98] sm:$0xf0]  ;;  %v916_v21 = vunpack.c.l.bf16 %v693_v8  ;;  %3036 = vmatpush.bf16.msrb.mxu0 %v4925_v25  ;;  %v1177_v38 = vmul.f32 %v6464_v32, %v917_v51 }
 0x219   :  { %v4989_v54 = vor.u32 %v5554_v5, %v4986_v49  ;;  %v702_v8 = vld [vmem:[#allocation7 + $0x358] sm:$0xff] }
 0x21a   :  { %v6675_v35 = vadd.f32 %v2820_v11, %v2748_v1  ;;  %v1176_v5 = vmul.f32 %v6462_v39, %v916_v21 }
 0x21b   :  { %v2603_v53 = vpop.f32.mrf.mxu2  ;;  %3109 = vmatpush.bf16.msrb.mxu1 %v4989_v54  ;;  %v935_v54 = vunpack.c.h.bf16 %v702_v8 }
 0x21c   :  { %8663 = vst [vmem:[#allocation92_spill] sm:$0xff] %v6675_v35  ;;  %v2604_v1 = vadd.f32 %v2603_v53, %v6261_v60  ;;  %v2676_v30 = vpop.f32.mrf.mxu3  ;;  %v2749_v11 = vpop.f32.mrf.mxu0  ;;  %v159_v35 = vperm.slane %v147_v10, 1  ;;  %v1166_v60 = vmul.f32 %v6462_v39, %v906_v27  ;;  %v383_v53 = vadd.f32 %v6221_v58, %v158_v18 }
 0x21d   :  { %v2822_v59 = vpop.f32.mrf.mxu1  ;;  %v1167_v10 = vmul.f32 %v6464_v32, %v907_v57  ;;  %v934_v18 = vunpack.c.l.bf16 %v702_v8 }
 0x21e   :  { %v2677_v40 = vadd.f32 %v2676_v30, %v2604_v1  ;;  %v403_v31 = vadd.f32 %v6223_v63, %v159_v35  ;;  %v6700_v1 = vpack.c.bf16 %v1176_v5, %v1166_v60  ;;  %v4908_v21 = vmul.f32 -1.442695, %v383_v53  ;;  %v703_v60 = vld [vmem:[#allocation7 + $0x360] sm:$0xff]  ;;  %v5665_v53 = vld [vmem:[#allocation2 + $0x404] sm:$0xf0] }
 0x21f   :  { %v6703_v63 = vpack.c.bf16 %v1177_v38, %v1167_v10  ;;  %v5424_v5 = vld [vmem:[#allocation2 + $0x400] sm:$0xf]  ;;  %v1195_v10 = vmul.f32 %v6432_v62, %v935_v54 }
 0x220   :  { %v2750_v44 = vadd.f32 %v2749_v11, %v2677_v40  ;;  %2645 = vmatmul.bf16.gmra.mxu2 %v6685_v0  ;;  %v697_v40 = vld [vmem:[#allocation7 + $0x330] sm:$0xff]  ;;  %8666 = vst [vmem:[#allocation95_spill] sm:$0xff] %v6700_v1  ;;  %v4909_v11 = vmul.f32 -1.442695, %v403_v31  ;;  %5734 = vpow2.f32 %v4908_v21  ;;  %v5425_v38 = vor.u32 %v5665_v53, %v5424_v5 }
 0x221   :  { %2718 = vmatmul.bf16.gmra.mxu3 %v6687_v2  ;;  %8667 = vst [vmem:[#allocation96_spill] sm:$0xff] %v6703_v63  ;;  %v925_v35 = vunpack.c.h.bf16 %v697_v40 }
 0x222   :  { %v6694_v25 = vadd.f32 %v2822_v59, %v2750_v44  ;;  %v924_v59 = vunpack.c.l.bf16 %v697_v40  ;;  %v1194_v44 = vmul.f32 %v6430_v29, %v934_v18  ;;  %5736 = vpow2.f32 %v4909_v11  ;;  %2891 = vmatpush.bf16.msra.mxu2 %v5425_v38  ;;  %v707_v38 = vld [vmem:[#allocation7 + $0x380] sm:$0xff] }
 0x223   :  { %v2606_v28 = vpop.f32.mrf.mxu2  ;;  %v937_v11 = vunpack.c.h.bf16 %v703_v60 }
 0x224   :  { %v2607_v50 = vadd.f32 %v2606_v28, %v6276_v6  ;;  %v2679_v48 = vpop.f32.mrf.mxu3  ;;  %v2752_v49 = vpop.f32.mrf.mxu0  ;;  %v698_v6 = vld [vmem:[#allocation7 + $0x338] sm:$0xff]  ;;  %v1184_v51 = vmul.f32 %v6430_v29, %v924_v59  ;;  %v1185_v28 = vmul.f32 %v6432_v62, %v925_v35 }
 0x225   :  { %v2825_v58 = vpop.f32.mrf.mxu1  ;;  %v927_v18 = vunpack.c.h.bf16 %v698_v6 }
 0x226   :  { %v2680_v30 = vadd.f32 %v2679_v48, %v2607_v50  ;;  %v926_v48 = vunpack.c.l.bf16 %v698_v6  ;;  %v6715_v59 = vpack.c.bf16 %v1195_v10, %v1185_v28  ;;  %v1197_v10 = vmul.f32 %v6464_v32, %v937_v11 }
 0x227   :  { %2791 = vmatmul.bf16.gmra.mxu0 %v6700_v1 }
 0x228   :  { %v2753_v27 = vadd.f32 %v2752_v49, %v2680_v30  ;;  %2864 = vmatmul.bf16.gmra.mxu1 %v6703_v63  ;;  %v936_v49 = vunpack.c.l.bf16 %v703_v60  ;;  %8669 = vst [vmem:[#allocation98_spill] sm:$0xff] %v6715_v59  ;;  %v1187_v60 = vmul.f32 %v6464_v32, %v927_v18 }
 0x22a   :  { %v6706_v57 = vadd.f32 %v2825_v58, %v2753_v27  ;;  %v6713_v58 = vpack.c.bf16 %v1194_v44, %v1184_v51  ;;  %v5735_v27 = vpop.eup %5734  ;;  %v1196_v5 = vmul.f32 %v6462_v39, %v936_v49  ;;  %v4914_v51 = vld [vmem:[#allocation2 + $0x8] sm:$0xf0]  ;;  %v5552_v44 = vld [vmem:[#allocation2 + $0x84] sm:$0xf]  ;;  %v6734_v11 = vpack.c.bf16 %v1197_v10, %v1187_v60 }
 0x22b   :  { %v2608_v31 = vpop.f32.mrf.mxu2  ;;  %v5737_v54 = vpop.eup %5736  ;;  %v6723_v28 = vadd.f32 1.0, %v5735_v27 }
 0x22c   :  { %v2609_v40 = vadd.f32 %v2608_v31, %v6294_v22  ;;  %v2681_v8 = vpop.f32.mrf.mxu3  ;;  %v2754_v50 = vpop.f32.mrf.mxu0  ;;  %8668 = vst [vmem:[#allocation97_spill] sm:$0xff] %v6713_v58  ;;  %v1186_v22 = vmul.f32 %v6462_v39, %v926_v48  ;;  %v5536_v31 = vld [vmem:[#allocation2 + $0x4] sm:$0xf] }
 0x22d   :  { %v2827_v30 = vpop.f32.mrf.mxu1  ;;  %5738 = vrcp.f32 %v6723_v28  ;;  %8671 = vst [vmem:[#allocation100_spill] sm:$0xff] %v6734_v11  ;;  %vm570_vm2 = vweird.f32 %v6723_v28 }
 0x22e   :  { %v2682_v21 = vadd.f32 %v2681_v8, %v2609_v40  ;;  %v712_v40 = vld [vmem:[#allocation7 + $0x3a8] sm:$0xff]  ;;  %v4917_v8 = vor.u32 %v5536_v31, %v4914_v51  ;;  %v6730_v63 = vpack.c.bf16 %v1196_v5, %v1186_v22 }
 0x22f   :  { %v954_v18 = vunpack.c.l.bf16 %v712_v40  ;;  %v955_v31 = vunpack.c.h.bf16 %v712_v40 }
 0x230   :  { %v2755_v35 = vadd.f32 %v2754_v50, %v2682_v21  ;;  %2650 = vmatmul.bf16.gmra.mxu2 %v6713_v58  ;;  %v4978_v50 = vld [vmem:[#allocation2 + $0x88] sm:$0xf0]  ;;  %v6727_v21 = vadd.f32 1.0, %v5737_v54  ;;  %8670 = vst [vmem:[#allocation99_spill] sm:$0xff] %v6730_v63  ;;  %3037 = vmatpush.bf16.msrb.mxu0 %v4917_v8  ;;  %v945_v54 = vunpack.c.h.bf16 %v707_v38 }
 0x231   :  { %2723 = vmatmul.bf16.gmra.mxu3 %v6715_v59  ;;  %v944_v59 = vunpack.c.l.bf16 %v707_v38  ;;  %v1214_v51 = vmul.f32 %v6430_v29, %v954_v18  ;;  %v1215_v60 = vmul.f32 %v6432_v62, %v955_v31 }
 0x232   :  { %v6721_v53 = vadd.f32 %v2827_v30, %v2755_v35  ;;  %v4981_v35 = vor.u32 %v5552_v44, %v4978_v50  ;;  %5740 = vrcp.f32 %v6727_v21  ;;  %v708_v44 = vld [vmem:[#allocation7 + $0x388] sm:$0xff]  ;;  %v1205_v50 = vmul.f32 %v6432_v62, %v945_v54 }
 0x233   :  { %v2611_v6 = vpop.f32.mrf.mxu2  ;;  %v1204_v5 = vmul.f32 %v6430_v29, %v944_v59  ;;  %vm585_vm4 = vweird.f32 %v6727_v21 }
 0x234   :  { %v2612_v48 = vadd.f32 %v2611_v6, %v6311_v15  ;;  %v2684_v49 = vpop.f32.mrf.mxu3  ;;  %v2757_v30 = vpop.f32.mrf.mxu0  ;;  %3110 = vmatpush.bf16.msrb.mxu1 %v4981_v35  ;;  %v713_v6 = vld [vmem:[#allocation7 + $0x3b0] sm:$0xff]  ;;  %v6751_v18 = vpack.c.bf16 %v1215_v60, %v1205_v50 }
 0x235   :  { %v2830_v1 = vpop.f32.mrf.mxu1  ;;  %v957_v54 = vunpack.c.h.bf16 %v713_v6  ;;  %v5582_v50 = vld [vmem:[#allocation2 + $0x174] sm:$0xf] }
 0x236   :  { %v2685_v27 = vadd.f32 %v2684_v49, %v2612_v48  ;;  %v6745_v48 = vpop.eup %5738  ;;  %v946_v49 = vunpack.c.l.bf16 %v708_v44  ;;  %8673 = vst [vmem:[#allocation102_spill] sm:$0xff] %v6751_v18 }
 0x237   :  { %2796 = vmatmul.bf16.gmra.mxu0 %v6730_v63  ;;  %v566_v31 = vmul.f32 %v6745_v48, %v6723_v28  ;;  %v5162_v63 = vld [vmem:[#allocation2 + $0x1f8] sm:$0xf0]  ;;  %vm571_vm3 = vweird.f32 %v6745_v48 }
 0x238   :  { %v2758_v15 = vadd.f32 %v2757_v30, %v2685_v27  ;;  %2869 = vmatmul.bf16.gmra.mxu1 %v6734_v11  ;;  %v6747_v30 = vpop.eup %5740  ;;  %v6749_v27 = vpack.c.bf16 %v1214_v51, %v1204_v5  ;;  %v5598_v11 = vld [vmem:[#allocation2 + $0x1f4] sm:$0xf]  ;;  %vm6791_vm6 = vmor %vm570_vm2, %vm571_vm3 }
 0x239   :  { %v5165_v2 = vor.u32 %v5598_v11, %v5162_v63  ;;  %v576_v63 = vand.u32 2147483648, %v6723_v28  ;;  %v718_v11 = vld [vmem:[#allocation7 + $0x3d8] sm:$0xff]  ;;  %vm586_vm5 = vweird.f32 %v6747_v30 }
 0x23a   :  { %v6738_v22 = vadd.f32 %v2830_v1, %v2758_v15  ;;  %v956_v1 = vunpack.c.l.bf16 %v713_v6  ;;  %8672 = vst [vmem:[#allocation101_spill] sm:$0xff] %v6749_v27  ;;  %v947_v15 = vunpack.c.h.bf16 %v708_v44  ;;  %v5098_v44 = vld [vmem:[#allocation2 + $0x178] sm:$0xf0]  ;;  %vm6801_vm7 = vmor %vm585_vm4, %vm586_vm5 }
 0x23b   :  { %v2613_v8 = vpop.f32.mrf.mxu2  ;;  %3249 = vmatpush.bf16.msrb.mxu3 %v5165_v2 }
 0x23c   :  { %v2614_v10 = vadd.f32 %v2613_v8, %v6333_v42  ;;  %v2686_v38 = vpop.f32.mrf.mxu3  ;;  %v2759_v40 = vpop.f32.mrf.mxu0  ;;  %v581_v8 = vmul.f32 %v6747_v30, %v6727_v21  ;;  %v1216_v5 = vmul.f32 %v6462_v39, %v956_v1  ;;  %v1207_v60 = vmul.f32 %v6464_v32, %v947_v15 }
 0x23d   :  { %v2832_v35 = vpop.f32.mrf.mxu1 }
 0x23e   :  { %v2687_v59 = vadd.f32 %v2686_v38, %v2614_v10  ;;  %v1206_v10 = vmul.f32 %v6462_v39, %v946_v49  ;;  %v1217_v38 = vmul.f32 %v6464_v32, %v957_v54  ;;  %v582_v1 = vsub.f32 1.0, %v581_v8  ;;  %v5226_v8 = vld [vmem:[#allocation2 + $0x278] sm:$0xf0] }
 0x240   :  { %v2760_v42 = vadd.f32 %v2759_v40, %v2687_v59  ;;  %2655 = vmatmul.bf16.gmra.mxu2 %v6749_v27  ;;  %v717_v40 = vld [vmem:[#allocation7 + $0x3d0] sm:$0xff]  ;;  %v5101_v59 = vor.u32 %v5582_v50, %v5098_v44  ;;  %v567_v27 = vsub.f32 1.0, %v566_v31  ;;  %v6769_v15 = vpack.c.bf16 %v1217_v38, %v1207_v60 }
 0x241   :  { %2728 = vmatmul.bf16.gmra.mxu3 %v6751_v18  ;;  %v965_v54 = vunpack.c.h.bf16 %v717_v40 }
 0x242   :  { %v6761_v51 = vadd.f32 %v2832_v35, %v2760_v42  ;;  %v6766_v35 = vpack.c.bf16 %v1216_v5, %v1206_v10  ;;  %3176 = vmatpush.bf16.msrb.mxu2 %v5101_v59  ;;  %8676 = vst [vmem:[#allocation105_spill] sm:$0xff] %v6769_v15  ;;  %v568_v31 = vmul.f32 %v6745_v48, %v567_v27  ;;  %v966_v59 = vunpack.c.l.bf16 %v718_v11 }
 0x243   :  { %v2616_v6 = vpop.f32.mrf.mxu2  ;;  %v1225_v10 = vmul.f32 %v6432_v62, %v965_v54 }
 0x244   :  { %8674 = vst [vmem:[#allocation103_spill] sm:$0xff] %v6761_v51  ;;  %v2617_v18 = vadd.f32 %v2616_v6, %v6373_v41  ;;  %v2689_v58 = vpop.f32.mrf.mxu3  ;;  %v2762_v49 = vpop.f32.mrf.mxu0  ;;  %v964_v51 = vunpack.c.l.bf16 %v717_v40  ;;  %v583_v41 = vmul.f32 %v6747_v30, %v582_v1  ;;  %v569_v44 = vadd.f32 %v6745_v48, %v568_v31 }
 0x245   :  { %8675 = vst [vmem:[#allocation104_spill] sm:$0xff] %v6766_v35  ;;  %v2835_v0 = vpop.f32.mrf.mxu1  ;;  %v574_v6 = vand.u32 2147483647, %v6723_v28  ;;  %v589_v40 = vand.u32 2147483647, %v6727_v21  ;;  %v6807_v54 = vpack.c.bf16 %v1225_v10, %v1225_v10  ;;  %v967_v31 = vunpack.c.h.bf16 %v718_v11 }
 0x246   :  { %v2690_v42 = vadd.f32 %v2689_v58, %v2617_v18  ;;  %v1224_v2 = vmul.f32 %v6430_v29, %v964_v51  ;;  %v5614_v18 = vld [vmem:[#allocation2 + $0x274] sm:$0xf]  ;;  %v584_v62 = vadd.f32 %v6747_v30, %v583_v41 }
 0x247   :  { %2801 = vmatmul.bf16.gmra.mxu0 %v6766_v35  ;;  %v5229_v5 = vor.u32 %v5614_v18, %v5226_v8  ;;  %vm575_vm8 = vcmp.eq.f32.partialorder %v574_v6, 8.507059e+37  ;;  %vm590_vm9 = vcmp.eq.f32.partialorder %v589_v40, 8.507059e+37  ;;  %v5630_v11 = vld [vmem:[#allocation2 + $0x2f4] sm:$0xf]  ;;  %v5290_v8 = vld [vmem:[#allocation2 + $0x2f8] sm:$0xf0]  ;;  %v1227_v10 = vmul.f32 %v6464_v32, %v967_v31 }
 0x248   :  { %v2763_v50 = vadd.f32 %v2762_v49, %v2690_v42  ;;  %2874 = vmatmul.bf16.gmra.mxu1 %v6769_v15  ;;  %v6805_v1 = vpack.c.bf16 %v1224_v2, %v1224_v2  ;;  %v577_v42 = vor.u32 1.1754944e-38, %v576_v63  ;;  %v1226_v63 = vmul.f32 %v6462_v39, %v966_v59  ;;  %v5178_v35 = vld [vmem:[#allocation2 + $0x218] sm:$0xf0] }
 0x249   :  { %3322 = vmatpush.bf16.msra.mxu0 %v5229_v5  ;;  %v599_v5 = vld [vmem:[#allocation7 + $0x20] sm:$0xff]  ;;  %v5293_v6 = vor.u32 %v5630_v11, %v5290_v8  ;;  %v6829_v32 = vpack.c.bf16 %v1227_v10, %v1227_v10 }
 0x24a   :  { %v6777_v58 = vadd.f32 %v2835_v0, %v2763_v50  ;;  %v591_v0 = vand.u32 2147483648, %v6727_v21  ;;  %v573_v50 = vsel %vm6791_vm6, %v6745_v48, %v569_v44  ;;  %v588_v21 = vsel %vm6801_vm7, %v6747_v30, %v584_v62  ;;  %v604_v44 = vld [vmem:[#allocation7 + $0x48] sm:$0xff] }
 0x24b   :  { %v2618_v27 = vpop.f32.mrf.mxu2  ;;  %3395 = vmatpush.bf16.msra.mxu1 %v5293_v6  ;;  %v728_v40 = vunpack.c.l.bf16 %v599_v5  ;;  %v738_v59 = vunpack.c.l.bf16 %v604_v44  ;;  %8682 = vst [vmem:[#allocation107_spill] sm:$0xff] %v6829_v32 }
 0x24c   :  { %v2619_v60 = vadd.f32 %v2618_v27, %v6411_v3  ;;  %v2691_v29 = vpop.f32.mrf.mxu3  ;;  %v2764_v51 = vpop.f32.mrf.mxu0  ;;  %v592_v41 = vor.u32 1.1754944e-38, %v591_v0  ;;  %v578_v27 = vsel %vm575_vm8, %v577_v42, %v573_v50 }
 0x24d   :  { %v2837_v28 = vpop.f32.mrf.mxu1  ;;  %v6824_v39 = vperm.slane %v578_v27, 0 }
 0x24e   :  { %v2692_v49 = vadd.f32 %v2691_v29, %v2619_v60  ;;  %v593_v0 = vsel %vm590_vm9, %v592_v41, %v588_v21  ;;  %v5580_v41 = vld [vmem:[#allocation2 + $0x164] sm:$0xf] }
 0x24f   :  { %v6826_v3 = vperm.slane %v593_v0, 0  ;;  %v988_v31 = vmul.f32 %v6824_v39, %v728_v40  ;;  %v998_v50 = vmul.f32 %v6824_v39, %v738_v59  ;;  %v614_v40 = vld [vmem:[#allocation7 + $0x98] sm:$0xff] }
 0x250   :  { %v2765_v18 = vadd.f32 %v2764_v51, %v2692_v49  ;;  %2660 = vmatmul.bf16.gmra.mxu2 %v6805_v1  ;;  %v6822_v51 = vpack.c.bf16 %v1226_v63, %v1226_v63  ;;  %v729_v49 = vunpack.c.h.bf16 %v599_v5 }
 0x251   :  { %2733 = vmatmul.bf16.gmra.mxu3 %v6807_v54  ;;  %v6839_v6 = vpack.c.bf16 %v998_v50, %v988_v31 }
 0x252   :  { %v6818_v2 = vadd.f32 %v2837_v28, %v2765_v18  ;;  %8681 = vst [vmem:[#allocation106_spill] sm:$0xff] %v6822_v51  ;;  %v739_v28 = vunpack.c.h.bf16 %v604_v44  ;;  %v5090_v18 = vld [vmem:[#allocation2 + $0x168] sm:$0xf0]  ;;  %v989_v63 = vmul.f32 %v6826_v3, %v729_v49 }
 0x253   :  { %v2621_v48 = vpop.f32.mrf.mxu2  ;;  %v5093_v8 = vor.u32 %v5580_v41, %v5090_v18  ;;  %v758_v18 = vunpack.c.l.bf16 %v614_v40 }
 0x254   :  { %v2622_v60 = vadd.f32 %v2621_v48, %v6453_v7  ;;  %v2694_v30 = vpop.f32.mrf.mxu3  ;;  %v2767_v29 = vpop.f32.mrf.mxu0  ;;  %v999_v11 = vmul.f32 %v6826_v3, %v739_v28 }
 0x255   :  { %v2840_v62 = vpop.f32.mrf.mxu1  ;;  %3177 = vmatpush.bf16.msrb.mxu2 %v5093_v8 }
 0x256   :  { %v2695_v38 = vadd.f32 %v2694_v30, %v2622_v60  ;;  %v6841_v0 = vpack.c.bf16 %v999_v11, %v989_v63  ;;  %v759_v63 = vunpack.c.h.bf16 %v614_v40 }
 0x257   :  { %2806 = vmatmul.bf16.gmra.mxu0 %v6822_v51 }
 0x258   :  { %v2768_v7 = vadd.f32 %v2767_v29, %v2695_v38  ;;  %2879 = vmatmul.bf16.gmra.mxu1 %v6829_v32  ;;  %v5596_v29 = vld [vmem:[#allocation2 + $0x1e4] sm:$0xf] }
 0x25a   :  { %v6832_v42 = vadd.f32 %v2840_v62, %v2768_v7  ;;  %v609_v62 = vld [vmem:[#allocation7 + $0x70] sm:$0xff] }
 0x25b   :  { %v2623_v21 = vpop.f32.mrf.mxu2  ;;  %v748_v41 = vunpack.c.l.bf16 %v609_v62 }
 0x25c   :  { %v2624_v27 = vadd.f32 %v2623_v21, %v6471_v61  ;;  %v2696_v48 = vpop.f32.mrf.mxu3  ;;  %v2769_v10 = vpop.f32.mrf.mxu0  ;;  %v5154_v61 = vld [vmem:[#allocation2 + $0x1e8] sm:$0xf0]  ;;  %v749_v21 = vunpack.c.h.bf16 %v609_v62 }
 0x25d   :  { %v2842_v44 = vpop.f32.mrf.mxu1  ;;  %v5157_v59 = vor.u32 %v5596_v29, %v5154_v61  ;;  %v1019_v29 = vmul.f32 %v6826_v3, %v759_v63  ;;  %v5282_v61 = vld [vmem:[#allocation2 + $0x2e8] sm:$0xf0] }
 0x25e   :  { %v2697_v5 = vadd.f32 %v2696_v48, %v2624_v27  ;;  %v1008_v27 = vmul.f32 %v6824_v39, %v748_v41  ;;  %v5612_v48 = vld [vmem:[#allocation2 + $0x264] sm:$0xf] }
 0x25f   :  { %3250 = vmatpush.bf16.msrb.mxu3 %v5157_v59  ;;  %v619_v41 = vld [vmem:[#allocation7 + $0xc0] sm:$0xff] }
 0x260   :  { %v2770_v60 = vadd.f32 %v2769_v10, %v2697_v5  ;;  %2892 = vmatmul.bf16.vlgmr.msra.gmra.mxu2 %v6839_v6  ;;  %v5218_v10 = vld [vmem:[#allocation2 + $0x268] sm:$0xf0]  ;;  %v5628_v5 = vld [vmem:[#allocation2 + $0x2e4] sm:$0xf] }
 0x261   :  { %5510 = vmatmul.msk.bf16.vlgmr.msra.gmra.mxu3 %vm2260_vm10, %v6841_v0  ;;  %v5285_v40 = vor.u32 %v5628_v5, %v5282_v61  ;;  %v769_v5 = vunpack.c.h.bf16 %v619_v41 }
 0x262   :  { %v6846_v30 = vadd.f32 %v2842_v44, %v2770_v60  ;;  %v1009_v60 = vmul.f32 %v6826_v3, %v749_v21 }
 0x263   :  { %v2626_v38 = vpop.f32.mrf.mxu2  ;;  %3396 = vmatpush.bf16.msra.mxu1 %v5285_v40  ;;  %v1029_v40 = vmul.f32 %v6826_v3, %v769_v5 }
 0x264   :  { %v2627_v49 = vadd.f32 %v2626_v38, %v6483_v33  ;;  %v2699_v28 = vpop.f32.mrf.mxu3  ;;  %v2772_v7 = vpop.f32.mrf.mxu0  ;;  %v1018_v33 = vmul.f32 %v6824_v39, %v758_v18  ;;  %v624_v18 = vld [vmem:[#allocation7 + $0xe8] sm:$0xff] }
 0x265   :  { %v2845_v50 = vpop.f32.mrf.mxu1 }
 0x266   :  { %v2700_v31 = vadd.f32 %v2699_v28, %v2627_v49  ;;  %v6858_v28 = vpack.c.bf16 %v1018_v33, %v1008_v27 }
 0x267   :  { %3038 = vmatmul.bf16.vlgmr.msrb.gmra.mxu0 %v6046_v4  ;;  %v5221_v4 = vor.u32 %v5612_v48, %v5218_v10  ;;  %v768_v48 = vunpack.c.l.bf16 %v619_v41  ;;  %v778_v10 = vunpack.c.l.bf16 %v624_v18 }
 0x268   :  { %v2773_v11 = vadd.f32 %v2772_v7, %v2700_v31  ;;  %3111 = vmatmul.bf16.vlgmr.msrb.gmra.mxu1 %v6048_v9  ;;  %v6860_v7 = vpack.c.bf16 %v1019_v29, %v1009_v60 }
 0x269   :  { %3323 = vmatpush.bf16.msra.mxu0 %v5221_v4  ;;  %v1028_v4 = vmul.f32 %v6824_v39, %v768_v48  ;;  %v1038_v61 = vmul.f32 %v6824_v39, %v778_v10  ;;  %v5210_v48 = vld [vmem:[#allocation2 + $0x258] sm:$0xf0]  ;;  %v5626_v10 = vld [vmem:[#allocation2 + $0x2d4] sm:$0xf] }
 0x26a   :  { %v6851_v8 = vadd.f32 %v2845_v50, %v2773_v11 }
 0x26b   :  { %v2628_v44 = vpop.f32.mrf.mxu2 }
 0x26c   :  { %v2629_v38 = vadd.f32 %v2628_v44, %v6495_v52  ;;  %v2701_v62 = vpop.f32.mrf.mxu3  ;;  %v2774_v9 = vpop.f32.mrf.mxu0  ;;  %v779_v44 = vunpack.c.h.bf16 %v624_v18 }
 0x26d   :  { %v2847_v49 = vpop.f32.mrf.mxu1 }
 0x26e   :  { %v2702_v59 = vadd.f32 %v2701_v62, %v2629_v38  ;;  %v5082_v38 = vld [vmem:[#allocation2 + $0x158] sm:$0xf0]  ;;  %v5594_v62 = vld [vmem:[#allocation2 + $0x1d4] sm:$0xf] }
 0x270   :  { %v2775_v31 = vadd.f32 %v2774_v9, %v2702_v59  ;;  %2897 = vmatmul.bf16.gmra.mxu2 %v6858_v28  ;;  %v1039_v59 = vmul.f32 %v6826_v3, %v779_v44  ;;  %v629_v44 = vld [vmem:[#allocation7 + $0x110] sm:$0xff] }
 0x271   :  { %5511 = vmatmul.msk.bf16.gmra.mxu3 %vm2260_vm10, %v6860_v7 }
 0x272   :  { %v6865_v50 = vadd.f32 %v2847_v49, %v2775_v31  ;;  %v5146_v49 = vld [vmem:[#allocation2 + $0x1d8] sm:$0xf0] }
 0x273   :  { %v2631_v52 = vpop.f32.mrf.mxu2  ;;  %v5149_v41 = vor.u32 %v5594_v62, %v5146_v49 }
 0x274   :  { %v2632_v21 = vadd.f32 %v2631_v52, %v6507_v13  ;;  %v2704_v63 = vpop.f32.mrf.mxu3  ;;  %v2777_v11 = vpop.f32.mrf.mxu0  ;;  %v5578_v13 = vld [vmem:[#allocation2 + $0x154] sm:$0xf] }
 0x275   :  { %v2850_v33 = vpop.f32.mrf.mxu1  ;;  %3251 = vmatpush.bf16.msrb.mxu3 %v5149_v41 }
 0x276   :  { %v2705_v27 = vadd.f32 %v2704_v63, %v2632_v21  ;;  %v6877_v63 = vpack.c.bf16 %v1038_v61, %v1028_v4  ;;  %v5274_v4 = vld [vmem:[#allocation2 + $0x2d8] sm:$0xf0] }
 0x277   :  { %3043 = vmatmul.bf16.gmra.mxu0 %v6073_v45  ;;  %v5085_v45 = vor.u32 %v5578_v13, %v5082_v38 }
 0x278   :  { %v2778_v60 = vadd.f32 %v2777_v11, %v2705_v27  ;;  %3116 = vmatmul.bf16.gmra.mxu1 %v6075_v46  ;;  %v6879_v11 = vpack.c.bf16 %v1039_v59, %v1029_v40 }
 0x279   :  { %3178 = vmatpush.bf16.msrb.mxu2 %v5085_v45  ;;  %v788_v45 = vunpack.c.l.bf16 %v629_v44 }
 0x27a   :  { %v6870_v29 = vadd.f32 %v2850_v33, %v2778_v60  ;;  %v634_v60 = vld [vmem:[#allocation7 + $0x138] sm:$0xff] }
 0x27b   :  { %v2633_v9 = vpop.f32.mrf.mxu2  ;;  %v798_v49 = vunpack.c.l.bf16 %v634_v60 }
 0x27c   :  { %v2634_v31 = vadd.f32 %v2633_v9, %v6519_v23  ;;  %v2706_v52 = vpop.f32.mrf.mxu3  ;;  %v2779_v46 = vpop.f32.mrf.mxu0  ;;  %v5610_v23 = vld [vmem:[#allocation2 + $0x254] sm:$0xf]  ;;  %v5277_v9 = vor.u32 %v5626_v10, %v5274_v4 }
 0x27d   :  { %v2852_v21 = vpop.f32.mrf.mxu1  ;;  %v5213_v13 = vor.u32 %v5610_v23, %v5210_v48 }
 0x27e   :  { %v2707_v18 = vadd.f32 %v2706_v52, %v2634_v31  ;;  %3397 = vmatpush.bf16.msra.mxu1 %v5277_v9  ;;  %v789_v31 = vunpack.c.h.bf16 %v629_v44  ;;  %v799_v52 = vunpack.c.h.bf16 %v634_v60  ;;  %v639_v9 = vld [vmem:[#allocation7 + $0x160] sm:$0xff] }
 0x27f   :  { %3324 = vmatpush.bf16.msra.mxu0 %v5213_v13 }
 0x280   :  { %v2780_v27 = vadd.f32 %v2779_v46, %v2707_v18  ;;  %2902 = vmatmul.bf16.gmra.mxu2 %v6877_v63  ;;  %v1058_v18 = vmul.f32 %v6824_v39, %v798_v49  ;;  %v1059_v23 = vmul.f32 %v6826_v3, %v799_v52 }
 0x281   :  { %5512 = vmatmul.msk.bf16.gmra.mxu3 %vm2260_vm10, %v6879_v11 }
 0x282   :  { %v6884_v33 = vadd.f32 %v2852_v21, %v2780_v27  ;;  %v1049_v27 = vmul.f32 %v6826_v3, %v789_v31 }
 0x283   :  { %v2636_v5 = vpop.f32.mrf.mxu2 }
 0x284   :  { %v2637_v61 = vadd.f32 %v2636_v5, %v6531_v47  ;;  %v2709_v38 = vpop.f32.mrf.mxu3  ;;  %v2782_v62 = vpop.f32.mrf.mxu0  ;;  %v1048_v47 = vmul.f32 %v6824_v39, %v788_v45  ;;  %v5138_v45 = vld [vmem:[#allocation2 + $0x1c8] sm:$0xf0] }
 0x285   :  { %v2855_v59 = vpop.f32.mrf.mxu1 }
 0x286   :  { %v2710_v40 = vadd.f32 %v2709_v38, %v2637_v61  ;;  %v6896_v60 = vpack.c.bf16 %v1058_v18, %v1048_v47  ;;  %v5576_v61 = vld [vmem:[#allocation2 + $0x144] sm:$0xf]  ;;  %v5074_v38 = vld [vmem:[#allocation2 + $0x148] sm:$0xf0] }
 0x287   :  { %3048 = vmatmul.bf16.gmra.mxu0 %v6093_v19 }
 0x288   :  { %v2783_v46 = vadd.f32 %v2782_v62, %v2710_v40  ;;  %3121 = vmatmul.bf16.gmra.mxu1 %v6095_v20  ;;  %v6898_v20 = vpack.c.bf16 %v1059_v23, %v1049_v27  ;;  %v5592_v62 = vld [vmem:[#allocation2 + $0x1c4] sm:$0xf]  ;;  %v644_v40 = vld [vmem:[#allocation7 + $0x188] sm:$0xff]  ;;  %v809_v23 = vunpack.c.h.bf16 %v639_v9 }
 0x289   :  { %v818_v27 = vunpack.c.l.bf16 %v644_v40 }
 0x28a   :  { %v6889_v41 = vadd.f32 %v2855_v59, %v2783_v46  ;;  %v5077_v59 = vor.u32 %v5576_v61, %v5074_v38  ;;  %v5141_v46 = vor.u32 %v5592_v62, %v5138_v45  ;;  %v5624_v61 = vld [vmem:[#allocation2 + $0x2c4] sm:$0xf]  ;;  %v1069_v62 = vmul.f32 %v6826_v3, %v809_v23 }
 0x28b   :  { %v2638_v21 = vpop.f32.mrf.mxu2 }
 0x28c   :  { %v2639_v48 = vadd.f32 %v2638_v21, %v6543_v26  ;;  %v2711_v10 = vpop.f32.mrf.mxu3  ;;  %v2784_v19 = vpop.f32.mrf.mxu0  ;;  %3179 = vmatpush.bf16.msrb.mxu2 %v5077_v59  ;;  %v808_v21 = vunpack.c.l.bf16 %v639_v9  ;;  %3252 = vmatpush.bf16.msrb.mxu3 %v5141_v46  ;;  %v5266_v9 = vld [vmem:[#allocation2 + $0x2c8] sm:$0xf0] }
 0x28d   :  { %v2857_v44 = vpop.f32.mrf.mxu1  ;;  %v5269_v45 = vor.u32 %v5624_v61, %v5266_v9 }
 0x28e   :  { %v2712_v5 = vadd.f32 %v2711_v10, %v2639_v48  ;;  %v819_v48 = vunpack.c.h.bf16 %v644_v40 }
 0x28f   :  { %3398 = vmatpush.bf16.msra.mxu1 %v5269_v45 }
 0x290   :  { %v2785_v13 = vadd.f32 %v2784_v19, %v2712_v5  ;;  %2907 = vmatmul.bf16.gmra.mxu2 %v6896_v60  ;;  %v1078_v5 = vmul.f32 %v6824_v39, %v818_v27  ;;  %v654_v27 = vld [vmem:[#allocation7 + $0x1d8] sm:$0xff] }
 0x291   :  { %5513 = vmatmul.msk.bf16.gmra.mxu3 %vm2260_vm10, %v6898_v20 }
 0x292   :  { %v6903_v4 = vadd.f32 %v2857_v44, %v2785_v13  ;;  %v5608_v44 = vld [vmem:[#allocation2 + $0x244] sm:$0xf]  ;;  %v5202_v13 = vld [vmem:[#allocation2 + $0x248] sm:$0xf0] }
 0x293   :  { %v2641_v26 = vpop.f32.mrf.mxu2 }
 0x294   :  { %v2642_v49 = vadd.f32 %v2641_v26, %v6555_v14  ;;  %v2714_v31 = vpop.f32.mrf.mxu3  ;;  %v2787_v52 = vpop.f32.mrf.mxu0  ;;  %v1068_v14 = vmul.f32 %v6824_v39, %v808_v21  ;;  %v1079_v26 = vmul.f32 %v6826_v3, %v819_v48  ;;  %v649_v21 = vld [vmem:[#allocation7 + $0x1b0] sm:$0xff] }
 0x295   :  { %v2860_v18 = vpop.f32.mrf.mxu1  ;;  %v829_v61 = vunpack.c.h.bf16 %v649_v21 }
 0x296   :  { %v2715_v47 = vadd.f32 %v2714_v31, %v2642_v49  ;;  %v6917_v46 = vpack.c.bf16 %v1079_v26, %v1069_v62 }
 0x297   :  { %3053 = vmatmul.bf16.gmra.mxu0 %v6113_v55  ;;  %v5205_v55 = vor.u32 %v5608_v44, %v5202_v13  ;;  %v828_v44 = vunpack.c.l.bf16 %v649_v21  ;;  %v838_v13 = vunpack.c.l.bf16 %v654_v27  ;;  %v1089_v45 = vmul.f32 %v6826_v3, %v829_v61  ;;  %v659_v61 = vld [vmem:[#allocation7 + $0x200] sm:$0xff] }
 0x298   :  { %v2788_v10 = vadd.f32 %v2787_v52, %v2715_v47  ;;  %3126 = vmatmul.bf16.gmra.mxu1 %v6115_v56  ;;  %v6915_v52 = vpack.c.bf16 %v1078_v5, %v1068_v14 }
 0x299   :  { %3325 = vmatpush.bf16.msra.mxu0 %v5205_v55  ;;  %v1088_v55 = vmul.f32 %v6824_v39, %v828_v44  ;;  %v1098_v9 = vmul.f32 %v6824_v39, %v838_v13  ;;  %v5194_v44 = vld [vmem:[#allocation2 + $0x238] sm:$0xf0] }
 0x29a   :  { %v6908_v19 = vadd.f32 %v2860_v18, %v2788_v10 }
 0x29b   :  { %v2643_v38 = vpop.f32.mrf.mxu2 }
 0x29c   :  { %v2644_v40 = vadd.f32 %v2643_v38, %v6567_v34  ;;  %v2716_v59 = vpop.f32.mrf.mxu3  ;;  %v2789_v56 = vpop.f32.mrf.mxu0  ;;  %v839_v38 = vunpack.c.h.bf16 %v654_v27 }
 0x29d   :  { %v2862_v31 = vpop.f32.mrf.mxu1 }
 0x29e   :  { %v2717_v49 = vadd.f32 %v2716_v59, %v2644_v40  ;;  %v5066_v40 = vld [vmem:[#allocation2 + $0x138] sm:$0xf0]  ;;  %v5590_v59 = vld [vmem:[#allocation2 + $0x1b4] sm:$0xf] }
 0x2a0   :  { %v2790_v47 = vadd.f32 %v2789_v56, %v2717_v49  ;;  %2912 = vmatmul.bf16.gmra.mxu2 %v6915_v52  ;;  %v1099_v49 = vmul.f32 %v6826_v3, %v839_v38  ;;  %v664_v38 = vld [vmem:[#allocation7 + $0x228] sm:$0xff] }
 0x2a1   :  { %5514 = vmatmul.msk.bf16.gmra.mxu3 %vm2260_vm10, %v6917_v46 }
 0x2a2   :  { %v6922_v18 = vadd.f32 %v2862_v31, %v2790_v47  ;;  %v5130_v31 = vld [vmem:[#allocation2 + $0x1b8] sm:$0xf0] }
 0x2a3   :  { %v2646_v34 = vpop.f32.mrf.mxu2  ;;  %v5133_v21 = vor.u32 %v5590_v59, %v5130_v31 }
 0x2a4   :  { %v2647_v23 = vadd.f32 %v2646_v34, %v6579_v24  ;;  %v2719_v48 = vpop.f32.mrf.mxu3  ;;  %v2792_v10 = vpop.f32.mrf.mxu0  ;;  %v5574_v24 = vld [vmem:[#allocation2 + $0x134] sm:$0xf] }
 0x2a5   :  { %v2865_v5 = vpop.f32.mrf.mxu1  ;;  %3253 = vmatpush.bf16.msrb.mxu3 %v5133_v21  ;;  %v5622_v21 = vld [vmem:[#allocation2 + $0x2b4] sm:$0xf] }
 0x2a6   :  { %v2720_v14 = vadd.f32 %v2719_v48, %v2647_v23  ;;  %v6934_v48 = vpack.c.bf16 %v1098_v9, %v1088_v55 }
 0x2a7   :  { %3058 = vmatmul.bf16.gmra.mxu0 %v6133_v36  ;;  %v5069_v36 = vor.u32 %v5574_v24, %v5066_v40 }
 0x2a8   :  { %v2793_v62 = vadd.f32 %v2792_v10, %v2720_v14  ;;  %3131 = vmatmul.bf16.gmra.mxu1 %v6135_v37  ;;  %v6936_v10 = vpack.c.bf16 %v1099_v49, %v1089_v45  ;;  %v858_v45 = vunpack.c.l.bf16 %v664_v38  ;;  %v849_v49 = vunpack.c.h.bf16 %v659_v61 }
 0x2a9   :  { %3180 = vmatpush.bf16.msrb.mxu2 %v5069_v36  ;;  %v859_v36 = vunpack.c.h.bf16 %v664_v38 }
 0x2aa   :  { %v6927_v26 = vadd.f32 %v2865_v5, %v2793_v62 }
 0x2ab   :  { %v2648_v56 = vpop.f32.mrf.mxu2 }
 0x2ac   :  { %v2649_v47 = vadd.f32 %v2648_v56, %v6591_v12  ;;  %v2721_v34 = vpop.f32.mrf.mxu3  ;;  %v2794_v37 = vpop.f32.mrf.mxu0  ;;  %v5606_v12 = vld [vmem:[#allocation2 + $0x234] sm:$0xf]  ;;  %v848_v56 = vunpack.c.l.bf16 %v659_v61 }
 0x2ad   :  { %v2867_v23 = vpop.f32.mrf.mxu1  ;;  %v5197_v62 = vor.u32 %v5606_v12, %v5194_v44  ;;  %v1119_v12 = vmul.f32 %v6826_v3, %v859_v36 }
 0x2ae   :  { %v2722_v27 = vadd.f32 %v2721_v34, %v2649_v47  ;;  %v8683_v47 = vld [vmem:[#allocation22_spill] sm:$0xff] }
 0x2af   :  { %3326 = vmatpush.bf16.msra.mxu0 %v5197_v62 }
 0x2b0   :  { %v2795_v14 = vadd.f32 %v2794_v37, %v2722_v27  ;;  %2917 = vmatmul.bf16.gmra.mxu2 %v6934_v48  ;;  %v1108_v37 = vmul.f32 %v6824_v39, %v848_v56  ;;  %v5258_v27 = vld [vmem:[#allocation2 + $0x2b8] sm:$0xf0]  ;;  %v5058_v56 = vld [vmem:[#allocation2 + $0x128] sm:$0xf0] }
 0x2b1   :  { %5515 = vmatmul.msk.bf16.gmra.mxu3 %vm2260_vm10, %v6936_v10  ;;  %v5261_v44 = vor.u32 %v5622_v21, %v5258_v27  ;;  %v8685_v21 = vld [vmem:[#allocation82_spill] sm:$0xff] }
 0x2b2   :  { %v6941_v5 = vadd.f32 %v2867_v23, %v2795_v14  ;;  %v1109_v14 = vmul.f32 %v6826_v3, %v849_v49 }
 0x2b3   :  { %v2651_v13 = vpop.f32.mrf.mxu2  ;;  %3399 = vmatpush.bf16.msra.mxu1 %v5261_v44 }
 0x2b4   :  { %v2652_v55 = vadd.f32 %v2651_v13, %v6603_v43  ;;  %v2724_v9 = vpop.f32.mrf.mxu3  ;;  %v2797_v24 = vpop.f32.mrf.mxu0  ;;  %v1118_v43 = vmul.f32 %v6824_v39, %v858_v45 }
 0x2b5   :  { %v2870_v59 = vpop.f32.mrf.mxu1 }
 0x2b6   :  { %v2725_v40 = vadd.f32 %v2724_v9, %v2652_v55  ;;  %v6953_v9 = vpack.c.bf16 %v1118_v43, %v1108_v37 }
 0x2b7   :  { %3063 = vmatmul.bf16.gmra.mxu0 %v6153_v16  ;;  %v8684_v16 = vld [vmem:[#allocation79_spill] sm:$0xff] }
 0x2b8   :  { %v2798_v31 = vadd.f32 %v2797_v24, %v2725_v40  ;;  %3136 = vmatmul.bf16.gmra.mxu1 %v8683_v47  ;;  %v6955_v24 = vpack.c.bf16 %v1119_v12, %v1109_v14  ;;  %v674_v47 = vld [vmem:[#allocation7 + $0x278] sm:$0xff] }
 0x2b9   :  { %v878_v44 = vunpack.c.l.bf16 %v674_v47 }
 0x2ba   :  { %v6946_v34 = vadd.f32 %v2870_v59, %v2798_v31  ;;  %v5572_v59 = vld [vmem:[#allocation2 + $0x124] sm:$0xf]  ;;  %v669_v31 = vld [vmem:[#allocation7 + $0x250] sm:$0xff] }
 0x2bb   :  { %v2653_v23 = vpop.f32.mrf.mxu2  ;;  %v5061_v49 = vor.u32 %v5572_v59, %v5058_v56  ;;  %v868_v12 = vunpack.c.l.bf16 %v669_v31  ;;  %v8687_v59 = vld [vmem:[#allocation26_spill] sm:$0xff] }
 0x2bc   :  { %v2654_v13 = vadd.f32 %v2653_v23, %v8684_v16  ;;  %v2726_v61 = vpop.f32.mrf.mxu3  ;;  %v2799_v38 = vpop.f32.mrf.mxu0  ;;  %v8686_v16 = vld [vmem:[#allocation25_spill] sm:$0xff] }
 0x2bd   :  { %v2872_v55 = vpop.f32.mrf.mxu1  ;;  %3181 = vmatpush.bf16.msrb.mxu2 %v5061_v49  ;;  %v1138_v49 = vmul.f32 %v6824_v39, %v878_v44 }
 0x2be   :  { %v2727_v62 = vadd.f32 %v2726_v61, %v2654_v13  ;;  %v869_v13 = vunpack.c.h.bf16 %v669_v31  ;;  %v879_v61 = vunpack.c.h.bf16 %v674_v47  ;;  %v8688_v31 = vld [vmem:[#allocation85_spill] sm:$0xff] }
 0x2c0   :  { %v2800_v40 = vadd.f32 %v2799_v38, %v2727_v62  ;;  %2922 = vmatmul.bf16.gmra.mxu2 %v6953_v9  ;;  %v5588_v38 = vld [vmem:[#allocation2 + $0x1a4] sm:$0xf]  ;;  %v5122_v62 = vld [vmem:[#allocation2 + $0x1a8] sm:$0xf0] }
 0x2c1   :  { %5516 = vmatmul.msk.bf16.gmra.mxu3 %vm2260_vm10, %v6955_v24 }
 0x2c2   :  { %v6960_v45 = vadd.f32 %v2872_v55, %v2800_v40  ;;  %v5125_v40 = vor.u32 %v5588_v38, %v5122_v62  ;;  %v5604_v62 = vld [vmem:[#allocation2 + $0x224] sm:$0xf] }
 0x2c3   :  { %v2656_v36 = vpop.f32.mrf.mxu2 }
 0x2c4   :  { %v2657_v27 = vadd.f32 %v2656_v36, %v8685_v21  ;;  %v2729_v37 = vpop.f32.mrf.mxu3  ;;  %v2802_v43 = vpop.f32.mrf.mxu0  ;;  %v1128_v36 = vmul.f32 %v6824_v39, %v868_v12  ;;  %3254 = vmatpush.bf16.msrb.mxu3 %v5125_v40  ;;  %v5186_v12 = vld [vmem:[#allocation2 + $0x228] sm:$0xf0] }
 0x2c5   :  { %v2875_v14 = vpop.f32.mrf.mxu1  ;;  %v5189_v40 = vor.u32 %v5604_v62, %v5186_v12  ;;  %v8689_v62 = vld [vmem:[#allocation29_spill] sm:$0xff] }
 0x2c6   :  { %v2730_v23 = vadd.f32 %v2729_v37, %v2657_v27  ;;  %v1129_v27 = vmul.f32 %v6826_v3, %v869_v13  ;;  %v1139_v37 = vmul.f32 %v6826_v3, %v879_v61  ;;  %v6972_v38 = vpack.c.bf16 %v1138_v49, %v1128_v36  ;;  %v5250_v13 = vld [vmem:[#allocation2 + $0x2a8] sm:$0xf0]  ;;  %v679_v36 = vld [vmem:[#allocation7 + $0x2a0] sm:$0xff] }
 0x2c7   :  { %3068 = vmatmul.bf16.gmra.mxu0 %v8686_v16  ;;  %v684_v49 = vld [vmem:[#allocation7 + $0x2c8] sm:$0xff]  ;;  %v889_v12 = vunpack.c.h.bf16 %v679_v36 }
 0x2c8   :  { %v2803_v55 = vadd.f32 %v2802_v43, %v2730_v23  ;;  %3141 = vmatmul.bf16.gmra.mxu1 %v8687_v59  ;;  %3327 = vmatpush.bf16.msra.mxu0 %v5189_v40  ;;  %v899_v51 = vunpack.c.h.bf16 %v684_v49 }
 0x2ca   :  { %v6965_v56 = vadd.f32 %v2875_v14, %v2803_v55  ;;  %v6974_v14 = vpack.c.bf16 %v1139_v37, %v1129_v27  ;;  %v5620_v55 = vld [vmem:[#allocation2 + $0x2a4] sm:$0xf] }
 0x2cb   :  { %v2658_v21 = vpop.f32.mrf.mxu2  ;;  %v5253_v61 = vor.u32 %v5620_v55, %v5250_v13 }
 0x2cc   :  { %v2659_v47 = vadd.f32 %v2658_v21, %v8688_v31  ;;  %v2731_v16 = vpop.f32.mrf.mxu3  ;;  %v2804_v32 = vpop.f32.mrf.mxu0 }
 0x2cd   :  { %v2877_v23 = vpop.f32.mrf.mxu1  ;;  %3400 = vmatpush.bf16.msra.mxu1 %v5253_v61  ;;  %v1149_v61 = vmul.f32 %v6826_v3, %v889_v12  ;;  %v689_v12 = vld [vmem:[#allocation7 + $0x2f0] sm:$0xff] }
 0x2ce   :  { %v2732_v43 = vadd.f32 %v2731_v16, %v2659_v47  ;;  %v888_v16 = vunpack.c.l.bf16 %v679_v36 }
 0x2d0   :  { %v2805_v44 = vadd.f32 %v2804_v32, %v2732_v43  ;;  %2927 = vmatmul.bf16.gmra.mxu2 %v6972_v38  ;;  %v898_v43 = vunpack.c.l.bf16 %v684_v49  ;;  %v1148_v40 = vmul.f32 %v6824_v39, %v888_v16  ;;  %v5570_v49 = vld [vmem:[#allocation2 + $0x114] sm:$0xf]  ;;  %v5114_v16 = vld [vmem:[#allocation2 + $0x198] sm:$0xf0] }
 0x2d1   :  { %5517 = vmatmul.msk.bf16.gmra.mxu3 %vm2260_vm10, %v6974_v14 }
 0x2d2   :  { %v6979_v59 = vadd.f32 %v2877_v23, %v2805_v44  ;;  %v8690_v23 = vld [vmem:[#allocation30_spill] sm:$0xff]  ;;  %v1158_v13 = vmul.f32 %v6824_v39, %v898_v43 }
 0x2d3   :  { %v2661_v21 = vpop.f32.mrf.mxu2 }
 0x2d4   :  { %v2662_v27 = vadd.f32 %v2661_v21, %v6651_v17  ;;  %v2734_v37 = vpop.f32.mrf.mxu3  ;;  %v2807_v31 = vpop.f32.mrf.mxu0  ;;  %v1159_v21 = vmul.f32 %v6826_v3, %v899_v51 }
 0x2d5   :  { %v2880_v47 = vpop.f32.mrf.mxu1 }
 0x2d6   :  { %v2735_v32 = vadd.f32 %v2734_v37, %v2662_v27  ;;  %v6992_v36 = vpack.c.bf16 %v1159_v21, %v1149_v61  ;;  %v908_v21 = vunpack.c.l.bf16 %v689_v12 }
 0x2d7   :  { %3073 = vmatmul.bf16.gmra.mxu0 %v8689_v62  ;;  %v6990_v62 = vpack.c.bf16 %v1158_v13, %v1148_v40 }
 0x2d8   :  { %v2808_v55 = vadd.f32 %v2807_v31, %v2735_v32  ;;  %3146 = vmatmul.bf16.gmra.mxu1 %v8690_v23  ;;  %8692 = vst [vmem:[#allocation79_spill] sm:$0xff] %v6992_v36  ;;  %v5050_v31 = vld [vmem:[#allocation2 + $0x118] sm:$0xf0]  ;;  %v5586_v32 = vld [vmem:[#allocation2 + $0x194] sm:$0xf] }
 0x2d9   :  { %8691 = vst [vmem:[#allocation22_spill] sm:$0xff] %v6990_v62  ;;  %v5117_v43 = vor.u32 %v5586_v32, %v5114_v16  ;;  %v5602_v16 = vld [vmem:[#allocation2 + $0x214] sm:$0xf] }
 0x2da   :  { %v6984_v44 = vadd.f32 %v2880_v47, %v2808_v55  ;;  %v5053_v47 = vor.u32 %v5570_v49, %v5050_v31  ;;  %v694_v55 = vld [vmem:[#allocation7 + $0x318] sm:$0xff]  ;;  %v8695_v49 = vld [vmem:[#allocation33_spill] sm:$0xff]  ;;  %v909_v31 = vunpack.c.h.bf16 %v689_v12 }
 0x2db   :  { %v2663_v17 = vpop.f32.mrf.mxu2  ;;  %3255 = vmatpush.bf16.msrb.mxu3 %v5117_v43  ;;  %v919_v32 = vunpack.c.h.bf16 %v694_v55  ;;  %v5618_v43 = vld [vmem:[#allocation2 + $0x294] sm:$0xf] }
 0x2dc   :  { %v2736_v27 = vpop.f32.mrf.mxu3  ;;  %v2809_v37 = vpop.f32.mrf.mxu0  ;;  %3182 = vmatpush.bf16.msrb.mxu2 %v5053_v47  ;;  %v8696_v47 = vld [vmem:[#allocation34_spill] sm:$0xff] }
 0x2dd   :  { %v2882_v15 = vpop.f32.mrf.mxu1  ;;  %v918_v27 = vunpack.c.l.bf16 %v694_v55 }
 0x2de   :  { %v8693_v15 = vld [vmem:[#allocation92_spill] sm:$0xff] }
 0x2e0   :  { %2932 = vmatmul.bf16.gmra.mxu2 %v6990_v62 }
 0x2e1   :  { %5518 = vmatmul.msk.bf16.gmra.mxu3 %vm2260_vm10, %v6992_v36  ;;  %v1169_v36 = vmul.f32 %v6826_v3, %v909_v31 }
 0x2e3   :  { %v2893_v51 = vpop.f32.mrf.mxu2 }
 0x2e4   :  { %v2894_v23 = vadd.f32 %v2893_v51, %v8693_v15  ;;  %v2966_v40 = vpop.f32.mrf.mxu3  ;;  %v3039_v13 = vpop.f32.mrf.mxu0  ;;  %v1168_v51 = vmul.f32 %v6824_v39, %v908_v21  ;;  %v1178_v15 = vmul.f32 %v6824_v39, %v918_v27 }
 0x2e5   :  { %v3112_v61 = vpop.f32.mrf.mxu1 }
 0x2e6   :  { %v6998_v17 = vadd.f32 %v2966_v40, %v2894_v23  ;;  %v7000_v37 = vadd.f32 %v3112_v61, %v3039_v13  ;;  %v5181_v23 = vor.u32 %v5602_v16, %v5178_v35  ;;  %v5242_v40 = vld [vmem:[#allocation2 + $0x298] sm:$0xf0]  ;;  %v1179_v13 = vmul.f32 %v6826_v3, %v919_v32 }
 0x2e7   :  { %3078 = vmatmul.bf16.gmra.mxu0 %v8695_v49  ;;  %v5245_v61 = vor.u32 %v5618_v43, %v5242_v40  ;;  %v7011_v21 = vpack.c.bf16 %v1178_v15, %v1168_v51 }
 0x2e8   :  { %8694 = vst [vmem:[#allocation82_spill] sm:$0xff] %v6998_v17  ;;  %3151 = vmatmul.bf16.gmra.mxu1 %v8696_v47  ;;  %3328 = vmatpush.bf16.msra.mxu0 %v5181_v23  ;;  %v7015_v35 = vpack.c.bf16 %v1179_v13, %v1169_v36  ;;  %v8701_v36 = vld [vmem:[#allocation37_spill] sm:$0xff] }
 0x2e9   :  { %3401 = vmatpush.bf16.msra.mxu1 %v5245_v61  ;;  %8698 = vst [vmem:[#allocation26_spill] sm:$0xff] %v7011_v21 }
 0x2ea   :  { %8699 = vst [vmem:[#allocation85_spill] sm:$0xff] %v7015_v35 }
 0x2eb   :  { %v2895_v17 = vpop.f32.mrf.mxu2 }
 0x2ec   :  { %v2896_v12 = vadd.f32 %v2895_v17, %v6694_v25  ;;  %v2968_v55 = vpop.f32.mrf.mxu3  ;;  %v3041_v49 = vpop.f32.mrf.mxu0  ;;  %v699_v25 = vld [vmem:[#allocation7 + $0x340] sm:$0xff]  ;;  %v704_v17 = vld [vmem:[#allocation7 + $0x368] sm:$0xff] }
 0x2ed   :  { %v3114_v62 = vpop.f32.mrf.mxu1  ;;  %v928_v15 = vunpack.c.l.bf16 %v699_v25  ;;  %v929_v13 = vunpack.c.h.bf16 %v699_v25  ;;  %v939_v61 = vunpack.c.h.bf16 %v704_v17 }
 0x2ee   :  { %v7009_v47 = vadd.f32 %v2968_v55, %v2896_v12  ;;  %v7013_v27 = vadd.f32 %v3114_v62, %v3041_v49  ;;  %v938_v62 = vunpack.c.l.bf16 %v704_v17  ;;  %v8702_v12 = vld [vmem:[#allocation38_spill] sm:$0xff]  ;;  %v5568_v55 = vld [vmem:[#allocation2 + $0x104] sm:$0xf] }
 0x2ef   :  { %v5042_v49 = vld [vmem:[#allocation2 + $0x108] sm:$0xf0] }
 0x2f0   :  { %8697 = vst [vmem:[#allocation25_spill] sm:$0xff] %v7009_v47  ;;  %2937 = vmatmul.bf16.gmra.mxu2 %v7011_v21  ;;  %v1189_v21 = vmul.f32 %v6826_v3, %v929_v13 }
 0x2f1   :  { %5519 = vmatmul.msk.bf16.gmra.mxu3 %vm2260_vm10, %v7015_v35  ;;  %v5584_v35 = vld [vmem:[#allocation2 + $0x184] sm:$0xf] }
 0x2f3   :  { %v2898_v31 = vpop.f32.mrf.mxu2 }
 0x2f4   :  { %v2899_v32 = vadd.f32 %v2898_v31, %v6706_v57  ;;  %v2971_v16 = vpop.f32.mrf.mxu3  ;;  %v3044_v43 = vpop.f32.mrf.mxu0  ;;  %v1188_v57 = vmul.f32 %v6824_v39, %v928_v15  ;;  %v1198_v31 = vmul.f32 %v6824_v39, %v938_v62 }
 0x2f5   :  { %v3117_v51 = vpop.f32.mrf.mxu1 }
 0x2f6   :  { %v7021_v23 = vadd.f32 %v2971_v16, %v2899_v32  ;;  %v7023_v40 = vadd.f32 %v3117_v51, %v3044_v43  ;;  %v5045_v32 = vor.u32 %v5568_v55, %v5042_v49  ;;  %v5106_v16 = vld [vmem:[#allocation2 + $0x188] sm:$0xf0]  ;;  %v1199_v43 = vmul.f32 %v6826_v3, %v939_v61 }
 0x2f7   :  { %3083 = vmatmul.bf16.gmra.mxu0 %v8701_v36  ;;  %v5109_v51 = vor.u32 %v5584_v35, %v5106_v16  ;;  %v7034_v15 = vpack.c.bf16 %v1198_v31, %v1188_v57  ;;  %v5600_v35 = vld [vmem:[#allocation2 + $0x204] sm:$0xf]  ;;  %v5234_v61 = vld [vmem:[#allocation2 + $0x288] sm:$0xf0]  ;;  %v714_v16 = vld [vmem:[#allocation7 + $0x3b8] sm:$0xff] }
 0x2f8   :  { %8700 = vst [vmem:[#allocation29_spill] sm:$0xff] %v7021_v23  ;;  %3156 = vmatmul.bf16.gmra.mxu1 %v8702_v12  ;;  %3183 = vmatpush.bf16.msrb.mxu2 %v5045_v32  ;;  %v7038_v55 = vpack.c.bf16 %v1199_v43, %v1189_v21  ;;  %v709_v32 = vld [vmem:[#allocation7 + $0x390] sm:$0xff] }
 0x2f9   :  { %3256 = vmatpush.bf16.msrb.mxu3 %v5109_v51  ;;  %8703 = vst [vmem:[#allocation30_spill] sm:$0xff] %v7034_v15 }
 0x2fa   :  { %8704 = vst [vmem:[#allocation92_spill] sm:$0xff] %v7038_v55 }
 0x2fb   :  { %v2900_v23 = vpop.f32.mrf.mxu2 }
 0x2fc   :  { %v2901_v25 = vadd.f32 %v2900_v23, %v6721_v53  ;;  %v2973_v17 = vpop.f32.mrf.mxu3  ;;  %v3046_v36 = vpop.f32.mrf.mxu0  ;;  %v5170_v53 = vld [vmem:[#allocation2 + $0x208] sm:$0xf0]  ;;  %v5616_v23 = vld [vmem:[#allocation2 + $0x284] sm:$0xf] }
 0x2fd   :  { %v3119_v47 = vpop.f32.mrf.mxu1  ;;  %v5173_v13 = vor.u32 %v5600_v35, %v5170_v53  ;;  %v5237_v51 = vor.u32 %v5616_v23, %v5234_v61  ;;  %v949_v35 = vunpack.c.h.bf16 %v709_v32  ;;  %v959_v53 = vunpack.c.h.bf16 %v714_v16 }
 0x2fe   :  { %v7032_v12 = vadd.f32 %v2973_v17, %v2901_v25  ;;  %v7036_v62 = vadd.f32 %v3119_v47, %v3046_v36  ;;  %v948_v25 = vunpack.c.l.bf16 %v709_v32  ;;  %v958_v17 = vunpack.c.l.bf16 %v714_v16 }
 0x2ff   :  { %3329 = vmatpush.bf16.msra.mxu0 %v5173_v13  ;;  %3402 = vmatpush.bf16.msra.mxu1 %v5237_v51  ;;  %v1209_v13 = vmul.f32 %v6826_v3, %v949_v35  ;;  %v8708_v51 = vld [vmem:[#allocation103_spill] sm:$0xff] }
 0x300   :  { %2942 = vmatmul.bf16.gmra.mxu2 %v7034_v15  ;;  %v8707_v15 = vld [vmem:[#allocation42_spill] sm:$0xff]  ;;  %v1208_v23 = vmul.f32 %v6824_v39, %v948_v25  ;;  %v5646_v25 = vld [vmem:[#allocation2 + $0x374] sm:$0xf] }
 0x301   :  { %5520 = vmatmul.msk.bf16.gmra.mxu3 %vm2260_vm10, %v7038_v55  ;;  %v8706_v55 = vld [vmem:[#allocation41_spill] sm:$0xff]  ;;  %v5662_v35 = vld [vmem:[#allocation2 + $0x3f4] sm:$0xf] }
 0x303   :  { %v2903_v49 = vpop.f32.mrf.mxu2 }
 0x304   :  { %v2904_v57 = vadd.f32 %v2903_v49, %v6738_v22  ;;  %v2976_v47 = vpop.f32.mrf.mxu3  ;;  %v3049_v31 = vpop.f32.mrf.mxu0  ;;  %v1218_v22 = vmul.f32 %v6824_v39, %v958_v17  ;;  %v1219_v49 = vmul.f32 %v6826_v3, %v959_v53  ;;  %v5354_v17 = vld [vmem:[#allocation2 + $0x378] sm:$0xf0] }
 0x305   :  { %v3122_v43 = vpop.f32.mrf.mxu1  ;;  %v5357_v53 = vor.u32 %v5646_v25, %v5354_v17  ;;  %v8714_v25 = vld [vmem:[#allocation46_spill] sm:$0xff]  ;;  %v5678_v17 = vld [vmem:[#allocation2 + $0x474] sm:$0xf] }
 0x306   :  { %v7044_v21 = vadd.f32 %v2976_v47, %v2904_v57  ;;  %v7046_v36 = vadd.f32 %v3122_v43, %v3049_v31  ;;  %v7057_v32 = vpack.c.bf16 %v1218_v22, %v1208_v23 }
 0x307   :  { %3088 = vmatmul.bf16.gmra.mxu0 %v8706_v55  ;;  %3468 = vmatpush.bf16.msra.mxu2 %v5357_v53 }
 0x308   :  { %8705 = vst [vmem:[#allocation33_spill] sm:$0xff] %v7044_v21  ;;  %3161 = vmatmul.bf16.gmra.mxu1 %v8707_v15  ;;  %v7061_v15 = vpack.c.bf16 %v1219_v49, %v1209_v13  ;;  %v5482_v21 = vld [vmem:[#allocation2 + $0x478] sm:$0xf0] }
 0x309   :  { %8710 = vst [vmem:[#allocation37_spill] sm:$0xff] %v7057_v32 }
 0x30a   :  { %8711 = vst [vmem:[#allocation38_spill] sm:$0xff] %v7061_v15 }
 0x30b   :  { %v2905_v61 = vpop.f32.mrf.mxu2 }
 0x30c   :  { %v2906_v57 = vadd.f32 %v2905_v61, %v8708_v51  ;;  %v2978_v47 = vpop.f32.mrf.mxu3  ;;  %v3051_v31 = vpop.f32.mrf.mxu0  ;;  %v5418_v61 = vld [vmem:[#allocation2 + $0x3f8] sm:$0xf0] }
 0x30d   :  { %v3124_v55 = vpop.f32.mrf.mxu1 }
 0x30e   :  { %v7055_v43 = vadd.f32 %v2978_v47, %v2906_v57  ;;  %v7059_v16 = vadd.f32 %v3124_v55, %v3051_v31  ;;  %v719_v57 = vld [vmem:[#allocation7 + $0x3e0] sm:$0xff]  ;;  %v5421_v47 = vor.u32 %v5662_v35, %v5418_v61 }
 0x30f   :  { %v968_v55 = vunpack.c.l.bf16 %v719_v57 }
 0x310   :  { %8709 = vst [vmem:[#allocation34_spill] sm:$0xff] %v7055_v43  ;;  %2947 = vmatmul.bf16.gmra.mxu2 %v7057_v32  ;;  %3541 = vmatpush.bf16.msra.mxu3 %v5421_v47  ;;  %v969_v43 = vunpack.c.h.bf16 %v719_v57 }
 0x311   :  { %5521 = vmatmul.msk.bf16.gmra.mxu3 %vm2260_vm10, %v7061_v15  ;;  %v8713_v15 = vld [vmem:[#allocation45_spill] sm:$0xff]  ;;  %v1228_v35 = vmul.f32 %v6824_v39, %v968_v55  ;;  %v5506_v39 = vld [vmem:[#allocation2 + $0x4a8] sm:$0xf0] }
 0x312   :  { %v1229_v53 = vmul.f32 %v6826_v3, %v969_v43 }
 0x313   :  { %v2908_v51 = vpop.f32.mrf.mxu2 }
 0x314   :  { %v2909_v23 = vadd.f32 %v2908_v51, %v6777_v58  ;;  %v2981_v22 = vpop.f32.mrf.mxu3  ;;  %v3054_v31 = vpop.f32.mrf.mxu0  ;;  %v5485_v58 = vor.u32 %v5678_v17, %v5482_v21 }
 0x315   :  { %v3127_v49 = vpop.f32.mrf.mxu1 }
 0x316   :  { %v7067_v13 = vadd.f32 %v2981_v22, %v2909_v23  ;;  %v7069_v32 = vadd.f32 %v3127_v49, %v3054_v31  ;;  %3614 = vmatpush.bf16.msrb.mxu0 %v5485_v58  ;;  %v7082_v49 = vpack.c.bf16 %v1229_v53, %v1229_v53  ;;  %v8720_v53 = vld [vmem:[#allocation50_spill] sm:$0xff] }
 0x317   :  { %3093 = vmatmul.bf16.gmra.mxu0 %v8713_v15  ;;  %v7078_v15 = vpack.c.bf16 %v1228_v35, %v1228_v35 }
 0x318   :  { %8712 = vst [vmem:[#allocation41_spill] sm:$0xff] %v7067_v13  ;;  %3166 = vmatmul.bf16.gmra.mxu1 %v8714_v25  ;;  %v5684_v25 = vld [vmem:[#allocation2 + $0x4a4] sm:$0xf] }
 0x319   :  { %8716 = vst [vmem:[#allocation103_spill] sm:$0xff] %v7078_v15  ;;  %v5509_v21 = vor.u32 %v5684_v25, %v5506_v39 }
 0x31a   :  { %8717 = vst [vmem:[#allocation45_spill] sm:$0xff] %v7082_v49 }
 0x31b   :  { %v2910_v61 = vpop.f32.mrf.mxu2  ;;  %3692 = vmatpush.bf16.msrb.mxu1 %v5509_v21 }
 0x31c   :  { %v2911_v51 = vadd.f32 %v2910_v61, %v6818_v2  ;;  %v2983_v47 = vpop.f32.mrf.mxu3  ;;  %v3056_v23 = vpop.f32.mrf.mxu0  ;;  %v8719_v61 = vld [vmem:[#allocation49_spill] sm:$0xff] }
 0x31d   :  { %v3129_v31 = vpop.f32.mrf.mxu1 }
 0x31e   :  { %v7076_v22 = vadd.f32 %v2983_v47, %v2911_v51  ;;  %v7080_v57 = vadd.f32 %v3129_v31, %v3056_v23  ;;  %v5644_v51 = vld [vmem:[#allocation2 + $0x364] sm:$0xf]  ;;  %v5346_v47 = vld [vmem:[#allocation2 + $0x368] sm:$0xf0] }
 0x31f   :  { %v5349_v23 = vor.u32 %v5644_v51, %v5346_v47 }
 0x320   :  { %8715 = vst [vmem:[#allocation42_spill] sm:$0xff] %v7076_v22  ;;  %2952 = vmatmul.bf16.gmra.mxu2 %v7078_v15 }
 0x321   :  { %5522 = vmatmul.msk.bf16.gmra.mxu3 %vm2260_vm10, %v7082_v49  ;;  %3469 = vmatpush.bf16.msra.mxu2 %v5349_v23 }
 0x323   :  { %v2913_v2 = vpop.f32.mrf.mxu2 }
 0x324   :  { %v2914_v3 = vadd.f32 %v2913_v2, %v6832_v42  ;;  %v2986_v43 = vpop.f32.mrf.mxu3  ;;  %v3059_v55 = vpop.f32.mrf.mxu0 }
 0x325   :  { %v3132_v35 = vpop.f32.mrf.mxu1 }
 0x326   :  { %v7088_v17 = vadd.f32 %v2986_v43, %v2914_v3  ;;  %v7090_v58 = vadd.f32 %v3132_v35, %v3059_v55  ;;  %v5660_v43 = vld [vmem:[#allocation2 + $0x3e4] sm:$0xf]  ;;  %v5410_v55 = vld [vmem:[#allocation2 + $0x3e8] sm:$0xf0]  ;;  %v8722_v35 = vld [vmem:[#allocation12_spill] sm:$0xff] }
 0x327   :  { %3098 = vmatmul.bf16.gmra.mxu0 %v8719_v61  ;;  %v5413_v61 = vor.u32 %v5660_v43, %v5410_v55 }
 0x328   :  { %8718 = vst [vmem:[#allocation46_spill] sm:$0xff] %v7088_v17  ;;  %3171 = vmatmul.bf16.gmra.mxu1 %v8720_v53  ;;  %v8723_v53 = vld [vmem:[#allocation13_spill] sm:$0xff] }
 0x329   :  { %3542 = vmatpush.bf16.msra.mxu3 %v5413_v61 }
 0x32b   :  { %v2915_v31 = vpop.f32.mrf.mxu2 }
 0x32c   :  { %v2916_v25 = vadd.f32 %v2915_v31, %v6846_v30  ;;  %v2988_v39 = vpop.f32.mrf.mxu3  ;;  %v3061_v21 = vpop.f32.mrf.mxu0 }
 0x32d   :  { %v3134_v2 = vpop.f32.mrf.mxu1 }
 0x32e   :  { %v7095_v42 = vadd.f32 %v2988_v39, %v2916_v25  ;;  %v7097_v3 = vadd.f32 %v3134_v2, %v3061_v21  ;;  %v8725_v39 = vld [vmem:[#allocation53_spill] sm:$0xff]  ;;  %v5474_v2 = vld [vmem:[#allocation2 + $0x468] sm:$0xf0] }
 0x32f   :  { %v5676_v21 = vld [vmem:[#allocation2 + $0x464] sm:$0xf] }
 0x330   :  { %8721 = vst [vmem:[#allocation49_spill] sm:$0xff] %v7095_v42  ;;  %3184 = vmatmul.bf16.vlgmr.msrb.gmra.mxu2 %v8722_v35  ;;  %v5477_v42 = vor.u32 %v5676_v21, %v5474_v2  ;;  %v8726_v35 = vld [vmem:[#allocation54_spill] sm:$0xff] }
 0x331   :  { %3257 = vmatmul.bf16.vlgmr.msrb.gmra.mxu3 %v8723_v53 }
 0x332   :  { %3615 = vmatpush.bf16.msrb.mxu0 %v5477_v42 }
 0x333   :  { %v2918_v51 = vpop.f32.mrf.mxu2 }
 0x334   :  { %v2919_v47 = vadd.f32 %v2918_v51, %v6851_v8  ;;  %v2991_v30 = vpop.f32.mrf.mxu3  ;;  %v3064_v31 = vpop.f32.mrf.mxu0 }
 0x335   :  { %v3137_v23 = vpop.f32.mrf.mxu1 }
 0x336   :  { %v7102_v17 = vadd.f32 %v2991_v30, %v2919_v47  ;;  %v7104_v25 = vadd.f32 %v3137_v23, %v3064_v31  ;;  %v8728_v30 = vld [vmem:[#allocation14_spill] sm:$0xff]  ;;  %v8729_v31 = vld [vmem:[#allocation15_spill] sm:$0xff] }
 0x337   :  { %3330 = vmatmul.bf16.vlgmr.msra.gmra.mxu0 %v8725_v39 }
 0x338   :  { %8724 = vst [vmem:[#allocation50_spill] sm:$0xff] %v7102_v17  ;;  %3403 = vmatmul.bf16.vlgmr.msra.gmra.mxu1 %v8726_v35 }
 0x33b   :  { %v2920_v43 = vpop.f32.mrf.mxu2 }
 0x33c   :  { %v2921_v55 = vadd.f32 %v2920_v43, %v6865_v50  ;;  %v2993_v61 = vpop.f32.mrf.mxu3  ;;  %v3066_v8 = vpop.f32.mrf.mxu0  ;;  %v8731_v43 = vld [vmem:[#allocation57_spill] sm:$0xff] }
 0x33d   :  { %v3139_v51 = vpop.f32.mrf.mxu1 }
 0x33e   :  { %v7109_v53 = vadd.f32 %v2993_v61, %v2921_v55  ;;  %v7111_v47 = vadd.f32 %v3139_v51, %v3066_v8  ;;  %v5642_v55 = vld [vmem:[#allocation2 + $0x354] sm:$0xf]  ;;  %v5338_v61 = vld [vmem:[#allocation2 + $0x358] sm:$0xf0]  ;;  %v8732_v51 = vld [vmem:[#allocation58_spill] sm:$0xff] }
 0x33f   :  { %v5341_v8 = vor.u32 %v5642_v55, %v5338_v61  ;;  %v8734_v55 = vld [vmem:[#allocation16_spill] sm:$0xff] }
 0x340   :  { %8727 = vst [vmem:[#allocation12_spill] sm:$0xff] %v7109_v53  ;;  %3189 = vmatmul.bf16.gmra.mxu2 %v8728_v30  ;;  %v5658_v30 = vld [vmem:[#allocation2 + $0x3d4] sm:$0xf]  ;;  %v5402_v53 = vld [vmem:[#allocation2 + $0x3d8] sm:$0xf0] }
 0x341   :  { %3262 = vmatmul.bf16.gmra.mxu3 %v8729_v31  ;;  %3470 = vmatpush.bf16.msra.mxu2 %v5341_v8  ;;  %v5405_v31 = vor.u32 %v5658_v30, %v5402_v53 }
 0x343   :  { %v2923_v23 = vpop.f32.mrf.mxu2  ;;  %3543 = vmatpush.bf16.msra.mxu3 %v5405_v31 }
 0x344   :  { %v2924_v39 = vadd.f32 %v2923_v23, %v6870_v29  ;;  %v2996_v21 = vpop.f32.mrf.mxu3  ;;  %v3069_v2 = vpop.f32.mrf.mxu0 }
 0x345   :  { %v3142_v35 = vpop.f32.mrf.mxu1 }
 0x346   :  { %v7116_v42 = vadd.f32 %v2996_v21, %v2924_v39  ;;  %v7118_v50 = vadd.f32 %v3142_v35, %v3069_v2 }
 0x347   :  { %3335 = vmatmul.bf16.gmra.mxu0 %v8731_v43  ;;  %v5674_v43 = vld [vmem:[#allocation2 + $0x454] sm:$0xf] }
 0x348   :  { %8730 = vst [vmem:[#allocation13_spill] sm:$0xff] %v7116_v42  ;;  %3408 = vmatmul.bf16.gmra.mxu1 %v8732_v51  ;;  %v5466_v42 = vld [vmem:[#allocation2 + $0x458] sm:$0xf0]  ;;  %v8735_v51 = vld [vmem:[#allocation17_spill] sm:$0xff] }
 0x349   :  { %v5469_v61 = vor.u32 %v5674_v43, %v5466_v42 }
 0x34b   :  { %v2925_v17 = vpop.f32.mrf.mxu2  ;;  %3616 = vmatpush.bf16.msrb.mxu0 %v5469_v61 }
 0x34c   :  { %v2926_v29 = vadd.f32 %v2925_v17, %v6884_v33  ;;  %v2998_v23 = vpop.f32.mrf.mxu3  ;;  %v3071_v39 = vpop.f32.mrf.mxu0 }
 0x34d   :  { %v3144_v2 = vpop.f32.mrf.mxu1 }
 0x34e   :  { %v7123_v21 = vadd.f32 %v2998_v23, %v2926_v29  ;;  %v7125_v35 = vadd.f32 %v3144_v2, %v3071_v39  ;;  %v8737_v23 = vld [vmem:[#allocation61_spill] sm:$0xff]  ;;  %v8738_v39 = vld [vmem:[#allocation62_spill] sm:$0xff] }
 0x350   :  { %8733 = vst [vmem:[#allocation53_spill] sm:$0xff] %v7123_v21  ;;  %3194 = vmatmul.bf16.gmra.mxu2 %v8734_v55 }
 0x351   :  { %3267 = vmatmul.bf16.gmra.mxu3 %v8735_v51 }
 0x353   :  { %v2928_v53 = vpop.f32.mrf.mxu2 }
 0x354   :  { %v2929_v8 = vadd.f32 %v2928_v53, %v6889_v41  ;;  %v3001_v33 = vpop.f32.mrf.mxu3  ;;  %v3074_v17 = vpop.f32.mrf.mxu0  ;;  %v5640_v53 = vld [vmem:[#allocation2 + $0x344] sm:$0xf] }
 0x355   :  { %v3147_v31 = vpop.f32.mrf.mxu1 }
 0x356   :  { %v7130_v30 = vadd.f32 %v3001_v33, %v2929_v8  ;;  %v7132_v29 = vadd.f32 %v3147_v31, %v3074_v17  ;;  %v5330_v8 = vld [vmem:[#allocation2 + $0x348] sm:$0xf0]  ;;  %v8741_v31 = vld [vmem:[#allocation19_spill] sm:$0xff] }
 0x357   :  { %3340 = vmatmul.bf16.gmra.mxu0 %v8737_v23  ;;  %v8740_v33 = vld [vmem:[#allocation18_spill] sm:$0xff]  ;;  %v5333_v17 = vor.u32 %v5640_v53, %v5330_v8  ;;  %v5656_v23 = vld [vmem:[#allocation2 + $0x3c4] sm:$0xf] }
 0x358   :  { %8736 = vst [vmem:[#allocation54_spill] sm:$0xff] %v7130_v30  ;;  %3413 = vmatmul.bf16.gmra.mxu1 %v8738_v39  ;;  %v5394_v30 = vld [vmem:[#allocation2 + $0x3c8] sm:$0xf0]  ;;  %v5682_v39 = vld [vmem:[#allocation2 + $0x494] sm:$0xf]  ;;  %v8743_v8 = vld [vmem:[#allocation65_spill] sm:$0xff] }
 0x359   :  { %3471 = vmatpush.bf16.msra.mxu2 %v5333_v17  ;;  %v5397_v21 = vor.u32 %v5656_v23, %v5394_v30  ;;  %v5672_v17 = vld [vmem:[#allocation2 + $0x444] sm:$0xf]  ;;  %v5458_v30 = vld [vmem:[#allocation2 + $0x448] sm:$0xf0] }
 0x35a   :  { %v5461_v23 = vor.u32 %v5672_v17, %v5458_v30  ;;  %v8749_v30 = vld [vmem:[#allocation69_spill] sm:$0xff] }
 0x35b   :  { %v2930_v2 = vpop.f32.mrf.mxu2  ;;  %3544 = vmatpush.bf16.msra.mxu3 %v5397_v21 }
 0x35c   :  { %v2931_v42 = vadd.f32 %v2930_v2, %v6903_v4  ;;  %v3003_v43 = vpop.f32.mrf.mxu3  ;;  %v3076_v55 = vpop.f32.mrf.mxu0  ;;  %v5498_v4 = vld [vmem:[#allocation2 + $0x498] sm:$0xf0]  ;;  %3617 = vmatpush.bf16.msrb.mxu0 %v5461_v23  ;;  %v8750_v23 = vld [vmem:[#allocation70_spill] sm:$0xff] }
 0x35d   :  { %v3149_v51 = vpop.f32.mrf.mxu1  ;;  %v5501_v49 = vor.u32 %v5682_v39, %v5498_v4 }
 0x35e   :  { %v7137_v61 = vadd.f32 %v3003_v43, %v2931_v42  ;;  %v7139_v41 = vadd.f32 %v3149_v51, %v3076_v55 }
 0x35f   :  { %3693 = vmatpush.bf16.msrb.mxu1 %v5501_v49 }
 0x360   :  { %8739 = vst [vmem:[#allocation14_spill] sm:$0xff] %v7137_v61  ;;  %3199 = vmatmul.bf16.gmra.mxu2 %v8740_v33 }
 0x361   :  { %3272 = vmatmul.bf16.gmra.mxu3 %v8741_v31  ;;  %v8744_v31 = vld [vmem:[#allocation66_spill] sm:$0xff] }
 0x363   :  { %v2933_v2 = vpop.f32.mrf.mxu2 }
 0x364   :  { %v2934_v42 = vadd.f32 %v2933_v2, %v6908_v19  ;;  %v3006_v43 = vpop.f32.mrf.mxu3  ;;  %v3079_v55 = vpop.f32.mrf.mxu0 }
 0x365   :  { %v3152_v33 = vpop.f32.mrf.mxu1 }
 0x366   :  { %v7144_v51 = vadd.f32 %v3006_v43, %v2934_v42  ;;  %v7146_v53 = vadd.f32 %v3152_v33, %v3079_v55  ;;  %v8746_v42 = vld [vmem:[#allocation20_spill] sm:$0xff]  ;;  %v8747_v43 = vld [vmem:[#allocation21_spill] sm:$0xff] }
 0x367   :  { %3345 = vmatmul.bf16.gmra.mxu0 %v8743_v8 }
 0x368   :  { %8742 = vst [vmem:[#allocation15_spill] sm:$0xff] %v7144_v51  ;;  %3418 = vmatmul.bf16.gmra.mxu1 %v8744_v31 }
 0x36b   :  { %v2935_v61 = vpop.f32.mrf.mxu2 }
 0x36c   :  { %v2936_v39 = vadd.f32 %v2935_v61, %v6922_v18  ;;  %v3008_v19 = vpop.f32.mrf.mxu3  ;;  %v3081_v4 = vpop.f32.mrf.mxu0 }
 0x36d   :  { %v3154_v49 = vpop.f32.mrf.mxu1 }
 0x36e   :  { %v7151_v21 = vadd.f32 %v3008_v19, %v2936_v39  ;;  %v7153_v2 = vadd.f32 %v3154_v49, %v3081_v4  ;;  %v5638_v39 = vld [vmem:[#allocation2 + $0x334] sm:$0xf]  ;;  %v5322_v19 = vld [vmem:[#allocation2 + $0x338] sm:$0xf0] }
 0x36f   :  { %v5654_v4 = vld [vmem:[#allocation2 + $0x3b4] sm:$0xf]  ;;  %v5325_v49 = vor.u32 %v5638_v39, %v5322_v19  ;;  %v5450_v39 = vld [vmem:[#allocation2 + $0x438] sm:$0xf0] }
 0x370   :  { %8745 = vst [vmem:[#allocation57_spill] sm:$0xff] %v7151_v21  ;;  %3204 = vmatmul.bf16.gmra.mxu2 %v8746_v42  ;;  %v5386_v42 = vld [vmem:[#allocation2 + $0x3b8] sm:$0xf0] }
 0x371   :  { %3277 = vmatmul.bf16.gmra.mxu3 %v8747_v43  ;;  %v5389_v21 = vor.u32 %v5654_v4, %v5386_v42  ;;  %3472 = vmatpush.bf16.msra.mxu2 %v5325_v49 }
 0x373   :  { %v2938_v55 = vpop.f32.mrf.mxu2  ;;  %3545 = vmatpush.bf16.msra.mxu3 %v5389_v21 }
 0x374   :  { %v2939_v33 = vadd.f32 %v2938_v55, %v6927_v26  ;;  %v3011_v8 = vpop.f32.mrf.mxu3  ;;  %v3084_v31 = vpop.f32.mrf.mxu0 }
 0x375   :  { %v3157_v18 = vpop.f32.mrf.mxu1 }
 0x376   :  { %v7158_v17 = vadd.f32 %v3011_v8, %v2939_v33  ;;  %v7160_v61 = vadd.f32 %v3157_v18, %v3084_v31  ;;  %v8752_v18 = vld [vmem:[#allocation23_spill] sm:$0xff] }
 0x377   :  { %3350 = vmatmul.bf16.gmra.mxu0 %v8749_v30  ;;  %v8753_v30 = vld [vmem:[#allocation24_spill] sm:$0xff] }
 0x378   :  { %8748 = vst [vmem:[#allocation58_spill] sm:$0xff] %v7158_v17  ;;  %3423 = vmatmul.bf16.gmra.mxu1 %v8750_v23  ;;  %v5670_v23 = vld [vmem:[#allocation2 + $0x434] sm:$0xf] }
 0x379   :  { %v5453_v19 = vor.u32 %v5670_v23, %v5450_v39  ;;  %v8758_v39 = vld [vmem:[#allocation27_spill] sm:$0xff] }
 0x37b   :  { %v2940_v43 = vpop.f32.mrf.mxu2  ;;  %3618 = vmatpush.bf16.msrb.mxu0 %v5453_v19  ;;  %v8759_v19 = vld [vmem:[#allocation28_spill] sm:$0xff] }
 0x37c   :  { %v2941_v26 = vadd.f32 %v2940_v43, %v6941_v5  ;;  %v3013_v55 = vpop.f32.mrf.mxu3  ;;  %v3086_v51 = vpop.f32.mrf.mxu0 }
 0x37d   :  { %v3159_v8 = vpop.f32.mrf.mxu1 }
 0x37e   :  { %v7165_v33 = vadd.f32 %v3013_v55, %v2941_v26  ;;  %v7167_v31 = vadd.f32 %v3159_v8, %v3086_v51  ;;  %v8755_v51 = vld [vmem:[#allocation73_spill] sm:$0xff]  ;;  %v8756_v26 = vld [vmem:[#allocation74_spill] sm:$0xff] }
 0x380   :  { %8751 = vst [vmem:[#allocation16_spill] sm:$0xff] %v7165_v33  ;;  %3209 = vmatmul.bf16.gmra.mxu2 %v8752_v18 }
 0x381   :  { %3282 = vmatmul.bf16.gmra.mxu3 %v8753_v30 }
 0x383   :  { %v2943_v17 = vpop.f32.mrf.mxu2 }
 0x384   :  { %v2944_v4 = vadd.f32 %v2943_v17, %v6946_v34  ;;  %v3016_v5 = vpop.f32.mrf.mxu3  ;;  %v3089_v42 = vpop.f32.mrf.mxu0 }
 0x385   :  { %v3162_v21 = vpop.f32.mrf.mxu1 }
 0x386   :  { %v7172_v49 = vadd.f32 %v3016_v5, %v2944_v4  ;;  %v7174_v43 = vadd.f32 %v3162_v21, %v3089_v42  ;;  %v5636_v4 = vld [vmem:[#allocation2 + $0x324] sm:$0xf]  ;;  %v5314_v5 = vld [vmem:[#allocation2 + $0x328] sm:$0xf0] }
 0x387   :  { %3355 = vmatmul.bf16.gmra.mxu0 %v8755_v51  ;;  %v5317_v42 = vor.u32 %v5636_v4, %v5314_v5 }
 0x388   :  { %8754 = vst [vmem:[#allocation17_spill] sm:$0xff] %v7172_v49  ;;  %3428 = vmatmul.bf16.gmra.mxu1 %v8756_v26 }
 0x389   :  { %3473 = vmatpush.bf16.msra.mxu2 %v5317_v42 }
 0x38b   :  { %v2945_v55 = vpop.f32.mrf.mxu2 }
 0x38c   :  { %v2946_v8 = vadd.f32 %v2945_v55, %v6960_v45  ;;  %v3018_v18 = vpop.f32.mrf.mxu3  ;;  %v3091_v30 = vpop.f32.mrf.mxu0 }
 0x38d   :  { %v3164_v34 = vpop.f32.mrf.mxu1 }
 0x38e   :  { %v7179_v23 = vadd.f32 %v3018_v18, %v2946_v8  ;;  %v7181_v17 = vadd.f32 %v3164_v34, %v3091_v30  ;;  %v8761_v18 = vld [vmem:[#allocation77_spill] sm:$0xff]  ;;  %v8762_v30 = vld [vmem:[#allocation78_spill] sm:$0xff] }
 0x38f   :  { %v5652_v34 = vld [vmem:[#allocation2 + $0x3a4] sm:$0xf] }
 0x390   :  { %8757 = vst [vmem:[#allocation61_spill] sm:$0xff] %v7179_v23  ;;  %3214 = vmatmul.bf16.gmra.mxu2 %v8758_v39  ;;  %v5378_v39 = vld [vmem:[#allocation2 + $0x3a8] sm:$0xf0] }
 0x391   :  { %3287 = vmatmul.bf16.gmra.mxu3 %v8759_v19  ;;  %v5381_v23 = vor.u32 %v5652_v34, %v5378_v39 }
 0x393   :  { %v2948_v21 = vpop.f32.mrf.mxu2  ;;  %3546 = vmatpush.bf16.msra.mxu3 %v5381_v23 }
 0x394   :  { %v2949_v51 = vadd.f32 %v2948_v21, %v6965_v56  ;;  %v3021_v26 = vpop.f32.mrf.mxu3  ;;  %v3094_v49 = vpop.f32.mrf.mxu0 }
 0x395   :  { %v3167_v55 = vpop.f32.mrf.mxu1 }
 0x396   :  { %v7186_v45 = vadd.f32 %v3021_v26, %v2949_v51  ;;  %v7188_v8 = vadd.f32 %v3167_v55, %v3094_v49  ;;  %v8764_v49 = vld [vmem:[#allocation31_spill] sm:$0xff]  ;;  %v8765_v26 = vld [vmem:[#allocation32_spill] sm:$0xff]  ;;  %v5668_v55 = vld [vmem:[#allocation2 + $0x424] sm:$0xf] }
 0x397   :  { %3360 = vmatmul.bf16.gmra.mxu0 %v8761_v18  ;;  %v5442_v18 = vld [vmem:[#allocation2 + $0x428] sm:$0xf0] }
 0x398   :  { %8760 = vst [vmem:[#allocation62_spill] sm:$0xff] %v7186_v45  ;;  %3433 = vmatmul.bf16.gmra.mxu1 %v8762_v30  ;;  %v5445_v45 = vor.u32 %v5668_v55, %v5442_v18  ;;  %v8769_v18 = vld [vmem:[#allocation35_spill] sm:$0xff] }
 0x39a   :  { %3619 = vmatpush.bf16.msrb.mxu0 %v5445_v45  ;;  %v8770_v45 = vld [vmem:[#allocation36_spill] sm:$0xff] }
 0x39b   :  { %v2950_v19 = vpop.f32.mrf.mxu2 }
 0x39c   :  { %v2951_v4 = vadd.f32 %v2950_v19, %v6979_v59  ;;  %v3023_v5 = vpop.f32.mrf.mxu3  ;;  %v3096_v56 = vpop.f32.mrf.mxu0 }
 0x39d   :  { %v3169_v42 = vpop.f32.mrf.mxu1 }
 0x39e   :  { %v7193_v21 = vadd.f32 %v3023_v5, %v2951_v4  ;;  %v7195_v51 = vadd.f32 %v3169_v42, %v3096_v56  ;;  %v8767_v5 = vld [vmem:[#allocation83_spill] sm:$0xff]  ;;  %v8768_v56 = vld [vmem:[#allocation84_spill] sm:$0xff]  ;;  %v5680_v42 = vld [vmem:[#allocation2 + $0x484] sm:$0xf] }
 0x3a0   :  { %8763 = vst [vmem:[#allocation18_spill] sm:$0xff] %v7193_v21  ;;  %3219 = vmatmul.bf16.gmra.mxu2 %v8764_v49  ;;  %v5490_v49 = vld [vmem:[#allocation2 + $0x488] sm:$0xf0] }
 0x3a1   :  { %3292 = vmatmul.bf16.gmra.mxu3 %v8765_v26  ;;  %v5493_v21 = vor.u32 %v5680_v42, %v5490_v49 }
 0x3a3   :  { %v2953_v30 = vpop.f32.mrf.mxu2  ;;  %3694 = vmatpush.bf16.msrb.mxu1 %v5493_v21  ;;  %v8771_v21 = vld [vmem:[#allocation88_spill] sm:$0xff] }
 0x3a4   :  { %v2954_v34 = vadd.f32 %v2953_v30, %v6984_v44  ;;  %v3026_v39 = vpop.f32.mrf.mxu3  ;;  %v3099_v59 = vpop.f32.mrf.mxu0  ;;  %v5634_v30 = vld [vmem:[#allocation2 + $0x314] sm:$0xf] }
 0x3a5   :  { %v3172_v23 = vpop.f32.mrf.mxu1 }
 0x3a6   :  { %v7200_v19 = vadd.f32 %v3026_v39, %v2954_v34  ;;  %v7202_v4 = vadd.f32 %v3172_v23, %v3099_v59  ;;  %v5306_v34 = vld [vmem:[#allocation2 + $0x318] sm:$0xf0]  ;;  %v5650_v39 = vld [vmem:[#allocation2 + $0x394] sm:$0xf] }
 0x3a7   :  { %3365 = vmatmul.bf16.gmra.mxu0 %v8767_v5  ;;  %v5309_v23 = vor.u32 %v5634_v30, %v5306_v34  ;;  %v5370_v5 = vld [vmem:[#allocation2 + $0x398] sm:$0xf0] }
 0x3a8   :  { %8766 = vst [vmem:[#allocation19_spill] sm:$0xff] %v7200_v19  ;;  %3438 = vmatmul.bf16.gmra.mxu1 %v8768_v56 }
 0x3a9   :  { %3474 = vmatpush.bf16.msra.mxu2 %v5309_v23 }
 0x3ab   :  { %v2955_v26 = vpop.f32.mrf.mxu2 }
 0x3ac   :  { %v3028_v33 = vpop.f32.mrf.mxu3  ;;  %v3101_v55 = vpop.f32.mrf.mxu0  ;;  %v5373_v26 = vor.u32 %v5650_v39, %v5370_v5  ;;  %v8773_v5 = vld [vmem:[#allocation39_spill] sm:$0xff] }
 0x3ad   :  { %v3174_v44 = vpop.f32.mrf.mxu1  ;;  %v8772_v55 = vld [vmem:[#allocation89_spill] sm:$0xff] }
 0x3ae   :  { %3547 = vmatpush.bf16.msra.mxu3 %v5373_v26 }
 0x3b0   :  { %3224 = vmatmul.bf16.gmra.mxu2 %v8769_v18  ;;  %v5666_v18 = vld [vmem:[#allocation2 + $0x414] sm:$0xf] }
 0x3b1   :  { %3297 = vmatmul.bf16.gmra.mxu3 %v8770_v45  ;;  %v5434_v45 = vld [vmem:[#allocation2 + $0x418] sm:$0xf0] }
 0x3b2   :  { %v5437_v34 = vor.u32 %v5666_v18, %v5434_v45  ;;  %v8776_v45 = vld [vmem:[#allocation94_spill] sm:$0xff] }
 0x3b3   :  { %v3185_v59 = vpop.f32.mrf.mxu2 }
 0x3b4   :  { %v3186_v56 = vadd.f32 %v3185_v59, %v7000_v37  ;;  %v3258_v19 = vpop.f32.mrf.mxu3  ;;  %v3331_v15 = vpop.f32.mrf.mxu0  ;;  %3620 = vmatpush.bf16.msrb.mxu0 %v5437_v34  ;;  %v5298_v34 = vld [vmem:[#allocation2 + $0x308] sm:$0xf0] }
 0x3b5   :  { %v3404_v42 = vpop.f32.mrf.mxu1 }
 0x3b6   :  { %v3259_v33 = vadd.f32 %v3258_v19, %v3186_v56  ;;  %v8774_v56 = vld [vmem:[#allocation40_spill] sm:$0xff] }
 0x3b7   :  { %3370 = vmatmul.bf16.gmra.mxu0 %v8771_v21 }
 0x3b8   :  { %v3332_v49 = vadd.f32 %v3331_v15, %v3259_v33  ;;  %3443 = vmatmul.bf16.gmra.mxu1 %v8772_v55 }
 0x3ba   :  { %v7211_v44 = vadd.f32 %v3404_v42, %v3332_v49 }
 0x3bb   :  { %v3187_v30 = vpop.f32.mrf.mxu2 }
 0x3bc   :  { %v3188_v37 = vadd.f32 %v3187_v30, %v7013_v27  ;;  %v3260_v59 = vpop.f32.mrf.mxu3  ;;  %v3333_v22 = vpop.f32.mrf.mxu0  ;;  %v8775_v27 = vld [vmem:[#allocation93_spill] sm:$0xff] }
 0x3bd   :  { %v3406_v19 = vpop.f32.mrf.mxu1 }
 0x3be   :  { %v3261_v39 = vadd.f32 %v3260_v59, %v3188_v37  ;;  %v5648_v37 = vld [vmem:[#allocation2 + $0x384] sm:$0xf] }
 0x3c0   :  { %v3334_v23 = vadd.f32 %v3333_v22, %v3261_v39  ;;  %3229 = vmatmul.bf16.gmra.mxu2 %v8773_v5  ;;  %v5632_v22 = vld [vmem:[#allocation2 + $0x304] sm:$0xf] }
 0x3c1   :  { %3302 = vmatmul.bf16.gmra.mxu3 %v8774_v56  ;;  %v5301_v39 = vor.u32 %v5632_v22, %v5298_v34 }
 0x3c2   :  { %v7216_v15 = vadd.f32 %v3406_v19, %v3334_v23  ;;  %v5362_v19 = vld [vmem:[#allocation2 + $0x388] sm:$0xf0] }
 0x3c3   :  { %v3190_v26 = vpop.f32.mrf.mxu2  ;;  %v5365_v56 = vor.u32 %v5648_v37, %v5362_v19  ;;  %3475 = vmatpush.bf16.msra.mxu2 %v5301_v39  ;;  %v8779_v19 = vld [vmem:[#allocation97_spill] sm:$0xff] }
 0x3c4   :  { %v3191_v33 = vadd.f32 %v3190_v26, %v7023_v40  ;;  %v3263_v42 = vpop.f32.mrf.mxu3  ;;  %v3336_v21 = vpop.f32.mrf.mxu0 }
 0x3c5   :  { %v3409_v55 = vpop.f32.mrf.mxu1  ;;  %3548 = vmatpush.bf16.msra.mxu3 %v5365_v56 }
 0x3c6   :  { %v3264_v49 = vadd.f32 %v3263_v42, %v3191_v33 }
 0x3c7   :  { %3375 = vmatmul.bf16.gmra.mxu0 %v8775_v27  ;;  %v5664_v27 = vld [vmem:[#allocation2 + $0x404] sm:$0xf] }
 0x3c8   :  { %v3337_v18 = vadd.f32 %v3336_v21, %v3264_v49  ;;  %3448 = vmatmul.bf16.gmra.mxu1 %v8776_v45  ;;  %v8777_v21 = vld [vmem:[#allocation43_spill] sm:$0xff]  ;;  %v8778_v49 = vld [vmem:[#allocation44_spill] sm:$0xff] }
 0x3ca   :  { %v7221_v30 = vadd.f32 %v3409_v55, %v3337_v18  ;;  %v5426_v18 = vld [vmem:[#allocation2 + $0x408] sm:$0xf0] }
 0x3cb   :  { %v3192_v59 = vpop.f32.mrf.mxu2  ;;  %v5429_v22 = vor.u32 %v5664_v27, %v5426_v18  ;;  %v8781_v27 = vld [vmem:[#allocation47_spill] sm:$0xff]  ;;  %v8782_v18 = vld [vmem:[#allocation48_spill] sm:$0xff] }
 0x3cc   :  { %v3193_v23 = vadd.f32 %v3192_v59, %v7036_v62  ;;  %v3265_v40 = vpop.f32.mrf.mxu3  ;;  %v3338_v5 = vpop.f32.mrf.mxu0 }
 0x3cd   :  { %v3411_v33 = vpop.f32.mrf.mxu1  ;;  %3621 = vmatpush.bf16.msrb.mxu0 %v5429_v22 }
 0x3ce   :  { %v3266_v26 = vadd.f32 %v3265_v40, %v3193_v23  ;;  %v8780_v40 = vld [vmem:[#allocation98_spill] sm:$0xff] }
 0x3d0   :  { %v3339_v42 = vadd.f32 %v3338_v5, %v3266_v26  ;;  %3234 = vmatmul.bf16.gmra.mxu2 %v8777_v21 }
 0x3d1   :  { %3307 = vmatmul.bf16.gmra.mxu3 %v8778_v49 }
 0x3d2   :  { %v7226_v55 = vadd.f32 %v3411_v33, %v3339_v42 }
 0x3d3   :  { %v3195_v45 = vpop.f32.mrf.mxu2 }
 0x3d4   :  { %v3196_v62 = vadd.f32 %v3195_v45, %v7046_v36  ;;  %v3268_v34 = vpop.f32.mrf.mxu3  ;;  %v3341_v59 = vpop.f32.mrf.mxu0 }
 0x3d5   :  { %v3414_v39 = vpop.f32.mrf.mxu1 }
 0x3d6   :  { %v3269_v37 = vadd.f32 %v3268_v34, %v3196_v62 }
 0x3d7   :  { %3380 = vmatmul.bf16.gmra.mxu0 %v8779_v19  ;;  %v8783_v19 = vld [vmem:[#allocation101_spill] sm:$0xff] }
 0x3d8   :  { %v3342_v23 = vadd.f32 %v3341_v59, %v3269_v37  ;;  %3453 = vmatmul.bf16.gmra.mxu1 %v8780_v40 }
 0x3da   :  { %v7231_v5 = vadd.f32 %v3414_v39, %v3342_v23  ;;  %v8784_v23 = vld [vmem:[#allocation102_spill] sm:$0xff] }
 0x3db   :  { %v3197_v56 = vpop.f32.mrf.mxu2 }
 0x3dc   :  { %v3198_v26 = vadd.f32 %v3197_v56, %v7059_v16  ;;  %v3270_v33 = vpop.f32.mrf.mxu3  ;;  %v3343_v42 = vpop.f32.mrf.mxu0 }
 0x3dd   :  { %v3416_v49 = vpop.f32.mrf.mxu1 }
 0x3de   :  { %v3271_v21 = vadd.f32 %v3270_v33, %v3198_v26 }
 0x3e0   :  { %v3344_v36 = vadd.f32 %v3343_v42, %v3271_v21  ;;  %3239 = vmatmul.bf16.gmra.mxu2 %v8781_v27  ;;  %v8786_v27 = vld [vmem:[#allocation52_spill] sm:$0xff] }
 0x3e1   :  { %3312 = vmatmul.bf16.gmra.mxu3 %v8782_v18 }
 0x3e2   :  { %v7236_v45 = vadd.f32 %v3416_v49, %v3344_v36 }
 0x3e3   :  { %v3200_v22 = vpop.f32.mrf.mxu2 }
 0x3e4   :  { %v3201_v62 = vadd.f32 %v3200_v22, %v7069_v32  ;;  %v3273_v34 = vpop.f32.mrf.mxu3  ;;  %v3346_v59 = vpop.f32.mrf.mxu0  ;;  %v8785_v32 = vld [vmem:[#allocation51_spill] sm:$0xff] }
 0x3e5   :  { %v3419_v39 = vpop.f32.mrf.mxu1 }
 0x3e6   :  { %v3274_v37 = vadd.f32 %v3273_v34, %v3201_v62 }
 0x3e7   :  { %3385 = vmatmul.bf16.gmra.mxu0 %v8783_v19 }
 0x3e8   :  { %v3347_v16 = vadd.f32 %v3346_v59, %v3274_v37  ;;  %3458 = vmatmul.bf16.gmra.mxu1 %v8784_v23 }
 0x3ea   :  { %v7241_v40 = vadd.f32 %v3419_v39, %v3347_v16 }
 0x3eb   :  { %v3202_v56 = vpop.f32.mrf.mxu2 }
 0x3ec   :  { %v3203_v26 = vadd.f32 %v3202_v56, %v7080_v57  ;;  %v3275_v33 = vpop.f32.mrf.mxu3  ;;  %v3348_v42 = vpop.f32.mrf.mxu0 }
 0x3ed   :  { %v3421_v49 = vpop.f32.mrf.mxu1 }
 0x3ee   :  { %v3276_v21 = vadd.f32 %v3275_v33, %v3203_v26 }
 0x3f0   :  { %v3349_v36 = vadd.f32 %v3348_v42, %v3276_v21  ;;  %3244 = vmatmul.bf16.gmra.mxu2 %v8785_v32 }
 0x3f1   :  { %3317 = vmatmul.bf16.gmra.mxu3 %v8786_v27 }
 0x3f2   :  { %v7246_v18 = vadd.f32 %v3421_v49, %v3349_v36  ;;  %v8788_v49 = vld [vmem:[#allocation56_spill] sm:$0xff] }
 0x3f3   :  { %v3205_v22 = vpop.f32.mrf.mxu2 }
 0x3f4   :  { %v3206_v62 = vadd.f32 %v3205_v22, %v7090_v58  ;;  %v3278_v34 = vpop.f32.mrf.mxu3  ;;  %v3351_v59 = vpop.f32.mrf.mxu0  ;;  %v8787_v58 = vld [vmem:[#allocation55_spill] sm:$0xff] }
 0x3f5   :  { %v3424_v39 = vpop.f32.mrf.mxu1 }
 0x3f6   :  { %v3279_v37 = vadd.f32 %v3278_v34, %v3206_v62 }
 0x3f7   :  { %3390 = vmatmul.bf16.gmra.mxu0 %v6805_v1 }
 0x3f8   :  { %v3352_v57 = vadd.f32 %v3351_v59, %v3279_v37  ;;  %3463 = vmatmul.bf16.gmra.mxu1 %v6807_v54 }
 0x3fa   :  { %v7251_v19 = vadd.f32 %v3424_v39, %v3352_v57 }
 0x3fb   :  { %v3207_v16 = vpop.f32.mrf.mxu2 }
 0x3fc   :  { %v3208_v23 = vadd.f32 %v3207_v16, %v7097_v3  ;;  %v3280_v56 = vpop.f32.mrf.mxu3  ;;  %v3353_v26 = vpop.f32.mrf.mxu0 }
 0x3fd   :  { %v3426_v42 = vpop.f32.mrf.mxu1 }
 0x3fe   :  { %v3281_v33 = vadd.f32 %v3280_v56, %v3208_v23  ;;  %v8789_v56 = vld [vmem:[#allocation59_spill] sm:$0xff] }
 0x400   :  { %v3354_v21 = vadd.f32 %v3353_v26, %v3281_v33  ;;  %3476 = vmatmul.bf16.vlgmr.msra.gmra.mxu2 %v8787_v58  ;;  %v8790_v26 = vld [vmem:[#allocation60_spill] sm:$0xff] }
 0x401   :  { %3549 = vmatmul.bf16.vlgmr.msra.gmra.mxu3 %v8788_v49 }
 0x402   :  { %v7256_v36 = vadd.f32 %v3426_v42, %v3354_v21 }
 0x403   :  { %v3210_v1 = vpop.f32.mrf.mxu2 }
 0x404   :  { %v3211_v32 = vadd.f32 %v3210_v1, %v7104_v25  ;;  %v3283_v54 = vpop.f32.mrf.mxu3  ;;  %v3356_v27 = vpop.f32.mrf.mxu0 }
 0x405   :  { %v3429_v62 = vpop.f32.mrf.mxu1 }
 0x406   :  { %v3284_v22 = vadd.f32 %v3283_v54, %v3211_v32 }
 0x407   :  { %3622 = vmatmul.bf16.vlgmr.msrb.gmra.mxu0 %v6839_v6 }
 0x408   :  { %v3357_v3 = vadd.f32 %v3356_v27, %v3284_v22  ;;  %5523 = vmatmul.msk.bf16.vlgmr.msrb.gmra.mxu1 %vm2260_vm10, %v6841_v0 }
 0x40a   :  { %v7262_v34 = vadd.f32 %v3429_v62, %v3357_v3 }
 0x40b   :  { %v3212_v59 = vpop.f32.mrf.mxu2 }
 0x40c   :  { %v3213_v37 = vadd.f32 %v3212_v59, %v7111_v47  ;;  %v3285_v39 = vpop.f32.mrf.mxu3  ;;  %v3358_v57 = vpop.f32.mrf.mxu0  ;;  %v8791_v59 = vld [vmem:[#allocation63_spill] sm:$0xff] }
 0x40d   :  { %v3431_v23 = vpop.f32.mrf.mxu1 }
 0x40e   :  { %v3286_v16 = vadd.f32 %v3285_v39, %v3213_v37  ;;  %v8792_v37 = vld [vmem:[#allocation64_spill] sm:$0xff] }
 0x410   :  { %v3359_v25 = vadd.f32 %v3358_v57, %v3286_v16  ;;  %3481 = vmatmul.bf16.gmra.mxu2 %v8789_v56 }
 0x411   :  { %3554 = vmatmul.bf16.gmra.mxu3 %v8790_v26 }
 0x412   :  { %v7267_v33 = vadd.f32 %v3431_v23, %v3359_v25 }
 0x413   :  { %v3215_v6 = vpop.f32.mrf.mxu2 }
 0x414   :  { %v3216_v42 = vadd.f32 %v3215_v6, %v7118_v50  ;;  %v3288_v0 = vpop.f32.mrf.mxu3  ;;  %v3361_v21 = vpop.f32.mrf.mxu0 }
 0x415   :  { %v3434_v49 = vpop.f32.mrf.mxu1 }
 0x416   :  { %v3289_v58 = vadd.f32 %v3288_v0, %v3216_v42 }
 0x417   :  { %3627 = vmatmul.bf16.gmra.mxu0 %v6858_v28 }
 0x418   :  { %v3362_v47 = vadd.f32 %v3361_v21, %v3289_v58  ;;  %5524 = vmatmul.msk.bf16.gmra.mxu1 %vm2260_vm10, %v6860_v7 }
 0x41a   :  { %v7273_v1 = vadd.f32 %v3434_v49, %v3362_v47  ;;  %v8793_v49 = vld [vmem:[#allocation67_spill] sm:$0xff]  ;;  %v8794_v47 = vld [vmem:[#allocation68_spill] sm:$0xff] }
 0x41b   :  { %v3217_v32 = vpop.f32.mrf.mxu2 }
 0x41c   :  { %v3218_v54 = vadd.f32 %v3217_v32, %v7125_v35  ;;  %v3290_v27 = vpop.f32.mrf.mxu3  ;;  %v3363_v22 = vpop.f32.mrf.mxu0 }
 0x41d   :  { %v3436_v3 = vpop.f32.mrf.mxu1 }
 0x41e   :  { %v3291_v62 = vadd.f32 %v3290_v27, %v3218_v54 }
 0x420   :  { %v3364_v50 = vadd.f32 %v3363_v22, %v3291_v62  ;;  %3486 = vmatmul.bf16.gmra.mxu2 %v8791_v59 }
 0x421   :  { %3559 = vmatmul.bf16.gmra.mxu3 %v8792_v37 }
 0x422   :  { %v7278_v39 = vadd.f32 %v3436_v3, %v3364_v50 }
 0x423   :  { %v3220_v28 = vpop.f32.mrf.mxu2 }
 0x424   :  { %v3221_v57 = vadd.f32 %v3220_v28, %v7132_v29  ;;  %v3293_v7 = vpop.f32.mrf.mxu3  ;;  %v3366_v16 = vpop.f32.mrf.mxu0 }
 0x425   :  { %v3439_v25 = vpop.f32.mrf.mxu1 }
 0x426   :  { %v3294_v23 = vadd.f32 %v3293_v7, %v3221_v57 }
 0x427   :  { %3632 = vmatmul.bf16.gmra.mxu0 %v6877_v63 }
 0x428   :  { %v3367_v35 = vadd.f32 %v3366_v16, %v3294_v23  ;;  %5525 = vmatmul.msk.bf16.gmra.mxu1 %vm2260_vm10, %v6879_v11  ;;  %v8795_v16 = vld [vmem:[#allocation71_spill] sm:$0xff]  ;;  %v8796_v23 = vld [vmem:[#allocation72_spill] sm:$0xff] }
 0x42a   :  { %v7284_v56 = vadd.f32 %v3439_v25, %v3367_v35 }
 0x42b   :  { %v3222_v26 = vpop.f32.mrf.mxu2 }
 0x42c   :  { %v3223_v6 = vadd.f32 %v3222_v26, %v7139_v41  ;;  %v3295_v42 = vpop.f32.mrf.mxu3  ;;  %v3368_v0 = vpop.f32.mrf.mxu0 }
 0x42d   :  { %v3441_v58 = vpop.f32.mrf.mxu1 }
 0x42e   :  { %v3296_v21 = vadd.f32 %v3295_v42, %v3223_v6 }
 0x430   :  { %v3369_v29 = vadd.f32 %v3368_v0, %v3296_v21  ;;  %3491 = vmatmul.bf16.gmra.mxu2 %v8793_v49 }
 0x431   :  { %3564 = vmatmul.bf16.gmra.mxu3 %v8794_v47 }
 0x432   :  { %v7289_v32 = vadd.f32 %v3441_v58, %v3369_v29 }
 0x433   :  { %v3225_v63 = vpop.f32.mrf.mxu2 }
 0x434   :  { %v3226_v54 = vadd.f32 %v3225_v63, %v7146_v53  ;;  %v3298_v11 = vpop.f32.mrf.mxu3  ;;  %v3371_v27 = vpop.f32.mrf.mxu0 }
 0x435   :  { %v3444_v62 = vpop.f32.mrf.mxu1 }
 0x436   :  { %v3299_v22 = vadd.f32 %v3298_v11, %v3226_v54  ;;  %v8797_v54 = vld [vmem:[#allocation75_spill] sm:$0xff]  ;;  %v8798_v11 = vld [vmem:[#allocation76_spill] sm:$0xff] }
 0x437   :  { %3637 = vmatmul.bf16.gmra.mxu0 %v6896_v60 }
 0x438   :  { %v3372_v41 = vadd.f32 %v3371_v27, %v3299_v22  ;;  %5526 = vmatmul.msk.bf16.gmra.mxu1 %vm2260_vm10, %v6898_v20 }
 0x43a   :  { %v7295_v3 = vadd.f32 %v3444_v62, %v3372_v41 }
 0x43b   :  { %v3227_v50 = vpop.f32.mrf.mxu2 }
 0x43c   :  { %v3228_v59 = vadd.f32 %v3227_v50, %v7153_v2  ;;  %v3300_v37 = vpop.f32.mrf.mxu3  ;;  %v3373_v28 = vpop.f32.mrf.mxu0 }
 0x43d   :  { %v3446_v7 = vpop.f32.mrf.mxu1 }
 0x43e   :  { %v3301_v57 = vadd.f32 %v3300_v37, %v3228_v59 }
 0x440   :  { %v3374_v53 = vadd.f32 %v3373_v28, %v3301_v57  ;;  %3496 = vmatmul.bf16.gmra.mxu2 %v8795_v16 }
 0x441   :  { %3569 = vmatmul.bf16.gmra.mxu3 %v8796_v23  ;;  %v8799_v23 = vld [vmem:[#allocation80_spill] sm:$0xff] }
 0x442   :  { %v7300_v25 = vadd.f32 %v3446_v7, %v3374_v53 }
 0x443   :  { %v3230_v60 = vpop.f32.mrf.mxu2 }
 0x444   :  { %v3231_v35 = vadd.f32 %v3230_v60, %v7160_v61  ;;  %v3303_v20 = vpop.f32.mrf.mxu3  ;;  %v3376_v26 = vpop.f32.mrf.mxu0  ;;  %v8800_v60 = vld [vmem:[#allocation81_spill] sm:$0xff] }
 0x445   :  { %v3449_v42 = vpop.f32.mrf.mxu1 }
 0x446   :  { %v3304_v6 = vadd.f32 %v3303_v20, %v3231_v35 }
 0x447   :  { %3642 = vmatmul.bf16.gmra.mxu0 %v6915_v52 }
 0x448   :  { %v3377_v2 = vadd.f32 %v3376_v26, %v3304_v6  ;;  %5527 = vmatmul.msk.bf16.gmra.mxu1 %vm2260_vm10, %v6917_v46 }
 0x44a   :  { %v7306_v0 = vadd.f32 %v3449_v42, %v3377_v2 }
 0x44b   :  { %v3232_v21 = vpop.f32.mrf.mxu2 }
 0x44c   :  { %v3233_v58 = vadd.f32 %v3232_v21, %v7167_v31  ;;  %v3305_v29 = vpop.f32.mrf.mxu3  ;;  %v3378_v49 = vpop.f32.mrf.mxu0 }
 0x44d   :  { %v3451_v63 = vpop.f32.mrf.mxu1 }
 0x44e   :  { %v3306_v47 = vadd.f32 %v3305_v29, %v3233_v58 }
 0x450   :  { %v3379_v61 = vadd.f32 %v3378_v49, %v3306_v47  ;;  %3501 = vmatmul.bf16.gmra.mxu2 %v8797_v54  ;;  %v8802_v54 = vld [vmem:[#allocation87_spill] sm:$0xff] }
 0x451   :  { %3574 = vmatmul.bf16.gmra.mxu3 %v8798_v11 }
 0x452   :  { %v7311_v27 = vadd.f32 %v3451_v63, %v3379_v61  ;;  %v8801_v61 = vld [vmem:[#allocation86_spill] sm:$0xff] }
 0x453   :  { %v3235_v52 = vpop.f32.mrf.mxu2 }
 0x454   :  { %v3236_v22 = vadd.f32 %v3235_v52, %v7174_v43  ;;  %v3308_v46 = vpop.f32.mrf.mxu3  ;;  %v3381_v62 = vpop.f32.mrf.mxu0 }
 0x455   :  { %v3454_v50 = vpop.f32.mrf.mxu1 }
 0x456   :  { %v3309_v41 = vadd.f32 %v3308_v46, %v3236_v22 }
 0x457   :  { %3647 = vmatmul.bf16.gmra.mxu0 %v6934_v48 }
 0x458   :  { %v3382_v31 = vadd.f32 %v3381_v62, %v3309_v41  ;;  %5528 = vmatmul.msk.bf16.gmra.mxu1 %vm2260_vm10, %v6936_v10 }
 0x45a   :  { %v7317_v59 = vadd.f32 %v3454_v50, %v3382_v31 }
 0x45b   :  { %v3237_v37 = vpop.f32.mrf.mxu2 }
 0x45c   :  { %v3238_v28 = vadd.f32 %v3237_v37, %v7181_v17  ;;  %v3310_v57 = vpop.f32.mrf.mxu3  ;;  %v3383_v7 = vpop.f32.mrf.mxu0 }
 0x45d   :  { %v3456_v16 = vpop.f32.mrf.mxu1 }
 0x45e   :  { %v3311_v53 = vadd.f32 %v3310_v57, %v3238_v28  ;;  %v8803_v57 = vld [vmem:[#allocation90_spill] sm:$0xff] }
 0x460   :  { %v3384_v43 = vadd.f32 %v3383_v7, %v3311_v53  ;;  %3506 = vmatmul.bf16.gmra.mxu2 %v8799_v23  ;;  %v8804_v7 = vld [vmem:[#allocation91_spill] sm:$0xff] }
 0x461   :  { %3579 = vmatmul.bf16.gmra.mxu3 %v8800_v60  ;;  %v8805_v60 = vld [vmem:[#allocation22_spill] sm:$0xff] }
 0x462   :  { %v7322_v35 = vadd.f32 %v3456_v16, %v3384_v43 }
 0x463   :  { %v3240_v48 = vpop.f32.mrf.mxu2 }
 0x464   :  { %v3241_v20 = vadd.f32 %v3240_v48, %v7188_v8  ;;  %v3313_v10 = vpop.f32.mrf.mxu3  ;;  %v3386_v26 = vpop.f32.mrf.mxu0  ;;  %v8806_v48 = vld [vmem:[#allocation79_spill] sm:$0xff] }
 0x465   :  { %v3459_v42 = vpop.f32.mrf.mxu1 }
 0x466   :  { %v3314_v6 = vadd.f32 %v3313_v10, %v3241_v20 }
 0x467   :  { %3652 = vmatmul.bf16.gmra.mxu0 %v6953_v9 }
 0x468   :  { %v3387_v17 = vadd.f32 %v3386_v26, %v3314_v6  ;;  %5529 = vmatmul.msk.bf16.gmra.mxu1 %vm2260_vm10, %v6955_v24 }
 0x46a   :  { %v7328_v2 = vadd.f32 %v3459_v42, %v3387_v17  ;;  %v8807_v17 = vld [vmem:[#allocation82_spill] sm:$0xff] }
 0x46b   :  { %v3242_v21 = vpop.f32.mrf.mxu2 }
 0x46c   :  { %v3243_v58 = vadd.f32 %v3242_v21, %v7195_v51  ;;  %v3315_v29 = vpop.f32.mrf.mxu3  ;;  %v3388_v49 = vpop.f32.mrf.mxu0  ;;  %v3835_v21 = vmul.f32 %v8807_v17, %v8807_v17 }
 0x46d   :  { %v3461_v63 = vpop.f32.mrf.mxu1 }
 0x46e   :  { %v3316_v47 = vadd.f32 %v3315_v29, %v3243_v58 }
 0x470   :  { %v3389_v8 = vadd.f32 %v3388_v49, %v3316_v47  ;;  %3511 = vmatmul.bf16.gmra.mxu2 %v8801_v61 }
 0x471   :  { %3584 = vmatmul.bf16.gmra.mxu3 %v8802_v54 }
 0x472   :  { %v7333_v11 = vadd.f32 %v3461_v63, %v3389_v8  ;;  %v8808_v8 = vld [vmem:[#allocation95_spill] sm:$0xff] }
 0x473   :  { %v3245_v9 = vpop.f32.mrf.mxu2 }
 0x474   :  { %v3246_v52 = vadd.f32 %v3245_v9, %v7202_v4  ;;  %v3318_v24 = vpop.f32.mrf.mxu3  ;;  %v3391_v22 = vpop.f32.mrf.mxu0 }
 0x475   :  { %v3464_v62 = vpop.f32.mrf.mxu1 }
 0x476   :  { %v3319_v46 = vadd.f32 %v3318_v24, %v3246_v52 }
 0x477   :  { %3657 = vmatmul.bf16.gmra.mxu0 %v6972_v38 }
 0x478   :  { %v3392_v51 = vadd.f32 %v3391_v22, %v3319_v46  ;;  %5530 = vmatmul.msk.bf16.gmra.mxu1 %vm2260_vm10, %v6974_v14  ;;  %v8810_v22 = vld [vmem:[#allocation25_spill] sm:$0xff] }
 0x47a   :  { %v7339_v41 = vadd.f32 %v3464_v62, %v3392_v51  ;;  %v3837_v62 = vmul.f32 %v8810_v22, %v8810_v22 }
 0x47b   :  { %v3247_v50 = vpop.f32.mrf.mxu2 }
 0x47c   :  { %v3320_v31 = vpop.f32.mrf.mxu3  ;;  %v3393_v37 = vpop.f32.mrf.mxu0 }
 0x47d   :  { %v3466_v28 = vpop.f32.mrf.mxu1 }
 0x47e   :  { %v8811_v28 = vld [vmem:[#allocation26_spill] sm:$0xff] }
 0x480   :  { %3516 = vmatmul.bf16.gmra.mxu2 %v8803_v57 }
 0x481   :  { %3589 = vmatmul.bf16.gmra.mxu3 %v8804_v7 }
 0x483   :  { %v3477_v4 = vpop.f32.mrf.mxu2 }
 0x484   :  { %v3478_v53 = vadd.f32 %v3477_v4, %v7211_v44  ;;  %v3550_v16 = vpop.f32.mrf.mxu3  ;;  %v3623_v43 = vpop.f32.mrf.mxu0 }
 0x485   :  { %v3696_v23 = vpop.f32.mrf.mxu1 }
 0x486   :  { %v3551_v38 = vadd.f32 %v3550_v16, %v3478_v53 }
 0x487   :  { %3662 = vmatmul.bf16.gmra.mxu0 %v8805_v60 }
 0x488   :  { %v3624_v14 = vadd.f32 %v3623_v43, %v3551_v38  ;;  %5531 = vmatmul.msk.bf16.gmra.mxu1 %vm2260_vm10, %v8806_v48  ;;  %v8813_v38 = vld [vmem:[#allocation29_spill] sm:$0xff] }
 0x489   :  { %v3839_v60 = vmul.f32 %v8813_v38, %v8813_v38 }
 0x48a   :  { %v7347_v20 = vadd.f32 %v3696_v23, %v3624_v14 }
 0x48b   :  { %v3479_v10 = vpop.f32.mrf.mxu2 }
 0x48c   :  { %v3480_v26 = vadd.f32 %v3479_v10, %v7216_v15  ;;  %v3552_v6 = vpop.f32.mrf.mxu3  ;;  %v3625_v42 = vpop.f32.mrf.mxu0  ;;  %v3760_v44 = vadd.f32 %v7347_v20, %v8807_v17  ;;  %v3836_v58 = vmul.f32 %v7347_v20, %v7347_v20  ;;  %v8809_v15 = vld [vmem:[#allocation96_spill] sm:$0xff] }
 0x48d   :  { %v3698_v49 = vpop.f32.mrf.mxu1 }
 0x48e   :  { %v3553_v29 = vadd.f32 %v3552_v6, %v3480_v26  ;;  %3761 = vadd.xlane.f32.xlu0 %v3760_v44  ;;  %v3885_v47 = vadd.f32 %v3836_v58, %v3835_v21 }
 0x490   :  { %v3626_v63 = vadd.f32 %v3625_v42, %v3553_v29  ;;  %3521 = vmatmul.bf16.gmra.mxu2 %v8808_v8  ;;  %3886 = vadd.xlane.f32.xlu1 %v3885_v47  ;;  %v8814_v42 = vld [vmem:[#allocation99_spill] sm:$0xff] }
 0x491   :  { %3594 = vmatmul.bf16.gmra.mxu3 %v8809_v15  ;;  %v8816_v15 = vld [vmem:[#allocation30_spill] sm:$0xff] }
 0x492   :  { %v7358_v61 = vadd.f32 %v3698_v49, %v3626_v63 }
 0x493   :  { %v3482_v54 = vpop.f32.mrf.mxu2 }
 0x494   :  { %v3483_v9 = vadd.f32 %v3482_v54, %v7221_v30  ;;  %v3555_v52 = vpop.f32.mrf.mxu3  ;;  %v3628_v24 = vpop.f32.mrf.mxu0  ;;  %v3763_v46 = vadd.f32 %v7358_v61, %v8810_v22  ;;  %v3838_v51 = vmul.f32 %v7358_v61, %v7358_v61  ;;  %v8812_v30 = vld [vmem:[#allocation85_spill] sm:$0xff] }
 0x495   :  { %v3701_v31 = vpop.f32.mrf.mxu1 }
 0x496   :  { %v3556_v50 = vadd.f32 %v3555_v52, %v3483_v9  ;;  %3764 = vadd.xlane.f32.xlu0 %v3763_v46  ;;  %v3888_v37 = vadd.f32 %v3838_v51, %v3837_v62  ;;  %v8817_v52 = vld [vmem:[#allocation92_spill] sm:$0xff] }
 0x497   :  { %3667 = vmatmul.bf16.gmra.mxu0 %v8811_v28 }
 0x498   :  { %v3629_v57 = vadd.f32 %v3628_v24, %v3556_v50  ;;  %3889 = vadd.xlane.f32.xlu2 %v3888_v37  ;;  %5532 = vmatmul.msk.bf16.gmra.mxu1 %vm2260_vm10, %v8812_v30 }
 0x49a   :  { %v7370_v7 = vadd.f32 %v3701_v31, %v3629_v57  ;;  %v8818_v31 = vld [vmem:[#allocation33_spill] sm:$0xff] }
 0x49b   :  { %v3484_v4 = vpop.f32.mrf.mxu2 }
 0x49c   :  { %v3485_v53 = vadd.f32 %v3484_v4, %v7226_v55  ;;  %v3557_v16 = vpop.f32.mrf.mxu3  ;;  %v3630_v43 = vpop.f32.mrf.mxu0  ;;  %v3766_v23 = vadd.f32 %v7370_v7, %v8813_v38  ;;  %v3840_v14 = vmul.f32 %v7370_v7, %v7370_v7  ;;  %v8815_v55 = vld [vmem:[#allocation100_spill] sm:$0xff] }
 0x49d   :  { %v3703_v10 = vpop.f32.mrf.mxu1 }
 0x49e   :  { %v3558_v48 = vadd.f32 %v3557_v16, %v3485_v53  ;;  %3767 = vadd.xlane.f32.xlu1 %v3766_v23  ;;  %v3891_v26 = vadd.f32 %v3840_v14, %v3839_v60  ;;  %v8819_v53 = vld [vmem:[#allocation104_spill] sm:$0xff] }
 0x4a0   :  { %v3631_v6 = vadd.f32 %v3630_v43, %v3558_v48  ;;  %3526 = vmatmul.bf16.gmra.mxu2 %v8814_v42  ;;  %3892 = vadd.xlane.f32.xlu0 %v3891_v26  ;;  %v8820_v43 = vld [vmem:[#allocation105_spill] sm:$0xff] }
 0x4a1   :  { %3599 = vmatmul.bf16.gmra.mxu3 %v8815_v55 }
 0x4a2   :  { %v7381_v44 = vadd.f32 %v3703_v10, %v3631_v6  ;;  %v8822_v6 = vld [vmem:[#allocation34_spill] sm:$0xff] }
 0x4a3   :  { %v3487_v21 = vpop.f32.mrf.mxu2  ;;  %v3845_v42 = vmul.f32 %v8822_v6, %v8822_v6 }
 0x4a4   :  { %v3488_v58 = vadd.f32 %v3487_v21, %v7231_v5  ;;  %v3560_v29 = vpop.f32.mrf.mxu3  ;;  %v3633_v49 = vpop.f32.mrf.mxu0  ;;  %v3769_v47 = vadd.f32 %v7381_v44, %v7032_v12  ;;  %v3842_v9 = vmul.f32 %v7381_v44, %v7381_v44  ;;  %v3841_v5 = vmul.f32 %v7032_v12, %v7032_v12 }
 0x4a5   :  { %v3706_v8 = vpop.f32.mrf.mxu1 }
 0x4a6   :  { %v3561_v63 = vadd.f32 %v3560_v29, %v3488_v58  ;;  %3770 = vadd.xlane.f32.xlu1 %v3769_v47  ;;  %v3894_v28 = vadd.f32 %v3842_v9, %v3841_v5  ;;  %v3847_v5 = vmul.f32 %v7067_v13, %v7067_v13 }
 0x4a7   :  { %3672 = vmatmul.bf16.gmra.mxu0 %v8816_v15 }
 0x4a8   :  { %v3634_v54 = vadd.f32 %v3633_v49, %v3561_v63  ;;  %5533 = vmatmul.msk.bf16.gmra.mxu1 %vm2260_vm10, %v8817_v52  ;;  %v8823_v49 = vld [vmem:[#allocation37_spill] sm:$0xff]  ;;  %v8824_v63 = vld [vmem:[#allocation38_spill] sm:$0xff] }
 0x4aa   :  { %v7391_v24 = vadd.f32 %v3706_v8, %v3634_v54 }
 0x4ab   :  { %v3489_v46 = vpop.f32.mrf.mxu2 }
 0x4ac   :  { %v3490_v62 = vadd.f32 %v3489_v46, %v7236_v45  ;;  %v3562_v51 = vpop.f32.mrf.mxu3  ;;  %v3635_v50 = vpop.f32.mrf.mxu0  ;;  %v3772_v37 = vadd.f32 %v7391_v24, %v8818_v31  ;;  %v3844_v16 = vmul.f32 %v7391_v24, %v7391_v24  ;;  %v3843_v45 = vmul.f32 %v8818_v31, %v8818_v31 }
 0x4ad   :  { %v3708_v30 = vpop.f32.mrf.mxu1 }
 0x4ae   :  { %v3563_v57 = vadd.f32 %v3562_v51, %v3490_v62  ;;  %3773 = vadd.xlane.f32.xlu2 %v3772_v37  ;;  %3895 = vadd.xlane.f32.xlu1 %v3894_v28  ;;  %v3897_v26 = vadd.f32 %v3844_v16, %v3843_v45  ;;  %v8829_v45 = vld [vmem:[#allocation42_spill] sm:$0xff] }
 0x4b0   :  { %v3636_v4 = vadd.f32 %v3635_v50, %v3563_v57  ;;  %3531 = vmatmul.bf16.gmra.mxu2 %v8819_v53  ;;  %v8827_v57 = vld [vmem:[#allocation107_spill] sm:$0xff] }
 0x4b1   :  { %3604 = vmatmul.bf16.gmra.mxu3 %v8820_v43 }
 0x4b2   :  { %v7402_v23 = vadd.f32 %v3708_v30, %v3636_v4 }
 0x4b3   :  { %v3492_v60 = vpop.f32.mrf.mxu2 }
 0x4b4   :  { %8821 = vst [vmem:[#allocation65_spill] sm:$0xff] %v7402_v23  ;;  %v3493_v14 = vadd.f32 %v3492_v60, %v7241_v40  ;;  %v3565_v48 = vpop.f32.mrf.mxu3  ;;  %v3638_v10 = vpop.f32.mrf.mxu0  ;;  %v3846_v55 = vmul.f32 %v7402_v23, %v7402_v23  ;;  %v3775_v52 = vadd.f32 %v7402_v23, %v8822_v6  ;;  %v3849_v60 = vmul.f32 %v8829_v45, %v8829_v45 }
 0x4b5   :  { %v3711_v58 = vpop.f32.mrf.mxu1 }
 0x4b6   :  { %v3566_v21 = vadd.f32 %v3565_v48, %v3493_v14  ;;  %3898 = vadd.xlane.f32.xlu2 %v3897_v26  ;;  %v3900_v29 = vadd.f32 %v3846_v55, %v3845_v42  ;;  %v8830_v55 = vld [vmem:[#allocation103_spill] sm:$0xff] }
 0x4b7   :  { %3677 = vmatmul.bf16.gmra.mxu0 %v8823_v49 }
 0x4b8   :  { %v3639_v47 = vadd.f32 %v3638_v10, %v3566_v21  ;;  %3901 = vadd.xlane.f32.xlu0 %v3900_v29  ;;  %5534 = vmatmul.msk.bf16.gmra.mxu1 %vm2260_vm10, %v8824_v63 }
 0x4ba   :  { %v7414_v40 = vadd.f32 %v3711_v58, %v3639_v47 }
 0x4bb   :  { %v3494_v8 = vpop.f32.mrf.mxu2 }
 0x4bc   :  { %8825 = vst [vmem:[#allocation66_spill] sm:$0xff] %v7414_v40  ;;  %v3495_v15 = vadd.f32 %v3494_v8, %v7246_v18  ;;  %v3567_v54 = vpop.f32.mrf.mxu3  ;;  %v3640_v9 = vpop.f32.mrf.mxu0  ;;  %v3848_v46 = vmul.f32 %v7414_v40, %v7414_v40  ;;  %v3778_v37 = vadd.f32 %v7414_v40, %v7067_v13  ;;  %v8826_v18 = vld [vmem:[#allocation106_spill] sm:$0xff] }
 0x4bd   :  { %v3713_v51 = vpop.f32.mrf.mxu1  ;;  %v8833_v8 = vld [vmem:[#allocation46_spill] sm:$0xff] }
 0x4be   :  { %v3568_v62 = vadd.f32 %v3567_v54, %v3495_v15  ;;  %3776 = vadd.xlane.f32.xlu2 %v3775_v52  ;;  %v3903_v50 = vadd.f32 %v3848_v46, %v3847_v5  ;;  %v3851_v15 = vmul.f32 %v8833_v8, %v8833_v8 }
 0x4c0   :  { %v3641_v28 = vadd.f32 %v3640_v9, %v3568_v62  ;;  %3536 = vmatmul.bf16.gmra.mxu2 %v8826_v18  ;;  %3904 = vadd.xlane.f32.xlu1 %v3903_v50  ;;  %v8835_v18 = vld [vmem:[#allocation49_spill] sm:$0xff] }
 0x4c1   :  { %3609 = vmatmul.bf16.gmra.mxu3 %v8827_v57  ;;  %3779 = vadd.xlane.f32.xlu0 %v3778_v37  ;;  %v3853_v57 = vmul.f32 %v8835_v18, %v8835_v18 }
 0x4c2   :  { %v7427_v30 = vadd.f32 %v3713_v51, %v3641_v28 }
 0x4c3   :  { %v3497_v4 = vpop.f32.mrf.mxu2 }
 0x4c4   :  { %8828 = vst [vmem:[#allocation20_spill] sm:$0xff] %v7427_v30  ;;  %v3498_v53 = vadd.f32 %v3497_v4, %v7251_v19  ;;  %v3570_v16 = vpop.f32.mrf.mxu3  ;;  %v3643_v43 = vpop.f32.mrf.mxu0  ;;  %v3850_v14 = vmul.f32 %v7427_v30, %v7427_v30  ;;  %v3781_v42 = vadd.f32 %v7427_v30, %v8829_v45  ;;  %v8831_v19 = vld [vmem:[#allocation45_spill] sm:$0xff] }
 0x4c5   :  { %v3716_v10 = vpop.f32.mrf.mxu1  ;;  %v4385_v45 = vld [vmem:[%s8403_s6] sm:$0xff] }
 0x4c6   :  { %v3571_v48 = vadd.f32 %v3570_v16, %v3498_v53  ;;  %v3906_v26 = vadd.f32 %v3850_v14, %v3849_v60 }
 0x4c7   :  { %3682 = vmatmul.bf16.gmra.mxu0 %v8830_v55  ;;  %v8837_v55 = vld [vmem:[#allocation50_spill] sm:$0xff] }
 0x4c8   :  { %v3644_v21 = vadd.f32 %v3643_v43, %v3571_v48  ;;  %3907 = vadd.xlane.f32.xlu2 %v3906_v26  ;;  %3782 = vadd.xlane.f32.xlu1 %v3781_v42 }
 0x4c9   :  { %5535 = vmatmul.msk.bf16.gmra.mxu1 %vm2260_vm10, %v8831_v19 }
 0x4ca   :  { %v7439_v58 = vadd.f32 %v3716_v10, %v3644_v21  ;;  %v3855_v21 = vmul.f32 %v8837_v55, %v8837_v55 }
 0x4cb   :  { %v3499_v29 = vpop.f32.mrf.mxu2 }
 0x4cc   :  { %8832 = vst [vmem:[#allocation21_spill] sm:$0xff] %v7439_v58  ;;  %v3500_v49 = vadd.f32 %v3499_v29, %v7256_v36  ;;  %v3572_v47 = vpop.f32.mrf.mxu3  ;;  %v3645_v63 = vpop.f32.mrf.mxu0  ;;  %v3852_v54 = vmul.f32 %v7439_v58, %v7439_v58  ;;  %v3784_v5 = vadd.f32 %v7439_v58, %v8833_v8 }
 0x4cd   :  { %v3718_v52 = vpop.f32.mrf.mxu1 }
 0x4ce   :  { %v3573_v9 = vadd.f32 %v3572_v47, %v3500_v49  ;;  %v3909_v46 = vadd.f32 %v3852_v54, %v3851_v15 }
 0x4d0   :  { %v3646_v62 = vadd.f32 %v3645_v63, %v3573_v9  ;;  %3785 = vadd.xlane.f32.xlu2 %v3784_v5  ;;  %3910 = vadd.xlane.f32.xlu0 %v3909_v46  ;;  %v8839_v46 = vld [vmem:[#allocation12_spill] sm:$0xff] }
 0x4d2   :  { %v7448_v51 = vadd.f32 %v3718_v52, %v3646_v62  ;;  %v3857_v62 = vmul.f32 %v8839_v46, %v8839_v46 }
 0x4d3   :  { %v3502_v36 = vpop.f32.mrf.mxu2 }
 0x4d4   :  { %8834 = vst [vmem:[#allocation69_spill] sm:$0xff] %v7448_v51  ;;  %v3503_v50 = vadd.f32 %v3502_v36, %v7262_v34  ;;  %v3575_v37 = vpop.f32.mrf.mxu3  ;;  %v3648_v28 = vpop.f32.mrf.mxu0  ;;  %v3854_v4 = vmul.f32 %v7448_v51, %v7448_v51  ;;  %v3787_v60 = vadd.f32 %v7448_v51, %v8835_v18 }
 0x4d5   :  { %v3721_v16 = vpop.f32.mrf.mxu1 }
 0x4d6   :  { %v3576_v53 = vadd.f32 %v3575_v37, %v3503_v50  ;;  %v3912_v43 = vadd.f32 %v3854_v4, %v3853_v57 }
 0x4d8   :  { %v3649_v14 = vadd.f32 %v3648_v28, %v3576_v53  ;;  %3913 = vadd.xlane.f32.xlu1 %v3912_v43  ;;  %3788 = vadd.xlane.f32.xlu0 %v3787_v60 }
 0x4da   :  { %v7457_v48 = vadd.f32 %v3721_v16, %v3649_v14  ;;  %v8841_v14 = vld [vmem:[#allocation13_spill] sm:$0xff] }
 0x4db   :  { %v3504_v34 = vpop.f32.mrf.mxu2 }
 0x4dc   :  { %8836 = vst [vmem:[#allocation70_spill] sm:$0xff] %v7457_v48  ;;  %v3505_v10 = vadd.f32 %v3504_v34, %v7267_v33  ;;  %v3577_v26 = vpop.f32.mrf.mxu3  ;;  %v3650_v42 = vpop.f32.mrf.mxu0  ;;  %v3856_v19 = vmul.f32 %v7457_v48, %v7457_v48  ;;  %v3790_v63 = vadd.f32 %v7457_v48, %v8837_v55  ;;  %v3859_v34 = vmul.f32 %v8841_v14, %v8841_v14 }
 0x4dd   :  { %v3723_v49 = vpop.f32.mrf.mxu1 }
 0x4de   :  { %v3578_v29 = vadd.f32 %v3577_v26, %v3505_v10  ;;  %v3915_v47 = vadd.f32 %v3856_v19, %v3855_v21 }
 0x4e0   :  { %v3651_v15 = vadd.f32 %v3650_v42, %v3578_v29  ;;  %3916 = vadd.xlane.f32.xlu2 %v3915_v47  ;;  %3791 = vadd.xlane.f32.xlu1 %v3790_v63 }
 0x4e2   :  { %v7466_v54 = vadd.f32 %v3723_v49, %v3651_v15 }
 0x4e3   :  { %v3507_v33 = vpop.f32.mrf.mxu2 }
 0x4e4   :  { %8838 = vst [vmem:[#allocation23_spill] sm:$0xff] %v7466_v54  ;;  %v3508_v9 = vadd.f32 %v3507_v33, %v7273_v1  ;;  %v3580_v52 = vpop.f32.mrf.mxu3  ;;  %v3653_v5 = vpop.f32.mrf.mxu0  ;;  %v3858_v36 = vmul.f32 %v7466_v54, %v7466_v54  ;;  %v3793_v28 = vadd.f32 %v7466_v54, %v8839_v46  ;;  %v8843_v33 = vld [vmem:[#allocation53_spill] sm:$0xff] }
 0x4e5   :  { %v3726_v37 = vpop.f32.mrf.mxu1 }
 0x4e6   :  { %v3581_v50 = vadd.f32 %v3580_v52, %v3508_v9  ;;  %v3918_v57 = vadd.f32 %v3858_v36, %v3857_v62  ;;  %v3861_v9 = vmul.f32 %v8843_v33, %v8843_v33 }
 0x4e8   :  { %v3654_v4 = vadd.f32 %v3653_v5, %v3581_v50  ;;  %3794 = vadd.xlane.f32.xlu2 %v3793_v28  ;;  %3919 = vadd.xlane.f32.xlu0 %v3918_v57 }
 0x4ea   :  { %v7475_v53 = vadd.f32 %v3726_v37, %v3654_v4 }
 0x4eb   :  { %v3509_v1 = vpop.f32.mrf.mxu2 }
 0x4ec   :  { %8840 = vst [vmem:[#allocation24_spill] sm:$0xff] %v7475_v53  ;;  %v3510_v16 = vadd.f32 %v3509_v1, %v7278_v39  ;;  %v3582_v43 = vpop.f32.mrf.mxu3  ;;  %v3655_v60 = vpop.f32.mrf.mxu0  ;;  %v3860_v10 = vmul.f32 %v7475_v53, %v7475_v53  ;;  %v3796_v19 = vadd.f32 %v7475_v53, %v8841_v14 }
 0x4ed   :  { %v3728_v42 = vpop.f32.mrf.mxu1 }
 0x4ee   :  { %v3583_v26 = vadd.f32 %v3582_v43, %v3510_v16  ;;  %v3921_v21 = vadd.f32 %v3860_v10, %v3859_v34  ;;  %v8845_v16 = vld [vmem:[#allocation54_spill] sm:$0xff] }
 0x4ef   :  { %v3863_v43 = vmul.f32 %v8845_v16, %v8845_v16 }
 0x4f0   :  { %v3656_v29 = vadd.f32 %v3655_v60, %v3583_v26  ;;  %3922 = vadd.xlane.f32.xlu1 %v3921_v21  ;;  %3797 = vadd.xlane.f32.xlu0 %v3796_v19 }
 0x4f2   :  { %v7484_v49 = vadd.f32 %v3728_v42, %v3656_v29 }
 0x4f3   :  { %v3512_v39 = vpop.f32.mrf.mxu2 }
 0x4f4   :  { %8842 = vst [vmem:[#allocation73_spill] sm:$0xff] %v7484_v49  ;;  %v3513_v47 = vadd.f32 %v3512_v39, %v7284_v56  ;;  %v3585_v63 = vpop.f32.mrf.mxu3  ;;  %v3658_v15 = vpop.f32.mrf.mxu0  ;;  %v3862_v52 = vmul.f32 %v7484_v49, %v7484_v49  ;;  %v3799_v50 = vadd.f32 %v7484_v49, %v8843_v33  ;;  %v4060_v49 = vld [vmem:[%s8402_s5] sm:$0xff] }
 0x4f5   :  { %v3731_v62 = vpop.f32.mrf.mxu1 }
 0x4f6   :  { %v3586_v5 = vadd.f32 %v3585_v63, %v3513_v47  ;;  %v3924_v36 = vadd.f32 %v3862_v52, %v3861_v9  ;;  %v8847_v63 = vld [vmem:[#allocation14_spill] sm:$0xff] }
 0x4f8   :  { %v3659_v37 = vadd.f32 %v3658_v15, %v3586_v5  ;;  %3925 = vadd.xlane.f32.xlu2 %v3924_v36  ;;  %3800 = vadd.xlane.f32.xlu1 %v3799_v50  ;;  %v3865_v15 = vmul.f32 %v8847_v63, %v8847_v63 }
 0x4fa   :  { %v7493_v28 = vadd.f32 %v3731_v62, %v3659_v37 }
 0x4fb   :  { %v3514_v56 = vpop.f32.mrf.mxu2 }
 0x4fc   :  { %8844 = vst [vmem:[#allocation74_spill] sm:$0xff] %v7493_v28  ;;  %v3515_v57 = vadd.f32 %v3514_v56, %v7289_v32  ;;  %v3587_v4 = vpop.f32.mrf.mxu3  ;;  %v3660_v1 = vpop.f32.mrf.mxu0  ;;  %v3864_v60 = vmul.f32 %v7493_v28, %v7493_v28  ;;  %v3802_v26 = vadd.f32 %v7493_v28, %v8845_v16 }
 0x4fd   :  { %v3733_v10 = vpop.f32.mrf.mxu1 }
 0x4fe   :  { %v3588_v34 = vadd.f32 %v3587_v4, %v3515_v57  ;;  %v3927_v42 = vadd.f32 %v3864_v60, %v3863_v43 }
 0x500   :  { %v3661_v21 = vadd.f32 %v3660_v1, %v3588_v34  ;;  %3803 = vadd.xlane.f32.xlu2 %v3802_v26  ;;  %3928 = vadd.xlane.f32.xlu0 %v3927_v42 }
 0x501   :  { %v3762_v19 = vpop.xlane.xlu0 %3761 }
 0x502   :  { %v7502_v29 = vadd.f32 %v3733_v10, %v3661_v21  ;;  %v7504_v32 = vmul.f32 0.0051020407, %v3762_v19 }
 0x503   :  { %v3517_v39 = vpop.f32.mrf.mxu2  ;;  %v3887_v47 = vpop.xlane.xlu1 %3886 }
 0x504   :  { %8846 = vst [vmem:[#allocation27_spill] sm:$0xff] %v7502_v29  ;;  %v4010_v9 = vmul.f32 %v7504_v32, %v7504_v32  ;;  %v3518_v52 = vadd.f32 %v3517_v39, %v7295_v3  ;;  %v3590_v5 = vpop.f32.mrf.mxu3  ;;  %v3663_v62 = vpop.f32.mrf.mxu0  ;;  %v3985_v36 = vmul.f32 0.0051020407, %v3887_v47  ;;  %v3866_v50 = vmul.f32 %v7502_v29, %v7502_v29  ;;  %v8849_v47 = vld [vmem:[#allocation15_spill] sm:$0xff] }
 0x505   :  { %v3736_v56 = vpop.f32.mrf.mxu1  ;;  %v3805_v1 = vadd.f32 %v7502_v29, %v8847_v63 }
 0x506   :  { %v3591_v37 = vadd.f32 %v3590_v5, %v3518_v52  ;;  %v4035_v57 = vsub.f32 %v3985_v36, %v4010_v9  ;;  %v3930_v4 = vadd.f32 %v3866_v50, %v3865_v15  ;;  %v3867_v15 = vmul.f32 %v8849_v47, %v8849_v47 }
 0x508   :  { %v3664_v43 = vadd.f32 %v3663_v62, %v3591_v37  ;;  %3931 = vadd.xlane.f32.xlu1 %v3930_v4  ;;  %3806 = vadd.xlane.f32.xlu0 %v3805_v1  ;;  %v7517_v3 = vadd.f32 0.001, %v4035_v57 }
 0x509   :  { %v3765_v60 = vpop.xlane.xlu0 %3764 }
 0x50a   :  { %v7515_v34 = vadd.f32 %v3736_v56, %v3664_v43  ;;  %v7519_v10 = vmul.f32 0.0051020407, %v3765_v60  ;;  %5742 = vrsqrt.f32 %v7517_v3  ;;  %vm4116_vm12 = vweird.f32 %v7517_v3 }
 0x50b   :  { %v3519_v26 = vpop.f32.mrf.mxu2  ;;  %v3890_v42 = vpop.xlane.xlu2 %3889 }
 0x50c   :  { %8848 = vst [vmem:[#allocation28_spill] sm:$0xff] %v7515_v34  ;;  %v3520_v21 = vadd.f32 %v3519_v26, %v7300_v25  ;;  %v3592_v19 = vpop.f32.mrf.mxu3  ;;  %v3665_v39 = vpop.f32.mrf.mxu0  ;;  %v3868_v9 = vmul.f32 %v7515_v34, %v7515_v34  ;;  %v4011_v52 = vmul.f32 %v7519_v10, %v7519_v10  ;;  %v3986_v5 = vmul.f32 0.0051020407, %v3890_v42 }
 0x50d   :  { %v3738_v36 = vpop.f32.mrf.mxu1  ;;  %v3808_v25 = vadd.f32 %v7515_v34, %v8849_v47 }
 0x50e   :  { %v3593_v62 = vadd.f32 %v3592_v19, %v3520_v21  ;;  %v3933_v50 = vadd.f32 %v3868_v9, %v3867_v15  ;;  %v4036_v56 = vsub.f32 %v3986_v5, %v4011_v52  ;;  %v8851_v21 = vld [vmem:[#allocation57_spill] sm:$0xff] }
 0x50f   :  { %v3869_v19 = vmul.f32 %v8851_v21, %v8851_v21 }
 0x510   :  { %v3666_v37 = vadd.f32 %v3665_v39, %v3593_v62  ;;  %3934 = vadd.xlane.f32.xlu2 %v3933_v50  ;;  %3809 = vadd.xlane.f32.xlu1 %v3808_v25  ;;  %v5743_v1 = vpop.eup %5742  ;;  %v7534_v42 = vadd.f32 0.001, %v4036_v56 }
 0x511   :  { %v4111_v5 = vmul.f32 %v5743_v1, %v7517_v3  ;;  %vm4117_vm11 = vweird.f32 %v5743_v1 }
 0x512   :  { %v7531_v57 = vadd.f32 %v3738_v36, %v3666_v37  ;;  %5744 = vrsqrt.f32 %v7534_v42  ;;  %vm4118_vm13 = vmor %vm4116_vm12, %vm4117_vm11  ;;  %vm4126_vm14 = vweird.f32 %v7534_v42 }
 0x513   :  { %v3522_v4 = vpop.f32.mrf.mxu2  ;;  %v4112_v25 = vmul.f32 %v5743_v1, %v4111_v5  ;;  %v5904_v5 = vmov 0   ;;  %v7565_v34 = vpop.xlane.xlu0 %3892 }
 0x514   :  { %8850 = vst [vmem:[#allocation77_spill] sm:$0xff] %v7531_v57  ;;  %v3523_v43 = vadd.f32 %v3522_v4, %v7306_v0  ;;  %v3595_v60 = vpop.f32.mrf.mxu3  ;;  %v3668_v26 = vpop.f32.mrf.mxu0  ;;  %v3870_v15 = vmul.f32 %v7531_v57, %v7531_v57  ;;  %v3811_v52 = vadd.f32 %v7531_v57, %v8851_v21  ;;  %5699 = vset.pattern.permute.xlu2 %v5904_v5 }
 0x515   :  { %v3741_v9 = vpop.f32.mrf.mxu1  ;;  %v7544_v0 = vpop.xlane.xlu1 %3767  ;;  %5700 = vset.pattern.permute.xlu1 %v5904_v5  ;;  %5701 = vset.pattern.permute.xlu0 %v5904_v5 }
 0x516   :  { %v3596_v39 = vadd.f32 %v3595_v60, %v3523_v43  ;;  %v3936_v62 = vadd.f32 %v3870_v15, %v3869_v19  ;;  %v8853_v43 = vld [vmem:[#allocation58_spill] sm:$0xff] }
 0x517   :  { %v3871_v60 = vmul.f32 %v8853_v43, %v8853_v43 }
 0x518   :  { %v3669_v36 = vadd.f32 %v3668_v26, %v3596_v39  ;;  %3812 = vadd.xlane.f32.xlu2 %v3811_v52  ;;  %3937 = vadd.xlane.f32.xlu0 %v3936_v62  ;;  %v5745_v39 = vpop.eup %5744  ;;  %v4113_v52 = vmul.f32 0.5, %v4112_v25 }
 0x519   :  { %vm4127_vm15 = vweird.f32 %v5745_v39 }
 0x51a   :  { %v7546_v50 = vadd.f32 %v3741_v9, %v3669_v36  ;;  %v4121_v36 = vmul.f32 %v5745_v39, %v7534_v42  ;;  %v4114_v47 = vsub.f32 1.5, %v4113_v52  ;;  %vm4128_vm0 = vmor %vm4126_vm14, %vm4127_vm15 }
 0x51b   :  { %v7548_v37 = vpop.f32.mrf.mxu2 }
 0x51c   :  { %8852 = vst [vmem:[#allocation78_spill] sm:$0xff] %v7546_v50  ;;  %v7550_v56 = vpop.f32.mrf.mxu3  ;;  %v7552_v4 = vpop.f32.mrf.mxu0  ;;  %v3872_v26 = vmul.f32 %v7546_v50, %v7546_v50  ;;  %v3814_v9 = vadd.f32 %v7546_v50, %v8853_v43 }
 0x51d   :  { %v7558_v19 = vpop.f32.mrf.mxu1  ;;  %v7567_v29 = vpop.xlane.xlu1 %3770 }
 0x51e   :  { %v3939_v15 = vadd.f32 %v3872_v26, %v3871_v60 }
 0x520   :  { %3940 = vadd.xlane.f32.xlu1 %v3939_v15  ;;  %3815 = vadd.xlane.f32.xlu0 %v3814_v9  ;;  %v4122_v15 = vmul.f32 %v5745_v39, %v4121_v36  ;;  %v4115_v9 = vmul.f32 %v5743_v1, %v4114_v47 }
 0x521   :  { %v7562_v62 = vpop.xlane.xlu2 %3773 }
 0x522   :  { %v4123_v63 = vmul.f32 0.5, %v4122_v15  ;;  %v4119_v33 = vsel %vm4118_vm13, %v5743_v1, %v4115_v9  ;;  %v4061_v1 = vld [vmem:[%s8402_s5 + $0x8] sm:$0xff] }
 0x523   :  { %v7569_v60 = vpop.f32.mrf.mxu2  ;;  %v4360_v48 = vmul.f32 %v4119_v33, %v4060_v49 }
 0x524   :  { %v7571_v25 = vpop.f32.mrf.mxu3  ;;  %v7573_v26 = vpop.f32.mrf.mxu0  ;;  %v4124_v14 = vsub.f32 1.5, %v4123_v63 }
 0x525   :  { %v7575_v50 = vpop.f32.mrf.mxu1  ;;  %v7589_v47 = vpop.xlane.xlu1 %3895  ;;  %v4410_v18 = vmul.f32 %v4360_v48, %v7504_v32 }
 0x526   :  { %v4125_v9 = vmul.f32 %v5745_v39, %v4124_v14 }
 0x527   :  { %v4435_v32 = vsub.f32 %v4385_v45, %v4410_v18 }
 0x529   :  { %v7578_v43 = vpop.xlane.xlu2 %3898 }
 0x52b   :  { %v7580_v52 = vpop.f32.mrf.mxu2  ;;  %v3902_v5 = vpop.xlane.xlu0 %3901 }
 0x52c   :  { %v7585_v53 = vpop.f32.mrf.mxu3  ;;  %v7587_v36 = vpop.f32.mrf.mxu0  ;;  %v3990_v63 = vmul.f32 0.0051020407, %v3902_v5 }
 0x52d   :  { %v7591_v3 = vpop.f32.mrf.mxu1 }
 0x530   :  { %4462 = vperm.xlu2 %5699, %v4360_v48  }
 0x531   :  { %v3777_v15 = vpop.xlane.xlu2 %3776 }
 0x532   :  { %v7594_v55 = vmul.f32 0.0051020407, %v3777_v15  ;;  %v4129_v15 = vsel %vm4128_vm0, %v5745_v39, %v4125_v9 }
 0x533   :  { %v3532_v51 = vpop.f32.mrf.mxu2  ;;  %v3905_v40 = vpop.xlane.xlu1 %3904  ;;  %v4361_v13 = vmul.f32 %v4129_v15, %v4061_v1  ;;  %v4386_v1 = vld [vmem:[%s8403_s6 + $0x8] sm:$0xff] }
 0x534   :  { %v4015_v49 = vmul.f32 %v7594_v55, %v7594_v55  ;;  %v3533_v33 = vadd.f32 %v3532_v51, %v7328_v2  ;;  %v3605_v30 = vpop.f32.mrf.mxu3  ;;  %v3678_v42 = vpop.f32.mrf.mxu0  ;;  %v7608_v2 = vmul.f32 0.0051020407, %v3905_v40 }
 0x535   :  { %v3780_v14 = vpop.xlane.xlu0 %3779  ;;  %v3751_v23 = vpop.f32.mrf.mxu1  ;;  %4467 = vperm.xlu0 %5701, %v4361_v13   ;;  %v4411_v40 = vmul.f32 %v4361_v13, %v7519_v10 }
 0x536   :  { %v4040_v57 = vsub.f32 %v3990_v63, %v4015_v49  ;;  %v3606_v21 = vadd.f32 %v3605_v30, %v3533_v33  ;;  %v7606_v48 = vmul.f32 0.0051020407, %v3780_v14 }
 0x537   :  { %v4436_v63 = vsub.f32 %v4386_v1, %v4411_v40 }
 0x538   :  { %v4090_v5 = vadd.f32 0.001, %v4040_v57  ;;  %v3679_v6 = vadd.f32 %v3678_v42, %v3606_v21  ;;  %v7612_v51 = vmul.f32 %v7606_v48, %v7606_v48 }
 0x539   :  { %4637 = vperm.xlu1 %5700, %v4435_v32   ;;  %v3987_v32 = vmul.f32 0.0051020407, %v7565_v34 }
 0x53a   :  { %5746 = vrsqrt.f32 %v4090_v5  ;;  %v7614_v39 = vadd.f32 %v3751_v23, %v3679_v6  ;;  %v7626_v23 = vmul.f32 0.0051020407, %v7544_v0  ;;  %vm4166_vm2 = vweird.f32 %v4090_v5 }
 0x53b   :  { %v3534_v45 = vpop.f32.mrf.mxu2  ;;  %v7621_v18 = vpop.xlane.xlu2 %3907 }
 0x53c   :  { %v3535_v57 = vadd.f32 %v3534_v45, %v7333_v11  ;;  %v3607_v21 = vpop.f32.mrf.mxu3  ;;  %v3680_v9 = vpop.f32.mrf.mxu0  ;;  %v4012_v14 = vmul.f32 %v7626_v23, %v7626_v23  ;;  %v3525_v11 = vadd.f32 %v7548_v37, %v7311_v27 }
 0x53d   :  { %v3753_v49 = vpop.f32.mrf.mxu1  ;;  %4642 = vperm.xlu0 %5701, %v4436_v63   ;;  %v7638_v63 = vpop.xlane.xlu1 %3782 }
 0x53e   :  { %v3608_v6 = vadd.f32 %v3607_v21, %v3535_v57  ;;  %v4037_v30 = vsub.f32 %v3987_v32, %v4012_v14  ;;  %v3598_v27 = vadd.f32 %v7550_v56, %v3525_v11 }
 0x540   :  { %v5747_v33 = vpop.eup %5746  ;;  %v3681_v42 = vadd.f32 %v3680_v9, %v3608_v6  ;;  %v3671_v56 = vadd.f32 %v7552_v4, %v3598_v27 }
 0x541   :  { %v4161_v15 = vmul.f32 %v5747_v33, %v4090_v5  ;;  %vm4167_vm1 = vweird.f32 %v5747_v33 }
 0x542   :  { %v7631_v13 = vadd.f32 %v3753_v49, %v3681_v42  ;;  %vm4168_vm3 = vmor %vm4166_vm2, %vm4167_vm1  ;;  %v7670_v4 = vadd.f32 %v7558_v19, %v3671_v56 }
 0x543   :  { %v4162_v10 = vmul.f32 %v5747_v33, %v4161_v15  ;;  %v3537_v1 = vpop.f32.mrf.mxu2  ;;  %v3786_v0 = vpop.xlane.xlu2 %3785 }
 0x544   :  { %v3538_v45 = vadd.f32 %v3537_v1, %v7339_v41  ;;  %v3610_v40 = vpop.f32.mrf.mxu3  ;;  %v3683_v57 = vpop.f32.mrf.mxu0  ;;  %v7636_v21 = vmul.f32 0.0051020407, %v3786_v0  ;;  %v7654_v0 = vadd.f32 0.001, %v4037_v30  ;;  %8855 = vst [vmem:[#allocation32_spill] sm:$0xff] %v7670_v4  ;;  %v3874_v56 = vmul.f32 %v7670_v4, %v7670_v4 }
 0x545   :  { %v4163_v9 = vmul.f32 0.5, %v4162_v10  ;;  %v3911_v6 = vpop.xlane.xlu0 %3910  ;;  %v4065_v10 = vld [vmem:[%s8402_s5 + $0x28] sm:$0xff] }
 0x546   :  { %v3611_v34 = vadd.f32 %v3610_v40, %v3538_v45  ;;  %v3756_v49 = vpop.f32.mrf.mxu1  ;;  %v7642_v42 = vmul.f32 %v7636_v21, %v7636_v21  ;;  %v7645_v41 = vmul.f32 0.0051020407, %v3911_v6  ;;  %v7660_v6 = vmul.f32 0.0051020407, %v7562_v62 }
 0x547   :  { %v4164_v37 = vsub.f32 1.5, %v4163_v9  ;;  %5748 = vrsqrt.f32 %v7654_v0  ;;  %v3989_v62 = vmul.f32 0.0051020407, %v7578_v43  ;;  %vm4136_vm5 = vweird.f32 %v7654_v0 }
 0x548   :  { %v3684_v15 = vadd.f32 %v3683_v57, %v3611_v34 }
 0x549   :  { %v4165_v1 = vmul.f32 %v5747_v33, %v4164_v37 }
 0x54a   :  { %v7652_v32 = vadd.f32 %v3756_v49, %v3684_v15 }
 0x54b   :  { %v4169_v11 = vsel %vm4168_vm3, %v5747_v33, %v4165_v1  ;;  %v3539_v45 = vpop.f32.mrf.mxu2  ;;  %v3914_v5 = vpop.xlane.xlu1 %3913  ;;  %v3528_v33 = vadd.f32 %v7569_v60, %v7317_v59  ;;  %v3988_v1 = vmul.f32 0.0051020407, %v7589_v47 }
 0x54c   :  { %v7657_v40 = vmul.f32 %v4169_v11, %v4065_v10  ;;  %v3612_v57 = vpop.f32.mrf.mxu3  ;;  %v3685_v9 = vpop.f32.mrf.mxu0  ;;  %v7675_v27 = vmul.f32 0.0051020407, %v3914_v5  ;;  %v4014_v10 = vmul.f32 %v7660_v6, %v7660_v6  ;;  %v8856_v45 = vld [vmem:[#allocation16_spill] sm:$0xff] }
 0x54d   :  { %v3789_v34 = vpop.xlane.xlu0 %3788  ;;  %v3601_v59 = vadd.f32 %v7571_v25, %v3528_v33  ;;  %v5749_v11 = vpop.eup %5748  ;;  %v3873_v57 = vmul.f32 %v8856_v45, %v8856_v45 }
 0x54e   :  { %v7664_v37 = vmul.f32 %v7657_v40, %v7594_v55  ;;  %v3758_v49 = vpop.f32.mrf.mxu1  ;;  %v7666_v30 = vmul.f32 0.0051020407, %v3789_v34  ;;  %v7682_v55 = vmul.f32 0.0051020407, %v7567_v29  ;;  %v4039_v43 = vsub.f32 %v3989_v62, %v4014_v10 }
 0x54f   :  { %v3674_v5 = vadd.f32 %v7573_v26, %v3601_v59  ;;  %v3942_v47 = vadd.f32 %v3874_v56, %v3873_v57  ;;  %v4131_v25 = vmul.f32 %v5749_v11, %v7654_v0  ;;  %vm4137_vm4 = vweird.f32 %v5749_v11 }
 0x550   :  { %8854 = vst [vmem:[#allocation31_spill] sm:$0xff] %v7666_v30  ;;  %v7679_v15 = vmul.f32 %v7666_v30, %v7666_v30  ;;  %v4013_v29 = vmul.f32 %v7682_v55, %v7682_v55  ;;  %v7699_v34 = vadd.f32 0.001, %v4039_v43  ;;  %v3530_v43 = vadd.f32 %v7580_v52, %v7322_v35  ;;  %vm4138_vm6 = vmor %vm4136_vm5, %vm4137_vm4 }
 0x551   :  { %v7707_v62 = vadd.f32 %v7575_v50, %v3674_v5  ;;  %v8858_v50 = vld [vmem:[#allocation17_spill] sm:$0xff] }
 0x552   :  { %v4038_v9 = vsub.f32 %v3988_v1, %v4013_v29  ;;  %5750 = vrsqrt.f32 %v7699_v34  ;;  %v4132_v1 = vmul.f32 %v5749_v11, %v4131_v25  ;;  %vm4156_vm8 = vweird.f32 %v7699_v34 }
 0x553   :  { %v7690_v60 = vpop.xlane.xlu2 %3916  ;;  %v7702_v49 = vpop.xlane.xlu1 %3791  ;;  %8857 = vst [vmem:[#allocation83_spill] sm:$0xff] %v7707_v62  ;;  %v3820_v56 = vadd.f32 %v7707_v62, %v8858_v50  ;;  %v3876_v35 = vmul.f32 %v7707_v62, %v7707_v62 }
 0x554   :  { %v7704_v33 = vadd.f32 0.001, %v4038_v9  ;;  %v4133_v57 = vmul.f32 0.5, %v4132_v1 }
 0x556   :  { %5752 = vrsqrt.f32 %v7704_v33  ;;  %v4134_v52 = vsub.f32 1.5, %v4133_v57  ;;  %vm4146_vm11 = vweird.f32 %v7704_v33 }
 0x558   :  { %v5751_v5 = vpop.eup %5750 }
 0x559   :  { %3943 = vadd.xlane.f32.xlu2 %v3942_v47  ;;  %v3817_v47 = vadd.f32 %v7670_v4, %v8856_v45  ;;  %v4151_v14 = vmul.f32 %v5751_v5, %v7699_v34  ;;  %v4135_v4 = vmul.f32 %v5749_v11, %v4134_v52  ;;  %vm4157_vm7 = vweird.f32 %v5751_v5 }
 0x55a   :  { %vm4158_vm9 = vmor %vm4156_vm8, %vm4157_vm7 }
 0x55b   :  { %v3795_v10 = vpop.xlane.xlu2 %3794  ;;  %v3920_v19 = vpop.xlane.xlu0 %3919  ;;  %v4152_v45 = vmul.f32 %v5751_v5, %v4151_v14  ;;  %v8861_v14 = vld [vmem:[#allocation61_spill] sm:$0xff] }
 0x55c   :  { %v7710_v29 = vmul.f32 0.0051020407, %v3795_v10  ;;  %v7716_v59 = vmul.f32 0.0051020407, %v3920_v19  ;;  %v3603_v19 = vadd.f32 %v7585_v53, %v3530_v43  ;;  %v5753_v28 = vpop.eup %5752 }
 0x55d   :  { %v4141_v57 = vmul.f32 %v5753_v28, %v7704_v33  ;;  %v4153_v16 = vmul.f32 0.5, %v4152_v45  ;;  %vm4147_vm10 = vweird.f32 %v5753_v28 }
 0x55e   :  { %v7714_v26 = vmul.f32 %v7710_v29, %v7710_v29  ;;  %v3676_v43 = vadd.f32 %v7587_v36, %v3603_v19  ;;  %v4062_v36 = vld [vmem:[%s8402_s5 + $0x10] sm:$0xff]  ;;  %v4139_v19 = vsel %vm4138_vm6, %v5749_v11, %v4135_v4  ;;  %vm4148_vm12 = vmor %vm4146_vm11, %vm4147_vm10 }
 0x55f   :  { %v4362_v52 = vmul.f32 %v4139_v19, %v4062_v36  ;;  %v4387_v4 = vld [vmem:[%s8403_s6 + $0x10] sm:$0xff]  ;;  %v4064_v19 = vld [vmem:[%s8402_s5 + $0x20] sm:$0xff] }
 0x561   :  { %3821 = vadd.xlane.f32.xlu2 %v3820_v56  ;;  %v3875_v56 = vmul.f32 %v8858_v50, %v8858_v50  ;;  %v4142_v50 = vmul.f32 %v5753_v28, %v4141_v57 }
 0x563   :  { %v3923_v25 = vpop.xlane.xlu1 %3922  ;;  %3818 = vadd.xlane.f32.xlu1 %v3817_v47  ;;  %v3798_v10 = vpop.xlane.xlu0 %3797  ;;  %v3945_v47 = vadd.f32 %v3876_v35, %v3875_v56  ;;  %v4143_v56 = vmul.f32 0.5, %v4142_v50 }
 0x564   :  { %v7731_v1 = vmul.f32 0.0051020407, %v3798_v10  ;;  %v7735_v9 = vmul.f32 0.0051020407, %v3923_v25  ;;  %v7747_v25 = vadd.f32 %v7591_v3, %v3676_v43  ;;  %v4412_v10 = vmul.f32 %v4362_v52, %v7626_v23 }
 0x565   :  { %v4144_v57 = vsub.f32 1.5, %v4143_v56 }
 0x566   :  { %8859 = vst [vmem:[#allocation84_spill] sm:$0xff] %v7731_v1  ;;  %v7739_v53 = vmul.f32 %v7731_v1, %v7731_v1  ;;  %v3823_v35 = vadd.f32 %v7747_v25, %v8861_v14  ;;  %v4437_v50 = vsub.f32 %v4387_v4, %v4412_v10  ;;  %v4063_v10 = vld [vmem:[%s8402_s5 + $0x18] sm:$0xff]  ;;  %v3992_v4 = vmul.f32 0.0051020407, %v7621_v18 }
 0x567   :  { %3946 = vadd.xlane.f32.xlu0 %v3945_v47  ;;  %8860 = vst [vmem:[#allocation35_spill] sm:$0xff] %v7747_v25  ;;  %v4154_v47 = vsub.f32 1.5, %v4153_v16  ;;  %v4145_v36 = vmul.f32 %v5753_v28, %v4144_v57  ;;  %v3878_v18 = vmul.f32 %v7747_v25, %v7747_v25 }
 0x569   :  { %v4155_v45 = vmul.f32 %v5751_v5, %v4154_v47 }
 0x56b   :  { %v7749_v62 = vpop.xlane.xlu2 %3925  ;;  %v7756_v0 = vpop.xlane.xlu1 %3800 }
 0x56c   :  { %v7884_v8 = vmul.f32 0.0051020407, %v7756_v0 }
 0x56f   :  { %3824 = vadd.xlane.f32.xlu0 %v3823_v35  ;;  %v4159_v35 = vsel %vm4158_vm9, %v5751_v5, %v4155_v45 }
 0x570   :  { %v4364_v47 = vmul.f32 %v4159_v35, %v4064_v19 }
 0x572   :  { %v4414_v33 = vmul.f32 %v4364_v47, %v7660_v6 }
 0x573   :  { %v3804_v3 = vpop.xlane.xlu2 %3803  ;;  %v3929_v43 = vpop.xlane.xlu0 %3928 }
 0x574   :  { %v7759_v1 = vmul.f32 0.0051020407, %v3804_v3  ;;  %v7769_v11 = vmul.f32 0.0051020407, %v3929_v43  ;;  %v4149_v43 = vsel %vm4148_vm12, %v5753_v28, %v4145_v36  ;;  %v8863_v36 = vsub.f32 %v7645_v41, %v7642_v42 }
 0x575   :  { %v7788_v45 = vmul.f32 %v4149_v43, %v4063_v10  ;;  %v7815_v42 = vmul.f32 0.0051020407, %v7638_v63 }
 0x576   :  { %v7767_v16 = vmul.f32 %v7759_v1, %v7759_v1  ;;  %v4093_v19 = vadd.f32 0.001, %v8863_v36 }
 0x578   :  { %5754 = vrsqrt.f32 %v4093_v19  ;;  %vm4196_vm14 = vweird.f32 %v4093_v19 }
 0x579   :  { %4647 = vperm.xlu2 %5699, %v4437_v50  }
 0x57b   :  { %v3932_v34 = vpop.xlane.xlu1 %3931  ;;  %v3807_v56 = vpop.xlane.xlu0 %3806 }
 0x57c   :  { %v7777_v3 = vmul.f32 0.0051020407, %v3807_v56  ;;  %4472 = vperm.xlu1 %5700, %v4362_v52   ;;  %v7782_v57 = vmul.f32 0.0051020407, %v3932_v34  ;;  %v4389_v52 = vld [vmem:[%s8403_s6 + $0x20] sm:$0xff] }
 0x57d   :  { %v4439_v28 = vsub.f32 %v4389_v52, %v4414_v33 }
 0x57e   :  { %8862 = vst [vmem:[#allocation36_spill] sm:$0xff] %v7777_v3  ;;  %v7786_v5 = vmul.f32 %v7777_v3, %v7777_v3  ;;  %v5755_v41 = vpop.eup %5754 }
 0x57f   :  { %v4191_v36 = vmul.f32 %v5755_v41, %v4093_v19  ;;  %vm4197_vm13 = vweird.f32 %v5755_v41 }
 0x580   :  { %vm4198_vm15 = vmor %vm4196_vm14, %vm4197_vm13 }
 0x581   :  { %4477 = vperm.xlu2 %5699, %v7788_v45   ;;  %v4192_v63 = vmul.f32 %v5755_v41, %v4191_v36 }
 0x583   :  { %v7797_v50 = vpop.xlane.xlu2 %3934  ;;  %4657 = vperm.xlu0 %5701, %v4439_v28   ;;  %v7802_v6 = vpop.xlane.xlu1 %3809  ;;  %v4017_v28 = vmul.f32 %v7815_v42, %v7815_v42  ;;  %v4193_v46 = vmul.f32 0.5, %v4192_v63  ;;  %v4068_v63 = vld [vmem:[%s8402_s5 + $0x40] sm:$0xff] }
 0x585   :  { %v4042_v33 = vsub.f32 %v3992_v4, %v4017_v28  ;;  %v7841_v4 = vmul.f32 0.0051020407, %v7702_v49  ;;  %v3877_v28 = vmul.f32 %v8861_v14, %v8861_v14 }
 0x587   :  { %v7830_v54 = vadd.f32 0.001, %v4042_v33  ;;  %v3948_v33 = vadd.f32 %v3878_v18, %v3877_v28  ;;  %v3882_v28 = vmul.f32 %v7631_v13, %v7631_v13 }
 0x589   :  { %4482 = vperm.xlu2 %5699, %v4364_v47   ;;  %5756 = vrsqrt.f32 %v7830_v54  ;;  %vm4186_vm2 = vweird.f32 %v7830_v54 }
 0x58b   :  { %v3813_v35 = vpop.xlane.xlu2 %3812  ;;  %v3938_v56 = vpop.xlane.xlu0 %3937 }
 0x58c   :  { %v7804_v34 = vmul.f32 0.0051020407, %v3813_v35  ;;  %v7810_v43 = vmul.f32 0.0051020407, %v3938_v56 }
 0x58e   :  { %v7808_v10 = vmul.f32 %v7804_v34, %v7804_v34 }
 0x58f   :  { %v7848_v36 = vpop.eup %5756 }
 0x590   :  { %vm4187_vm0 = vweird.f32 %v7848_v36 }
 0x591   :  { %vm7918_vm3 = vmor %vm4186_vm2, %vm4187_vm0 }
 0x593   :  { %v3941_v47 = vpop.xlane.xlu1 %3940  ;;  %v3816_v52 = vpop.xlane.xlu0 %3815 }
 0x594   :  { %v7819_v35 = vmul.f32 0.0051020407, %v3816_v52  ;;  %v7822_v23 = vmul.f32 0.0051020407, %v3941_v47  ;;  %v8865_v52 = vsub.f32 %v7716_v59, %v7714_v26  ;;  %v4194_v47 = vsub.f32 1.5, %v4193_v46  ;;  %v4463_v49 = vpop.permute.xlu2 %4462 }
 0x595   :  { %v4020_v26 = vmul.f32 %v7841_v4, %v7841_v4  ;;  %v3995_v46 = vmul.f32 0.0051020407, %v7690_v60  ;;  %v4585_v60 = vmul.f32 %v4463_v49, %v8807_v17  ;;  %v4586_v25 = vmul.f32 %v4463_v49, %v7347_v20 }
 0x596   :  { %8864 = vst [vmem:[#allocation88_spill] sm:$0xff] %v7819_v35  ;;  %v7826_v56 = vmul.f32 %v7819_v35, %v7819_v35  ;;  %v7835_v30 = vadd.f32 0.001, %v8865_v52  ;;  %v4195_v59 = vmul.f32 %v5755_v41, %v4194_v47 }
 0x597   :  { %v4045_v18 = vsub.f32 %v3995_v46, %v4020_v26 }
 0x598   :  { %5758 = vrsqrt.f32 %v7835_v30  ;;  %v4199_v52 = vsel %vm4198_vm15, %v5755_v41, %v4195_v59  ;;  %v8866_v59 = vld [vmem:[#allocation18_spill] sm:$0xff]  ;;  %vm4226_vm4 = vweird.f32 %v7835_v30 }
 0x599   :  { %v7854_v3 = vmul.f32 %v4199_v52, %v4068_v63  ;;  %v3881_v26 = vmul.f32 %v8866_v59, %v8866_v59  ;;  %v3880_v52 = vmul.f32 %v7614_v39, %v7614_v39  ;;  %v7872_v35 = vadd.f32 0.001, %v4045_v18 }
 0x59b   :  { %v7866_v14 = vmul.f32 %v7854_v3, %v7636_v21  ;;  %v3954_v58 = vadd.f32 %v3882_v28, %v3881_v26  ;;  %v8867_v21 = vld [vmem:[#allocation62_spill] sm:$0xff]  ;;  %5760 = vrsqrt.f32 %v7872_v35  ;;  %vm4216_vm7 = vweird.f32 %v7872_v35 }
 0x59c   :  { %v3879_v49 = vmul.f32 %v8867_v21, %v8867_v21 }
 0x59e   :  { %v7858_v47 = vpop.eup %5758 }
 0x59f   :  { %v4221_v17 = vmul.f32 %v7858_v47, %v7835_v30  ;;  %vm4227_vm1 = vweird.f32 %v7858_v47  ;;  %v4071_v30 = vld [vmem:[%s8402_s5 + $0x58] sm:$0xff] }
 0x5a0   :  { %vm4228_vm5 = vmor %vm4226_vm4, %vm4227_vm1 }
 0x5a1   :  { %v4222_v18 = vmul.f32 %v7858_v47, %v4221_v17  ;;  %v7895_v17 = vpop.eup %5760 }
 0x5a2   :  { %vm4217_vm6 = vweird.f32 %v7895_v17 }
 0x5a3   :  { %vm4218_vm8 = vmor %vm4216_vm7, %vm4217_vm6 }
 0x5a6   :  { %3949 = vadd.xlane.f32.xlu1 %v3948_v33  ;;  %v4181_v33 = vmul.f32 %v7848_v36, %v7830_v54 }
 0x5a7   :  { %v4468_v19 = vpop.permute.xlu0 %4467 }
 0x5a8   :  { %v4182_v20 = vmul.f32 %v7848_v36, %v4181_v33 }
 0x5aa   :  { %v4183_v33 = vmul.f32 0.5, %v4182_v20  ;;  %v3998_v20 = vmul.f32 0.0051020407, %v7749_v62  ;;  %v4211_v62 = vmul.f32 %v7895_v17, %v7872_v35 }
 0x5ab   :  { %v4638_v41 = vpop.permute.xlu1 %4637 }
 0x5ac   :  { %v4760_v46 = vadd.f32 %v4638_v41, %v4585_v60  ;;  %v4761_v63 = vadd.f32 %v4638_v41, %v4586_v25  ;;  %v4587_v60 = vmul.f32 %v4468_v19, %v8810_v22  ;;  %v4588_v25 = vmul.f32 %v4468_v19, %v7358_v61  ;;  %v8869_v19 = vld [vmem:[#allocation19_spill] sm:$0xff] }
 0x5ad   :  { %3955 = vadd.xlane.f32.xlu0 %v3954_v58  ;;  %v3951_v41 = vadd.f32 %v3880_v52, %v3879_v49  ;;  %v8868_v58 = vsub.f32 %v7608_v2, %v7612_v51  ;;  %v4223_v61 = vmul.f32 0.5, %v4222_v18  ;;  %v4023_v22 = vmul.f32 %v7884_v8, %v7884_v8 }
 0x5ae   :  { %4810 = vst [vmem:[#allocation8] sm:$0xff] %v4760_v46  ;;  %v3832_v0 = vadd.f32 %v7652_v32, %v8869_v19  ;;  %v4184_v52 = vsub.f32 1.5, %v4183_v33  ;;  %v8870_v49 = vsub.f32 %v7769_v11, %v7767_v16  ;;  %v3829_v51 = vadd.f32 %v7631_v13, %v8866_v59  ;;  %v4388_v16 = vld [vmem:[%s8403_s6 + $0x18] sm:$0xff] }
 0x5af   :  { %4811 = vst [vmem:[#allocation8 + $0x8] sm:$0xff] %v4761_v63  ;;  %v4643_v28 = vpop.permute.xlu0 %4642  ;;  %v7889_v63 = vadd.f32 0.001, %v8868_v58 }
 0x5b0   :  { %v4762_v26 = vadd.f32 %v4643_v28, %v4587_v60  ;;  %v4763_v46 = vadd.f32 %v4643_v28, %v4588_v25  ;;  %v7901_v2 = vadd.f32 0.001, %v8870_v49  ;;  %v4224_v60 = vsub.f32 1.5, %v4223_v61 }
 0x5b1   :  { %5762 = vrsqrt.f32 %v7889_v63  ;;  %v4048_v25 = vsub.f32 %v3998_v20, %v4023_v22  ;;  %v4185_v18 = vmul.f32 %v7848_v36, %v4184_v52  ;;  %vm4176_vm11 = vweird.f32 %v7889_v63 }
 0x5b2   :  { %3952 = vadd.xlane.f32.xlu2 %v3951_v41  ;;  %4812 = vst [vmem:[#allocation8 + $0x10] sm:$0xff] %v4762_v26  ;;  %v4413_v41 = vmul.f32 %v7788_v45, %v7682_v55  ;;  %5764 = vrsqrt.f32 %v7901_v2  ;;  %v4225_v28 = vmul.f32 %v7858_v47, %v4224_v60  ;;  %v4067_v26 = vld [vmem:[%s8402_s5 + $0x38] sm:$0xff]  ;;  %vm4256_vm13 = vweird.f32 %v7901_v2 }
 0x5b3   :  { %4813 = vst [vmem:[#allocation8 + $0x18] sm:$0xff] %v4763_v46  ;;  %v7923_v11 = vadd.f32 0.001, %v4048_v25  ;;  %v4189_v54 = vsel %vm7918_vm3, %v7848_v36, %v4185_v18  ;;  %v4212_v46 = vmul.f32 %v7895_v17, %v4211_v62  ;;  %v7949_v36 = vmul.f32 0.0051020407, %v7802_v6 }
 0x5b4   :  { %v4438_v45 = vsub.f32 %v4388_v16, %v4413_v41  ;;  %v4229_v58 = vsel %vm4228_vm5, %v7858_v47, %v4225_v28  ;;  %v7945_v52 = vmul.f32 %v4189_v54, %v4067_v26  ;;  %v8873_v47 = vsub.f32 %v7675_v27, %v7679_v15 }
 0x5b5   :  { %3833 = vadd.xlane.f32.xlu0 %v3832_v0  ;;  %v7939_v61 = vmul.f32 %v4229_v58, %v4071_v30  ;;  %5766 = vrsqrt.f32 %v7923_v11  ;;  %v4213_v20 = vmul.f32 0.5, %v4212_v46  ;;  %v4026_v6 = vmul.f32 %v7949_v36, %v7949_v36 }
 0x5b6   :  { %v4417_v41 = vmul.f32 %v7945_v52, %v7815_v42  ;;  %v4001_v27 = vmul.f32 0.0051020407, %v7797_v50  ;;  %v8874_v26 = vsub.f32 %v7810_v43, %v7808_v10  ;;  %v4070_v10 = vld [vmem:[%s8402_s5 + $0x50] sm:$0xff]  ;;  %vm4246_vm0 = vweird.f32 %v7923_v11 }
 0x5b7   :  { %v7926_v33 = vpop.eup %5762  ;;  %v7953_v49 = vmul.f32 %v7939_v61, %v7710_v29  ;;  %v4214_v18 = vsub.f32 1.5, %v4213_v20  ;;  %v4392_v29 = vld [vmem:[%s8403_s6 + $0x38] sm:$0xff] }
 0x5b8   :  { %v7941_v22 = vpop.eup %5764  ;;  %v4171_v0 = vmul.f32 %v7926_v33, %v7889_v63  ;;  %v4051_v55 = vsub.f32 %v4001_v27, %v4026_v6  ;;  %v7982_v54 = vadd.f32 0.001, %v8874_v26  ;;  %vm4177_vm9 = vweird.f32 %v7926_v33  ;;  %v4393_v27 = vld [vmem:[%s8403_s6 + $0x40] sm:$0xff] }
 0x5b9   :  { %v4251_v60 = vmul.f32 %v7941_v22, %v7901_v2  ;;  %v4215_v42 = vmul.f32 %v7895_v17, %v4214_v18  ;;  %vm4257_vm10 = vweird.f32 %v7941_v22  ;;  %vm8016_vm12 = vmor %vm4176_vm11, %vm4177_vm9 }
 0x5ba   :  { %3830 = vadd.xlane.f32.xlu2 %v3829_v51  ;;  %v7958_v51 = vadd.f32 0.001, %v8873_v47  ;;  %v4172_v25 = vmul.f32 %v7926_v33, %v4171_v0  ;;  %v7985_v58 = vadd.f32 0.001, %v4051_v55  ;;  %v4390_v0 = vld [vmem:[%s8403_s6 + $0x28] sm:$0xff]  ;;  %vm4258_vm14 = vmor %vm4256_vm13, %vm4257_vm10  ;;  %vm4286_vm6 = vweird.f32 %v7982_v54 }
 0x5bb   :  { %v7970_v62 = vpop.eup %5766  ;;  %v4252_v15 = vmul.f32 %v7941_v22, %v4251_v60  ;;  %v4219_v43 = vsel %vm4218_vm8, %v7895_v17, %v4215_v42  ;;  %v4440_v60 = vsub.f32 %v4390_v0, %v7664_v37  ;;  %v8875_v17 = vsub.f32 %v7735_v9, %v7739_v53  ;;  %v4066_v9 = vld [vmem:[%s8402_s5 + $0x30] sm:$0xff] }
 0x5bc   :  { %5768 = vrsqrt.f32 %v7958_v51  ;;  %v4173_v16 = vmul.f32 0.5, %v4172_v25  ;;  %v4241_v28 = vmul.f32 %v7970_v62, %v7923_v11  ;;  %v8003_v6 = vmul.f32 %v4219_v43, %v4070_v10  ;;  %v4395_v42 = vld [vmem:[%s8403_s6 + $0x50] sm:$0xff] }
 0x5bd   :  { %v4253_v50 = vmul.f32 0.5, %v4252_v15  ;;  %5770 = vrsqrt.f32 %v7982_v54  ;;  %v4074_v15 = vld [vmem:[%s8402_s5 + $0x70] sm:$0xff]  ;;  %vm4247_vm15 = vweird.f32 %v7970_v62  ;;  %vm4206_vm3 = vweird.f32 %v7958_v51 }
 0x5be   :  { %v4174_v30 = vsub.f32 1.5, %v4173_v16  ;;  %v4242_v35 = vmul.f32 %v7970_v62, %v4241_v28  ;;  %5772 = vrsqrt.f32 %v7985_v58  ;;  %v4420_v16 = vmul.f32 %v8003_v6, %v7841_v4  ;;  %vm4248_vm1 = vmor %vm4246_vm0, %vm4247_vm15 }
 0x5bf   :  { %4652 = vperm.xlu1 %5700, %v4438_v45   ;;  %v4442_v45 = vsub.f32 %v4392_v29, %v4417_v41  ;;  %v4254_v47 = vsub.f32 1.5, %v4253_v50  ;;  %v8011_v29 = vadd.f32 0.001, %v8875_v17  ;;  %vm4276_vm9 = vweird.f32 %v7985_v58 }
 0x5c0   :  { %v4175_v25 = vmul.f32 %v7926_v33, %v4174_v30  ;;  %v4243_v18 = vmul.f32 0.5, %v4242_v35  ;;  %v4445_v35 = vsub.f32 %v4395_v42, %v4420_v16 }
 0x5c1   :  { %v4255_v63 = vmul.f32 %v7941_v22, %v4254_v47  ;;  %5774 = vrsqrt.f32 %v8011_v29 }
 0x5c2   :  { %v7990_v20 = vpop.eup %5768  ;;  %v4179_v53 = vsel %vm8016_vm12, %v7926_v33, %v4175_v25  ;;  %v4244_v55 = vsub.f32 1.5, %v4243_v18  ;;  %vm4236_vm12 = vweird.f32 %v8011_v29 }
 0x5c3   :  { %v4201_v41 = vmul.f32 %v7990_v20, %v7958_v51  ;;  %v8014_v37 = vpop.eup %5770  ;;  %v4259_v28 = vsel %vm4258_vm14, %v7941_v22, %v4255_v63  ;;  %v8047_v30 = vmul.f32 %v4179_v53, %v4066_v9  ;;  %vm4207_vm2 = vweird.f32 %v7990_v20 }
 0x5c4   :  { %v8038_v26 = vpop.eup %5772  ;;  %v4281_v33 = vmul.f32 %v8014_v37, %v7982_v54  ;;  %v8045_v4 = vmul.f32 %v4259_v28, %v4074_v15  ;;  %v4245_v22 = vmul.f32 %v7970_v62, %v4244_v55  ;;  %vm4208_vm4 = vmor %vm4206_vm3, %vm4207_vm2  ;;  %vm4287_vm5 = vweird.f32 %v8014_v37  ;;  %v4077_v54 = vld [vmem:[%s8402_s5 + $0x88] sm:$0xff] }
 0x5c5   :  { %v4271_v47 = vmul.f32 %v8038_v26, %v7985_v58  ;;  %vm4277_vm7 = vweird.f32 %v8038_v26  ;;  %vm4288_vm8 = vmor %vm4286_vm6, %vm4287_vm5 }
 0x5c6   :  { %v4282_v25 = vmul.f32 %v8014_v37, %v4281_v33  ;;  %v4249_v15 = vsel %vm4248_vm1, %v7970_v62, %v4245_v22  ;;  %v8878_v62 = vsub.f32 %v7782_v57, %v7786_v5  ;;  %v3826_v22 = vadd.f32 %v7614_v39, %v8867_v21  ;;  %vm4278_vm10 = vmor %vm4276_vm9, %vm4277_vm7 }
 0x5c7   :  { %v4272_v63 = vmul.f32 %v8038_v26, %v4271_v47 }
 0x5c8   :  { %v4283_v9 = vmul.f32 0.5, %v4282_v25 }
 0x5c9   :  { %4672 = vperm.xlu0 %5701, %v4442_v45   ;;  %v4273_v42 = vmul.f32 0.5, %v4272_v63 }
 0x5ca   :  { %v4284_v33 = vsub.f32 1.5, %v4283_v9 }
 0x5cb   :  { %v4274_v51 = vsub.f32 1.5, %v4273_v42 }
 0x5cc   :  { %v3944_v46 = vpop.xlane.xlu2 %3943 }
 0x5cd   :  { %v4004_v10 = vmul.f32 0.0051020407, %v3944_v46 }
 0x5d1   :  { %4502 = vperm.xlu0 %5701, %v7854_v3   ;;  %v4202_v3 = vmul.f32 %v7990_v20, %v4201_v41  ;;  %v8062_v41 = vpop.eup %5774 }
 0x5d2   :  { %4662 = vperm.xlu2 %5699, %v4440_v60   ;;  %v8058_v60 = vmul.f32 %v8045_v4, %v7759_v1  ;;  %v4073_v1 = vld [vmem:[%s8402_s5 + $0x68] sm:$0xff]  ;;  %v4231_v53 = vmul.f32 %v8062_v41, %v8011_v29  ;;  %vm4237_vm11 = vweird.f32 %v8062_v41 }
 0x5d3   :  { %v4203_v0 = vmul.f32 0.5, %v4202_v3  ;;  %v4443_v3 = vsub.f32 %v4393_v27, %v7866_v14  ;;  %v8081_v55 = vmul.f32 %v4249_v15, %v4073_v1  ;;  %v4275_v27 = vmul.f32 %v8038_v26, %v4274_v51  ;;  %vm4238_vm13 = vmor %vm4236_vm12, %vm4237_vm11 }
 0x5d4   :  { %v3822_v2 = vpop.xlane.xlu2 %3821 }
 0x5d5   :  { %v4204_v18 = vsub.f32 1.5, %v4203_v0  ;;  %v8090_v14 = vmul.f32 0.0051020407, %v3822_v2  ;;  %v4232_v0 = vmul.f32 %v8062_v41, %v4231_v53  ;;  %v4423_v5 = vmul.f32 %v8081_v55, %v7884_v8 }
 0x5d6   :  { %v3819_v45 = vpop.xlane.xlu1 %3818 }
 0x5d7   :  { %v8043_v50 = vmul.f32 0.0051020407, %v3819_v45  ;;  %v4205_v16 = vmul.f32 %v7990_v20, %v4204_v18  ;;  %v8087_v45 = vadd.f32 0.001, %v8878_v62  ;;  %v4233_v47 = vmul.f32 0.5, %v4232_v0 }
 0x5d8   :  { %v4279_v62 = vsel %vm4278_vm10, %v8038_v26, %v4275_v27 }
 0x5d9   :  { %v4029_v43 = vmul.f32 %v8043_v50, %v8043_v50  ;;  %4687 = vperm.xlu0 %5701, %v4445_v35   ;;  %v4209_v57 = vsel %vm4208_vm4, %v7990_v20, %v4205_v16  ;;  %v4030_v35 = vmul.f32 %v8090_v14, %v8090_v14  ;;  %v4285_v20 = vmul.f32 %v8014_v37, %v4284_v33  ;;  %v4076_v16 = vld [vmem:[%s8402_s5 + $0x80] sm:$0xff] }
 0x5da   :  { %4492 = vperm.xlu2 %5699, %v8047_v30   ;;  %v3947_v28 = vpop.xlane.xlu0 %3946  ;;  %v4234_v9 = vsub.f32 1.5, %v4233_v47  ;;  %v8148_v26 = vmul.f32 %v4279_v62, %v4076_v16  ;;  %vm4266_vm2 = vweird.f32 %v8087_v45 }
 0x5db   :  { %v4054_v46 = vsub.f32 %v4004_v10, %v4029_v43  ;;  %v4069_v10 = vld [vmem:[%s8402_s5 + $0x48] sm:$0xff]  ;;  %v4005_v43 = vmul.f32 0.0051020407, %v3947_v28  ;;  %v4289_v15 = vsel %vm4288_vm8, %v8014_v37, %v4285_v20 }
 0x5dc   :  { %v8074_v11 = vpop.permute.xlu2 %4647  ;;  %v8112_v8 = vmul.f32 %v4209_v57, %v4069_v10  ;;  %v4377_v28 = vmul.f32 %v4289_v15, %v4077_v54  ;;  %v4235_v10 = vmul.f32 %v8062_v41, %v4234_v9  ;;  %v4426_v29 = vmul.f32 %v8148_v26, %v7949_v36  ;;  %v4399_v15 = vld [vmem:[%s8403_s6 + $0x70] sm:$0xff] }
 0x5dd   :  { %v8064_v17 = vadd.f32 0.001, %v4054_v46  ;;  %v4055_v25 = vsub.f32 %v4005_v43, %v4030_v35 }
 0x5df   :  { %5776 = vrsqrt.f32 %v8064_v17  ;;  %v8129_v53 = vadd.f32 0.001, %v4055_v25  ;;  %vm4306_vm15 = vweird.f32 %v8064_v17 }
 0x5e0   :  { %5778 = vrsqrt.f32 %v8087_v45 }
 0x5e1   :  { %4517 = vperm.xlu0 %5701, %v7939_v61   ;;  %v4398_v61 = vld [vmem:[%s8403_s6 + $0x68] sm:$0xff]  ;;  %5780 = vrsqrt.f32 %v8129_v53  ;;  %vm4316_vm5 = vweird.f32 %v8129_v53 }
 0x5e2   :  { %4677 = vperm.xlu2 %5699, %v4443_v3   ;;  %v4448_v18 = vsub.f32 %v4398_v61, %v4423_v5  ;;  %v4396_v3 = vld [vmem:[%s8403_s6 + $0x58] sm:$0xff]  ;;  %v8139_v33 = vpop.xlane.xlu0 %3824 }
 0x5e3   :  { %v4446_v5 = vsub.f32 %v4396_v3, %v7953_v49  ;;  %v8879_v49 = vsub.f32 %v7822_v23, %v7826_v56  ;;  %v4401_v23 = vld [vmem:[%s8403_s6 + $0x80] sm:$0xff]  ;;  %v4079_v3 = vld [vmem:[%s8402_s5 + $0x98] sm:$0xff] }
 0x5e4   :  { %v8115_v46 = vpop.permute.xlu2 %4477  ;;  %v4451_v54 = vsub.f32 %v4401_v23, %v4426_v29  ;;  %v8223_v29 = vmul.f32 0.0051020407, %v8139_v33 }
 0x5e5   :  { %v8104_v2 = vpop.eup %5776  ;;  %v8161_v35 = vadd.f32 0.001, %v8879_v49 }
 0x5e6   :  { %v4301_v1 = vmul.f32 %v8104_v2, %v8064_v17  ;;  %v8126_v63 = vpop.eup %5778  ;;  %vm4307_vm14 = vweird.f32 %v8104_v2 }
 0x5e7   :  { %v4261_v57 = vmul.f32 %v8126_v63, %v8087_v45  ;;  %v5781_v56 = vpop.eup %5780  ;;  %5782 = vrsqrt.f32 %v8161_v35  ;;  %vm4308_vm0 = vmor %vm4306_vm15, %vm4307_vm14  ;;  %vm4267_vm1 = vweird.f32 %v8126_v63  ;;  %vm4296_vm8 = vweird.f32 %v8161_v35 }
 0x5e8   :  { %v4302_v37 = vmul.f32 %v8104_v2, %v4301_v1  ;;  %vm4268_vm3 = vmor %vm4266_vm2, %vm4267_vm1  ;;  %vm4317_vm4 = vweird.f32 %v5781_v56 }
 0x5e9   :  { %3827 = vadd.xlane.f32.xlu1 %v3826_v22  ;;  %4702 = vperm.xlu0 %5701, %v4448_v18   ;;  %v4262_v22 = vmul.f32 %v8126_v63, %v4261_v57  ;;  %vm4318_vm6 = vmor %vm4316_vm5, %vm4317_vm4 }
 0x5ea   :  { %4507 = vperm.xlu2 %5699, %v8112_v8  }
 0x5eb   :  { %v4263_v1 = vmul.f32 0.5, %v4262_v22 }
 0x5ec   :  { %v4483_v61 = vpop.permute.xlu2 %4482 }
 0x5ed   :  { %v4594_v47 = vmul.f32 %v4483_v61, %v7391_v24  ;;  %v4311_v24 = vmul.f32 %v5781_v56, %v8129_v53  ;;  %v5783_v9 = vpop.eup %5782  ;;  %v4078_v53 = vld [vmem:[%s8402_s5 + $0x90] sm:$0xff] }
 0x5ee   :  { %v4473_v42 = vpop.permute.xlu1 %4472  ;;  %v4291_v17 = vmul.f32 %v5783_v9, %v8161_v35  ;;  %vm4297_vm7 = vweird.f32 %v5783_v9 }
 0x5ef   :  { %v4589_v58 = vmul.f32 %v4473_v42, %v8813_v38  ;;  %v4590_v0 = vmul.f32 %v4473_v42, %v7370_v7  ;;  %v4303_v38 = vmul.f32 0.5, %v4302_v37  ;;  %v8154_v7 = vmul.f32 %v4377_v28, %v7804_v34  ;;  %vm4298_vm9 = vmor %vm4296_vm8, %vm4297_vm7 }
 0x5f0   :  { %v4239_v34 = vsel %vm4238_vm13, %v8062_v41, %v4235_v10  ;;  %v4312_v62 = vmul.f32 %v5781_v56, %v4311_v24  ;;  %v4449_v37 = vsub.f32 %v4399_v15, %v8058_v60  ;;  %v4075_v60 = vld [vmem:[%s8402_s5 + $0x78] sm:$0xff]  ;;  %v4292_v10 = vmul.f32 %v5783_v9, %v4291_v17 }
 0x5f1   :  { %v4764_v43 = vadd.f32 %v8074_v11, %v4589_v58  ;;  %v4765_v51 = vadd.f32 %v8074_v11, %v4590_v0  ;;  %4532 = vperm.xlu0 %5701, %v8045_v4   ;;  %v4072_v11 = vld [vmem:[%s8402_s5 + $0x60] sm:$0xff]  ;;  %v4304_v20 = vsub.f32 1.5, %v4303_v38  ;;  %v4593_v4 = vmul.f32 %v4483_v61, %v8818_v31 }
 0x5f2   :  { %4692 = vperm.xlu2 %5699, %v4446_v5   ;;  %v8175_v18 = vmul.f32 %v4239_v34, %v4072_v11  ;;  %v4264_v31 = vsub.f32 1.5, %v4263_v1  ;;  %v4313_v0 = vmul.f32 0.5, %v4312_v62  ;;  %v4293_v45 = vmul.f32 0.5, %v4292_v10  ;;  %v4080_v38 = vld [vmem:[%s8402_s5 + $0xa0] sm:$0xff]  ;;  %v4081_v62 = vld [vmem:[%s8402_s5 + $0xa8] sm:$0xff] }
 0x5f3   :  { %4814 = vst [vmem:[#allocation8 + $0x20] sm:$0xff] %v4764_v43  ;;  %v4305_v36 = vmul.f32 %v8104_v2, %v4304_v20  ;;  %v3884_v1 = vmul.f32 %v7652_v32, %v7652_v32  ;;  %v4592_v17 = vmul.f32 %v8115_v46, %v7381_v44 }
 0x5f4   :  { %4815 = vst [vmem:[#allocation8 + $0x28] sm:$0xff] %v4765_v51  ;;  %v4265_v42 = vmul.f32 %v8126_v63, %v4264_v31  ;;  %v4314_v5 = vsub.f32 1.5, %v4313_v0 }
 0x5f5   :  { %v4658_v25 = vpop.permute.xlu0 %4657  ;;  %v4309_v16 = vsel %vm4308_vm0, %v8104_v2, %v4305_v36  ;;  %v3883_v36 = vmul.f32 %v8869_v19, %v8869_v19 }
 0x5f6   :  { %v4768_v41 = vadd.f32 %v4658_v25, %v4593_v4  ;;  %v4769_v27 = vadd.f32 %v4658_v25, %v4594_v47  ;;  %v8194_v58 = vmul.f32 %v4309_v16, %v4079_v3  ;;  %v4269_v2 = vsel %vm4268_vm3, %v8126_v63, %v4265_v42 }
 0x5f7   :  { %v8207_v43 = vmul.f32 %v4269_v2, %v4075_v60  ;;  %v4315_v51 = vmul.f32 %v5781_v56, %v4314_v5  ;;  %v4294_v63 = vsub.f32 1.5, %v4293_v45  ;;  %v4591_v42 = vmul.f32 %v8115_v46, %v7032_v12 }
 0x5f8   :  { %4818 = vst [vmem:[#allocation8 + $0x40] sm:$0xff] %v4768_v41  ;;  %v4429_v57 = vmul.f32 %v8194_v58, %v8043_v50  ;;  %v4402_v50 = vld [vmem:[%s8403_s6 + $0x88] sm:$0xff] }
 0x5f9   :  { %4819 = vst [vmem:[#allocation8 + $0x48] sm:$0xff] %v4769_v27  ;;  %4717 = vperm.xlu0 %5701, %v4451_v54   ;;  %v4319_v61 = vsel %vm4318_vm6, %v5781_v56, %v4315_v51  ;;  %v4452_v49 = vsub.f32 %v4402_v50, %v8154_v7  ;;  %v4295_v11 = vmul.f32 %v5783_v9, %v4294_v63  ;;  %v4405_v56 = vld [vmem:[%s8403_s6 + $0xa0] sm:$0xff] }
 0x5fa   :  { %4522 = vperm.xlu2 %5699, %v8175_v18   ;;  %v4380_v34 = vmul.f32 %v4319_v61, %v4080_v38  ;;  %v4031_v7 = vmul.f32 %v8223_v29, %v8223_v29  ;;  %v4416_v38 = vmul.f32 %v8047_v30, %v7606_v48  ;;  %v8880_v48 = vld [vmem:[#allocation46_spill] sm:$0xff] }
 0x5fb   :  { %v4299_v22 = vsel %vm4298_vm9, %v5783_v9, %v4295_v11 }
 0x5fc   :  { %v8225_v20 = vmul.f32 %v4299_v22, %v4078_v53  ;;  %v4430_v23 = vmul.f32 %v4380_v34, %v8090_v14  ;;  %v3957_v14 = vadd.f32 %v3884_v1, %v3883_v36  ;;  %v4083_v22 = vld [vmem:[%s8402_s5 + $0xb8] sm:$0xff] }
 0x5fe   :  { %v4455_v33 = vsub.f32 %v4405_v56, %v4430_v23 }
 0x601   :  { %4547 = vperm.xlu0 %5701, %v4377_v28  }
 0x602   :  { %4487 = vperm.xlu1 %5700, %v7657_v40   ;;  %4707 = vperm.xlu2 %5699, %v4449_v37   ;;  %v4404_v40 = vld [vmem:[%s8403_s6 + $0x98] sm:$0xff] }
 0x603   :  { %v4454_v28 = vsub.f32 %v4404_v40, %v4429_v57 }
 0x609   :  { %4732 = vperm.xlu0 %5701, %v4454_v28  }
 0x60a   :  { %4537 = vperm.xlu2 %5699, %v8207_v43  }
 0x611   :  { %4562 = vperm.xlu0 %5701, %v4380_v34  }
 0x612   :  { %4722 = vperm.xlu2 %5699, %v4452_v49   ;;  %v4391_v49 = vld [vmem:[%s8403_s6 + $0x30] sm:$0xff] }
 0x613   :  { %v4441_v53 = vsub.f32 %v4391_v49, %v4416_v38 }
 0x619   :  { %v3950_v4 = vpop.xlane.xlu1 %3949 }
 0x61a   :  { %v4006_v47 = vmul.f32 0.0051020407, %v3950_v4  ;;  %4552 = vperm.xlu2 %5699, %v8225_v20  }
 0x61c   :  { %v4056_v35 = vsub.f32 %v4006_v47, %v4031_v7 }
 0x61e   :  { %v4106_v25 = vadd.f32 0.001, %v4056_v35  ;;  %v8881_v35 = vld [vmem:[#allocation21_spill] sm:$0xff] }
 0x620   :  { %5784 = vrsqrt.f32 %v4106_v25  ;;  %v3956_v15 = vpop.xlane.xlu0 %3955  ;;  %vm4326_vm11 = vweird.f32 %v4106_v25 }
 0x621   :  { %v4008_v0 = vmul.f32 0.0051020407, %v3956_v15 }
 0x622   :  { %4737 = vperm.xlu2 %5699, %v4455_v33  }
 0x625   :  { %v8234_v41 = vpop.xlane.xlu2 %3952 }
 0x626   :  { %v5785_v27 = vpop.eup %5784 }
 0x627   :  { %v4321_v54 = vmul.f32 %v5785_v27, %v4106_v25  ;;  %vm4327_vm10 = vweird.f32 %v5785_v27 }
 0x628   :  { %vm4328_vm12 = vmor %vm4326_vm11, %vm4327_vm10  ;;  %v8250_v51 = vpop.xlane.xlu0 %3833 }
 0x629   :  { %v4322_v24 = vmul.f32 %v5785_v27, %v4321_v54 }
 0x62b   :  { %v4323_v31 = vmul.f32 0.5, %v4322_v24  ;;  %v8882_v24 = vld [vmem:[#allocation31_spill] sm:$0xff] }
 0x62c   :  { %3958 = vadd.xlane.f32.xlu1 %v3957_v14  ;;  %v4419_v14 = vmul.f32 %v8112_v8, %v8882_v24 }
 0x62d   :  { %v4324_v9 = vsub.f32 1.5, %v4323_v31  ;;  %v3831_v3 = vpop.xlane.xlu2 %3830  ;;  %v4394_v31 = vld [vmem:[%s8403_s6 + $0x48] sm:$0xff] }
 0x62e   :  { %v3983_v16 = vmul.f32 0.0051020407, %v3831_v3  ;;  %v4444_v15 = vsub.f32 %v4394_v31, %v4419_v14  ;;  %v8889_v31 = vld [vmem:[#allocation34_spill] sm:$0xff] }
 0x62f   :  { %v4325_v37 = vmul.f32 %v5785_v27, %v4324_v9 }
 0x630   :  { %v4033_v60 = vmul.f32 %v3983_v16, %v3983_v16 }
 0x631   :  { %v4653_v2 = vpop.permute.xlu1 %4652  ;;  %v4329_v10 = vsel %vm4328_vm12, %v5785_v27, %v4325_v37  ;;  %v8884_v37 = vld [vmem:[#allocation23_spill] sm:$0xff] }
 0x632   :  { %v4058_v57 = vsub.f32 %v4008_v0, %v4033_v60  ;;  %v4766_v5 = vadd.f32 %v4653_v2, %v4591_v42  ;;  %v4767_v40 = vadd.f32 %v4653_v2, %v4592_v17  ;;  %v8247_v45 = vmul.f32 %v4329_v10, %v4081_v62  ;;  %v8885_v10 = vld [vmem:[#allocation84_spill] sm:$0xff] }
 0x634   :  { %v4108_v28 = vadd.f32 0.001, %v4058_v57  ;;  %4816 = vst [vmem:[#allocation8 + $0x30] sm:$0xff] %v4766_v5  ;;  %4567 = vperm.xlu2 %5699, %v8247_v45   ;;  %v4422_v57 = vmul.f32 %v8175_v18, %v8885_v10  ;;  %v4007_v5 = vmul.f32 0.0051020407, %v8234_v41 }
 0x635   :  { %4817 = vst [vmem:[#allocation8 + $0x38] sm:$0xff] %v4767_v40  ;;  %v8252_v12 = vpop.permute.xlu2 %4662 }
 0x636   :  { %5786 = vrsqrt.f32 %v4108_v28  ;;  %vm4346_vm14 = vweird.f32 %v4108_v28 }
 0x63b   :  { %v8254_v63 = vpop.permute.xlu0 %4672 }
 0x63c   :  { %v5787_v44 = vpop.eup %5786 }
 0x63d   :  { %v4341_v46 = vmul.f32 %v5787_v44, %v4108_v28  ;;  %v8256_v50 = vpop.permute.xlu2 %4492  ;;  %vm4347_vm13 = vweird.f32 %v5787_v44  ;;  %v4397_v28 = vld [vmem:[%s8403_s6 + $0x60] sm:$0xff] }
 0x63e   :  { %vm4348_vm15 = vmor %vm4346_vm14, %vm4347_vm13  ;;  %v4447_v38 = vsub.f32 %v4397_v28, %v4422_v57 }
 0x63f   :  { %v4342_v61 = vmul.f32 %v5787_v44, %v4341_v46 }
 0x641   :  { %v4343_v11 = vmul.f32 0.5, %v4342_v61 }
 0x643   :  { %v4344_v34 = vsub.f32 1.5, %v4343_v11  ;;  %v4503_v7 = vpop.permute.xlu0 %4502 }
 0x644   :  { %v4601_v30 = vmul.f32 %v4503_v7, %v8880_v48  ;;  %v4602_v23 = vmul.f32 %v4503_v7, %v8881_v35 }
 0x645   :  { %v4345_v4 = vmul.f32 %v5787_v44, %v4344_v34  ;;  %4667 = vperm.xlu1 %5700, %v4441_v53   ;;  %v4678_v47 = vpop.permute.xlu2 %4677  ;;  %v8887_v34 = vld [vmem:[#allocation74_spill] sm:$0xff] }
 0x646   :  { %v4776_v33 = vadd.f32 %v4678_v47, %v4601_v30  ;;  %v4777_v27 = vadd.f32 %v4678_v47, %v4602_v23  ;;  %v8888_v30 = vld [vmem:[#allocation36_spill] sm:$0xff] }
 0x647   :  { %v4349_v56 = vsel %vm4348_vm15, %v5787_v44, %v4345_v4  ;;  %v4425_v35 = vmul.f32 %v8207_v43, %v8888_v30  ;;  %v8890_v43 = vld [vmem:[#allocation65_spill] sm:$0xff]  ;;  %v3984_v30 = vmul.f32 0.0051020407, %v8250_v51 }
 0x648   :  { %v4383_v25 = vmul.f32 %v4349_v56, %v4083_v22  ;;  %4826 = vst [vmem:[#allocation8 + $0x80] sm:$0xff] %v4776_v33  ;;  %v4400_v56 = vld [vmem:[%s8403_s6 + $0x78] sm:$0xff]  ;;  %v8896_v51 = vld [vmem:[#allocation41_spill] sm:$0xff] }
 0x649   :  { %4827 = vst [vmem:[#allocation8 + $0x88] sm:$0xff] %v4777_v27  ;;  %v4450_v33 = vsub.f32 %v4400_v56, %v4425_v35  ;;  %v4082_v27 = vld [vmem:[%s8402_s5 + $0xb0] sm:$0xff] }
 0x64a   :  { %v8268_v1 = vmul.f32 %v4383_v25, %v3983_v16  ;;  %4577 = vperm.xlu0 %5701, %v4383_v25   ;;  %v8883_v16 = vld [vmem:[#allocation12_spill] sm:$0xff] }
 0x64b   :  { %v8270_v54 = vpop.permute.xlu0 %4687 }
 0x64d   :  { %4497 = vperm.xlu1 %5700, %v7945_v52   ;;  %v8273_v36 = vpop.permute.xlu2 %4507 }
 0x653   :  { %v4518_v9 = vpop.permute.xlu0 %4517 }
 0x654   :  { %v4607_v62 = vmul.f32 %v4518_v9, %v8883_v16  ;;  %v4608_v42 = vmul.f32 %v4518_v9, %v8884_v37 }
 0x655   :  { %4682 = vperm.xlu1 %5700, %v4444_v15   ;;  %v4693_v3 = vpop.permute.xlu2 %4692 }
 0x656   :  { %v4782_v17 = vadd.f32 %v4693_v3, %v4607_v62  ;;  %v4783_v0 = vadd.f32 %v4693_v3, %v4608_v42  ;;  %v8891_v62 = vld [vmem:[#allocation57_spill] sm:$0xff] }
 0x657   :  { %v8892_v42 = vld [vmem:[#allocation77_spill] sm:$0xff] }
 0x658   :  { %4832 = vst [vmem:[#allocation8 + $0xb0] sm:$0xff] %v4782_v17 }
 0x659   :  { %4833 = vst [vmem:[#allocation8 + $0xb8] sm:$0xff] %v4783_v0 }
 0x65b   :  { %v8282_v60 = vpop.permute.xlu0 %4702 }
 0x65c   :  { %v3828_v52 = vpop.xlane.xlu1 %3827 }
 0x65d   :  { %v3982_v8 = vmul.f32 0.0051020407, %v3828_v52  ;;  %4512 = vperm.xlu1 %5700, %v8003_v6   ;;  %v8285_v2 = vpop.permute.xlu2 %4522  ;;  %v8886_v6 = vld [vmem:[#allocation54_spill] sm:$0xff] }
 0x65f   :  { %v4032_v40 = vmul.f32 %v3982_v8, %v3982_v8 }
 0x661   :  { %v4057_v44 = vsub.f32 %v4007_v5, %v4032_v40  ;;  %v4407_v40 = vld [vmem:[%s8403_s6 + $0xb0] sm:$0xff] }
 0x663   :  { %v4107_v46 = vadd.f32 0.001, %v4057_v44  ;;  %v4533_v61 = vpop.permute.xlu0 %4532 }
 0x664   :  { %v4613_v11 = vmul.f32 %v4533_v61, %v8886_v6  ;;  %v4614_v53 = vmul.f32 %v4533_v61, %v8887_v34  ;;  %v8894_v34 = vld [vmem:[#allocation17_spill] sm:$0xff] }
 0x665   :  { %5788 = vrsqrt.f32 %v4107_v46  ;;  %4697 = vperm.xlu1 %5700, %v4447_v38   ;;  %v4708_v49 = vpop.permute.xlu2 %4707  ;;  %vm4336_vm1 = vweird.f32 %v4107_v46 }
 0x666   :  { %v4788_v22 = vadd.f32 %v4708_v49, %v4613_v11  ;;  %v4789_v18 = vadd.f32 %v4708_v49, %v4614_v53  ;;  %v4403_v49 = vld [vmem:[%s8403_s6 + $0x90] sm:$0xff] }
 0x668   :  { %4838 = vst [vmem:[#allocation8 + $0xe0] sm:$0xff] %v4788_v22  ;;  %v8895_v22 = vld [vmem:[#allocation83_spill] sm:$0xff] }
 0x669   :  { %4839 = vst [vmem:[#allocation8 + $0xe8] sm:$0xff] %v4789_v18 }
 0x66b   :  { %v5789_v41 = vpop.eup %5788  ;;  %v8295_v7 = vpop.permute.xlu0 %4717 }
 0x66c   :  { %v4331_v4 = vmul.f32 %v5789_v41, %v4107_v46  ;;  %vm4337_vm0 = vweird.f32 %v5789_v41 }
 0x66d   :  { %4527 = vperm.xlu1 %5700, %v8081_v55   ;;  %v8298_v47 = vpop.permute.xlu2 %4537  ;;  %vm4338_vm2 = vmor %vm4336_vm1, %vm4337_vm0 }
 0x66e   :  { %v4332_v48 = vmul.f32 %v5789_v41, %v4331_v4  ;;  %v4406_v4 = vld [vmem:[%s8403_s6 + $0xa8] sm:$0xff] }
 0x670   :  { %v4333_v23 = vmul.f32 0.5, %v4332_v48 }
 0x672   :  { %v4334_v25 = vsub.f32 1.5, %v4333_v23  ;;  %v4034_v23 = vmul.f32 %v3984_v30, %v3984_v30 }
 0x673   :  { %v4548_v14 = vpop.permute.xlu0 %4547 }
 0x674   :  { %v4335_v24 = vmul.f32 %v5789_v41, %v4334_v25  ;;  %v4488_v55 = vpop.permute.xlu1 %4487  ;;  %v4619_v37 = vmul.f32 %v4548_v14, %v8891_v62  ;;  %v4620_v17 = vmul.f32 %v4548_v14, %v8892_v42  ;;  %v4409_v42 = vld [vmem:[%s8403_s6 + $0xc0] sm:$0xff] }
 0x675   :  { %v4595_v15 = vmul.f32 %v4488_v55, %v8889_v31  ;;  %v4596_v9 = vmul.f32 %v4488_v55, %v8890_v43  ;;  %4712 = vperm.xlu1 %5700, %v4450_v33   ;;  %v4723_v3 = vpop.permute.xlu2 %4722  ;;  %v4597_v31 = vmul.f32 %v8256_v50, %v8896_v51 }
 0x676   :  { %v4339_v16 = vsel %vm4338_vm2, %v5789_v41, %v4335_v24  ;;  %v4794_v57 = vadd.f32 %v4723_v3, %v4619_v37  ;;  %v4795_v5 = vadd.f32 %v4723_v3, %v4620_v17 }
 0x677   :  { %v4382_v0 = vmul.f32 %v4339_v16, %v4082_v27  ;;  %v4770_v52 = vadd.f32 %v8252_v12, %v4595_v15  ;;  %v4771_v10 = vadd.f32 %v8252_v12, %v4596_v9  ;;  %v8893_v12 = vld [vmem:[#allocation88_spill] sm:$0xff]  ;;  %v8897_v15 = vld [vmem:[#allocation66_spill] sm:$0xff] }
 0x678   :  { %4844 = vst [vmem:[#allocation8 + $0x110] sm:$0xff] %v4794_v57  ;;  %v4428_v61 = vmul.f32 %v8225_v20, %v8893_v12  ;;  %v4431_v20 = vmul.f32 %v8247_v45, %v8223_v29  ;;  %v4084_v45 = vld [vmem:[%s8402_s5 + $0xc0] sm:$0xff]  ;;  %v4598_v43 = vmul.f32 %v8256_v50, %v8897_v15 }
 0x679   :  { %v4432_v28 = vmul.f32 %v4382_v0, %v3982_v8  ;;  %4820 = vst [vmem:[#allocation8 + $0x50] sm:$0xff] %v4770_v52  ;;  %v4408_v52 = vld [vmem:[%s8403_s6 + $0xb8] sm:$0xff]  ;;  %s5905_s6 = smov [#allocation8]  }
 0x67a   :  { %4821 = vst [vmem:[#allocation8 + $0x58] sm:$0xff] %v4771_v10  ;;  %v4453_v8 = vsub.f32 %v4403_v49, %v4428_v61  ;;  %v4456_v48 = vsub.f32 %v4406_v4, %v4431_v20  ;;  %v8898_v10 = vld [vmem:[#allocation42_spill] sm:$0xff]  ;;  %v8900_v61 = vld [vmem:[#allocation49_spill] sm:$0xff]  ;;  %s4864_s16 = sshll.u32 %s5905_s6, 4  ;;  %s4865_s16 = int_to_ptr.vmem [resolvable:$true] %s4864_s16 }
 0x67b   :  { %v4457_v44 = vsub.f32 %v4407_v40, %v4432_v28  ;;  %4845 = vst [vmem:[#allocation8 + $0x118] sm:$0xff] %v4795_v5  ;;  %v8317_v46 = vpop.permute.xlu0 %4732  ;;  %v8899_v5 = vld [vmem:[#allocation20_spill] sm:$0xff]  ;;  %v4458_v28 = vsub.f32 %v4408_v52, %v8268_v1  ;;  %v4603_v49 = vmul.f32 %v8273_v36, %v8900_v61  ;;  %v8902_v1 = vld [vmem:[#allocation50_spill] sm:$0xff]  ;;  %v8904_v4 = vld [vmem:[#allocation13_spill] sm:$0xff] }
 0x67d   :  { %4542 = vperm.xlu1 %5700, %v8148_v26   ;;  %v8320_v38 = vpop.permute.xlu2 %4552  ;;  %4747 = vperm.xlu0 %5701, %v4457_v44  }
 0x683   :  { %v4563_v6 = vpop.permute.xlu0 %4562 }
 0x684   :  { %v4625_v53 = vmul.f32 %v4563_v6, %v8894_v34  ;;  %v4626_v18 = vmul.f32 %v4563_v6, %v8895_v22 }
 0x685   :  { %4727 = vperm.xlu1 %5700, %v4453_v8   ;;  %v4738_v11 = vpop.permute.xlu2 %4737  ;;  %v8901_v8 = vld [vmem:[#allocation69_spill] sm:$0xff] }
 0x686   :  { %v4800_v41 = vadd.f32 %v4738_v11, %v4625_v53  ;;  %v4801_v26 = vadd.f32 %v4738_v11, %v4626_v18  ;;  %v4604_v6 = vmul.f32 %v8273_v36, %v8901_v8  ;;  %v8905_v36 = vld [vmem:[#allocation24_spill] sm:$0xff] }
 0x688   :  { %4850 = vst [vmem:[#allocation8 + $0x140] sm:$0xff] %v4800_v41  ;;  %v8903_v41 = vld [vmem:[#allocation70_spill] sm:$0xff] }
 0x689   :  { %4851 = vst [vmem:[#allocation8 + $0x148] sm:$0xff] %v4801_v26 }
 0x68d   :  { %4557 = vperm.xlu1 %5700, %v8194_v58  }
 0x68e   :  { %v4568_v61 = vpop.permute.xlu2 %4567 }
 0x695   :  { %4742 = vperm.xlu1 %5700, %v4456_v48   ;;  %v4609_v48 = vmul.f32 %v8285_v2, %v8904_v4 }
 0x69d   :  { %4572 = vperm.xlu1 %5700, %v4382_v0  }
 0x69f   :  { %v3959_v35 = vpop.xlane.xlu1 %3958 }
 0x6a0   :  { %v4009_v56 = vmul.f32 0.0051020407, %v3959_v35 }
 0x6a2   :  { %v4059_v25 = vsub.f32 %v4009_v56, %v4034_v23 }
 0x6a4   :  { %v4109_v33 = vadd.f32 0.001, %v4059_v25 }
 0x6a6   :  { %5790 = vrsqrt.f32 %v4109_v33  ;;  %vm4356_vm4 = vweird.f32 %v4109_v33 }
 0x6ac   :  { %v5791_v27 = vpop.eup %5790 }
 0x6ad   :  { %v4351_v58 = vmul.f32 %v5791_v27, %v4109_v33  ;;  %vm4357_vm3 = vweird.f32 %v5791_v27  ;;  %v8906_v33 = vld [vmem:[#allocation53_spill] sm:$0xff] }
 0x6ae   :  { %vm4358_vm5 = vmor %vm4356_vm4, %vm4357_vm3 }
 0x6af   :  { %v4352_v24 = vmul.f32 %v5791_v27, %v4351_v58  ;;  %v8907_v58 = vld [vmem:[#allocation73_spill] sm:$0xff] }
 0x6b1   :  { %v4353_v55 = vmul.f32 0.5, %v4352_v24 }
 0x6b3   :  { %v4354_v29 = vsub.f32 1.5, %v4353_v55 }
 0x6b5   :  { %v4355_v14 = vmul.f32 %v5791_v27, %v4354_v29  ;;  %v8908_v29 = vld [vmem:[#allocation14_spill] sm:$0xff] }
 0x6b7   :  { %v4668_v9 = vpop.permute.xlu1 %4667  ;;  %v4359_v3 = vsel %vm4358_vm5, %v5791_v27, %v4355_v14 }
 0x6b8   :  { %v4772_v16 = vadd.f32 %v4668_v9, %v4597_v31  ;;  %v4773_v62 = vadd.f32 %v4668_v9, %v4598_v43  ;;  %v4384_v37 = vmul.f32 %v4359_v3, %v4084_v45  ;;  %v4615_v45 = vmul.f32 %v8298_v47, %v8908_v29  ;;  %v8910_v9 = vld [vmem:[#allocation15_spill] sm:$0xff] }
 0x6ba   :  { %4822 = vst [vmem:[#allocation8 + $0x60] sm:$0xff] %v4772_v16  ;;  %4582 = vperm.xlu2 %5699, %v4384_v37   ;;  %v4434_v17 = vmul.f32 %v4384_v37, %v3984_v30  ;;  %v4610_v30 = vmul.f32 %v8285_v2, %v8905_v36  ;;  %v8909_v2 = vld [vmem:[#allocation27_spill] sm:$0xff]  ;;  %v8911_v16 = vld [vmem:[#allocation28_spill] sm:$0xff] }
 0x6bb   :  { %4823 = vst [vmem:[#allocation8 + $0x68] sm:$0xff] %v4773_v62  ;;  %v4616_v14 = vmul.f32 %v8298_v47, %v8909_v2  ;;  %v8913_v47 = vld [vmem:[#allocation78_spill] sm:$0xff] }
 0x6bc   :  { %v4459_v0 = vsub.f32 %v4409_v42, %v4434_v17  ;;  %v8912_v42 = vld [vmem:[#allocation58_spill] sm:$0xff] }
 0x6bd   :  { %v4621_v17 = vmul.f32 %v8320_v38, %v8912_v42 }
 0x6be   :  { %4757 = vperm.xlu1 %5700, %v4459_v0   ;;  %v4622_v0 = vmul.f32 %v8320_v38, %v8913_v47  ;;  %v8917_v38 = vld [vmem:[#allocation35_spill] sm:$0xff] }
 0x6bf   :  { %v4498_v50 = vpop.permute.xlu1 %4497 }
 0x6c0   :  { %v4599_v57 = vmul.f32 %v4498_v50, %v8898_v10  ;;  %v4600_v40 = vmul.f32 %v4498_v50, %v8899_v5  ;;  %v8914_v5 = vld [vmem:[#allocation16_spill] sm:$0xff] }
 0x6c2   :  { %v4774_v44 = vadd.f32 %v8254_v63, %v4599_v57  ;;  %v4775_v12 = vadd.f32 %v8254_v63, %v4600_v40  ;;  %4752 = vperm.xlu2 %5699, %v4458_v28   ;;  %v8915_v28 = vld [vmem:[#allocation32_spill] sm:$0xff] }
 0x6c4   :  { %4824 = vst [vmem:[#allocation8 + $0x70] sm:$0xff] %v4774_v44 }
 0x6c5   :  { %4825 = vst [vmem:[#allocation8 + $0x78] sm:$0xff] %v4775_v12 }
 0x6c7   :  { %v4683_v11 = vpop.permute.xlu1 %4682 }
 0x6c8   :  { %v4778_v34 = vadd.f32 %v4683_v11, %v4603_v49  ;;  %v4779_v53 = vadd.f32 %v4683_v11, %v4604_v6  ;;  %v8916_v49 = vld [vmem:[#allocation61_spill] sm:$0xff]  ;;  %v4628_v6 = vmul.f32 %v4568_v61, %v8917_v38 }
 0x6c9   :  { %v4627_v8 = vmul.f32 %v4568_v61, %v8916_v49 }
 0x6ca   :  { %4828 = vst [vmem:[#allocation8 + $0x90] sm:$0xff] %v4778_v34 }
 0x6cb   :  { %4829 = vst [vmem:[#allocation8 + $0x98] sm:$0xff] %v4779_v53 }
 0x6cf   :  { %v4513_v22 = vpop.permute.xlu1 %4512 }
 0x6d0   :  { %v4605_v18 = vmul.f32 %v4513_v22, %v8902_v1  ;;  %v4606_v26 = vmul.f32 %v4513_v22, %v8903_v41  ;;  %v4578_v22 = vpop.permute.xlu0 %4577 }
 0x6d1   :  { %v4631_v4 = vmul.f32 %v4578_v22, %v8866_v59 }
 0x6d2   :  { %v4780_v63 = vadd.f32 %v8270_v54, %v4605_v18  ;;  %v4781_v20 = vadd.f32 %v8270_v54, %v4606_v26 }
 0x6d4   :  { %4830 = vst [vmem:[#allocation8 + $0xa0] sm:$0xff] %v4780_v63 }
 0x6d5   :  { %4831 = vst [vmem:[#allocation8 + $0xa8] sm:$0xff] %v4781_v20 }
 0x6d7   :  { %v4698_v35 = vpop.permute.xlu1 %4697 }
 0x6d8   :  { %v4784_v23 = vadd.f32 %v4698_v35, %v4609_v48  ;;  %v4785_v56 = vadd.f32 %v4698_v35, %v4610_v30  ;;  %v4632_v48 = vmul.f32 %v4578_v22, %v7631_v13 }
 0x6da   :  { %4834 = vst [vmem:[#allocation8 + $0xc0] sm:$0xff] %v4784_v23 }
 0x6db   :  { %4835 = vst [vmem:[#allocation8 + $0xc8] sm:$0xff] %v4785_v56 }
 0x6df   :  { %v4528_v25 = vpop.permute.xlu1 %4527 }
 0x6e0   :  { %v4611_v27 = vmul.f32 %v4528_v25, %v8906_v33  ;;  %v4612_v24 = vmul.f32 %v4528_v25, %v8907_v58 }
 0x6e2   :  { %v4786_v54 = vadd.f32 %v8282_v60, %v4611_v27  ;;  %v4787_v55 = vadd.f32 %v8282_v60, %v4612_v24 }
 0x6e4   :  { %4836 = vst [vmem:[#allocation8 + $0xd0] sm:$0xff] %v4786_v54 }
 0x6e5   :  { %4837 = vst [vmem:[#allocation8 + $0xd8] sm:$0xff] %v4787_v55 }
 0x6e7   :  { %v4713_v51 = vpop.permute.xlu1 %4712 }
 0x6e8   :  { %v4790_v31 = vadd.f32 %v4713_v51, %v4615_v45  ;;  %v4791_v15 = vadd.f32 %v4713_v51, %v4616_v14 }
 0x6ea   :  { %4840 = vst [vmem:[#allocation8 + $0xf0] sm:$0xff] %v4790_v31 }
 0x6eb   :  { %4841 = vst [vmem:[#allocation8 + $0xf8] sm:$0xff] %v4791_v15 }
 0x6ef   :  { %v4543_v43 = vpop.permute.xlu1 %4542  ;;  %v4748_v26 = vpop.permute.xlu0 %4747 }
 0x6f0   :  { %v4617_v3 = vmul.f32 %v4543_v43, %v8910_v9  ;;  %v4618_v62 = vmul.f32 %v4543_v43, %v8911_v16 }
 0x6f2   :  { %v4792_v60 = vadd.f32 %v8295_v7, %v4617_v3  ;;  %v4793_v37 = vadd.f32 %v8295_v7, %v4618_v62 }
 0x6f4   :  { %4842 = vst [vmem:[#allocation8 + $0x100] sm:$0xff] %v4792_v60 }
 0x6f5   :  { %4843 = vst [vmem:[#allocation8 + $0x108] sm:$0xff] %v4793_v37 }
 0x6f7   :  { %v4728_v52 = vpop.permute.xlu1 %4727 }
 0x6f8   :  { %v4796_v50 = vadd.f32 %v4728_v52, %v4621_v17  ;;  %v4797_v10 = vadd.f32 %v4728_v52, %v4622_v0 }
 0x6fa   :  { %4846 = vst [vmem:[#allocation8 + $0x120] sm:$0xff] %v4796_v50 }
 0x6fb   :  { %4847 = vst [vmem:[#allocation8 + $0x128] sm:$0xff] %v4797_v10 }
 0x6ff   :  { %v4558_v57 = vpop.permute.xlu1 %4557 }
 0x700   :  { %v4623_v40 = vmul.f32 %v4558_v57, %v8914_v5  ;;  %v4624_v44 = vmul.f32 %v4558_v57, %v8915_v28 }
 0x702   :  { %v4798_v7 = vadd.f32 %v8317_v46, %v4623_v40  ;;  %v4799_v12 = vadd.f32 %v8317_v46, %v4624_v44 }
 0x704   :  { %4848 = vst [vmem:[#allocation8 + $0x130] sm:$0xff] %v4798_v7 }
 0x705   :  { %4849 = vst [vmem:[#allocation8 + $0x138] sm:$0xff] %v4799_v12 }
 0x707   :  { %v4743_v11 = vpop.permute.xlu1 %4742 }
 0x708   :  { %v4802_v34 = vadd.f32 %v4743_v11, %v4627_v8  ;;  %v4803_v53 = vadd.f32 %v4743_v11, %v4628_v6 }
 0x70a   :  { %4852 = vst [vmem:[#allocation8 + $0x150] sm:$0xff] %v4802_v34 }
 0x70b   :  { %4853 = vst [vmem:[#allocation8 + $0x158] sm:$0xff] %v4803_v53 }
 0x70f   :  { %v4573_v1 = vpop.permute.xlu1 %4572 }
 0x710   :  { %v4629_v18 = vmul.f32 %v4573_v1, %v8867_v21  ;;  %v4630_v41 = vmul.f32 %v4573_v1, %v7614_v39 }
 0x712   :  { %v4804_v46 = vadd.f32 %v4748_v26, %v4629_v18  ;;  %v4805_v63 = vadd.f32 %v4748_v26, %v4630_v41 }
 0x714   :  { %4854 = vst [vmem:[#allocation8 + $0x160] sm:$0xff] %v4804_v46  ;;  %v4583_v20 = vpop.permute.xlu2 %4582 }
 0x715   :  { %4855 = vst [vmem:[#allocation8 + $0x168] sm:$0xff] %v4805_v63  ;;  %v4633_v39 = vmul.f32 %v4583_v20, %v8869_v19  ;;  %v4634_v21 = vmul.f32 %v4583_v20, %v7652_v32 }
 0x71c   :  { %v4753_v36 = vpop.permute.xlu2 %4752 }
 0x71d   :  { %v4806_v30 = vadd.f32 %v4753_v36, %v4631_v4  ;;  %v4807_v35 = vadd.f32 %v4753_v36, %v4632_v48 }
 0x71f   :  { %4856 = vst [vmem:[#allocation8 + $0x170] sm:$0xff] %v4806_v30 }
 0x720   :  { %4857 = vst [vmem:[#allocation8 + $0x178] sm:$0xff] %v4807_v35 }
 0x730   :  { %v4758_v23 = vpop.permute.xlu1 %4757 }
 0x731   :  { %v4808_v56 = vadd.f32 %v4758_v23, %v4633_v39  ;;  %v4809_v59 = vadd.f32 %v4758_v23, %v4634_v21 }
 0x733   :  { %4858 = vst [vmem:[#allocation8 + $0x180] sm:$0xff] %v4808_v56 }
 0x734   :  { %4859 = vst [vmem:[#allocation8 + $0x188] sm:$0xff] %v4809_v59 }
 0x735   :  { %4872 = dma.vmem_to_hbm [thread:$0]  %s4865_s16, 6400, %s4867_s19, [#allocation4], %s5906_s1, %s5906_s1, %s5907_s4  }
 0x736   :  { %5893 = dma.done.wait [#allocation4], 6400  }
 0x737   :  { %5894 = vsyncadd [#allocation4], 4294960896 }
 0x738   :  { %4877 = vsyncpa [#allocation3], 1 }
 0x739   :  { %4878 = vsyncpa [#allocation6], 1 }
 0x73a   :  { %4879 = vsyncpa [#allocation4], 1 }

</bundles_post_ra>
